<compile_context>
chip_gen: v5e
topology: v5e:2x2
jax: 0.10.0
libtpu: 0.0.40
codegen_flags: <defaults>
</compile_context>

<pallas_src>
import functools

import numpy as np
import jax
import jax.numpy as jnp
from jax import lax
from jax.experimental import pallas as pl
from jax.experimental.pallas import tpu as pltpu

C1 = 0.01 ** 2
C2 = 0.03 ** 2


# ---------------------------------------------------------------------------
# Deterministic window construction (matches gaussian / create_window_3D).
# ---------------------------------------------------------------------------
def gaussian_1d_np(window_size: int, sigma: float = 1.5) -> np.ndarray:
    xs = np.arange(window_size, dtype=np.float64)
    g = np.exp(-((xs - window_size // 2) ** 2) / (2.0 * sigma ** 2))
    return (g / g.sum()).astype(np.float32)


def band_matrix_np(n: int, g: np.ndarray) -> np.ndarray:
    """Banded matrix B with B[a, b] = g[b - a + pad] for |a - b| <= pad.

    Left-multiplying (H pass) or right-multiplying (W pass) a plane by this
    matrix is exactly the zero-padded 1-D correlation with taps `g` (g is
    symmetric, so the same construction serves both sides).
    """
    ws = len(g)
    pad = ws // 2
    m = np.zeros((n, n), dtype=np.float32)
    idx = np.arange(n)
    for k in range(ws):
        off = k - pad
        a = idx[(idx + off >= 0) & (idx + off < n)]
        m[a, a + off] = g[k]
    return m


# ---------------------------------------------------------------------------
# Pallas kernel: one (n,c) volume, one depth slab of TD planes per grid step.
#   bh_ref (H,H), bw_ref (W,W) : banded Gaussian matrices (MXU blur)
#   xc/yc (1,TD,H,W)           : centre depth slab of img1 / img2
#   xu/yu, xd/yd (1,1,H,W)     : clamped halo planes just above / below slab
#   o_ref (1,TD,H,W)           : SSIM map slab
# ---------------------------------------------------------------------------
def _ssim3d_kernel(bh_ref, bw_ref, xc_ref, xu_ref, xd_ref, yc_ref, yu_ref,
                   yd_ref, o_ref, *, g0, g1, td, n_slabs):
    t = pl.program_id(1)

    bh = bh_ref[...]
    bw = bw_ref[...]

    def blur_hw(f):
        # Both matmuls are in the MXU's natural layout (lhs contracts over its
        # lane dim, rhs over its sublane dim) -> no transposes inserted.
        f = jnp.dot(bh, f, preferred_element_type=jnp.float32,
                    precision=lax.Precision.HIGHEST)
        f = jnp.dot(f, bw, preferred_element_type=jnp.float32,
                    precision=lax.Precision.HIGHEST)
        return f

    def planes(j):
        # j in [-1, td]; -1 / td are the single-plane halo views.  At the
        # global depth boundary they are clamped copies of a valid plane, but
        # their z-tap weight is forced to 0 there, so clamped data never leaks.
        if j < 0:
            return xu_ref[0, 0], yu_ref[0, 0]
        if j >= td:
            return xd_ref[0, 0], yd_ref[0, 0]
        return xc_ref[0, j], yc_ref[0, j]

    # Products hoisted: each contributing plane's x*x / y*y / x*y is formed
    # once per slab, directly from the input refs (no full x/y block binds).
    fields = []
    for j in range(-1, td + 1):
        xj, yj = planes(j)
        fields.append((xj, yj, xj * xj, yj * yj, xj * yj))

    for p in range(td):
        up, ce, dn = fields[p], fields[p + 1], fields[p + 2]

        if 0 < p < td - 1:
            # Interior plane: symmetric 3-tap (g[0] == g[2]) -> 2 muls + 2 adds.
            zb = [g1 * ce[i] + g0 * (up[i] + dn[i]) for i in range(5)]
        else:
            # First/last plane of the slab: zero the missing-neighbour tap when
            # this slab sits at the global depth boundary (cheap scalar select).
            w_up = g0 if p > 0 else jnp.where(t == 0, 0.0, g0)
            w_dn = g0 if p < td - 1 else jnp.where(t == n_slabs - 1, 0.0, g0)
            zb = [g1 * ce[i] + w_up * up[i] + w_dn * dn[i] for i in range(5)]

        mu1 = blur_hw(zb[0])
        mu2 = blur_hw(zb[1])
        e11 = blur_hw(zb[2])
        e22 = blur_hw(zb[3])
        e12 = blur_hw(zb[4])

        mu1_sq = mu1 * mu1
        mu2_sq = mu2 * mu2
        mu1_mu2 = mu1 * mu2
        sigma1_sq = e11 - mu1_sq
        sigma2_sq = e22 - mu2_sq
        sigma12 = e12 - mu1_mu2

        num = (2.0 * mu1_mu2 + C1) * (2.0 * sigma12 + C2)
        den = (mu1_sq + mu2_sq + C1) * (sigma1_sq + sigma2_sq + C2)
        # EUP approx reciprocal (idle bundle slot) + 2 Newton steps -> ~f32.
        r = pl.reciprocal(den, approx=True)
        r = r * (2.0 - den * r)
        r = r * (2.0 - den * r)
        o_ref[0, p] = (num * r).astype(o_ref.dtype)


# ---------------------------------------------------------------------------
# Depth-slab size selection from a per-generation VMEM budget.
# ---------------------------------------------------------------------------
def _pick_depth_slab(nc, d, h, w, budget_bytes, max_unroll=16):
    plane = 4 * h * w

    def est(td):
        # double-buffered x/y centre blocks (4*td planes) + output (2*td)
        # + halo planes (8) + memoised per-plane fields (5*(td+2))
        # + blur/formula temporaries (~12) + band matrices (double-buffered).
        return plane * (6 * td + 5 * (td + 2) + 20) + 8 * (h * h + w * w)

    divisors = [x for x in range(1, d + 1) if d % x == 0]
    fitting = [x for x in divisors
               if x <= max_unroll and est(x) <= budget_bytes] or [1]
    total = lambda td: nc * (d // td)
    even_multi = [x for x in fitting if total(x) >= 2 and total(x) % 2 == 0]
    multi = [x for x in fitting if total(x) >= 2]
    return max(even_multi or multi or fitting)


# ---------------------------------------------------------------------------
# Wrapper == SSIM3D_old(window_size=3, size_average=True, distance=0).forward
# ---------------------------------------------------------------------------
def ssim3d_old_forward(img1, img2, window_size: int = 3, sigma: float = 1.5):
    if img1.ndim == 4:
        img1 = img1[None]
    if img2.ndim == 4:
        img2 = img2[None]
    img1 = img1.astype(jnp.float32)
    img2 = img2.astype(jnp.float32)
    assert img1.shape == img2.shape
    if window_size != 3:
        # TODO(synk): depth-halo handling specialised to the module default
        # window_size=3 (one halo plane per side); generalise if ever needed.
        raise NotImplementedError("ssim3d_old_forward supports window_size=3 only")

    N, C, D, H, W = img1.shape
    NC = N * C
    g = gaussian_1d_np(window_size, sigma)
    bh = jnp.asarray(band_matrix_np(H, g))        # (H, H)
    bw = jnp.asarray(band_matrix_np(W, g))        # (W, W)

    x = img1.reshape(NC, D, H, W)
    y = img2.reshape(NC, D, H, W)

    # Per-generation VMEM budget (v5e/v6e: 128 MiB, v7x: 64 MiB physical).
    try:
        vmem_cap = int(getattr(pltpu.get_tpu_info(), "vmem_capacity_bytes",
                               64 * 1024 * 1024))
    except Exception:
        vmem_cap = 64 * 1024 * 1024               # v7x-safe fallback
    vmem_limit = min(int(vmem_cap * 0.75), 112 * 1024 * 1024)
    td = _pick_depth_slab(NC, D, H, W, budget_bytes=int(vmem_limit * 0.7))
    n_slabs = D // td

    kernel = functools.partial(_ssim3d_kernel, g0=float(g[0]), g1=float(g[1]),
                               td=td, n_slabs=n_slabs)

    def centre_map(i, t):
        return (i, t, 0, 0)

    def up_map(i, t):        # plane just above the slab (clamped at d == 0)
        return (i, jnp.maximum(t * td - 1, 0), 0, 0)

    def dn_map(i, t):        # plane just below the slab (clamped at d == D-1)
        return (i, jnp.minimum((t + 1) * td, D - 1), 0, 0)

    out = pl.pallas_call(
        kernel,
        out_shape=jax.ShapeDtypeStruct((NC, D, H, W), jnp.float32),
        grid=(NC, n_slabs),
        in_specs=[
            pl.BlockSpec((H, H), lambda i, t: (0, 0)),
            pl.BlockSpec((W, W), lambda i, t: (0, 0)),
            pl.BlockSpec((1, td, H, W), centre_map),
            pl.BlockSpec((1, 1, H, W), up_map),
            pl.BlockSpec((1, 1, H, W), dn_map),
            pl.BlockSpec((1, td, H, W), centre_map),
            pl.BlockSpec((1, 1, H, W), up_map),
            pl.BlockSpec((1, 1, H, W), dn_map),
        ],
        out_specs=pl.BlockSpec((1, td, H, W), centre_map),
        compiler_params=pltpu.CompilerParams(
            dimension_semantics=("parallel", "parallel"),
            vmem_limit_bytes=vmem_limit,
        ),
    )(bh, bw, x, x, x, y, y, y)

    ssim_map = out.reshape(N, C, D, H, W)
    if N == 1:   # torch .squeeze(0) only removes a size-1 leading dim
        ssim_map = jnp.squeeze(ssim_map, axis=0)
    return ssim_map


# ---------------------------------------------------------------------------
# Pure-JAX reference (direct 3-D depthwise conv) for correctness checking.
# ---------------------------------------------------------------------------
def _ref_ssim3d(img1, img2, window_size: int = 3, sigma: float = 1.5):
    img1 = img1.astype(jnp.float32)
    img2 = img2.astype(jnp.float32)
    N, C, D, H, W = img1.shape
    pad = window_size // 2
    g = gaussian_1d_np(window_size, sigma)
    w3 = jnp.asarray(np.einsum("i,j,k->ijk", g, g, g).astype(np.float32))
    kern = jnp.broadcast_to(w3, (C, 1, window_size, window_size, window_size))

    def conv(v):
        return lax.conv_general_dilated(
            v, kern, window_strides=(1, 1, 1),
            padding=[(pad, pad)] * 3,
            dimension_numbers=("NCDHW", "OIDHW", "NCDHW"),
            feature_group_count=C,
            precision=lax.Precision.HIGHEST,
        )

    mu1, mu2 = conv(img1), conv(img2)
    mu1_sq, mu2_sq, mu1_mu2 = mu1 * mu1, mu2 * mu2, mu1 * mu2
    sigma1_sq = conv(img1 * img1) - mu1_sq
    sigma2_sq = conv(img2 * img2) - mu2_sq
    sigma12 = conv(img1 * img2) - mu1_mu2
    ssim_map = ((2 * mu1_mu2 + C1) * (2 * sigma12 + C2)) / (
        (mu1_sq + mu2_sq + C1) * (sigma1_sq + sigma2_sq + C2)
    )
    return jnp.squeeze(ssim_map, axis=0) if N == 1 else ssim_map


if __name__ == "__main__":
    key = jax.random.PRNGKey(0)
    k1, k2 = jax.random.split(key)
    # small NCDHW volumes
    img1 = jax.random.uniform(k1, (2, 2, 8, 16, 16), dtype=jnp.float32)
    img2 = jax.random.uniform(k2, (2, 2, 8, 16, 16), dtype=jnp.float32)

    out = jax.block_until_ready(ssim3d_old_forward(img1, img2))
    ref = jax.block_until_ready(_ref_ssim3d(img1, img2))

    assert out.shape == ref.shape, (out.shape, ref.shape)
    assert np.allclose(np.asarray(out), np.asarray(ref), atol=1e-5, rtol=1e-5)

    print("KERNEL_OK")
</pallas_src>

<mosaic_0001>
module attributes {stable_mosaic.version = 11 : i64} {
  func.func @_ssim3d_kernel(%arg0: i32, %arg1: i32, %arg2: memref<16x16xf32, #tpu.memory_space<vmem>>, %arg3: memref<16x16xf32, #tpu.memory_space<vmem>>, %arg4: memref<1x8x16x16xf32, #tpu.memory_space<vmem>>, %arg5: memref<1x1x16x16xf32, #tpu.memory_space<vmem>>, %arg6: memref<1x1x16x16xf32, #tpu.memory_space<vmem>>, %arg7: memref<1x8x16x16xf32, #tpu.memory_space<vmem>>, %arg8: memref<1x1x16x16xf32, #tpu.memory_space<vmem>>, %arg9: memref<1x1x16x16xf32, #tpu.memory_space<vmem>>, %arg10: memref<1x8x16x16xf32, #tpu.memory_space<vmem>>) attributes {dimension_semantics = [#tpu.dimension_semantics<parallel>, #tpu.dimension_semantics<parallel>], iteration_bounds = array<i64: 4, 1>, scalar_prefetch = 0 : i64, scratch_operands = 0 : i64, tpu.core_type = #tpu.core_type<tc>, window_params = [{pipeline_mode = #tpu.pipeline_mode<synchronous>, transform_indices = @transform_0, window_bounds = array<i64: 16, 16>}, {pipeline_mode = #tpu.pipeline_mode<synchronous>, transform_indices = @transform_1, window_bounds = array<i64: 16, 16>}, {transform_indices = @transform_2, window_bounds = array<i64: 1, 8, 16, 16>}, {transform_indices = @transform_3, window_bounds = array<i64: 1, 1, 16, 16>}, {transform_indices = @transform_4, window_bounds = array<i64: 1, 1, 16, 16>}, {transform_indices = @transform_5, window_bounds = array<i64: 1, 8, 16, 16>}, {transform_indices = @transform_6, window_bounds = array<i64: 1, 1, 16, 16>}, {transform_indices = @transform_7, window_bounds = array<i64: 1, 1, 16, 16>}, {transform_indices = @transform_8, window_bounds = array<i64: 1, 8, 16, 16>}]} {
    %c0 = arith.constant 0 : index
    %c0_0 = arith.constant 0 : index
    %0 = vector.load %arg2[%c0, %c0_0] : memref<16x16xf32, #tpu.memory_space<vmem>>, vector<16x16xf32>
    %c0_1 = arith.constant 0 : index
    %c0_2 = arith.constant 0 : index
    %1 = vector.load %arg3[%c0_1, %c0_2] : memref<16x16xf32, #tpu.memory_space<vmem>>, vector<16x16xf32>
    %c0_3 = arith.constant 0 : index
    %c0_4 = arith.constant 0 : index
    %c0_5 = arith.constant 0 : index
    %c0_6 = arith.constant 0 : index
    %2 = vector.load %arg5[%c0_3, %c0_4, %c0_5, %c0_6] : memref<1x1x16x16xf32, #tpu.memory_space<vmem>>, vector<1x1x16x16xf32>
    %3 = vector.shape_cast %2 : vector<1x1x16x16xf32> to vector<16x16xf32>
    %c0_7 = arith.constant 0 : index
    %c0_8 = arith.constant 0 : index
    %c0_9 = arith.constant 0 : index
    %c0_10 = arith.constant 0 : index
    %4 = vector.load %arg8[%c0_7, %c0_8, %c0_9, %c0_10] : memref<1x1x16x16xf32, #tpu.memory_space<vmem>>, vector<1x1x16x16xf32>
    %5 = vector.shape_cast %4 : vector<1x1x16x16xf32> to vector<16x16xf32>
    %6 = arith.mulf %3, %3 : vector<16x16xf32>
    %7 = arith.mulf %5, %5 : vector<16x16xf32>
    %8 = arith.mulf %3, %5 : vector<16x16xf32>
    %c0_11 = arith.constant 0 : index
    %c0_12 = arith.constant 0 : index
    %c0_13 = arith.constant 0 : index
    %c0_14 = arith.constant 0 : index
    %9 = vector.load %arg4[%c0_11, %c0_12, %c0_13, %c0_14] : memref<1x8x16x16xf32, #tpu.memory_space<vmem>>, vector<1x1x16x16xf32>
    %10 = vector.shape_cast %9 : vector<1x1x16x16xf32> to vector<16x16xf32>
    %c0_15 = arith.constant 0 : index
    %c0_16 = arith.constant 0 : index
    %c0_17 = arith.constant 0 : index
    %c0_18 = arith.constant 0 : index
    %11 = vector.load %arg7[%c0_15, %c0_16, %c0_17, %c0_18] : memref<1x8x16x16xf32, #tpu.memory_space<vmem>>, vector<1x1x16x16xf32>
    %12 = vector.shape_cast %11 : vector<1x1x16x16xf32> to vector<16x16xf32>
    %13 = arith.mulf %10, %10 : vector<16x16xf32>
    %14 = arith.mulf %12, %12 : vector<16x16xf32>
    %15 = arith.mulf %10, %12 : vector<16x16xf32>
    %c0_19 = arith.constant 0 : index
    %c1 = arith.constant 1 : index
    %c0_20 = arith.constant 0 : index
    %c0_21 = arith.constant 0 : index
    %16 = vector.load %arg4[%c0_19, %c1, %c0_20, %c0_21] : memref<1x8x16x16xf32, #tpu.memory_space<vmem>>, vector<1x1x16x16xf32>
    %17 = vector.shape_cast %16 : vector<1x1x16x16xf32> to vector<16x16xf32>
    %c0_22 = arith.constant 0 : index
    %c1_23 = arith.constant 1 : index
    %c0_24 = arith.constant 0 : index
    %c0_25 = arith.constant 0 : index
    %18 = vector.load %arg7[%c0_22, %c1_23, %c0_24, %c0_25] : memref<1x8x16x16xf32, #tpu.memory_space<vmem>>, vector<1x1x16x16xf32>
    %19 = vector.shape_cast %18 : vector<1x1x16x16xf32> to vector<16x16xf32>
    %20 = arith.mulf %17, %17 : vector<16x16xf32>
    %21 = arith.mulf %19, %19 : vector<16x16xf32>
    %22 = arith.mulf %17, %19 : vector<16x16xf32>
    %c0_26 = arith.constant 0 : index
    %c2 = arith.constant 2 : index
    %c0_27 = arith.constant 0 : index
    %c0_28 = arith.constant 0 : index
    %23 = vector.load %arg4[%c0_26, %c2, %c0_27, %c0_28] : memref<1x8x16x16xf32, #tpu.memory_space<vmem>>, vector<1x1x16x16xf32>
    %24 = vector.shape_cast %23 : vector<1x1x16x16xf32> to vector<16x16xf32>
    %c0_29 = arith.constant 0 : index
    %c2_30 = arith.constant 2 : index
    %c0_31 = arith.constant 0 : index
    %c0_32 = arith.constant 0 : index
    %25 = vector.load %arg7[%c0_29, %c2_30, %c0_31, %c0_32] : memref<1x8x16x16xf32, #tpu.memory_space<vmem>>, vector<1x1x16x16xf32>
    %26 = vector.shape_cast %25 : vector<1x1x16x16xf32> to vector<16x16xf32>
    %27 = arith.mulf %24, %24 : vector<16x16xf32>
    %28 = arith.mulf %26, %26 : vector<16x16xf32>
    %29 = arith.mulf %24, %26 : vector<16x16xf32>
    %c0_33 = arith.constant 0 : index
    %c3 = arith.constant 3 : index
    %c0_34 = arith.constant 0 : index
    %c0_35 = arith.constant 0 : index
    %30 = vector.load %arg4[%c0_33, %c3, %c0_34, %c0_35] : memref<1x8x16x16xf32, #tpu.memory_space<vmem>>, vector<1x1x16x16xf32>
    %31 = vector.shape_cast %30 : vector<1x1x16x16xf32> to vector<16x16xf32>
    %c0_36 = arith.constant 0 : index
    %c3_37 = arith.constant 3 : index
    %c0_38 = arith.constant 0 : index
    %c0_39 = arith.constant 0 : index
    %32 = vector.load %arg7[%c0_36, %c3_37, %c0_38, %c0_39] : memref<1x8x16x16xf32, #tpu.memory_space<vmem>>, vector<1x1x16x16xf32>
    %33 = vector.shape_cast %32 : vector<1x1x16x16xf32> to vector<16x16xf32>
    %34 = arith.mulf %31, %31 : vector<16x16xf32>
    %35 = arith.mulf %33, %33 : vector<16x16xf32>
    %36 = arith.mulf %31, %33 : vector<16x16xf32>
    %c0_40 = arith.constant 0 : index
    %c4 = arith.constant 4 : index
    %c0_41 = arith.constant 0 : index
    %c0_42 = arith.constant 0 : index
    %37 = vector.load %arg4[%c0_40, %c4, %c0_41, %c0_42] : memref<1x8x16x16xf32, #tpu.memory_space<vmem>>, vector<1x1x16x16xf32>
    %38 = vector.shape_cast %37 : vector<1x1x16x16xf32> to vector<16x16xf32>
    %c0_43 = arith.constant 0 : index
    %c4_44 = arith.constant 4 : index
    %c0_45 = arith.constant 0 : index
    %c0_46 = arith.constant 0 : index
    %39 = vector.load %arg7[%c0_43, %c4_44, %c0_45, %c0_46] : memref<1x8x16x16xf32, #tpu.memory_space<vmem>>, vector<1x1x16x16xf32>
    %40 = vector.shape_cast %39 : vector<1x1x16x16xf32> to vector<16x16xf32>
    %41 = arith.mulf %38, %38 : vector<16x16xf32>
    %42 = arith.mulf %40, %40 : vector<16x16xf32>
    %43 = arith.mulf %38, %40 : vector<16x16xf32>
    %c0_47 = arith.constant 0 : index
    %c5 = arith.constant 5 : index
    %c0_48 = arith.constant 0 : index
    %c0_49 = arith.constant 0 : index
    %44 = vector.load %arg4[%c0_47, %c5, %c0_48, %c0_49] : memref<1x8x16x16xf32, #tpu.memory_space<vmem>>, vector<1x1x16x16xf32>
    %45 = vector.shape_cast %44 : vector<1x1x16x16xf32> to vector<16x16xf32>
    %c0_50 = arith.constant 0 : index
    %c5_51 = arith.constant 5 : index
    %c0_52 = arith.constant 0 : index
    %c0_53 = arith.constant 0 : index
    %46 = vector.load %arg7[%c0_50, %c5_51, %c0_52, %c0_53] : memref<1x8x16x16xf32, #tpu.memory_space<vmem>>, vector<1x1x16x16xf32>
    %47 = vector.shape_cast %46 : vector<1x1x16x16xf32> to vector<16x16xf32>
    %48 = arith.mulf %45, %45 : vector<16x16xf32>
    %49 = arith.mulf %47, %47 : vector<16x16xf32>
    %50 = arith.mulf %45, %47 : vector<16x16xf32>
    %c0_54 = arith.constant 0 : index
    %c6 = arith.constant 6 : index
    %c0_55 = arith.constant 0 : index
    %c0_56 = arith.constant 0 : index
    %51 = vector.load %arg4[%c0_54, %c6, %c0_55, %c0_56] : memref<1x8x16x16xf32, #tpu.memory_space<vmem>>, vector<1x1x16x16xf32>
    %52 = vector.shape_cast %51 : vector<1x1x16x16xf32> to vector<16x16xf32>
    %c0_57 = arith.constant 0 : index
    %c6_58 = arith.constant 6 : index
    %c0_59 = arith.constant 0 : index
    %c0_60 = arith.constant 0 : index
    %53 = vector.load %arg7[%c0_57, %c6_58, %c0_59, %c0_60] : memref<1x8x16x16xf32, #tpu.memory_space<vmem>>, vector<1x1x16x16xf32>
    %54 = vector.shape_cast %53 : vector<1x1x16x16xf32> to vector<16x16xf32>
    %55 = arith.mulf %52, %52 : vector<16x16xf32>
    %56 = arith.mulf %54, %54 : vector<16x16xf32>
    %57 = arith.mulf %52, %54 : vector<16x16xf32>
    %c0_61 = arith.constant 0 : index
    %c7 = arith.constant 7 : index
    %c0_62 = arith.constant 0 : index
    %c0_63 = arith.constant 0 : index
    %58 = vector.load %arg4[%c0_61, %c7, %c0_62, %c0_63] : memref<1x8x16x16xf32, #tpu.memory_space<vmem>>, vector<1x1x16x16xf32>
    %59 = vector.shape_cast %58 : vector<1x1x16x16xf32> to vector<16x16xf32>
    %c0_64 = arith.constant 0 : index
    %c7_65 = arith.constant 7 : index
    %c0_66 = arith.constant 0 : index
    %c0_67 = arith.constant 0 : index
    %60 = vector.load %arg7[%c0_64, %c7_65, %c0_66, %c0_67] : memref<1x8x16x16xf32, #tpu.memory_space<vmem>>, vector<1x1x16x16xf32>
    %61 = vector.shape_cast %60 : vector<1x1x16x16xf32> to vector<16x16xf32>
    %62 = arith.mulf %59, %59 : vector<16x16xf32>
    %63 = arith.mulf %61, %61 : vector<16x16xf32>
    %64 = arith.mulf %59, %61 : vector<16x16xf32>
    %c0_68 = arith.constant 0 : index
    %c0_69 = arith.constant 0 : index
    %c0_70 = arith.constant 0 : index
    %c0_71 = arith.constant 0 : index
    %65 = vector.load %arg6[%c0_68, %c0_69, %c0_70, %c0_71] : memref<1x1x16x16xf32, #tpu.memory_space<vmem>>, vector<1x1x16x16xf32>
    %66 = vector.shape_cast %65 : vector<1x1x16x16xf32> to vector<16x16xf32>
    %c0_72 = arith.constant 0 : index
    %c0_73 = arith.constant 0 : index
    %c0_74 = arith.constant 0 : index
    %c0_75 = arith.constant 0 : index
    %67 = vector.load %arg9[%c0_72, %c0_73, %c0_74, %c0_75] : memref<1x1x16x16xf32, #tpu.memory_space<vmem>>, vector<1x1x16x16xf32>
    %68 = vector.shape_cast %67 : vector<1x1x16x16xf32> to vector<16x16xf32>
    %69 = arith.mulf %66, %66 : vector<16x16xf32>
    %70 = arith.mulf %68, %68 : vector<16x16xf32>
    %71 = arith.mulf %66, %68 : vector<16x16xf32>
    %c0_i32 = arith.constant 0 : i32
    %72 = arith.cmpi eq, %arg1, %c0_i32 : i32
    %cst = arith.constant 0.000000e+00 : f32
    %cst_76 = arith.constant 0.307801336 : f32
    %73 = arith.select %72, %cst, %cst_76 : f32
    %cst_77 = arith.constant 0.384397328 : f32
    %74 = vector.broadcast %cst_77 : f32 to vector<16x16xf32>
    %75 = arith.mulf %74, %10 : vector<16x16xf32>
    %76 = vector.broadcast %73 : f32 to vector<16x16xf32>
    %77 = arith.mulf %76, %3 : vector<16x16xf32>
    %78 = arith.addf %75, %77 : vector<16x16xf32>
    %cst_78 = arith.constant 0.307801336 : f32
    %79 = vector.broadcast %cst_78 : f32 to vector<16x16xf32>
    %80 = arith.mulf %79, %17 : vector<16x16xf32>
    %81 = arith.addf %78, %80 : vector<16x16xf32>
    %cst_79 = arith.constant 0.384397328 : f32
    %82 = vector.broadcast %cst_79 : f32 to vector<16x16xf32>
    %83 = arith.mulf %82, %12 : vector<16x16xf32>
    %84 = vector.broadcast %73 : f32 to vector<16x16xf32>
    %85 = arith.mulf %84, %5 : vector<16x16xf32>
    %86 = arith.addf %83, %85 : vector<16x16xf32>
    %cst_80 = arith.constant 0.307801336 : f32
    %87 = vector.broadcast %cst_80 : f32 to vector<16x16xf32>
    %88 = arith.mulf %87, %19 : vector<16x16xf32>
    %89 = arith.addf %86, %88 : vector<16x16xf32>
    %cst_81 = arith.constant 0.384397328 : f32
    %90 = vector.broadcast %cst_81 : f32 to vector<16x16xf32>
    %91 = arith.mulf %90, %13 : vector<16x16xf32>
    %92 = vector.broadcast %73 : f32 to vector<16x16xf32>
    %93 = arith.mulf %92, %6 : vector<16x16xf32>
    %94 = arith.addf %91, %93 : vector<16x16xf32>
    %cst_82 = arith.constant 0.307801336 : f32
    %95 = vector.broadcast %cst_82 : f32 to vector<16x16xf32>
    %96 = arith.mulf %95, %20 : vector<16x16xf32>
    %97 = arith.addf %94, %96 : vector<16x16xf32>
    %cst_83 = arith.constant 0.384397328 : f32
    %98 = vector.broadcast %cst_83 : f32 to vector<16x16xf32>
    %99 = arith.mulf %98, %14 : vector<16x16xf32>
    %100 = vector.broadcast %73 : f32 to vector<16x16xf32>
    %101 = arith.mulf %100, %7 : vector<16x16xf32>
    %102 = arith.addf %99, %101 : vector<16x16xf32>
    %cst_84 = arith.constant 0.307801336 : f32
    %103 = vector.broadcast %cst_84 : f32 to vector<16x16xf32>
    %104 = arith.mulf %103, %21 : vector<16x16xf32>
    %105 = arith.addf %102, %104 : vector<16x16xf32>
    %cst_85 = arith.constant 0.384397328 : f32
    %106 = vector.broadcast %cst_85 : f32 to vector<16x16xf32>
    %107 = arith.mulf %106, %15 : vector<16x16xf32>
    %108 = vector.broadcast %73 : f32 to vector<16x16xf32>
    %109 = arith.mulf %108, %8 : vector<16x16xf32>
    %110 = arith.addf %107, %109 : vector<16x16xf32>
    %cst_86 = arith.constant 0.307801336 : f32
    %111 = vector.broadcast %cst_86 : f32 to vector<16x16xf32>
    %112 = arith.mulf %111, %22 : vector<16x16xf32>
    %113 = arith.addf %110, %112 : vector<16x16xf32>
    %cst_87 = arith.constant dense<0.000000e+00> : vector<16x16xf32>
    %114 = tpu.matmul %0, %81, %cst_87 {dimension_numbers = #tpu.dot_dimension_numbers<[1], [0], [0], [1], [0, 0, 1, 1], [], []>, precision = #tpu.contract_precision<fp32>} : vector<16x16xf32>, vector<16x16xf32>, vector<16x16xf32> -> vector<16x16xf32>
    %cst_88 = arith.constant dense<0.000000e+00> : vector<16x16xf32>
    %115 = tpu.matmul %114, %1, %cst_88 {dimension_numbers = #tpu.dot_dimension_numbers<[1], [0], [0], [1], [0, 0, 1, 1], [], []>, precision = #tpu.contract_precision<fp32>} : vector<16x16xf32>, vector<16x16xf32>, vector<16x16xf32> -> vector<16x16xf32>
    %cst_89 = arith.constant dense<0.000000e+00> : vector<16x16xf32>
    %116 = tpu.matmul %0, %89, %cst_89 {dimension_numbers = #tpu.dot_dimension_numbers<[1], [0], [0], [1], [0, 0, 1, 1], [], []>, precision = #tpu.contract_precision<fp32>} : vector<16x16xf32>, vector<16x16xf32>, vector<16x16xf32> -> vector<16x16xf32>
    %cst_90 = arith.constant dense<0.000000e+00> : vector<16x16xf32>
    %117 = tpu.matmul %116, %1, %cst_90 {dimension_numbers = #tpu.dot_dimension_numbers<[1], [0], [0], [1], [0, 0, 1, 1], [], []>, precision = #tpu.contract_precision<fp32>} : vector<16x16xf32>, vector<16x16xf32>, vector<16x16xf32> -> vector<16x16xf32>
    %cst_91 = arith.constant dense<0.000000e+00> : vector<16x16xf32>
    %118 = tpu.matmul %0, %97, %cst_91 {dimension_numbers = #tpu.dot_dimension_numbers<[1], [0], [0], [1], [0, 0, 1, 1], [], []>, precision = #tpu.contract_precision<fp32>} : vector<16x16xf32>, vector<16x16xf32>, vector<16x16xf32> -> vector<16x16xf32>
    %cst_92 = arith.constant dense<0.000000e+00> : vector<16x16xf32>
    %119 = tpu.matmul %118, %1, %cst_92 {dimension_numbers = #tpu.dot_dimension_numbers<[1], [0], [0], [1], [0, 0, 1, 1], [], []>, precision = #tpu.contract_precision<fp32>} : vector<16x16xf32>, vector<16x16xf32>, vector<16x16xf32> -> vector<16x16xf32>
    %cst_93 = arith.constant dense<0.000000e+00> : vector<16x16xf32>
    %120 = tpu.matmul %0, %105, %cst_93 {dimension_numbers = #tpu.dot_dimension_numbers<[1], [0], [0], [1], [0, 0, 1, 1], [], []>, precision = #tpu.contract_precision<fp32>} : vector<16x16xf32>, vector<16x16xf32>, vector<16x16xf32> -> vector<16x16xf32>
    %cst_94 = arith.constant dense<0.000000e+00> : vector<16x16xf32>
    %121 = tpu.matmul %120, %1, %cst_94 {dimension_numbers = #tpu.dot_dimension_numbers<[1], [0], [0], [1], [0, 0, 1, 1], [], []>, precision = #tpu.contract_precision<fp32>} : vector<16x16xf32>, vector<16x16xf32>, vector<16x16xf32> -> vector<16x16xf32>
    %cst_95 = arith.constant dense<0.000000e+00> : vector<16x16xf32>
    %122 = tpu.matmul %0, %113, %cst_95 {dimension_numbers = #tpu.dot_dimension_numbers<[1], [0], [0], [1], [0, 0, 1, 1], [], []>, precision = #tpu.contract_precision<fp32>} : vector<16x16xf32>, vector<16x16xf32>, vector<16x16xf32> -> vector<16x16xf32>
    %cst_96 = arith.constant dense<0.000000e+00> : vector<16x16xf32>
    %123 = tpu.matmul %122, %1, %cst_96 {dimension_numbers = #tpu.dot_dimension_numbers<[1], [0], [0], [1], [0, 0, 1, 1], [], []>, precision = #tpu.contract_precision<fp32>} : vector<16x16xf32>, vector<16x16xf32>, vector<16x16xf32> -> vector<16x16xf32>
    %124 = arith.mulf %115, %115 : vector<16x16xf32>
    %125 = arith.mulf %117, %117 : vector<16x16xf32>
    %126 = arith.mulf %115, %117 : vector<16x16xf32>
    %127 = arith.subf %119, %124 : vector<16x16xf32>
    %128 = arith.subf %121, %125 : vector<16x16xf32>
    %129 = arith.subf %123, %126 : vector<16x16xf32>
    %cst_97 = arith.constant 2.000000e+00 : f32
    %130 = vector.broadcast %cst_97 : f32 to vector<16x16xf32>
    %131 = arith.mulf %130, %126 : vector<16x16xf32>
    %cst_98 = arith.constant 9.99999974E-5 : f32
    %132 = vector.broadcast %cst_98 : f32 to vector<16x16xf32>
    %133 = arith.addf %131, %132 : vector<16x16xf32>
    %cst_99 = arith.constant 2.000000e+00 : f32
    %134 = vector.broadcast %cst_99 : f32 to vector<16x16xf32>
    %135 = arith.mulf %134, %129 : vector<16x16xf32>
    %cst_100 = arith.constant 8.99999984E-4 : f32
    %136 = vector.broadcast %cst_100 : f32 to vector<16x16xf32>
    %137 = arith.addf %135, %136 : vector<16x16xf32>
    %138 = arith.mulf %133, %137 : vector<16x16xf32>
    %139 = arith.addf %124, %125 : vector<16x16xf32>
    %cst_101 = arith.constant 9.99999974E-5 : f32
    %140 = vector.broadcast %cst_101 : f32 to vector<16x16xf32>
    %141 = arith.addf %139, %140 : vector<16x16xf32>
    %142 = arith.addf %127, %128 : vector<16x16xf32>
    %cst_102 = arith.constant 8.99999984E-4 : f32
    %143 = vector.broadcast %cst_102 : f32 to vector<16x16xf32>
    %144 = arith.addf %142, %143 : vector<16x16xf32>
    %145 = arith.mulf %141, %144 : vector<16x16xf32>
    %146 = tpu.reciprocal %145 {approx = true} : vector<16x16xf32> -> vector<16x16xf32>
    %147 = arith.mulf %145, %146 : vector<16x16xf32>
    %cst_103 = arith.constant 2.000000e+00 : f32
    %148 = vector.broadcast %cst_103 : f32 to vector<16x16xf32>
    %149 = arith.subf %148, %147 : vector<16x16xf32>
    %150 = arith.mulf %146, %149 : vector<16x16xf32>
    %151 = arith.mulf %145, %150 : vector<16x16xf32>
    %cst_104 = arith.constant 2.000000e+00 : f32
    %152 = vector.broadcast %cst_104 : f32 to vector<16x16xf32>
    %153 = arith.subf %152, %151 : vector<16x16xf32>
    %154 = arith.mulf %150, %153 : vector<16x16xf32>
    %155 = arith.mulf %138, %154 : vector<16x16xf32>
    %c0_105 = arith.constant 0 : index
    %c0_106 = arith.constant 0 : index
    %c0_107 = arith.constant 0 : index
    %c0_108 = arith.constant 0 : index
    %156 = vector.load %arg10[%c0_105, %c0_106, %c0_107, %c0_108] : memref<1x8x16x16xf32, #tpu.memory_space<vmem>>, vector<1x1x16x16xf32>
    %157 = vector.shape_cast %156 : vector<1x1x16x16xf32> to vector<16x16xf32>
    %158 = vector.shape_cast %155 : vector<16x16xf32> to vector<1x1x16x16xf32>
    tpu.vector_store %arg10[%c0_105, %c0_106, %c0_107, %c0_108], %158 {strides = array<i32>} : memref<1x8x16x16xf32, #tpu.memory_space<vmem>>, vector<1x1x16x16xf32>,
    %cst_109 = arith.constant 0.384397328 : f32
    %159 = vector.broadcast %cst_109 : f32 to vector<16x16xf32>
    %160 = arith.mulf %159, %17 : vector<16x16xf32>
    %161 = arith.addf %10, %24 : vector<16x16xf32>
    %cst_110 = arith.constant 0.307801336 : f32
    %162 = vector.broadcast %cst_110 : f32 to vector<16x16xf32>
    %163 = arith.mulf %162, %161 : vector<16x16xf32>
    %164 = arith.addf %160, %163 : vector<16x16xf32>
    %cst_111 = arith.constant 0.384397328 : f32
    %165 = vector.broadcast %cst_111 : f32 to vector<16x16xf32>
    %166 = arith.mulf %165, %19 : vector<16x16xf32>
    %167 = arith.addf %12, %26 : vector<16x16xf32>
    %cst_112 = arith.constant 0.307801336 : f32
    %168 = vector.broadcast %cst_112 : f32 to vector<16x16xf32>
    %169 = arith.mulf %168, %167 : vector<16x16xf32>
    %170 = arith.addf %166, %169 : vector<16x16xf32>
    %cst_113 = arith.constant 0.384397328 : f32
    %171 = vector.broadcast %cst_113 : f32 to vector<16x16xf32>
    %172 = arith.mulf %171, %20 : vector<16x16xf32>
    %173 = arith.addf %13, %27 : vector<16x16xf32>
    %cst_114 = arith.constant 0.307801336 : f32
    %174 = vector.broadcast %cst_114 : f32 to vector<16x16xf32>
    %175 = arith.mulf %174, %173 : vector<16x16xf32>
    %176 = arith.addf %172, %175 : vector<16x16xf32>
    %cst_115 = arith.constant 0.384397328 : f32
    %177 = vector.broadcast %cst_115 : f32 to vector<16x16xf32>
    %178 = arith.mulf %177, %21 : vector<16x16xf32>
    %179 = arith.addf %14, %28 : vector<16x16xf32>
    %cst_116 = arith.constant 0.307801336 : f32
    %180 = vector.broadcast %cst_116 : f32 to vector<16x16xf32>
    %181 = arith.mulf %180, %179 : vector<16x16xf32>
    %182 = arith.addf %178, %181 : vector<16x16xf32>
    %cst_117 = arith.constant 0.384397328 : f32
    %183 = vector.broadcast %cst_117 : f32 to vector<16x16xf32>
    %184 = arith.mulf %183, %22 : vector<16x16xf32>
    %185 = arith.addf %15, %29 : vector<16x16xf32>
    %cst_118 = arith.constant 0.307801336 : f32
    %186 = vector.broadcast %cst_118 : f32 to vector<16x16xf32>
    %187 = arith.mulf %186, %185 : vector<16x16xf32>
    %188 = arith.addf %184, %187 : vector<16x16xf32>
    %cst_119 = arith.constant dense<0.000000e+00> : vector<16x16xf32>
    %189 = tpu.matmul %0, %164, %cst_119 {dimension_numbers = #tpu.dot_dimension_numbers<[1], [0], [0], [1], [0, 0, 1, 1], [], []>, precision = #tpu.contract_precision<fp32>} : vector<16x16xf32>, vector<16x16xf32>, vector<16x16xf32> -> vector<16x16xf32>
    %cst_120 = arith.constant dense<0.000000e+00> : vector<16x16xf32>
    %190 = tpu.matmul %189, %1, %cst_120 {dimension_numbers = #tpu.dot_dimension_numbers<[1], [0], [0], [1], [0, 0, 1, 1], [], []>, precision = #tpu.contract_precision<fp32>} : vector<16x16xf32>, vector<16x16xf32>, vector<16x16xf32> -> vector<16x16xf32>
    %cst_121 = arith.constant dense<0.000000e+00> : vector<16x16xf32>
    %191 = tpu.matmul %0, %170, %cst_121 {dimension_numbers = #tpu.dot_dimension_numbers<[1], [0], [0], [1], [0, 0, 1, 1], [], []>, precision = #tpu.contract_precision<fp32>} : vector<16x16xf32>, vector<16x16xf32>, vector<16x16xf32> -> vector<16x16xf32>
    %cst_122 = arith.constant dense<0.000000e+00> : vector<16x16xf32>
    %192 = tpu.matmul %191, %1, %cst_122 {dimension_numbers = #tpu.dot_dimension_numbers<[1], [0], [0], [1], [0, 0, 1, 1], [], []>, precision = #tpu.contract_precision<fp32>} : vector<16x16xf32>, vector<16x16xf32>, vector<16x16xf32> -> vector<16x16xf32>
    %cst_123 = arith.constant dense<0.000000e+00> : vector<16x16xf32>
    %193 = tpu.matmul %0, %176, %cst_123 {dimension_numbers = #tpu.dot_dimension_numbers<[1], [0], [0], [1], [0, 0, 1, 1], [], []>, precision = #tpu.contract_precision<fp32>} : vector<16x16xf32>, vector<16x16xf32>, vector<16x16xf32> -> vector<16x16xf32>
    %cst_124 = arith.constant dense<0.000000e+00> : vector<16x16xf32>
    %194 = tpu.matmul %193, %1, %cst_124 {dimension_numbers = #tpu.dot_dimension_numbers<[1], [0], [0], [1], [0, 0, 1, 1], [], []>, precision = #tpu.contract_precision<fp32>} : vector<16x16xf32>, vector<16x16xf32>, vector<16x16xf32> -> vector<16x16xf32>
    %cst_125 = arith.constant dense<0.000000e+00> : vector<16x16xf32>
    %195 = tpu.matmul %0, %182, %cst_125 {dimension_numbers = #tpu.dot_dimension_numbers<[1], [0], [0], [1], [0, 0, 1, 1], [], []>, precision = #tpu.contract_precision<fp32>} : vector<16x16xf32>, vector<16x16xf32>, vector<16x16xf32> -> vector<16x16xf32>
    %cst_126 = arith.constant dense<0.000000e+00> : vector<16x16xf32>
    %196 = tpu.matmul %195, %1, %cst_126 {dimension_numbers = #tpu.dot_dimension_numbers<[1], [0], [0], [1], [0, 0, 1, 1], [], []>, precision = #tpu.contract_precision<fp32>} : vector<16x16xf32>, vector<16x16xf32>, vector<16x16xf32> -> vector<16x16xf32>
    %cst_127 = arith.constant dense<0.000000e+00> : vector<16x16xf32>
    %197 = tpu.matmul %0, %188, %cst_127 {dimension_numbers = #tpu.dot_dimension_numbers<[1], [0], [0], [1], [0, 0, 1, 1], [], []>, precision = #tpu.contract_precision<fp32>} : vector<16x16xf32>, vector<16x16xf32>, vector<16x16xf32> -> vector<16x16xf32>
    %cst_128 = arith.constant dense<0.000000e+00> : vector<16x16xf32>
    %198 = tpu.matmul %197, %1, %cst_128 {dimension_numbers = #tpu.dot_dimension_numbers<[1], [0], [0], [1], [0, 0, 1, 1], [], []>, precision = #tpu.contract_precision<fp32>} : vector<16x16xf32>, vector<16x16xf32>, vector<16x16xf32> -> vector<16x16xf32>
    %199 = arith.mulf %190, %190 : vector<16x16xf32>
    %200 = arith.mulf %192, %192 : vector<16x16xf32>
    %201 = arith.mulf %190, %192 : vector<16x16xf32>
    %202 = arith.subf %194, %199 : vector<16x16xf32>
    %203 = arith.subf %196, %200 : vector<16x16xf32>
    %204 = arith.subf %198, %201 : vector<16x16xf32>
    %cst_129 = arith.constant 2.000000e+00 : f32
    %205 = vector.broadcast %cst_129 : f32 to vector<16x16xf32>
    %206 = arith.mulf %205, %201 : vector<16x16xf32>
    %cst_130 = arith.constant 9.99999974E-5 : f32
    %207 = vector.broadcast %cst_130 : f32 to vector<16x16xf32>
    %208 = arith.addf %206, %207 : vector<16x16xf32>
    %cst_131 = arith.constant 2.000000e+00 : f32
    %209 = vector.broadcast %cst_131 : f32 to vector<16x16xf32>
    %210 = arith.mulf %209, %204 : vector<16x16xf32>
    %cst_132 = arith.constant 8.99999984E-4 : f32
    %211 = vector.broadcast %cst_132 : f32 to vector<16x16xf32>
    %212 = arith.addf %210, %211 : vector<16x16xf32>
    %213 = arith.mulf %208, %212 : vector<16x16xf32>
    %214 = arith.addf %199, %200 : vector<16x16xf32>
    %cst_133 = arith.constant 9.99999974E-5 : f32
    %215 = vector.broadcast %cst_133 : f32 to vector<16x16xf32>
    %216 = arith.addf %214, %215 : vector<16x16xf32>
    %217 = arith.addf %202, %203 : vector<16x16xf32>
    %cst_134 = arith.constant 8.99999984E-4 : f32
    %218 = vector.broadcast %cst_134 : f32 to vector<16x16xf32>
    %219 = arith.addf %217, %218 : vector<16x16xf32>
    %220 = arith.mulf %216, %219 : vector<16x16xf32>
    %221 = tpu.reciprocal %220 {approx = true} : vector<16x16xf32> -> vector<16x16xf32>
    %222 = arith.mulf %220, %221 : vector<16x16xf32>
    %cst_135 = arith.constant 2.000000e+00 : f32
    %223 = vector.broadcast %cst_135 : f32 to vector<16x16xf32>
    %224 = arith.subf %223, %222 : vector<16x16xf32>
    %225 = arith.mulf %221, %224 : vector<16x16xf32>
    %226 = arith.mulf %220, %225 : vector<16x16xf32>
    %cst_136 = arith.constant 2.000000e+00 : f32
    %227 = vector.broadcast %cst_136 : f32 to vector<16x16xf32>
    %228 = arith.subf %227, %226 : vector<16x16xf32>
    %229 = arith.mulf %225, %228 : vector<16x16xf32>
    %230 = arith.mulf %213, %229 : vector<16x16xf32>
    %c0_137 = arith.constant 0 : index
    %c1_138 = arith.constant 1 : index
    %c0_139 = arith.constant 0 : index
    %c0_140 = arith.constant 0 : index
    %231 = vector.load %arg10[%c0_137, %c1_138, %c0_139, %c0_140] : memref<1x8x16x16xf32, #tpu.memory_space<vmem>>, vector<1x1x16x16xf32>
    %232 = vector.shape_cast %231 : vector<1x1x16x16xf32> to vector<16x16xf32>
    %233 = vector.shape_cast %230 : vector<16x16xf32> to vector<1x1x16x16xf32>
    tpu.vector_store %arg10[%c0_137, %c1_138, %c0_139, %c0_140], %233 {strides = array<i32>} : memref<1x8x16x16xf32, #tpu.memory_space<vmem>>, vector<1x1x16x16xf32>,
    %cst_141 = arith.constant 0.384397328 : f32
    %234 = vector.broadcast %cst_141 : f32 to vector<16x16xf32>
    %235 = arith.mulf %234, %24 : vector<16x16xf32>
    %236 = arith.addf %17, %31 : vector<16x16xf32>
    %cst_142 = arith.constant 0.307801336 : f32
    %237 = vector.broadcast %cst_142 : f32 to vector<16x16xf32>
    %238 = arith.mulf %237, %236 : vector<16x16xf32>
    %239 = arith.addf %235, %238 : vector<16x16xf32>
    %cst_143 = arith.constant 0.384397328 : f32
    %240 = vector.broadcast %cst_143 : f32 to vector<16x16xf32>
    %241 = arith.mulf %240, %26 : vector<16x16xf32>
    %242 = arith.addf %19, %33 : vector<16x16xf32>
    %cst_144 = arith.constant 0.307801336 : f32
    %243 = vector.broadcast %cst_144 : f32 to vector<16x16xf32>
    %244 = arith.mulf %243, %242 : vector<16x16xf32>
    %245 = arith.addf %241, %244 : vector<16x16xf32>
    %cst_145 = arith.constant 0.384397328 : f32
    %246 = vector.broadcast %cst_145 : f32 to vector<16x16xf32>
    %247 = arith.mulf %246, %27 : vector<16x16xf32>
    %248 = arith.addf %20, %34 : vector<16x16xf32>
    %cst_146 = arith.constant 0.307801336 : f32
    %249 = vector.broadcast %cst_146 : f32 to vector<16x16xf32>
    %250 = arith.mulf %249, %248 : vector<16x16xf32>
    %251 = arith.addf %247, %250 : vector<16x16xf32>
    %cst_147 = arith.constant 0.384397328 : f32
    %252 = vector.broadcast %cst_147 : f32 to vector<16x16xf32>
    %253 = arith.mulf %252, %28 : vector<16x16xf32>
    %254 = arith.addf %21, %35 : vector<16x16xf32>
    %cst_148 = arith.constant 0.307801336 : f32
    %255 = vector.broadcast %cst_148 : f32 to vector<16x16xf32>
    %256 = arith.mulf %255, %254 : vector<16x16xf32>
    %257 = arith.addf %253, %256 : vector<16x16xf32>
    %cst_149 = arith.constant 0.384397328 : f32
    %258 = vector.broadcast %cst_149 : f32 to vector<16x16xf32>
    %259 = arith.mulf %258, %29 : vector<16x16xf32>
    %260 = arith.addf %22, %36 : vector<16x16xf32>
    %cst_150 = arith.constant 0.307801336 : f32
    %261 = vector.broadcast %cst_150 : f32 to vector<16x16xf32>
    %262 = arith.mulf %261, %260 : vector<16x16xf32>
    %263 = arith.addf %259, %262 : vector<16x16xf32>
    %cst_151 = arith.constant dense<0.000000e+00> : vector<16x16xf32>
    %264 = tpu.matmul %0, %239, %cst_151 {dimension_numbers = #tpu.dot_dimension_numbers<[1], [0], [0], [1], [0, 0, 1, 1], [], []>, precision = #tpu.contract_precision<fp32>} : vector<16x16xf32>, vector<16x16xf32>, vector<16x16xf32> -> vector<16x16xf32>
    %cst_152 = arith.constant dense<0.000000e+00> : vector<16x16xf32>
    %265 = tpu.matmul %264, %1, %cst_152 {dimension_numbers = #tpu.dot_dimension_numbers<[1], [0], [0], [1], [0, 0, 1, 1], [], []>, precision = #tpu.contract_precision<fp32>} : vector<16x16xf32>, vector<16x16xf32>, vector<16x16xf32> -> vector<16x16xf32>
    %cst_153 = arith.constant dense<0.000000e+00> : vector<16x16xf32>
    %266 = tpu.matmul %0, %245, %cst_153 {dimension_numbers = #tpu.dot_dimension_numbers<[1], [0], [0], [1], [0, 0, 1, 1], [], []>, precision = #tpu.contract_precision<fp32>} : vector<16x16xf32>, vector<16x16xf32>, vector<16x16xf32> -> vector<16x16xf32>
    %cst_154 = arith.constant dense<0.000000e+00> : vector<16x16xf32>
    %267 = tpu.matmul %266, %1, %cst_154 {dimension_numbers = #tpu.dot_dimension_numbers<[1], [0], [0], [1], [0, 0, 1, 1], [], []>, precision = #tpu.contract_precision<fp32>} : vector<16x16xf32>, vector<16x16xf32>, vector<16x16xf32> -> vector<16x16xf32>
    %cst_155 = arith.constant dense<0.000000e+00> : vector<16x16xf32>
    %268 = tpu.matmul %0, %251, %cst_155 {dimension_numbers = #tpu.dot_dimension_numbers<[1], [0], [0], [1], [0, 0, 1, 1], [], []>, precision = #tpu.contract_precision<fp32>} : vector<16x16xf32>, vector<16x16xf32>, vector<16x16xf32> -> vector<16x16xf32>
    %cst_156 = arith.constant dense<0.000000e+00> : vector<16x16xf32>
    %269 = tpu.matmul %268, %1, %cst_156 {dimension_numbers = #tpu.dot_dimension_numbers<[1], [0], [0], [1], [0, 0, 1, 1], [], []>, precision = #tpu.contract_precision<fp32>} : vector<16x16xf32>, vector<16x16xf32>, vector<16x16xf32> -> vector<16x16xf32>
    %cst_157 = arith.constant dense<0.000000e+00> : vector<16x16xf32>
    %270 = tpu.matmul %0, %257, %cst_157 {dimension_numbers = #tpu.dot_dimension_numbers<[1], [0], [0], [1], [0, 0, 1, 1], [], []>, precision = #tpu.contract_precision<fp32>} : vector<16x16xf32>, vector<16x16xf32>, vector<16x16xf32> -> vector<16x16xf32>
    %cst_158 = arith.constant dense<0.000000e+00> : vector<16x16xf32>
    %271 = tpu.matmul %270, %1, %cst_158 {dimension_numbers = #tpu.dot_dimension_numbers<[1], [0], [0], [1], [0, 0, 1, 1], [], []>, precision = #tpu.contract_precision<fp32>} : vector<16x16xf32>, vector<16x16xf32>, vector<16x16xf32> -> vector<16x16xf32>
    %cst_159 = arith.constant dense<0.000000e+00> : vector<16x16xf32>
    %272 = tpu.matmul %0, %263, %cst_159 {dimension_numbers = #tpu.dot_dimension_numbers<[1], [0], [0], [1], [0, 0, 1, 1], [], []>, precision = #tpu.contract_precision<fp32>} : vector<16x16xf32>, vector<16x16xf32>, vector<16x16xf32> -> vector<16x16xf32>
    %cst_160 = arith.constant dense<0.000000e+00> : vector<16x16xf32>
    %273 = tpu.matmul %272, %1, %cst_160 {dimension_numbers = #tpu.dot_dimension_numbers<[1], [0], [0], [1], [0, 0, 1, 1], [], []>, precision = #tpu.contract_precision<fp32>} : vector<16x16xf32>, vector<16x16xf32>, vector<16x16xf32> -> vector<16x16xf32>
    %274 = arith.mulf %265, %265 : vector<16x16xf32>
    %275 = arith.mulf %267, %267 : vector<16x16xf32>
    %276 = arith.mulf %265, %267 : vector<16x16xf32>
    %277 = arith.subf %269, %274 : vector<16x16xf32>
    %278 = arith.subf %271, %275 : vector<16x16xf32>
    %279 = arith.subf %273, %276 : vector<16x16xf32>
    %cst_161 = arith.constant 2.000000e+00 : f32
    %280 = vector.broadcast %cst_161 : f32 to vector<16x16xf32>
    %281 = arith.mulf %280, %276 : vector<16x16xf32>
    %cst_162 = arith.constant 9.99999974E-5 : f32
    %282 = vector.broadcast %cst_162 : f32 to vector<16x16xf32>
    %283 = arith.addf %281, %282 : vector<16x16xf32>
    %cst_163 = arith.constant 2.000000e+00 : f32
    %284 = vector.broadcast %cst_163 : f32 to vector<16x16xf32>
    %285 = arith.mulf %284, %279 : vector<16x16xf32>
    %cst_164 = arith.constant 8.99999984E-4 : f32
    %286 = vector.broadcast %cst_164 : f32 to vector<16x16xf32>
    %287 = arith.addf %285, %286 : vector<16x16xf32>
    %288 = arith.mulf %283, %287 : vector<16x16xf32>
    %289 = arith.addf %274, %275 : vector<16x16xf32>
    %cst_165 = arith.constant 9.99999974E-5 : f32
    %290 = vector.broadcast %cst_165 : f32 to vector<16x16xf32>
    %291 = arith.addf %289, %290 : vector<16x16xf32>
    %292 = arith.addf %277, %278 : vector<16x16xf32>
    %cst_166 = arith.constant 8.99999984E-4 : f32
    %293 = vector.broadcast %cst_166 : f32 to vector<16x16xf32>
    %294 = arith.addf %292, %293 : vector<16x16xf32>
    %295 = arith.mulf %291, %294 : vector<16x16xf32>
    %296 = tpu.reciprocal %295 {approx = true} : vector<16x16xf32> -> vector<16x16xf32>
    %297 = arith.mulf %295, %296 : vector<16x16xf32>
    %cst_167 = arith.constant 2.000000e+00 : f32
    %298 = vector.broadcast %cst_167 : f32 to vector<16x16xf32>
    %299 = arith.subf %298, %297 : vector<16x16xf32>
    %300 = arith.mulf %296, %299 : vector<16x16xf32>
    %301 = arith.mulf %295, %300 : vector<16x16xf32>
    %cst_168 = arith.constant 2.000000e+00 : f32
    %302 = vector.broadcast %cst_168 : f32 to vector<16x16xf32>
    %303 = arith.subf %302, %301 : vector<16x16xf32>
    %304 = arith.mulf %300, %303 : vector<16x16xf32>
    %305 = arith.mulf %288, %304 : vector<16x16xf32>
    %c0_169 = arith.constant 0 : index
    %c2_170 = arith.constant 2 : index
    %c0_171 = arith.constant 0 : index
    %c0_172 = arith.constant 0 : index
    %306 = vector.load %arg10[%c0_169, %c2_170, %c0_171, %c0_172] : memref<1x8x16x16xf32, #tpu.memory_space<vmem>>, vector<1x1x16x16xf32>
    %307 = vector.shape_cast %306 : vector<1x1x16x16xf32> to vector<16x16xf32>
    %308 = vector.shape_cast %305 : vector<16x16xf32> to vector<1x1x16x16xf32>
    tpu.vector_store %arg10[%c0_169, %c2_170, %c0_171, %c0_172], %308 {strides = array<i32>} : memref<1x8x16x16xf32, #tpu.memory_space<vmem>>, vector<1x1x16x16xf32>,
    %cst_173 = arith.constant 0.384397328 : f32
    %309 = vector.broadcast %cst_173 : f32 to vector<16x16xf32>
    %310 = arith.mulf %309, %31 : vector<16x16xf32>
    %311 = arith.addf %24, %38 : vector<16x16xf32>
    %cst_174 = arith.constant 0.307801336 : f32
    %312 = vector.broadcast %cst_174 : f32 to vector<16x16xf32>
    %313 = arith.mulf %312, %311 : vector<16x16xf32>
    %314 = arith.addf %310, %313 : vector<16x16xf32>
    %cst_175 = arith.constant 0.384397328 : f32
    %315 = vector.broadcast %cst_175 : f32 to vector<16x16xf32>
    %316 = arith.mulf %315, %33 : vector<16x16xf32>
    %317 = arith.addf %26, %40 : vector<16x16xf32>
    %cst_176 = arith.constant 0.307801336 : f32
    %318 = vector.broadcast %cst_176 : f32 to vector<16x16xf32>
    %319 = arith.mulf %318, %317 : vector<16x16xf32>
    %320 = arith.addf %316, %319 : vector<16x16xf32>
    %cst_177 = arith.constant 0.384397328 : f32
    %321 = vector.broadcast %cst_177 : f32 to vector<16x16xf32>
    %322 = arith.mulf %321, %34 : vector<16x16xf32>
    %323 = arith.addf %27, %41 : vector<16x16xf32>
    %cst_178 = arith.constant 0.307801336 : f32
    %324 = vector.broadcast %cst_178 : f32 to vector<16x16xf32>
    %325 = arith.mulf %324, %323 : vector<16x16xf32>
    %326 = arith.addf %322, %325 : vector<16x16xf32>
    %cst_179 = arith.constant 0.384397328 : f32
    %327 = vector.broadcast %cst_179 : f32 to vector<16x16xf32>
    %328 = arith.mulf %327, %35 : vector<16x16xf32>
    %329 = arith.addf %28, %42 : vector<16x16xf32>
    %cst_180 = arith.constant 0.307801336 : f32
    %330 = vector.broadcast %cst_180 : f32 to vector<16x16xf32>
    %331 = arith.mulf %330, %329 : vector<16x16xf32>
    %332 = arith.addf %328, %331 : vector<16x16xf32>
    %cst_181 = arith.constant 0.384397328 : f32
    %333 = vector.broadcast %cst_181 : f32 to vector<16x16xf32>
    %334 = arith.mulf %333, %36 : vector<16x16xf32>
    %335 = arith.addf %29, %43 : vector<16x16xf32>
    %cst_182 = arith.constant 0.307801336 : f32
    %336 = vector.broadcast %cst_182 : f32 to vector<16x16xf32>
    %337 = arith.mulf %336, %335 : vector<16x16xf32>
    %338 = arith.addf %334, %337 : vector<16x16xf32>
    %cst_183 = arith.constant dense<0.000000e+00> : vector<16x16xf32>
    %339 = tpu.matmul %0, %314, %cst_183 {dimension_numbers = #tpu.dot_dimension_numbers<[1], [0], [0], [1], [0, 0, 1, 1], [], []>, precision = #tpu.contract_precision<fp32>} : vector<16x16xf32>, vector<16x16xf32>, vector<16x16xf32> -> vector<16x16xf32>
    %cst_184 = arith.constant dense<0.000000e+00> : vector<16x16xf32>
    %340 = tpu.matmul %339, %1, %cst_184 {dimension_numbers = #tpu.dot_dimension_numbers<[1], [0], [0], [1], [0, 0, 1, 1], [], []>, precision = #tpu.contract_precision<fp32>} : vector<16x16xf32>, vector<16x16xf32>, vector<16x16xf32> -> vector<16x16xf32>
    %cst_185 = arith.constant dense<0.000000e+00> : vector<16x16xf32>
    %341 = tpu.matmul %0, %320, %cst_185 {dimension_numbers = #tpu.dot_dimension_numbers<[1], [0], [0], [1], [0, 0, 1, 1], [], []>, precision = #tpu.contract_precision<fp32>} : vector<16x16xf32>, vector<16x16xf32>, vector<16x16xf32> -> vector<16x16xf32>
    %cst_186 = arith.constant dense<0.000000e+00> : vector<16x16xf32>
    %342 = tpu.matmul %341, %1, %cst_186 {dimension_numbers = #tpu.dot_dimension_numbers<[1], [0], [0], [1], [0, 0, 1, 1], [], []>, precision = #tpu.contract_precision<fp32>} : vector<16x16xf32>, vector<16x16xf32>, vector<16x16xf32> -> vector<16x16xf32>
    %cst_187 = arith.constant dense<0.000000e+00> : vector<16x16xf32>
    %343 = tpu.matmul %0, %326, %cst_187 {dimension_numbers = #tpu.dot_dimension_numbers<[1], [0], [0], [1], [0, 0, 1, 1], [], []>, precision = #tpu.contract_precision<fp32>} : vector<16x16xf32>, vector<16x16xf32>, vector<16x16xf32> -> vector<16x16xf32>
    %cst_188 = arith.constant dense<0.000000e+00> : vector<16x16xf32>
    %344 = tpu.matmul %343, %1, %cst_188 {dimension_numbers = #tpu.dot_dimension_numbers<[1], [0], [0], [1], [0, 0, 1, 1], [], []>, precision = #tpu.contract_precision<fp32>} : vector<16x16xf32>, vector<16x16xf32>, vector<16x16xf32> -> vector<16x16xf32>
    %cst_189 = arith.constant dense<0.000000e+00> : vector<16x16xf32>
    %345 = tpu.matmul %0, %332, %cst_189 {dimension_numbers = #tpu.dot_dimension_numbers<[1], [0], [0], [1], [0, 0, 1, 1], [], []>, precision = #tpu.contract_precision<fp32>} : vector<16x16xf32>, vector<16x16xf32>, vector<16x16xf32> -> vector<16x16xf32>
    %cst_190 = arith.constant dense<0.000000e+00> : vector<16x16xf32>
    %346 = tpu.matmul %345, %1, %cst_190 {dimension_numbers = #tpu.dot_dimension_numbers<[1], [0], [0], [1], [0, 0, 1, 1], [], []>, precision = #tpu.contract_precision<fp32>} : vector<16x16xf32>, vector<16x16xf32>, vector<16x16xf32> -> vector<16x16xf32>
    %cst_191 = arith.constant dense<0.000000e+00> : vector<16x16xf32>
    %347 = tpu.matmul %0, %338, %cst_191 {dimension_numbers = #tpu.dot_dimension_numbers<[1], [0], [0], [1], [0, 0, 1, 1], [], []>, precision = #tpu.contract_precision<fp32>} : vector<16x16xf32>, vector<16x16xf32>, vector<16x16xf32> -> vector<16x16xf32>
    %cst_192 = arith.constant dense<0.000000e+00> : vector<16x16xf32>
    %348 = tpu.matmul %347, %1, %cst_192 {dimension_numbers = #tpu.dot_dimension_numbers<[1], [0], [0], [1], [0, 0, 1, 1], [], []>, precision = #tpu.contract_precision<fp32>} : vector<16x16xf32>, vector<16x16xf32>, vector<16x16xf32> -> vector<16x16xf32>
    %349 = arith.mulf %340, %340 : vector<16x16xf32>
    %350 = arith.mulf %342, %342 : vector<16x16xf32>
    %351 = arith.mulf %340, %342 : vector<16x16xf32>
    %352 = arith.subf %344, %349 : vector<16x16xf32>
    %353 = arith.subf %346, %350 : vector<16x16xf32>
    %354 = arith.subf %348, %351 : vector<16x16xf32>
    %cst_193 = arith.constant 2.000000e+00 : f32
    %355 = vector.broadcast %cst_193 : f32 to vector<16x16xf32>
    %356 = arith.mulf %355, %351 : vector<16x16xf32>
    %cst_194 = arith.constant 9.99999974E-5 : f32
    %357 = vector.broadcast %cst_194 : f32 to vector<16x16xf32>
    %358 = arith.addf %356, %357 : vector<16x16xf32>
    %cst_195 = arith.constant 2.000000e+00 : f32
    %359 = vector.broadcast %cst_195 : f32 to vector<16x16xf32>
    %360 = arith.mulf %359, %354 : vector<16x16xf32>
    %cst_196 = arith.constant 8.99999984E-4 : f32
    %361 = vector.broadcast %cst_196 : f32 to vector<16x16xf32>
    %362 = arith.addf %360, %361 : vector<16x16xf32>
    %363 = arith.mulf %358, %362 : vector<16x16xf32>
    %364 = arith.addf %349, %350 : vector<16x16xf32>
    %cst_197 = arith.constant 9.99999974E-5 : f32
    %365 = vector.broadcast %cst_197 : f32 to vector<16x16xf32>
    %366 = arith.addf %364, %365 : vector<16x16xf32>
    %367 = arith.addf %352, %353 : vector<16x16xf32>
    %cst_198 = arith.constant 8.99999984E-4 : f32
    %368 = vector.broadcast %cst_198 : f32 to vector<16x16xf32>
    %369 = arith.addf %367, %368 : vector<16x16xf32>
    %370 = arith.mulf %366, %369 : vector<16x16xf32>
    %371 = tpu.reciprocal %370 {approx = true} : vector<16x16xf32> -> vector<16x16xf32>
    %372 = arith.mulf %370, %371 : vector<16x16xf32>
    %cst_199 = arith.constant 2.000000e+00 : f32
    %373 = vector.broadcast %cst_199 : f32 to vector<16x16xf32>
    %374 = arith.subf %373, %372 : vector<16x16xf32>
    %375 = arith.mulf %371, %374 : vector<16x16xf32>
    %376 = arith.mulf %370, %375 : vector<16x16xf32>
    %cst_200 = arith.constant 2.000000e+00 : f32
    %377 = vector.broadcast %cst_200 : f32 to vector<16x16xf32>
    %378 = arith.subf %377, %376 : vector<16x16xf32>
    %379 = arith.mulf %375, %378 : vector<16x16xf32>
    %380 = arith.mulf %363, %379 : vector<16x16xf32>
    %c0_201 = arith.constant 0 : index
    %c3_202 = arith.constant 3 : index
    %c0_203 = arith.constant 0 : index
    %c0_204 = arith.constant 0 : index
    %381 = vector.load %arg10[%c0_201, %c3_202, %c0_203, %c0_204] : memref<1x8x16x16xf32, #tpu.memory_space<vmem>>, vector<1x1x16x16xf32>
    %382 = vector.shape_cast %381 : vector<1x1x16x16xf32> to vector<16x16xf32>
    %383 = vector.shape_cast %380 : vector<16x16xf32> to vector<1x1x16x16xf32>
    tpu.vector_store %arg10[%c0_201, %c3_202, %c0_203, %c0_204], %383 {strides = array<i32>} : memref<1x8x16x16xf32, #tpu.memory_space<vmem>>, vector<1x1x16x16xf32>,
    %cst_205 = arith.constant 0.384397328 : f32
    %384 = vector.broadcast %cst_205 : f32 to vector<16x16xf32>
    %385 = arith.mulf %384, %38 : vector<16x16xf32>
    %386 = arith.addf %31, %45 : vector<16x16xf32>
    %cst_206 = arith.constant 0.307801336 : f32
    %387 = vector.broadcast %cst_206 : f32 to vector<16x16xf32>
    %388 = arith.mulf %387, %386 : vector<16x16xf32>
    %389 = arith.addf %385, %388 : vector<16x16xf32>
    %cst_207 = arith.constant 0.384397328 : f32
    %390 = vector.broadcast %cst_207 : f32 to vector<16x16xf32>
    %391 = arith.mulf %390, %40 : vector<16x16xf32>
    %392 = arith.addf %33, %47 : vector<16x16xf32>
    %cst_208 = arith.constant 0.307801336 : f32
    %393 = vector.broadcast %cst_208 : f32 to vector<16x16xf32>
    %394 = arith.mulf %393, %392 : vector<16x16xf32>
    %395 = arith.addf %391, %394 : vector<16x16xf32>
    %cst_209 = arith.constant 0.384397328 : f32
    %396 = vector.broadcast %cst_209 : f32 to vector<16x16xf32>
    %397 = arith.mulf %396, %41 : vector<16x16xf32>
    %398 = arith.addf %34, %48 : vector<16x16xf32>
    %cst_210 = arith.constant 0.307801336 : f32
    %399 = vector.broadcast %cst_210 : f32 to vector<16x16xf32>
    %400 = arith.mulf %399, %398 : vector<16x16xf32>
    %401 = arith.addf %397, %400 : vector<16x16xf32>
    %cst_211 = arith.constant 0.384397328 : f32
    %402 = vector.broadcast %cst_211 : f32 to vector<16x16xf32>
    %403 = arith.mulf %402, %42 : vector<16x16xf32>
    %404 = arith.addf %35, %49 : vector<16x16xf32>
    %cst_212 = arith.constant 0.307801336 : f32
    %405 = vector.broadcast %cst_212 : f32 to vector<16x16xf32>
    %406 = arith.mulf %405, %404 : vector<16x16xf32>
    %407 = arith.addf %403, %406 : vector<16x16xf32>
    %cst_213 = arith.constant 0.384397328 : f32
    %408 = vector.broadcast %cst_213 : f32 to vector<16x16xf32>
    %409 = arith.mulf %408, %43 : vector<16x16xf32>
    %410 = arith.addf %36, %50 : vector<16x16xf32>
    %cst_214 = arith.constant 0.307801336 : f32
    %411 = vector.broadcast %cst_214 : f32 to vector<16x16xf32>
    %412 = arith.mulf %411, %410 : vector<16x16xf32>
    %413 = arith.addf %409, %412 : vector<16x16xf32>
    %cst_215 = arith.constant dense<0.000000e+00> : vector<16x16xf32>
    %414 = tpu.matmul %0, %389, %cst_215 {dimension_numbers = #tpu.dot_dimension_numbers<[1], [0], [0], [1], [0, 0, 1, 1], [], []>, precision = #tpu.contract_precision<fp32>} : vector<16x16xf32>, vector<16x16xf32>, vector<16x16xf32> -> vector<16x16xf32>
    %cst_216 = arith.constant dense<0.000000e+00> : vector<16x16xf32>
    %415 = tpu.matmul %414, %1, %cst_216 {dimension_numbers = #tpu.dot_dimension_numbers<[1], [0], [0], [1], [0, 0, 1, 1], [], []>, precision = #tpu.contract_precision<fp32>} : vector<16x16xf32>, vector<16x16xf32>, vector<16x16xf32> -> vector<16x16xf32>
    %cst_217 = arith.constant dense<0.000000e+00> : vector<16x16xf32>
    %416 = tpu.matmul %0, %395, %cst_217 {dimension_numbers = #tpu.dot_dimension_numbers<[1], [0], [0], [1], [0, 0, 1, 1], [], []>, precision = #tpu.contract_precision<fp32>} : vector<16x16xf32>, vector<16x16xf32>, vector<16x16xf32> -> vector<16x16xf32>
    %cst_218 = arith.constant dense<0.000000e+00> : vector<16x16xf32>
    %417 = tpu.matmul %416, %1, %cst_218 {dimension_numbers = #tpu.dot_dimension_numbers<[1], [0], [0], [1], [0, 0, 1, 1], [], []>, precision = #tpu.contract_precision<fp32>} : vector<16x16xf32>, vector<16x16xf32>, vector<16x16xf32> -> vector<16x16xf32>
    %cst_219 = arith.constant dense<0.000000e+00> : vector<16x16xf32>
    %418 = tpu.matmul %0, %401, %cst_219 {dimension_numbers = #tpu.dot_dimension_numbers<[1], [0], [0], [1], [0, 0, 1, 1], [], []>, precision = #tpu.contract_precision<fp32>} : vector<16x16xf32>, vector<16x16xf32>, vector<16x16xf32> -> vector<16x16xf32>
    %cst_220 = arith.constant dense<0.000000e+00> : vector<16x16xf32>
    %419 = tpu.matmul %418, %1, %cst_220 {dimension_numbers = #tpu.dot_dimension_numbers<[1], [0], [0], [1], [0, 0, 1, 1], [], []>, precision = #tpu.contract_precision<fp32>} : vector<16x16xf32>, vector<16x16xf32>, vector<16x16xf32> -> vector<16x16xf32>
    %cst_221 = arith.constant dense<0.000000e+00> : vector<16x16xf32>
    %420 = tpu.matmul %0, %407, %cst_221 {dimension_numbers = #tpu.dot_dimension_numbers<[1], [0], [0], [1], [0, 0, 1, 1], [], []>, precision = #tpu.contract_precision<fp32>} : vector<16x16xf32>, vector<16x16xf32>, vector<16x16xf32> -> vector<16x16xf32>
    %cst_222 = arith.constant dense<0.000000e+00> : vector<16x16xf32>
    %421 = tpu.matmul %420, %1, %cst_222 {dimension_numbers = #tpu.dot_dimension_numbers<[1], [0], [0], [1], [0, 0, 1, 1], [], []>, precision = #tpu.contract_precision<fp32>} : vector<16x16xf32>, vector<16x16xf32>, vector<16x16xf32> -> vector<16x16xf32>
    %cst_223 = arith.constant dense<0.000000e+00> : vector<16x16xf32>
    %422 = tpu.matmul %0, %413, %cst_223 {dimension_numbers = #tpu.dot_dimension_numbers<[1], [0], [0], [1], [0, 0, 1, 1], [], []>, precision = #tpu.contract_precision<fp32>} : vector<16x16xf32>, vector<16x16xf32>, vector<16x16xf32> -> vector<16x16xf32>
    %cst_224 = arith.constant dense<0.000000e+00> : vector<16x16xf32>
    %423 = tpu.matmul %422, %1, %cst_224 {dimension_numbers = #tpu.dot_dimension_numbers<[1], [0], [0], [1], [0, 0, 1, 1], [], []>, precision = #tpu.contract_precision<fp32>} : vector<16x16xf32>, vector<16x16xf32>, vector<16x16xf32> -> vector<16x16xf32>
    %424 = arith.mulf %415, %415 : vector<16x16xf32>
    %425 = arith.mulf %417, %417 : vector<16x16xf32>
    %426 = arith.mulf %415, %417 : vector<16x16xf32>
    %427 = arith.subf %419, %424 : vector<16x16xf32>
    %428 = arith.subf %421, %425 : vector<16x16xf32>
    %429 = arith.subf %423, %426 : vector<16x16xf32>
    %cst_225 = arith.constant 2.000000e+00 : f32
    %430 = vector.broadcast %cst_225 : f32 to vector<16x16xf32>
    %431 = arith.mulf %430, %426 : vector<16x16xf32>
    %cst_226 = arith.constant 9.99999974E-5 : f32
    %432 = vector.broadcast %cst_226 : f32 to vector<16x16xf32>
    %433 = arith.addf %431, %432 : vector<16x16xf32>
    %cst_227 = arith.constant 2.000000e+00 : f32
    %434 = vector.broadcast %cst_227 : f32 to vector<16x16xf32>
    %435 = arith.mulf %434, %429 : vector<16x16xf32>
    %cst_228 = arith.constant 8.99999984E-4 : f32
    %436 = vector.broadcast %cst_228 : f32 to vector<16x16xf32>
    %437 = arith.addf %435, %436 : vector<16x16xf32>
    %438 = arith.mulf %433, %437 : vector<16x16xf32>
    %439 = arith.addf %424, %425 : vector<16x16xf32>
    %cst_229 = arith.constant 9.99999974E-5 : f32
    %440 = vector.broadcast %cst_229 : f32 to vector<16x16xf32>
    %441 = arith.addf %439, %440 : vector<16x16xf32>
    %442 = arith.addf %427, %428 : vector<16x16xf32>
    %cst_230 = arith.constant 8.99999984E-4 : f32
    %443 = vector.broadcast %cst_230 : f32 to vector<16x16xf32>
    %444 = arith.addf %442, %443 : vector<16x16xf32>
    %445 = arith.mulf %441, %444 : vector<16x16xf32>
    %446 = tpu.reciprocal %445 {approx = true} : vector<16x16xf32> -> vector<16x16xf32>
    %447 = arith.mulf %445, %446 : vector<16x16xf32>
    %cst_231 = arith.constant 2.000000e+00 : f32
    %448 = vector.broadcast %cst_231 : f32 to vector<16x16xf32>
    %449 = arith.subf %448, %447 : vector<16x16xf32>
    %450 = arith.mulf %446, %449 : vector<16x16xf32>
    %451 = arith.mulf %445, %450 : vector<16x16xf32>
    %cst_232 = arith.constant 2.000000e+00 : f32
    %452 = vector.broadcast %cst_232 : f32 to vector<16x16xf32>
    %453 = arith.subf %452, %451 : vector<16x16xf32>
    %454 = arith.mulf %450, %453 : vector<16x16xf32>
    %455 = arith.mulf %438, %454 : vector<16x16xf32>
    %c0_233 = arith.constant 0 : index
    %c4_234 = arith.constant 4 : index
    %c0_235 = arith.constant 0 : index
    %c0_236 = arith.constant 0 : index
    %456 = vector.load %arg10[%c0_233, %c4_234, %c0_235, %c0_236] : memref<1x8x16x16xf32, #tpu.memory_space<vmem>>, vector<1x1x16x16xf32>
    %457 = vector.shape_cast %456 : vector<1x1x16x16xf32> to vector<16x16xf32>
    %458 = vector.shape_cast %455 : vector<16x16xf32> to vector<1x1x16x16xf32>
    tpu.vector_store %arg10[%c0_233, %c4_234, %c0_235, %c0_236], %458 {strides = array<i32>} : memref<1x8x16x16xf32, #tpu.memory_space<vmem>>, vector<1x1x16x16xf32>,
    %cst_237 = arith.constant 0.384397328 : f32
    %459 = vector.broadcast %cst_237 : f32 to vector<16x16xf32>
    %460 = arith.mulf %459, %45 : vector<16x16xf32>
    %461 = arith.addf %38, %52 : vector<16x16xf32>
    %cst_238 = arith.constant 0.307801336 : f32
    %462 = vector.broadcast %cst_238 : f32 to vector<16x16xf32>
    %463 = arith.mulf %462, %461 : vector<16x16xf32>
    %464 = arith.addf %460, %463 : vector<16x16xf32>
    %cst_239 = arith.constant 0.384397328 : f32
    %465 = vector.broadcast %cst_239 : f32 to vector<16x16xf32>
    %466 = arith.mulf %465, %47 : vector<16x16xf32>
    %467 = arith.addf %40, %54 : vector<16x16xf32>
    %cst_240 = arith.constant 0.307801336 : f32
    %468 = vector.broadcast %cst_240 : f32 to vector<16x16xf32>
    %469 = arith.mulf %468, %467 : vector<16x16xf32>
    %470 = arith.addf %466, %469 : vector<16x16xf32>
    %cst_241 = arith.constant 0.384397328 : f32
    %471 = vector.broadcast %cst_241 : f32 to vector<16x16xf32>
    %472 = arith.mulf %471, %48 : vector<16x16xf32>
    %473 = arith.addf %41, %55 : vector<16x16xf32>
    %cst_242 = arith.constant 0.307801336 : f32
    %474 = vector.broadcast %cst_242 : f32 to vector<16x16xf32>
    %475 = arith.mulf %474, %473 : vector<16x16xf32>
    %476 = arith.addf %472, %475 : vector<16x16xf32>
    %cst_243 = arith.constant 0.384397328 : f32
    %477 = vector.broadcast %cst_243 : f32 to vector<16x16xf32>
    %478 = arith.mulf %477, %49 : vector<16x16xf32>
    %479 = arith.addf %42, %56 : vector<16x16xf32>
    %cst_244 = arith.constant 0.307801336 : f32
    %480 = vector.broadcast %cst_244 : f32 to vector<16x16xf32>
    %481 = arith.mulf %480, %479 : vector<16x16xf32>
    %482 = arith.addf %478, %481 : vector<16x16xf32>
    %cst_245 = arith.constant 0.384397328 : f32
    %483 = vector.broadcast %cst_245 : f32 to vector<16x16xf32>
    %484 = arith.mulf %483, %50 : vector<16x16xf32>
    %485 = arith.addf %43, %57 : vector<16x16xf32>
    %cst_246 = arith.constant 0.307801336 : f32
    %486 = vector.broadcast %cst_246 : f32 to vector<16x16xf32>
    %487 = arith.mulf %486, %485 : vector<16x16xf32>
    %488 = arith.addf %484, %487 : vector<16x16xf32>
    %cst_247 = arith.constant dense<0.000000e+00> : vector<16x16xf32>
    %489 = tpu.matmul %0, %464, %cst_247 {dimension_numbers = #tpu.dot_dimension_numbers<[1], [0], [0], [1], [0, 0, 1, 1], [], []>, precision = #tpu.contract_precision<fp32>} : vector<16x16xf32>, vector<16x16xf32>, vector<16x16xf32> -> vector<16x16xf32>
    %cst_248 = arith.constant dense<0.000000e+00> : vector<16x16xf32>
    %490 = tpu.matmul %489, %1, %cst_248 {dimension_numbers = #tpu.dot_dimension_numbers<[1], [0], [0], [1], [0, 0, 1, 1], [], []>, precision = #tpu.contract_precision<fp32>} : vector<16x16xf32>, vector<16x16xf32>, vector<16x16xf32> -> vector<16x16xf32>
    %cst_249 = arith.constant dense<0.000000e+00> : vector<16x16xf32>
    %491 = tpu.matmul %0, %470, %cst_249 {dimension_numbers = #tpu.dot_dimension_numbers<[1], [0], [0], [1], [0, 0, 1, 1], [], []>, precision = #tpu.contract_precision<fp32>} : vector<16x16xf32>, vector<16x16xf32>, vector<16x16xf32> -> vector<16x16xf32>
    %cst_250 = arith.constant dense<0.000000e+00> : vector<16x16xf32>
    %492 = tpu.matmul %491, %1, %cst_250 {dimension_numbers = #tpu.dot_dimension_numbers<[1], [0], [0], [1], [0, 0, 1, 1], [], []>, precision = #tpu.contract_precision<fp32>} : vector<16x16xf32>, vector<16x16xf32>, vector<16x16xf32> -> vector<16x16xf32>
    %cst_251 = arith.constant dense<0.000000e+00> : vector<16x16xf32>
    %493 = tpu.matmul %0, %476, %cst_251 {dimension_numbers = #tpu.dot_dimension_numbers<[1], [0], [0], [1], [0, 0, 1, 1], [], []>, precision = #tpu.contract_precision<fp32>} : vector<16x16xf32>, vector<16x16xf32>, vector<16x16xf32> -> vector<16x16xf32>
    %cst_252 = arith.constant dense<0.000000e+00> : vector<16x16xf32>
    %494 = tpu.matmul %493, %1, %cst_252 {dimension_numbers = #tpu.dot_dimension_numbers<[1], [0], [0], [1], [0, 0, 1, 1], [], []>, precision = #tpu.contract_precision<fp32>} : vector<16x16xf32>, vector<16x16xf32>, vector<16x16xf32> -> vector<16x16xf32>
    %cst_253 = arith.constant dense<0.000000e+00> : vector<16x16xf32>
    %495 = tpu.matmul %0, %482, %cst_253 {dimension_numbers = #tpu.dot_dimension_numbers<[1], [0], [0], [1], [0, 0, 1, 1], [], []>, precision = #tpu.contract_precision<fp32>} : vector<16x16xf32>, vector<16x16xf32>, vector<16x16xf32> -> vector<16x16xf32>
    %cst_254 = arith.constant dense<0.000000e+00> : vector<16x16xf32>
    %496 = tpu.matmul %495, %1, %cst_254 {dimension_numbers = #tpu.dot_dimension_numbers<[1], [0], [0], [1], [0, 0, 1, 1], [], []>, precision = #tpu.contract_precision<fp32>} : vector<16x16xf32>, vector<16x16xf32>, vector<16x16xf32> -> vector<16x16xf32>
    %cst_255 = arith.constant dense<0.000000e+00> : vector<16x16xf32>
    %497 = tpu.matmul %0, %488, %cst_255 {dimension_numbers = #tpu.dot_dimension_numbers<[1], [0], [0], [1], [0, 0, 1, 1], [], []>, precision = #tpu.contract_precision<fp32>} : vector<16x16xf32>, vector<16x16xf32>, vector<16x16xf32> -> vector<16x16xf32>
    %cst_256 = arith.constant dense<0.000000e+00> : vector<16x16xf32>
    %498 = tpu.matmul %497, %1, %cst_256 {dimension_numbers = #tpu.dot_dimension_numbers<[1], [0], [0], [1], [0, 0, 1, 1], [], []>, precision = #tpu.contract_precision<fp32>} : vector<16x16xf32>, vector<16x16xf32>, vector<16x16xf32> -> vector<16x16xf32>
    %499 = arith.mulf %490, %490 : vector<16x16xf32>
    %500 = arith.mulf %492, %492 : vector<16x16xf32>
    %501 = arith.mulf %490, %492 : vector<16x16xf32>
    %502 = arith.subf %494, %499 : vector<16x16xf32>
    %503 = arith.subf %496, %500 : vector<16x16xf32>
    %504 = arith.subf %498, %501 : vector<16x16xf32>
    %cst_257 = arith.constant 2.000000e+00 : f32
    %505 = vector.broadcast %cst_257 : f32 to vector<16x16xf32>
    %506 = arith.mulf %505, %501 : vector<16x16xf32>
    %cst_258 = arith.constant 9.99999974E-5 : f32
    %507 = vector.broadcast %cst_258 : f32 to vector<16x16xf32>
    %508 = arith.addf %506, %507 : vector<16x16xf32>
    %cst_259 = arith.constant 2.000000e+00 : f32
    %509 = vector.broadcast %cst_259 : f32 to vector<16x16xf32>
    %510 = arith.mulf %509, %504 : vector<16x16xf32>
    %cst_260 = arith.constant 8.99999984E-4 : f32
    %511 = vector.broadcast %cst_260 : f32 to vector<16x16xf32>
    %512 = arith.addf %510, %511 : vector<16x16xf32>
    %513 = arith.mulf %508, %512 : vector<16x16xf32>
    %514 = arith.addf %499, %500 : vector<16x16xf32>
    %cst_261 = arith.constant 9.99999974E-5 : f32
    %515 = vector.broadcast %cst_261 : f32 to vector<16x16xf32>
    %516 = arith.addf %514, %515 : vector<16x16xf32>
    %517 = arith.addf %502, %503 : vector<16x16xf32>
    %cst_262 = arith.constant 8.99999984E-4 : f32
    %518 = vector.broadcast %cst_262 : f32 to vector<16x16xf32>
    %519 = arith.addf %517, %518 : vector<16x16xf32>
    %520 = arith.mulf %516, %519 : vector<16x16xf32>
    %521 = tpu.reciprocal %520 {approx = true} : vector<16x16xf32> -> vector<16x16xf32>
    %522 = arith.mulf %520, %521 : vector<16x16xf32>
    %cst_263 = arith.constant 2.000000e+00 : f32
    %523 = vector.broadcast %cst_263 : f32 to vector<16x16xf32>
    %524 = arith.subf %523, %522 : vector<16x16xf32>
    %525 = arith.mulf %521, %524 : vector<16x16xf32>
    %526 = arith.mulf %520, %525 : vector<16x16xf32>
    %cst_264 = arith.constant 2.000000e+00 : f32
    %527 = vector.broadcast %cst_264 : f32 to vector<16x16xf32>
    %528 = arith.subf %527, %526 : vector<16x16xf32>
    %529 = arith.mulf %525, %528 : vector<16x16xf32>
    %530 = arith.mulf %513, %529 : vector<16x16xf32>
    %c0_265 = arith.constant 0 : index
    %c5_266 = arith.constant 5 : index
    %c0_267 = arith.constant 0 : index
    %c0_268 = arith.constant 0 : index
    %531 = vector.load %arg10[%c0_265, %c5_266, %c0_267, %c0_268] : memref<1x8x16x16xf32, #tpu.memory_space<vmem>>, vector<1x1x16x16xf32>
    %532 = vector.shape_cast %531 : vector<1x1x16x16xf32> to vector<16x16xf32>
    %533 = vector.shape_cast %530 : vector<16x16xf32> to vector<1x1x16x16xf32>
    tpu.vector_store %arg10[%c0_265, %c5_266, %c0_267, %c0_268], %533 {strides = array<i32>} : memref<1x8x16x16xf32, #tpu.memory_space<vmem>>, vector<1x1x16x16xf32>,
    %cst_269 = arith.constant 0.384397328 : f32
    %534 = vector.broadcast %cst_269 : f32 to vector<16x16xf32>
    %535 = arith.mulf %534, %52 : vector<16x16xf32>
    %536 = arith.addf %45, %59 : vector<16x16xf32>
    %cst_270 = arith.constant 0.307801336 : f32
    %537 = vector.broadcast %cst_270 : f32 to vector<16x16xf32>
    %538 = arith.mulf %537, %536 : vector<16x16xf32>
    %539 = arith.addf %535, %538 : vector<16x16xf32>
    %cst_271 = arith.constant 0.384397328 : f32
    %540 = vector.broadcast %cst_271 : f32 to vector<16x16xf32>
    %541 = arith.mulf %540, %54 : vector<16x16xf32>
    %542 = arith.addf %47, %61 : vector<16x16xf32>
    %cst_272 = arith.constant 0.307801336 : f32
    %543 = vector.broadcast %cst_272 : f32 to vector<16x16xf32>
    %544 = arith.mulf %543, %542 : vector<16x16xf32>
    %545 = arith.addf %541, %544 : vector<16x16xf32>
    %cst_273 = arith.constant 0.384397328 : f32
    %546 = vector.broadcast %cst_273 : f32 to vector<16x16xf32>
    %547 = arith.mulf %546, %55 : vector<16x16xf32>
    %548 = arith.addf %48, %62 : vector<16x16xf32>
    %cst_274 = arith.constant 0.307801336 : f32
    %549 = vector.broadcast %cst_274 : f32 to vector<16x16xf32>
    %550 = arith.mulf %549, %548 : vector<16x16xf32>
    %551 = arith.addf %547, %550 : vector<16x16xf32>
    %cst_275 = arith.constant 0.384397328 : f32
    %552 = vector.broadcast %cst_275 : f32 to vector<16x16xf32>
    %553 = arith.mulf %552, %56 : vector<16x16xf32>
    %554 = arith.addf %49, %63 : vector<16x16xf32>
    %cst_276 = arith.constant 0.307801336 : f32
    %555 = vector.broadcast %cst_276 : f32 to vector<16x16xf32>
    %556 = arith.mulf %555, %554 : vector<16x16xf32>
    %557 = arith.addf %553, %556 : vector<16x16xf32>
    %cst_277 = arith.constant 0.384397328 : f32
    %558 = vector.broadcast %cst_277 : f32 to vector<16x16xf32>
    %559 = arith.mulf %558, %57 : vector<16x16xf32>
    %560 = arith.addf %50, %64 : vector<16x16xf32>
    %cst_278 = arith.constant 0.307801336 : f32
    %561 = vector.broadcast %cst_278 : f32 to vector<16x16xf32>
    %562 = arith.mulf %561, %560 : vector<16x16xf32>
    %563 = arith.addf %559, %562 : vector<16x16xf32>
    %cst_279 = arith.constant dense<0.000000e+00> : vector<16x16xf32>
    %564 = tpu.matmul %0, %539, %cst_279 {dimension_numbers = #tpu.dot_dimension_numbers<[1], [0], [0], [1], [0, 0, 1, 1], [], []>, precision = #tpu.contract_precision<fp32>} : vector<16x16xf32>, vector<16x16xf32>, vector<16x16xf32> -> vector<16x16xf32>
    %cst_280 = arith.constant dense<0.000000e+00> : vector<16x16xf32>
    %565 = tpu.matmul %564, %1, %cst_280 {dimension_numbers = #tpu.dot_dimension_numbers<[1], [0], [0], [1], [0, 0, 1, 1], [], []>, precision = #tpu.contract_precision<fp32>} : vector<16x16xf32>, vector<16x16xf32>, vector<16x16xf32> -> vector<16x16xf32>
    %cst_281 = arith.constant dense<0.000000e+00> : vector<16x16xf32>
    %566 = tpu.matmul %0, %545, %cst_281 {dimension_numbers = #tpu.dot_dimension_numbers<[1], [0], [0], [1], [0, 0, 1, 1], [], []>, precision = #tpu.contract_precision<fp32>} : vector<16x16xf32>, vector<16x16xf32>, vector<16x16xf32> -> vector<16x16xf32>
    %cst_282 = arith.constant dense<0.000000e+00> : vector<16x16xf32>
    %567 = tpu.matmul %566, %1, %cst_282 {dimension_numbers = #tpu.dot_dimension_numbers<[1], [0], [0], [1], [0, 0, 1, 1], [], []>, precision = #tpu.contract_precision<fp32>} : vector<16x16xf32>, vector<16x16xf32>, vector<16x16xf32> -> vector<16x16xf32>
    %cst_283 = arith.constant dense<0.000000e+00> : vector<16x16xf32>
    %568 = tpu.matmul %0, %551, %cst_283 {dimension_numbers = #tpu.dot_dimension_numbers<[1], [0], [0], [1], [0, 0, 1, 1], [], []>, precision = #tpu.contract_precision<fp32>} : vector<16x16xf32>, vector<16x16xf32>, vector<16x16xf32> -> vector<16x16xf32>
    %cst_284 = arith.constant dense<0.000000e+00> : vector<16x16xf32>
    %569 = tpu.matmul %568, %1, %cst_284 {dimension_numbers = #tpu.dot_dimension_numbers<[1], [0], [0], [1], [0, 0, 1, 1], [], []>, precision = #tpu.contract_precision<fp32>} : vector<16x16xf32>, vector<16x16xf32>, vector<16x16xf32> -> vector<16x16xf32>
    %cst_285 = arith.constant dense<0.000000e+00> : vector<16x16xf32>
    %570 = tpu.matmul %0, %557, %cst_285 {dimension_numbers = #tpu.dot_dimension_numbers<[1], [0], [0], [1], [0, 0, 1, 1], [], []>, precision = #tpu.contract_precision<fp32>} : vector<16x16xf32>, vector<16x16xf32>, vector<16x16xf32> -> vector<16x16xf32>
    %cst_286 = arith.constant dense<0.000000e+00> : vector<16x16xf32>
    %571 = tpu.matmul %570, %1, %cst_286 {dimension_numbers = #tpu.dot_dimension_numbers<[1], [0], [0], [1], [0, 0, 1, 1], [], []>, precision = #tpu.contract_precision<fp32>} : vector<16x16xf32>, vector<16x16xf32>, vector<16x16xf32> -> vector<16x16xf32>
    %cst_287 = arith.constant dense<0.000000e+00> : vector<16x16xf32>
    %572 = tpu.matmul %0, %563, %cst_287 {dimension_numbers = #tpu.dot_dimension_numbers<[1], [0], [0], [1], [0, 0, 1, 1], [], []>, precision = #tpu.contract_precision<fp32>} : vector<16x16xf32>, vector<16x16xf32>, vector<16x16xf32> -> vector<16x16xf32>
    %cst_288 = arith.constant dense<0.000000e+00> : vector<16x16xf32>
    %573 = tpu.matmul %572, %1, %cst_288 {dimension_numbers = #tpu.dot_dimension_numbers<[1], [0], [0], [1], [0, 0, 1, 1], [], []>, precision = #tpu.contract_precision<fp32>} : vector<16x16xf32>, vector<16x16xf32>, vector<16x16xf32> -> vector<16x16xf32>
    %574 = arith.mulf %565, %565 : vector<16x16xf32>
    %575 = arith.mulf %567, %567 : vector<16x16xf32>
    %576 = arith.mulf %565, %567 : vector<16x16xf32>
    %577 = arith.subf %569, %574 : vector<16x16xf32>
    %578 = arith.subf %571, %575 : vector<16x16xf32>
    %579 = arith.subf %573, %576 : vector<16x16xf32>
    %cst_289 = arith.constant 2.000000e+00 : f32
    %580 = vector.broadcast %cst_289 : f32 to vector<16x16xf32>
    %581 = arith.mulf %580, %576 : vector<16x16xf32>
    %cst_290 = arith.constant 9.99999974E-5 : f32
    %582 = vector.broadcast %cst_290 : f32 to vector<16x16xf32>
    %583 = arith.addf %581, %582 : vector<16x16xf32>
    %cst_291 = arith.constant 2.000000e+00 : f32
    %584 = vector.broadcast %cst_291 : f32 to vector<16x16xf32>
    %585 = arith.mulf %584, %579 : vector<16x16xf32>
    %cst_292 = arith.constant 8.99999984E-4 : f32
    %586 = vector.broadcast %cst_292 : f32 to vector<16x16xf32>
    %587 = arith.addf %585, %586 : vector<16x16xf32>
    %588 = arith.mulf %583, %587 : vector<16x16xf32>
    %589 = arith.addf %574, %575 : vector<16x16xf32>
    %cst_293 = arith.constant 9.99999974E-5 : f32
    %590 = vector.broadcast %cst_293 : f32 to vector<16x16xf32>
    %591 = arith.addf %589, %590 : vector<16x16xf32>
    %592 = arith.addf %577, %578 : vector<16x16xf32>
    %cst_294 = arith.constant 8.99999984E-4 : f32
    %593 = vector.broadcast %cst_294 : f32 to vector<16x16xf32>
    %594 = arith.addf %592, %593 : vector<16x16xf32>
    %595 = arith.mulf %591, %594 : vector<16x16xf32>
    %596 = tpu.reciprocal %595 {approx = true} : vector<16x16xf32> -> vector<16x16xf32>
    %597 = arith.mulf %595, %596 : vector<16x16xf32>
    %cst_295 = arith.constant 2.000000e+00 : f32
    %598 = vector.broadcast %cst_295 : f32 to vector<16x16xf32>
    %599 = arith.subf %598, %597 : vector<16x16xf32>
    %600 = arith.mulf %596, %599 : vector<16x16xf32>
    %601 = arith.mulf %595, %600 : vector<16x16xf32>
    %cst_296 = arith.constant 2.000000e+00 : f32
    %602 = vector.broadcast %cst_296 : f32 to vector<16x16xf32>
    %603 = arith.subf %602, %601 : vector<16x16xf32>
    %604 = arith.mulf %600, %603 : vector<16x16xf32>
    %605 = arith.mulf %588, %604 : vector<16x16xf32>
    %c0_297 = arith.constant 0 : index
    %c6_298 = arith.constant 6 : index
    %c0_299 = arith.constant 0 : index
    %c0_300 = arith.constant 0 : index
    %606 = vector.load %arg10[%c0_297, %c6_298, %c0_299, %c0_300] : memref<1x8x16x16xf32, #tpu.memory_space<vmem>>, vector<1x1x16x16xf32>
    %607 = vector.shape_cast %606 : vector<1x1x16x16xf32> to vector<16x16xf32>
    %608 = vector.shape_cast %605 : vector<16x16xf32> to vector<1x1x16x16xf32>
    tpu.vector_store %arg10[%c0_297, %c6_298, %c0_299, %c0_300], %608 {strides = array<i32>} : memref<1x8x16x16xf32, #tpu.memory_space<vmem>>, vector<1x1x16x16xf32>,
    %c0_i32_301 = arith.constant 0 : i32
    %609 = arith.cmpi eq, %arg1, %c0_i32_301 : i32
    %cst_302 = arith.constant 0.000000e+00 : f32
    %cst_303 = arith.constant 0.307801336 : f32
    %610 = arith.select %609, %cst_302, %cst_303 : f32
    %cst_304 = arith.constant 0.384397328 : f32
    %611 = vector.broadcast %cst_304 : f32 to vector<16x16xf32>
    %612 = arith.mulf %611, %59 : vector<16x16xf32>
    %cst_305 = arith.constant 0.307801336 : f32
    %613 = vector.broadcast %cst_305 : f32 to vector<16x16xf32>
    %614 = arith.mulf %613, %52 : vector<16x16xf32>
    %615 = arith.addf %612, %614 : vector<16x16xf32>
    %616 = vector.broadcast %610 : f32 to vector<16x16xf32>
    %617 = arith.mulf %616, %66 : vector<16x16xf32>
    %618 = arith.addf %615, %617 : vector<16x16xf32>
    %cst_306 = arith.constant 0.384397328 : f32
    %619 = vector.broadcast %cst_306 : f32 to vector<16x16xf32>
    %620 = arith.mulf %619, %61 : vector<16x16xf32>
    %cst_307 = arith.constant 0.307801336 : f32
    %621 = vector.broadcast %cst_307 : f32 to vector<16x16xf32>
    %622 = arith.mulf %621, %54 : vector<16x16xf32>
    %623 = arith.addf %620, %622 : vector<16x16xf32>
    %624 = vector.broadcast %610 : f32 to vector<16x16xf32>
    %625 = arith.mulf %624, %68 : vector<16x16xf32>
    %626 = arith.addf %623, %625 : vector<16x16xf32>
    %cst_308 = arith.constant 0.384397328 : f32
    %627 = vector.broadcast %cst_308 : f32 to vector<16x16xf32>
    %628 = arith.mulf %627, %62 : vector<16x16xf32>
    %cst_309 = arith.constant 0.307801336 : f32
    %629 = vector.broadcast %cst_309 : f32 to vector<16x16xf32>
    %630 = arith.mulf %629, %55 : vector<16x16xf32>
    %631 = arith.addf %628, %630 : vector<16x16xf32>
    %632 = vector.broadcast %610 : f32 to vector<16x16xf32>
    %633 = arith.mulf %632, %69 : vector<16x16xf32>
    %634 = arith.addf %631, %633 : vector<16x16xf32>
    %cst_310 = arith.constant 0.384397328 : f32
    %635 = vector.broadcast %cst_310 : f32 to vector<16x16xf32>
    %636 = arith.mulf %635, %63 : vector<16x16xf32>
    %cst_311 = arith.constant 0.307801336 : f32
    %637 = vector.broadcast %cst_311 : f32 to vector<16x16xf32>
    %638 = arith.mulf %637, %56 : vector<16x16xf32>
    %639 = arith.addf %636, %638 : vector<16x16xf32>
    %640 = vector.broadcast %610 : f32 to vector<16x16xf32>
    %641 = arith.mulf %640, %70 : vector<16x16xf32>
    %642 = arith.addf %639, %641 : vector<16x16xf32>
    %cst_312 = arith.constant 0.384397328 : f32
    %643 = vector.broadcast %cst_312 : f32 to vector<16x16xf32>
    %644 = arith.mulf %643, %64 : vector<16x16xf32>
    %cst_313 = arith.constant 0.307801336 : f32
    %645 = vector.broadcast %cst_313 : f32 to vector<16x16xf32>
    %646 = arith.mulf %645, %57 : vector<16x16xf32>
    %647 = arith.addf %644, %646 : vector<16x16xf32>
    %648 = vector.broadcast %610 : f32 to vector<16x16xf32>
    %649 = arith.mulf %648, %71 : vector<16x16xf32>
    %650 = arith.addf %647, %649 : vector<16x16xf32>
    %cst_314 = arith.constant dense<0.000000e+00> : vector<16x16xf32>
    %651 = tpu.matmul %0, %618, %cst_314 {dimension_numbers = #tpu.dot_dimension_numbers<[1], [0], [0], [1], [0, 0, 1, 1], [], []>, precision = #tpu.contract_precision<fp32>} : vector<16x16xf32>, vector<16x16xf32>, vector<16x16xf32> -> vector<16x16xf32>
    %cst_315 = arith.constant dense<0.000000e+00> : vector<16x16xf32>
    %652 = tpu.matmul %651, %1, %cst_315 {dimension_numbers = #tpu.dot_dimension_numbers<[1], [0], [0], [1], [0, 0, 1, 1], [], []>, precision = #tpu.contract_precision<fp32>} : vector<16x16xf32>, vector<16x16xf32>, vector<16x16xf32> -> vector<16x16xf32>
    %cst_316 = arith.constant dense<0.000000e+00> : vector<16x16xf32>
    %653 = tpu.matmul %0, %626, %cst_316 {dimension_numbers = #tpu.dot_dimension_numbers<[1], [0], [0], [1], [0, 0, 1, 1], [], []>, precision = #tpu.contract_precision<fp32>} : vector<16x16xf32>, vector<16x16xf32>, vector<16x16xf32> -> vector<16x16xf32>
    %cst_317 = arith.constant dense<0.000000e+00> : vector<16x16xf32>
    %654 = tpu.matmul %653, %1, %cst_317 {dimension_numbers = #tpu.dot_dimension_numbers<[1], [0], [0], [1], [0, 0, 1, 1], [], []>, precision = #tpu.contract_precision<fp32>} : vector<16x16xf32>, vector<16x16xf32>, vector<16x16xf32> -> vector<16x16xf32>
    %cst_318 = arith.constant dense<0.000000e+00> : vector<16x16xf32>
    %655 = tpu.matmul %0, %634, %cst_318 {dimension_numbers = #tpu.dot_dimension_numbers<[1], [0], [0], [1], [0, 0, 1, 1], [], []>, precision = #tpu.contract_precision<fp32>} : vector<16x16xf32>, vector<16x16xf32>, vector<16x16xf32> -> vector<16x16xf32>
    %cst_319 = arith.constant dense<0.000000e+00> : vector<16x16xf32>
    %656 = tpu.matmul %655, %1, %cst_319 {dimension_numbers = #tpu.dot_dimension_numbers<[1], [0], [0], [1], [0, 0, 1, 1], [], []>, precision = #tpu.contract_precision<fp32>} : vector<16x16xf32>, vector<16x16xf32>, vector<16x16xf32> -> vector<16x16xf32>
    %cst_320 = arith.constant dense<0.000000e+00> : vector<16x16xf32>
    %657 = tpu.matmul %0, %642, %cst_320 {dimension_numbers = #tpu.dot_dimension_numbers<[1], [0], [0], [1], [0, 0, 1, 1], [], []>, precision = #tpu.contract_precision<fp32>} : vector<16x16xf32>, vector<16x16xf32>, vector<16x16xf32> -> vector<16x16xf32>
    %cst_321 = arith.constant dense<0.000000e+00> : vector<16x16xf32>
    %658 = tpu.matmul %657, %1, %cst_321 {dimension_numbers = #tpu.dot_dimension_numbers<[1], [0], [0], [1], [0, 0, 1, 1], [], []>, precision = #tpu.contract_precision<fp32>} : vector<16x16xf32>, vector<16x16xf32>, vector<16x16xf32> -> vector<16x16xf32>
    %cst_322 = arith.constant dense<0.000000e+00> : vector<16x16xf32>
    %659 = tpu.matmul %0, %650, %cst_322 {dimension_numbers = #tpu.dot_dimension_numbers<[1], [0], [0], [1], [0, 0, 1, 1], [], []>, precision = #tpu.contract_precision<fp32>} : vector<16x16xf32>, vector<16x16xf32>, vector<16x16xf32> -> vector<16x16xf32>
    %cst_323 = arith.constant dense<0.000000e+00> : vector<16x16xf32>
    %660 = tpu.matmul %659, %1, %cst_323 {dimension_numbers = #tpu.dot_dimension_numbers<[1], [0], [0], [1], [0, 0, 1, 1], [], []>, precision = #tpu.contract_precision<fp32>} : vector<16x16xf32>, vector<16x16xf32>, vector<16x16xf32> -> vector<16x16xf32>
    %661 = arith.mulf %652, %652 : vector<16x16xf32>
    %662 = arith.mulf %654, %654 : vector<16x16xf32>
    %663 = arith.mulf %652, %654 : vector<16x16xf32>
    %664 = arith.subf %656, %661 : vector<16x16xf32>
    %665 = arith.subf %658, %662 : vector<16x16xf32>
    %666 = arith.subf %660, %663 : vector<16x16xf32>
    %cst_324 = arith.constant 2.000000e+00 : f32
    %667 = vector.broadcast %cst_324 : f32 to vector<16x16xf32>
    %668 = arith.mulf %667, %663 : vector<16x16xf32>
    %cst_325 = arith.constant 9.99999974E-5 : f32
    %669 = vector.broadcast %cst_325 : f32 to vector<16x16xf32>
    %670 = arith.addf %668, %669 : vector<16x16xf32>
    %cst_326 = arith.constant 2.000000e+00 : f32
    %671 = vector.broadcast %cst_326 : f32 to vector<16x16xf32>
    %672 = arith.mulf %671, %666 : vector<16x16xf32>
    %cst_327 = arith.constant 8.99999984E-4 : f32
    %673 = vector.broadcast %cst_327 : f32 to vector<16x16xf32>
    %674 = arith.addf %672, %673 : vector<16x16xf32>
    %675 = arith.mulf %670, %674 : vector<16x16xf32>
    %676 = arith.addf %661, %662 : vector<16x16xf32>
    %cst_328 = arith.constant 9.99999974E-5 : f32
    %677 = vector.broadcast %cst_328 : f32 to vector<16x16xf32>
    %678 = arith.addf %676, %677 : vector<16x16xf32>
    %679 = arith.addf %664, %665 : vector<16x16xf32>
    %cst_329 = arith.constant 8.99999984E-4 : f32
    %680 = vector.broadcast %cst_329 : f32 to vector<16x16xf32>
    %681 = arith.addf %679, %680 : vector<16x16xf32>
    %682 = arith.mulf %678, %681 : vector<16x16xf32>
    %683 = tpu.reciprocal %682 {approx = true} : vector<16x16xf32> -> vector<16x16xf32>
    %684 = arith.mulf %682, %683 : vector<16x16xf32>
    %cst_330 = arith.constant 2.000000e+00 : f32
    %685 = vector.broadcast %cst_330 : f32 to vector<16x16xf32>
    %686 = arith.subf %685, %684 : vector<16x16xf32>
    %687 = arith.mulf %683, %686 : vector<16x16xf32>
    %688 = arith.mulf %682, %687 : vector<16x16xf32>
    %cst_331 = arith.constant 2.000000e+00 : f32
    %689 = vector.broadcast %cst_331 : f32 to vector<16x16xf32>
    %690 = arith.subf %689, %688 : vector<16x16xf32>
    %691 = arith.mulf %687, %690 : vector<16x16xf32>
    %692 = arith.mulf %675, %691 : vector<16x16xf32>
    %c0_332 = arith.constant 0 : index
    %c7_333 = arith.constant 7 : index
    %c0_334 = arith.constant 0 : index
    %c0_335 = arith.constant 0 : index
    %693 = vector.load %arg10[%c0_332, %c7_333, %c0_334, %c0_335] : memref<1x8x16x16xf32, #tpu.memory_space<vmem>>, vector<1x1x16x16xf32>
    %694 = vector.shape_cast %693 : vector<1x1x16x16xf32> to vector<16x16xf32>
    %695 = vector.shape_cast %692 : vector<16x16xf32> to vector<1x1x16x16xf32>
    tpu.vector_store %arg10[%c0_332, %c7_333, %c0_334, %c0_335], %695 {strides = array<i32>} : memref<1x8x16x16xf32, #tpu.memory_space<vmem>>, vector<1x1x16x16xf32>,
    return
  }
  func.func @transform_0(%arg0: i32, %arg1: i32) -> (i32, i32) {
    %c0_i32 = arith.constant 0 : i32
    %c0_i32_0 = arith.constant 0 : i32
    %c0_i32_1 = arith.constant 0 : i32
    return %c0_i32, %c0_i32_0 : i32, i32
  }
  func.func @transform_1(%arg0: i32, %arg1: i32) -> (i32, i32) {
    %c0_i32 = arith.constant 0 : i32
    %c0_i32_0 = arith.constant 0 : i32
    %c0_i32_1 = arith.constant 0 : i32
    return %c0_i32, %c0_i32_0 : i32, i32
  }
  func.func @transform_2(%arg0: i32, %arg1: i32) -> (i32, i32, i32, i32) {
    %c0_i32 = arith.constant 0 : i32
    %c0_i32_0 = arith.constant 0 : i32
    %c0_i32_1 = arith.constant 0 : i32
    return %arg0, %arg1, %c0_i32, %c0_i32_0 : i32, i32, i32, i32
  }
  func.func @transform_3(%arg0: i32, %arg1: i32) -> (i32, i32, i32, i32) {
    %c8_i32 = arith.constant 8 : i32
    %0 = arith.muli %arg1, %c8_i32 : i32
    %c1_i32 = arith.constant 1 : i32
    %1 = arith.subi %0, %c1_i32 : i32
    %c0_i32 = arith.constant 0 : i32
    %2 = arith.maxsi %1, %c0_i32 : i32
    %c0_i32_0 = arith.constant 0 : i32
    %c0_i32_1 = arith.constant 0 : i32
    %c0_i32_2 = arith.constant 0 : i32
    return %arg0, %2, %c0_i32_0, %c0_i32_1 : i32, i32, i32, i32
  }
  func.func @transform_4(%arg0: i32, %arg1: i32) -> (i32, i32, i32, i32) {
    %c1_i32 = arith.constant 1 : i32
    %0 = arith.addi %arg1, %c1_i32 : i32
    %c8_i32 = arith.constant 8 : i32
    %1 = arith.muli %0, %c8_i32 : i32
    %c7_i32 = arith.constant 7 : i32
    %2 = arith.minsi %1, %c7_i32 : i32
    %c0_i32 = arith.constant 0 : i32
    %c0_i32_0 = arith.constant 0 : i32
    %c0_i32_1 = arith.constant 0 : i32
    return %arg0, %2, %c0_i32, %c0_i32_0 : i32, i32, i32, i32
  }
  func.func @transform_5(%arg0: i32, %arg1: i32) -> (i32, i32, i32, i32) {
    %c0_i32 = arith.constant 0 : i32
    %c0_i32_0 = arith.constant 0 : i32
    %c0_i32_1 = arith.constant 0 : i32
    return %arg0, %arg1, %c0_i32, %c0_i32_0 : i32, i32, i32, i32
  }
  func.func @transform_6(%arg0: i32, %arg1: i32) -> (i32, i32, i32, i32) {
    %c8_i32 = arith.constant 8 : i32
    %0 = arith.muli %arg1, %c8_i32 : i32
    %c1_i32 = arith.constant 1 : i32
    %1 = arith.subi %0, %c1_i32 : i32
    %c0_i32 = arith.constant 0 : i32
    %2 = arith.maxsi %1, %c0_i32 : i32
    %c0_i32_0 = arith.constant 0 : i32
    %c0_i32_1 = arith.constant 0 : i32
    %c0_i32_2 = arith.constant 0 : i32
    return %arg0, %2, %c0_i32_0, %c0_i32_1 : i32, i32, i32, i32
  }
  func.func @transform_7(%arg0: i32, %arg1: i32) -> (i32, i32, i32, i32) {
    %c1_i32 = arith.constant 1 : i32
    %0 = arith.addi %arg1, %c1_i32 : i32
    %c8_i32 = arith.constant 8 : i32
    %1 = arith.muli %0, %c8_i32 : i32
    %c7_i32 = arith.constant 7 : i32
    %2 = arith.minsi %1, %c7_i32 : i32
    %c0_i32 = arith.constant 0 : i32
    %c0_i32_0 = arith.constant 0 : i32
    %c0_i32_1 = arith.constant 0 : i32
    return %arg0, %2, %c0_i32, %c0_i32_0 : i32, i32, i32, i32
  }
  func.func @transform_8(%arg0: i32, %arg1: i32) -> (i32, i32, i32, i32) {
    %c0_i32 = arith.constant 0 : i32
    %c0_i32_0 = arith.constant 0 : i32
    %c0_i32_1 = arith.constant 0 : i32
    return %arg0, %arg1, %c0_i32, %c0_i32_0 : i32, i32, i32, i32
  }
}

</mosaic_0001>

<bundles_post_ra>
// kernel: tpu_custom_call.1
= control target key start
LH: loop header
LB: loop body
LE: loop exit
PB: predicated region body
PF: predicated region fallthrough
CT: control target
= control target key end

     0   :  { %s20953_s0 = inlined_call_operand.hbm [shape: f32[16,16], index: 0, kind: input, shape index: {}]   ;;  %s20954_s1 = inlined_call_operand.hbm [shape: f32[16,16], index: 1, kind: input, shape index: {}]   ;;  %s20955_s2 = inlined_call_operand.hbm [shape: f32[4,8,16,16], index: 2, kind: input, shape index: {}]   ;;  %s20956_s3 = inlined_call_operand.hbm [shape: f32[4,8,16,16], index: 3, kind: input, shape index: {}]   ;;  %s20957_s4 = inlined_call_operand.hbm [shape: f32[4,8,16,16], index: 4, kind: input, shape index: {}]   ;;  %s20958_s5 = inlined_call_operand.hbm [shape: f32[4,8,16,16], index: 5, kind: input, shape index: {}]   ;;  %s20959_s6 = inlined_call_operand.hbm [shape: f32[4,8,16,16], index: 6, kind: input, shape index: {}]   ;;  %s20960_s7 = inlined_call_operand.hbm [shape: f32[4,8,16,16], index: 7, kind: input, shape index: {}]   ;;  %s20961_s8 = inlined_call_operand.hbm [shape: f32[4,8,16,16], index: 8, kind: output, shape index: {}]  }
   0x1   :  { %21073 = sst [smem:[#allocation67_spill]] %s20953_s0 }
   0x2   :  { %21074 = sst [smem:[#allocation68_spill]] %s20955_s2 }
   0x3   :  { %21075 = sst [smem:[#allocation69_spill]] %s20956_s3 }
   0x4   :  { %13 = vsyncpa [#allocation3], 0 }
   0x5   :  { %14 = vsyncpa [#allocation6], 0 }
   0x6   :  { %15 = vsyncpa [#allocation4], 0 }
   0x7   :  { %17 = vsyncpa [#allocation4 + $0x1], 0  ;;  %s17891_s27 = smov 0   ;;  %s17893_s28 = smov 0  }
   0x8   :  { %s17895_s29 = smov 0   ;;  %s17897_s30 = smov 0  }
   0x9   :  { %s17899_s9 = smov 0   ;;  %s17901_s10 = smov 0  }
   0xa LB: > { %21076 = sst [smem:[#allocation18_spill]] %s17818_s27  ;;  %s17922_s11 = sadd.s32 4294967295, %s17838_s10   ;;  %s17838_s10 = sphi %s17901_s10, %s23_s10   ;;  %s17834_s9 = sphi %s17899_s9, %s21641_s9   ;;  %s17830_s30 = sphi %s17897_s30, %s21640_s30   ;;  %s17826_s29 = sphi %s17895_s29, %s21639_s29   ;;  %s17822_s28 = sphi %s17893_s28, %s21643_s28   ;;  %s17818_s27 = sphi %s17891_s27, %s21642_s27  }
   0xb   : > { %21077 = sst [smem:[#allocation19_spill]] %s17826_s29  ;;  %s17215_s12 = sadd.s32 4294967294, %s17838_s10  }
   0xc   : > { %21078 = sst [smem:[#allocation20_spill]] %s17834_s9  ;;  %p99_p0 = scmp.ne.s32.totalorder %s17822_s28, %s17818_s27 }
   0xd   : > { %21079 = sst [smem:[#allocation21_spill]] %s17838_s10  ;;  %p100_p1 = scmp.eq.s32.totalorder %s17922_s11, 0 }
   0xe   : > { %p297_p2 = scmp.eq.s32.totalorder %s17922_s11, 3  ;;  %p303_p3 = scmp.eq.s32.totalorder %s17215_s12, 3 }
   0xf   : > { %p17931_p4 = por %p100_p1, %p99_p0  ;;  %p17216_p5 = scmp.ge.s32.totalorder %s17838_s10, 1 }
  0x10   : > { %p17936_p6 = por %p303_p3, %p99_p0  ;;  %p310_p7 = scmp.lt.s32.totalorder %s17838_s10, 5 }
  0x11   : > { %s21083_s0 = sld [smem:[#allocation67_spill]]  ;;  %s17840_s19 = smov [#allocation2]  }
  0x12   : > { %s21081_s14 = scalar_select %p17936_p6, 1, 0 }
  0x13   : > { %p17944_p8 = pnand %p17216_p5, %p310_p7  ;;  %s323_s20 = sshll.u32 %s17840_s19, 4  ;;  %s324_s20 = int_to_ptr.vmem [resolvable:$true] %s323_s20 }
  0x14   : > { %21082 = sst [smem:[#allocation22_spill]] %s21081_s14  ;;  %s20962_s22 = smov 128  }
  0x15   : > { %p17328_p9 = pneg %p17944_p8  ;;  %s20964_s23 = smov 8  }
  0x16   : > { %s35_s24 = sadd.s32 1, %s17834_s9  ;;  %s86_s25 = sadd.s32 1, %s17826_s29 }
  0x17   : > { %s321_s17 = sshll.u32 %s21083_s0, 4  ;;  %p17952_p10 = pnand %p17328_p9, %p100_p1  ;;  %s322_s17 = int_to_ptr.hbm [resolvable:$true] %s321_s17 }
  0x18   : > { %p37_p11 = scmp.ge.s32.totalorder %s35_s24, 4  ;;  %p93_p12 = scmp.ne.s32.totalorder %s17826_s29, %s17822_s28 }
  0x19   : > { %17331 = dma.hbm_to_vmem [thread:$0]  (!%p17952_p10), %s322_s17, 256, %s324_s20, [#allocation3], %s20962_s22, %s20962_s22, %s20964_s23  }
  0x1a   : > { %p94_p13 = scmp.eq.s32.totalorder %s17838_s10, 0  ;;  %s21645_s24 = smov (%p37_p11, %s35_s24), 0 }
  0x1b   : > { %21086 = sst [smem:[#allocation23_spill]] %s21645_s24  ;;  %p17974_p3 = por %p297_p2, %p93_p12 }
  0x1c   : > { %p17968_p0 = por %p94_p13, %p93_p12  ;;  %s81_s15 = ssub.s32 %s17834_s9, %s21645_s24 }
  0x1d   : > { %s21088_s12 = scalar_select %p17974_p3, 1, 0 }
  0x1e   : > { %p17360_p5 = scmp.lt.s32.totalorder %s17838_s10, 4  ;;  %p84_p7 = scmp.eq.s32.totalorder %s81_s15, 0 }
  0x1f   : > { %21089 = sst [smem:[#allocation24_spill]] %s21088_s12  ;;  %s351_s16 = sand.u32 1, %s17838_s10  }
  0x20   : > { %s353_s17 = sand.u32 1, %s17826_s29   ;;  %s17989_s22 = sshll.u32 %s17834_s9, 7 }
  0x21   : > { %s17984_s19 = scalar_select %p84_p7, %s17826_s29, %s86_s25  }
  0x22   : > { %s17986_s20 = sshll.u32 %s353_s17, 7  ;;  %s21091_s2 = sld [smem:[#allocation68_spill]] }
  0x23   : > { %21090 = sst [smem:[#allocation25_spill]] %s17984_s19  ;;  %s355_s24 = scalar_lea.vmem [#allocation7], %s17986_s20 }
  0x24   : > { %s366_s12 = sshll.u32 %s355_s24, 4  ;;  %p18000_p2 = pnand %p17360_p5, %p17968_p0  ;;  %s367_s12 = int_to_ptr.vmem [resolvable:$true] %s366_s12 }
  0x25   : > { %s18004_s15 = sshll.u32 %s353_s17, 4  ;;  %s21093_s3 = sld [smem:[#allocation69_spill]] }
  0x26   : > { %s21094_s26 = smov 8   ;;  %s21095_s9 = smov 128  }
  0x27   : > { %s380_s17 = scalar_lea.vmem [#allocation8], %s18004_s15  ;;  %s408_s23 = scalar_lea.vmem [#allocation9], %s18004_s15 }
  0x28   : > { %s363_s14 = scalar_lea.hbm %s21091_s2, %s17989_s22  ;;  %s18010_s2 = scalar_lea.sflag [#allocation3], %s351_s16 }
  0x29   : > { %s364_s27 = sshll.u32 %s363_s14, 4  ;;  %s394_s0 = sshll.u32 %s380_s17, 4  ;;  %s365_s27 = int_to_ptr.hbm [resolvable:$true] %s364_s27  ;;  %s395_s0 = int_to_ptr.vmem [resolvable:$true] %s394_s0 }
  0x2a   : > { %17338 = dma.hbm_to_vmem [thread:$0]  (!%p18000_p2), %s365_s27, 2048, %s367_s12, %s18010_s2, %s21095_s9, %s21095_s9, %s21094_s26  }
  0x2b   : > { %s391_s14 = scalar_lea.hbm %s21093_s3, %s17989_s22  ;;  %s17298_s16 = sadd.s32 112, %s17989_s22 }
  0x2c   : > { %s392_s24 = sshll.u32 %s391_s14, 4  ;;  %s422_s14 = sshll.u32 %s408_s23, 4  ;;  %s393_s24 = int_to_ptr.hbm [resolvable:$true] %s392_s24  ;;  %s423_s14 = int_to_ptr.vmem [resolvable:$true] %s422_s14 }
  0x2d   : > { %17341 = dma.hbm_to_vmem [thread:$0]  (!%p18000_p2), %s393_s24, 256, %s395_s0, %s18010_s2, %s21095_s9, %s21095_s9, %s21094_s26  }
  0x2e   : > { %s419_s12 = scalar_lea.hbm %s20957_s4, %s17298_s16  ;;  %s444_s10 = scalar_lea.hbm %s20958_s5, %s17989_s22 }
  0x2f   : > { %s420_s17 = sshll.u32 %s419_s12, 4  ;;  %s445_s24 = sshll.u32 %s444_s10, 4  ;;  %s421_s17 = int_to_ptr.hbm [resolvable:$true] %s420_s17  ;;  %s446_s24 = int_to_ptr.hbm [resolvable:$true] %s445_s24 }
  0x30   : > { %17344 = dma.hbm_to_vmem [thread:$0]  (!%p18000_p2), %s421_s17, 256, %s423_s14, %s18010_s2, %s21095_s9, %s21095_s9, %s21094_s26  }
  0x31   : > { %s436_s0 = scalar_lea.vmem [#allocation10], %s17986_s20  ;;  %s472_s19 = scalar_lea.hbm %s20959_s6, %s17989_s22 }
  0x32   : > { %s447_s23 = sshll.u32 %s436_s0, 4  ;;  %s473_s27 = sshll.u32 %s472_s19, 4  ;;  %s448_s23 = int_to_ptr.vmem [resolvable:$true] %s447_s23  ;;  %s474_s27 = int_to_ptr.hbm [resolvable:$true] %s473_s27 }
  0x33   : > { %17347 = dma.hbm_to_vmem [thread:$0]  (!%p18000_p2), %s446_s24, 2048, %s448_s23, %s18010_s2, %s21095_s9, %s21095_s9, %s21094_s26  }
  0x34   : > { %s461_s12 = scalar_lea.vmem [#allocation11], %s18004_s15  ;;  %s335_s17 = sshll.u32 %s20954_s1, 4  ;;  %s336_s17 = int_to_ptr.hbm [resolvable:$true] %s335_s17 }
  0x35   : > { %s475_s14 = sshll.u32 %s461_s12, 4  ;;  %s17843_s24 = smov [#allocation5]   ;;  %s476_s14 = int_to_ptr.vmem [resolvable:$true] %s475_s14 }
  0x36   : > { %17350 = dma.hbm_to_vmem [thread:$0]  (!%p18000_p2), %s474_s27, 256, %s476_s14, %s18010_s2, %s21095_s9, %s21095_s9, %s21094_s26  }
  0x37   : > { %s337_s0 = sshll.u32 %s17843_s24, 4  ;;  %s500_s29 = scalar_lea.hbm %s20960_s7, %s17298_s16  ;;  %s338_s0 = int_to_ptr.vmem [resolvable:$true] %s337_s0 }
  0x38   : > { %17334 = dma.hbm_to_vmem [thread:$0]  (!%p17952_p10), %s336_s17, 256, %s338_s0, [#allocation6], %s21095_s9, %s21095_s9, %s21094_s26  }
  0x39   : > { %s489_s19 = scalar_lea.vmem [#allocation12], %s18004_s15  ;;  %s501_s12 = sshll.u32 %s500_s29, 4  ;;  %s502_s12 = int_to_ptr.hbm [resolvable:$true] %s501_s12 }
  0x3a   : > { %s503_s27 = sshll.u32 %s489_s19, 4  ;;  %515 = sbr.rel (%p17944_p8) target bundleno = 7558 (0x1d86), region = 52  ;;  %s504_s27 = int_to_ptr.vmem [resolvable:$true] %s503_s27 }
  0x3b   : > { %17353 = dma.hbm_to_vmem [thread:$0]  (!%p18000_p2), %s502_s12, 256, %s504_s27, %s18010_s2, %s21095_s9, %s21095_s9, %s21094_s26  }
  0x3f   : > { %17801 = dma.done.wait (%p100_p1), [#allocation3], 256  }
  0x40   : > { %17803 = vsyncadd (%p100_p1), [#allocation3], 4294967040 }
  0x41   : > { %17805 = dma.done.wait (%p100_p1), [#allocation6], 256  }
  0x42   : > { %17807 = vsyncadd (%p100_p1), [#allocation6], 4294967040  ;;  %s527_s21 = sand.u32 1, %s17922_s11   ;;  %s18092_s2 = sand.u32 1, %s17822_s28  }
  0x43   : > { %s18095_s9 = sshll.u32 %s18092_s2, 7  ;;  %s528_s18 = scalar_lea.sflag [#allocation3], %s527_s21 }
  0x44   : > { %s18098_s22 = scalar_lea.vmem [#allocation7], %s18095_s9 }
  0x45   : > { %17809 = dma.done.wait (%p17931_p4), %s528_s18, 5120  }
  0x46   : > { %17811 = vsyncadd (%p17931_p4), %s528_s18, 4294962176  ;;  %s18105_s11 = sshll.u32 %s18092_s2, 4  ;;  %v18111_v1 = vld [vmem:[%s18098_s22 + $0x8] sm:$0xff]  ;;  %vm830_vm0 = vcmask 130048   ;;  %v18114_v2 = vld [vmem:[%s18098_s22 + $0x18] sm:$0xff]  ;;  %s18208_s15 = scalar_lea.vmem [#allocation10], %s18095_s9 }
  0x47   : > { %s541_s25 = scalar_lea.vmem [#allocation8], %s18105_s11  ;;  %v780_v3 = vmul.f32 0.38439733, %v18111_v1  ;;  %v787_v6 = vmul.f32 0.30780134, %v18114_v2  ;;  %v18122_v7 = vld [vmem:[%s18098_s22] sm:$0xff] }
  0x48   : > { %v18108_v0 = vld [vmem:[%s541_s25 + $0x8] sm:$0xff]  ;;  %v18118_v5 = vld [vmem:[%s541_s25] sm:$0xff]  ;;  %v779_v12 = vmul.f32 0.38439733, %v18122_v7  ;;  %s571_s13 = scalar_lea.vmem [#allocation11], %s18105_s11  ;;  %s18598_s26 = scalar_lea.vmem [#allocation13], %s18095_s9 }
  0x49   : > { %v783_v4 = vmul.f32 0.0, %v18108_v0  ;;  %v18125_v8 = vld [vmem:[%s18098_s22 + $0x10] sm:$0xff]  ;;  %v782_v9 = vmul.f32 0.0, %v18118_v5  ;;  %v659_v10 = vld [vmem:[#allocation2] sm:$0xff]  ;;  %v660_v15 = vld [vmem:[#allocation2 + $0x8] sm:$0xff]  ;;  %s20606_s16 = scalar_lea.vmem [#allocation9], %s18105_s11 }
  0x4a   : > { %v786_v13 = vmul.f32 0.30780134, %v18125_v8  ;;  %v832_v14 = vsel %vm830_vm0, %v659_v10, 0  ;;  %v835_v17 = vsel %vm830_vm0, %v660_v15, 0  ;;  %v662_v28 = vld [vmem:[#allocation5 + $0x8] sm:$0xff]  ;;  %v661_v42 = vld [vmem:[#allocation5] sm:$0xff] }
  0x4b   : > { %v785_v11 = vadd.f32 %v783_v4, %v780_v3  ;;  %v18131_v16 = vand.u32 4294901760, %v832_v14  ;;  %v784_v19 = vadd.f32 %v782_v9, %v779_v12  ;;  %v18134_v20 = vand.u32 4294901760, %v835_v17  ;;  %v18205_v57 = vld [vmem:[%s571_s13 + $0x8] sm:$0xff]  ;;  %v18219_v4 = vld [vmem:[%s571_s13] sm:$0xff]  ;;  %s581_s14 = scalar_lea.vmem [#allocation12], %s18105_s11  ;;  %s17303_s10 = sshll.u32 %s17830_s30, 7 }
  0x4c   : > { %v18152_v34 = vand.u32 4294901760, %v662_v28  ;;  %v18175_v44 = vand.u32 4294901760, %v661_v42  ;;  %v18211_v58 = vld [vmem:[%s18208_s15 + $0x8] sm:$0xff]  ;;  %v18214_v59 = vld [vmem:[%s18208_s15 + $0x18] sm:$0xff]  ;;  %v793_v61 = vmul.f32 0.0, %v18205_v57  ;;  %v792_v12 = vmul.f32 0.0, %v18219_v4  ;;  %s16989_s24 = scalar_lea.hbm %s20961_s8, %s17303_s10 }
  0x4d   : > { %v789_v18 = vadd.f32 %v787_v6, %v785_v11  ;;  %v18137_v21 = vsub.f32 %v832_v14, %v18131_v16  ;;  %v788_v23 = vadd.f32 %v786_v13, %v784_v19  ;;  %v18140_v24 = vsub.f32 %v835_v17, %v18134_v20  ;;  %v18222_v6 = vld [vmem:[%s18208_s15] sm:$0xff]  ;;  %v18227_v14 = vld [vmem:[%s18208_s15 + $0x10] sm:$0xff]  ;;  %s16990_s23 = sshll.u32 %s18598_s26, 4  ;;  %s16992_s3 = sshll.u32 %s16989_s24, 4  ;;  %s16991_s23 = int_to_ptr.vmem [resolvable:$true] %s16990_s23  ;;  %s16993_s3 = int_to_ptr.hbm [resolvable:$true] %s16992_s3 }
  0x4e   : > { %v18173_v43 = vsub.f32 %v662_v28, %v18152_v34  ;;  %v18181_v46 = vsub.f32 %v661_v42, %v18175_v44  ;;  %v791_v60 = vmul.f32 0.38439733, %v18211_v58  ;;  %v797_v62 = vmul.f32 0.30780134, %v18214_v59  ;;  %s16975_s30 = scalar_lea.sflag [#allocation4], %s18092_s2  ;;  %s17762_s29 = sshra.s32 %s16993_s3, 4  ;;  %s17763_s29 = int_to_ptr.hbm [resolvable:$true] %s17762_s29 }
  0x4f   : > { %v851_v22 = vand.u32 4294901760, %v789_v18  ;;  %v18143_v25 = vand.u32 4294901760, %v18137_v21  ;;  %v853_v26 = vand.u32 4294901760, %v788_v23  ;;  %v18148_v30 = vand.u32 4294901760, %v18140_v24  ;;  %s17764_s19 = scalar_lea.hbm %s17763_s29, 128  ;;  %s17768_s21 = scalar_lea.hbm %s20961_s8, 512 }
  0x50   : > { %v18178_v45 = vand.u32 4294901760, %v18173_v43  ;;  %v18189_v48 = vand.u32 4294901760, %v18181_v46  ;;  %v795_v10 = vadd.f32 %v793_v61, %v791_v60  ;;  %v790_v11 = vmul.f32 0.38439733, %v18222_v6  ;;  %p17765_p1 = scmp.ne.s32.totalorder %s17763_s29, %s17764_s19  ;;  %p17769_p9 = scmp.lt.s32.totalorder %s17763_s29, %s20961_s8 }
  0x51   : > { %852 = vmatpush.msra.mxu0 %v851_v22  ;;  %v887_v27 = vsub.f32 %v789_v18, %v851_v22  ;;  %953 = vmatpush.msra.mxu3 %v851_v22  ;;  %v858_v29 = vsub.f32 %v18137_v21, %v18143_v25  ;;  %v893_v31 = vsub.f32 %v788_v23, %v853_v26  ;;  %v796_v18 = vmul.f32 0.30780134, %v18227_v14  ;;  %p17770_p10 = scmp.lt.s32.totalorder %s17768_s21, %s17764_s19 }
  0x52   : > { %v866_v37 = vsub.f32 %v18140_v24, %v18148_v30  ;;  %v1085_v47 = vsub.f32 %v18173_v43, %v18178_v45  ;;  %v1091_v50 = vsub.f32 %v18181_v46, %v18189_v48  ;;  %v799_v15 = vadd.f32 %v797_v62, %v795_v10  ;;  %p17766_p4 = pnand %p17765_p1, %p17974_p3 }
  0x53   : > { %854 = vmatpush.msra.mxu0 %v853_v26  ;;  %923 = vmatpush.msra.mxu2 %v887_v27  ;;  %v888_v32 = vand.u32 4294901760, %v887_v27  ;;  %v18150_v33 = vand.u32 4294901760, %v858_v29  ;;  %v894_v36 = vand.u32 4294901760, %v893_v31  ;;  %v794_v17 = vadd.f32 %v792_v12, %v790_v11  ;;  %p17771_p11 = por %p17770_p10, %p17769_p9 }
  0x54   : > { %955 = vmatpush.msra.mxu3 %v853_v26  ;;  %v18160_v41 = vand.u32 4294901760, %v866_v37  ;;  %v18193_v49 = vand.u32 4294901760, %v1085_v47  ;;  %v18199_v51 = vand.u32 4294901760, %v1091_v50  ;;  %v1237_v23 = vand.u32 4294901760, %v799_v15  ;;  %p17767_p8 = pneg %p17766_p4 }
  0x55   : > { %926 = vmatpush.msra.mxu2 %v893_v31  ;;  %v889_v35 = vsub.f32 %v887_v27, %v888_v32  ;;  %959 = vmatmul.f32.vlgmr.msra.gmra.mxu3 %v18143_v25  ;;  %v895_v39 = vsub.f32 %v893_v31, %v894_v36  ;;  %v798_v27 = vadd.f32 %v796_v18, %v794_v17 }
  0x56   : > { %860 = vmatmul.f32.vlgmr.msra.gmra.mxu0 %v18150_v33  ;;  %929 = vmatmul.f32.vlgmr.msra.gmra.mxu2 %v18137_v21  ;;  %v1273_v29 = vsub.f32 %v799_v15, %v1237_v23  ;;  %p17772_p12 = pnand %p17771_p11, %p17767_p8 }
  0x57   : > { %v890_v38 = vand.u32 4294901760, %v889_v35  ;;  %986 = vmatpush.msrb.mxu0 %v888_v32  ;;  %1048 = vmatpush.msrb.mxu2 %v18152_v34  ;;  %v896_v40 = vand.u32 4294901760, %v895_v39  ;;  %v1239_v32 = vand.u32 4294901760, %v798_v27 }
  0x58   : > { %1087 = vmatpush.msrb.mxu3 %v18193_v49  ;;  %v1274_v37 = vand.u32 4294901760, %v1273_v29 }
  0x59   : > { %891 = vmatpush.msra.mxu1 %v890_v38  ;;  %990 = vmatpush.msrb.mxu0 %v894_v36  ;;  %v1279_v39 = vsub.f32 %v798_v27, %v1239_v32 }
  0x5a   : > { %1050 = vmatpush.msrb.mxu2 %v18175_v44  ;;  %1093 = vmatpush.msrb.mxu3 %v18199_v51  ;;  %v1275_v42 = vsub.f32 %v1273_v29, %v1274_v37 }
  0x5b   : > { %897 = vmatpush.msra.mxu1 %v896_v40  ;;  %1119 = vmatpush.msra.mxu0 %v18173_v43 }
  0x5c   : > { %899 = vmatmul.f32.vlgmr.msra.gmra.mxu1 %v18131_v16  ;;  %1182 = vmatpush.msra.mxu2 %v18178_v45 }
  0x5d   : > { %1015 = vmatpush.msrb.mxu1 %v851_v22  ;;  %965 = vmatmul.f32.gmra.mxu3 %v18148_v30 }
  0x5e   : > { %868 = vmatmul.f32.gmra.mxu0 %v18160_v41  ;;  %934 = vmatmul.f32.gmra.mxu2 %v18140_v24 }
  0x5f   : > { %1017 = vmatpush.msrb.mxu1 %v853_v26  ;;  %1122 = vmatpush.msra.mxu0 %v18181_v46 }
  0x60   : > { %1186 = vmatpush.msra.mxu2 %v18189_v48  ;;  %1211 = vmatpush.msra.mxu3 %v18152_v34 }
  0x61   : > { %1149 = vmatpush.msra.mxu1 %v18152_v34 }
  0x62   : > { %1213 = vmatpush.msra.mxu3 %v18175_v44 }
  0x63   : > { %1151 = vmatpush.msra.mxu1 %v18175_v44 }
  0x64   : > { %903 = vmatmul.f32.gmra.mxu1 %v18134_v20 }
  0x66   : > { %992 = vmatmul.f32.vlgmr.msrb.gmra.mxu0 %v18131_v16 }
  0x67   : > { %1238 = vmatpush.msrb.mxu0 %v1237_v23 }
  0x69   : > { %1240 = vmatpush.msrb.mxu0 %v1239_v32 }
  0x6c   : > { %1019 = vmatmul.f32.vlgmr.msrb.gmra.mxu1 %v18131_v16 }
  0x6e   : > { %996 = vmatmul.f32.gmra.mxu0 %v18134_v20 }
  0x74   : > { %1023 = vmatmul.f32.gmra.mxu1 %v18134_v20 }
  0xd3   : > { %v861_v52 = vpop.f32.mrf.mxu0 }
  0xd8   : > { %v960_v63 = vpop.f32.mrf.mxu3 }
  0xd9   : > { %v900_v53 = vpop.f32.mrf.mxu1  ;;  %v930_v55 = vpop.f32.mrf.mxu2 }
  0xda   : > { %v901_v56 = vadd.f32 %v900_v53, %v861_v52  ;;  %v1280_v52 = vand.u32 4294901760, %v1279_v39 }
  0xdb   : > { %v869_v54 = vpop.f32.mrf.mxu0 }
  0xdc   : > { %v931_v9 = vadd.f32 %v930_v55, %v901_v56  ;;  %v1281_v56 = vsub.f32 %v1279_v39, %v1280_v52 }
  0xde   : > { %v961_v19 = vadd.f32 %v960_v63, %v931_v9  ;;  %v1282_v63 = vand.u32 4294901760, %v1281_v56 }
  0xe0   : > { %v966_v38 = vpop.f32.mrf.mxu3 }
  0xe1   : > { %v904_v3 = vpop.f32.mrf.mxu1  ;;  %v935_v26 = vpop.f32.mrf.mxu2 }
  0xe2   : > { %v905_v22 = vadd.f32 %v904_v3, %v869_v54  ;;  %v1276_v54 = vand.u32 4294901760, %v1275_v42 }
  0xe3   : > { %v993_v13 = vpop.f32.mrf.mxu0 }
  0xe4   : > { %v994_v28 = vadd.f32 %v993_v13, %v961_v19  ;;  %v936_v35 = vadd.f32 %v935_v26, %v905_v22  ;;  %1277 = vmatpush.msrb.mxu1 %v1276_v54 }
  0xe6   : > { %v967_v53 = vadd.f32 %v966_v38, %v936_v35  ;;  %1283 = vmatpush.msrb.mxu1 %v1282_v63 }
  0xe9   : > { %v1020_v31 = vpop.f32.mrf.mxu1 }
  0xea   : > { %v1021_v36 = vadd.f32 %v1020_v31, %v994_v28 }
  0xeb   : > { %v997_v47 = vpop.f32.mrf.mxu0 }
  0xec   : > { %v1028_v40 = vsel %vm830_vm0, %v1021_v36, 0  ;;  %v998_v60 = vadd.f32 %v997_v47, %v967_v53  ;;  %v668_v47 = vmul.f32 %v18108_v0, %v18108_v0 }
  0xed   : > { %v1051_v50 = vand.u32 4294901760, %v1028_v40 }
  0xee   : > { %v803_v54 = vmul.f32 0.0, %v668_v47 }
  0xef   : > { %v1052_v55 = vsub.f32 %v1028_v40, %v1051_v50  ;;  %1095 = vmatmul.f32.vlgmr.msrb.gmra.mxu3 %v1051_v50 }
  0xf0   : > { %1339 = vmatpush.msrb.mxu3 %v1237_v23 }
  0xf1   : > { %v1024_v61 = vpop.f32.mrf.mxu1  ;;  %1125 = vmatmul.f32.vlgmr.msra.gmra.mxu0 %v1052_v55  ;;  %v1053_v62 = vand.u32 4294901760, %v1052_v55 }
  0xf2   : > { %v1025_v3 = vadd.f32 %v1024_v61, %v998_v60  ;;  %1341 = vmatpush.msrb.mxu3 %v1239_v32  ;;  %1372 = vmatpush.msra.mxu0 %v1274_v37  ;;  %v18296_v61 = vmul.f32 %v18122_v7, %v18122_v7 }
  0xf3   : > { %1155 = vmatmul.f32.vlgmr.msra.gmra.mxu1 %v1053_v62  ;;  %v1054_v9 = vsub.f32 %v1052_v55, %v1053_v62  ;;  %v667_v55 = vmul.f32 %v18118_v5, %v18118_v5 }
  0xf4   : > { %v1031_v10 = vsel %vm830_vm0, %v1025_v3, 0  ;;  %1376 = vmatpush.msra.mxu0 %v1280_v52  ;;  %1401 = vmatpush.msra.mxu1 %v1237_v23  ;;  %v18288_v52 = vmul.f32 %v18114_v2, %v18114_v2  ;;  %21107 = vst [vmem:[#allocation37_spill] sm:$0xff] %v18296_v61  ;;  %v18300_v3 = vmul.f32 %v18125_v8, %v18125_v8 }
  0xf5   : > { %v1059_v11 = vand.u32 4294901760, %v1031_v10  ;;  %v1055_v12 = vand.u32 4294901760, %v1054_v9  ;;  %v802_v9 = vmul.f32 0.0, %v667_v55 }
  0xf6   : > { %1403 = vmatpush.msra.mxu1 %v1239_v32  ;;  %21106 = vst [vmem:[#allocation36_spill] sm:$0xff] %v18288_v52  ;;  %v807_v60 = vmul.f32 0.30780134, %v18288_v52 }
  0xf7   : > { %1056 = vmatmul.f32.vlgmr.msrb.gmra.mxu2 %v1055_v12  ;;  %1099 = vmatmul.f32.gmra.mxu3 %v1059_v11  ;;  %v1060_v13 = vsub.f32 %v1031_v10, %v1059_v11  ;;  %21108 = vst [vmem:[#allocation38_spill] sm:$0xff] %v18300_v3  ;;  %v800_v12 = vmul.f32 0.38439733, %v18296_v61 }
  0xf8   : > { %1309 = vmatpush.msrb.mxu2 %v1273_v29 }
  0xf9   : > { %1130 = vmatmul.f32.gmra.mxu0 %v1060_v13  ;;  %v1061_v15 = vand.u32 4294901760, %v1060_v13  ;;  %v804_v47 = vadd.f32 %v802_v9, %v800_v12 }
  0xfa   : > { %1312 = vmatpush.msrb.mxu2 %v1279_v39 }
  0xfb   : > { %1161 = vmatmul.f32.gmra.mxu1 %v1061_v15  ;;  %v1062_v17 = vsub.f32 %v1060_v13, %v1061_v15 }
  0xfd   : > { %v1063_v18 = vand.u32 4294901760, %v1062_v17  ;;  %v806_v17 = vmul.f32 0.30780134, %v18300_v3  ;;  %v18374_v3 = vmul.f32 %v18227_v14, %v18227_v14 }
  0xff   : > { %1064 = vmatmul.f32.gmra.mxu2 %v1063_v18  ;;  %1215 = vmatmul.f32.vlgmr.msra.gmra.mxu3 %v1051_v50  ;;  %21120 = vst [vmem:[#allocation50_spill] sm:$0xff] %v18374_v3 }
 0x100   : > { %1473 = vmatpush.msra.mxu3 %v18193_v49 }
 0x101   : > { %1246 = vmatmul.f32.vlgmr.msrb.gmra.mxu0 %v18150_v33 }
 0x102   : > { %1479 = vmatpush.msra.mxu3 %v18199_v51  ;;  %1505 = vmatpush.msrb.mxu0 %v18173_v43 }
 0x103   : > { %1285 = vmatmul.f32.vlgmr.msrb.gmra.mxu1 %v18131_v16 }
 0x104   : > { %1508 = vmatpush.msrb.mxu0 %v18181_v46  ;;  %1535 = vmatpush.msrb.mxu1 %v18152_v34 }
 0x106   : > { %1537 = vmatpush.msrb.mxu1 %v18175_v44 }
 0x107   : > { %1188 = vmatmul.f32.vlgmr.msra.gmra.mxu2 %v1051_v50  ;;  %1219 = vmatmul.f32.gmra.mxu3 %v1059_v11  ;;  %v18284_v50 = vmul.f32 %v18111_v1, %v18111_v1 }
 0x108   : > { %1434 = vmatpush.msra.mxu2 %v18152_v34 }
 0x109   : > { %1254 = vmatmul.f32.gmra.mxu0 %v18160_v41  ;;  %21105 = vst [vmem:[#allocation35_spill] sm:$0xff] %v18284_v50  ;;  %v801_v53 = vmul.f32 0.38439733, %v18284_v50 }
 0x10a   : > { %1436 = vmatpush.msra.mxu2 %v18175_v44 }
 0x10b   : > { %1289 = vmatmul.f32.gmra.mxu1 %v18134_v20  ;;  %v805_v63 = vadd.f32 %v803_v54, %v801_v53 }
 0x10d   : > { %v809_v15 = vadd.f32 %v807_v60, %v805_v63 }
 0x10f   : > { %1192 = vmatmul.f32.gmra.mxu2 %v1059_v11  ;;  %1345 = vmatmul.f32.vlgmr.msrb.gmra.mxu3 %v18143_v25  ;;  %v1623_v52 = vand.u32 4294901760, %v809_v15 }
 0x110   : > { %1597 = vmatpush.msrb.mxu3 %v18152_v34 }
 0x111   : > { %1378 = vmatmul.f32.vlgmr.msra.gmra.mxu0 %v18131_v16 }
 0x112   : > { %1599 = vmatpush.msrb.mxu3 %v18175_v44  ;;  %1624 = vmatpush.msra.mxu0 %v1623_v52 }
 0x113   : > { %1405 = vmatmul.f32.vlgmr.msra.gmra.mxu1 %v18131_v16 }
 0x117   : > { %1315 = vmatmul.f32.vlgmr.msrb.gmra.mxu2 %v18137_v21  ;;  %1351 = vmatmul.f32.gmra.mxu3 %v18148_v30 }
 0x118   : > { %1568 = vmatpush.msrb.mxu2 %v18178_v45 }
 0x119   : > { %1382 = vmatmul.f32.gmra.mxu0 %v18134_v20 }
 0x11a   : > { %1572 = vmatpush.msrb.mxu2 %v18189_v48 }
 0x11b   : > { %1409 = vmatmul.f32.gmra.mxu1 %v18134_v20 }
 0x11f   : > { %1320 = vmatmul.f32.gmra.mxu2 %v18140_v24 }
 0x16e   : > { %v18258_v22 = vpop.f32.mrf.mxu0 }
 0x170   : > { %v18260_v23 = vpop.f32.mrf.mxu1 }
 0x171   : > { %21096 = vst [vmem:[#allocation26_spill] sm:$0xff] %v18260_v23 }
 0x172   : > { %v18256_v19 = vpop.f32.mrf.mxu3 }
 0x176   : > { %v18266_v28 = vpop.f32.mrf.mxu0 }
 0x177   : > { %21098 = vst [vmem:[#allocation28_spill] sm:$0xff] %v18266_v28 }
 0x178   : > { %v18268_v29 = vpop.f32.mrf.mxu1 }
 0x179   : > { %21099 = vst [vmem:[#allocation29_spill] sm:$0xff] %v18268_v29 }
 0x17a   : > { %v18262_v26 = vpop.f32.mrf.mxu2  ;;  %v18264_v27 = vpop.f32.mrf.mxu3 }
 0x17b   : > { %21097 = vst [vmem:[#allocation27_spill] sm:$0xff] %v18264_v27 }
 0x17e   : > { %v1247_v35 = vpop.f32.mrf.mxu0 }
 0x180   : > { %v1286_v37 = vpop.f32.mrf.mxu1 }
 0x181   : > { %v1287_v62 = vadd.f32 %v1286_v37, %v1247_v35  ;;  %v1659_v37 = vsub.f32 %v809_v15, %v1623_v52 }
 0x182   : > { %v18270_v31 = vpop.f32.mrf.mxu2  ;;  %v18272_v32 = vpop.f32.mrf.mxu3 }
 0x183   : > { %21100 = vst [vmem:[#allocation30_spill] sm:$0xff] %v18270_v31  ;;  %v1660_v55 = vand.u32 4294901760, %v1659_v37 }
 0x184   : > { %21101 = vst [vmem:[#allocation31_spill] sm:$0xff] %v18272_v32 }
 0x185   : > { %v1661_v63 = vsub.f32 %v1659_v37, %v1660_v55 }
 0x186   : > { %v1255_v39 = vpop.f32.mrf.mxu0 }
 0x188   : > { %v1290_v42 = vpop.f32.mrf.mxu1 }
 0x189   : > { %v1291_v54 = vadd.f32 %v1290_v42, %v1255_v39 }
 0x18a   : > { %v18274_v36 = vpop.f32.mrf.mxu2  ;;  %v18276_v38 = vpop.f32.mrf.mxu3 }
 0x18b   : > { %21102 = vst [vmem:[#allocation32_spill] sm:$0xff] %v18274_v36  ;;  %v816_v36 = vmul.f32 0.30780134, %v18374_v3 }
 0x18c   : > { %21103 = vst [vmem:[#allocation33_spill] sm:$0xff] %v18276_v38  ;;  %v808_v38 = vadd.f32 %v806_v17, %v804_v47 }
 0x18e   : > { %v1379_v11 = vpop.f32.mrf.mxu0  ;;  %v1625_v53 = vand.u32 4294901760, %v808_v38 }
 0x190   : > { %v1406_v18 = vpop.f32.mrf.mxu1  ;;  %1626 = vmatpush.msra.mxu0 %v1625_v53  ;;  %v1665_v61 = vsub.f32 %v808_v38, %v1625_v53 }
 0x192   : > { %v18278_v40 = vpop.f32.mrf.mxu2  ;;  %v1346_v56 = vpop.f32.mrf.mxu3 }
 0x193   : > { %21104 = vst [vmem:[#allocation34_spill] sm:$0xff] %v18278_v40 }
 0x196   : > { %v1383_v9 = vpop.f32.mrf.mxu0 }
 0x19a   : > { %v1316_v10 = vpop.f32.mrf.mxu2  ;;  %v1352_v32 = vpop.f32.mrf.mxu3 }
 0x19b   : > { %v1317_v13 = vadd.f32 %v1316_v10, %v1287_v62 }
 0x19d   : > { %v1347_v50 = vadd.f32 %v1346_v56, %v1317_v13  ;;  %v1666_v56 = vand.u32 4294901760, %v1665_v61  ;;  %v1662_v13 = vand.u32 4294901760, %v1661_v63 }
 0x19f   : > { %v1380_v35 = vadd.f32 %v1379_v11, %v1347_v50  ;;  %v1410_v11 = vpop.f32.mrf.mxu1  ;;  %v1667_v15 = vsub.f32 %v1665_v61, %v1666_v56  ;;  %1663 = vmatpush.msra.mxu1 %v1662_v13 }
 0x1a1   : > { %v1407_v40 = vadd.f32 %v1406_v18, %v1380_v35  ;;  %v1668_v17 = vand.u32 4294901760, %v1667_v15 }
 0x1a2   : > { %v1321_v29 = vpop.f32.mrf.mxu2 }
 0x1a3   : > { %v1414_v60 = vsel %vm830_vm0, %v1407_v40, 0  ;;  %v1322_v62 = vadd.f32 %v1321_v29, %v1291_v54  ;;  %1669 = vmatpush.msra.mxu1 %v1668_v17  ;;  %v18358_v17 = vmul.f32 %v18211_v58, %v18211_v58 }
 0x1a4   : > { %v1437_v10 = vand.u32 4294901760, %v1414_v60 }
 0x1a5   : > { %v1353_v12 = vadd.f32 %v1352_v32, %v1322_v62  ;;  %21117 = vst [vmem:[#allocation47_spill] sm:$0xff] %v18358_v17 }
 0x1a6   : > { %v1438_v50 = vsub.f32 %v1414_v60, %v1437_v10  ;;  %1481 = vmatmul.f32.vlgmr.msra.gmra.mxu3 %v1437_v10 }
 0x1a7   : > { %v1384_v39 = vadd.f32 %v1383_v9, %v1353_v12  ;;  %1725 = vmatpush.msra.mxu3 %v1623_v52 }
 0x1a8   : > { %1511 = vmatmul.f32.vlgmr.msrb.gmra.mxu0 %v1438_v50  ;;  %v1439_v42 = vand.u32 4294901760, %v1438_v50 }
 0x1a9   : > { %v1411_v38 = vadd.f32 %v1410_v11, %v1384_v39  ;;  %1727 = vmatpush.msra.mxu3 %v1625_v53  ;;  %1758 = vmatpush.msrb.mxu0 %v1660_v55 }
 0x1aa   : > { %1541 = vmatmul.f32.vlgmr.msrb.gmra.mxu1 %v1439_v42  ;;  %v1440_v29 = vsub.f32 %v1438_v50, %v1439_v42  ;;  %v670_v42 = vmul.f32 %v18205_v57, %v18205_v57 }
 0x1ab   : > { %v1417_v40 = vsel %vm830_vm0, %v1411_v38, 0  ;;  %1762 = vmatpush.msrb.mxu0 %v1666_v56  ;;  %1787 = vmatpush.msrb.mxu1 %v1623_v52  ;;  %v18362_v38 = vmul.f32 %v18214_v59, %v18214_v59 }
 0x1ac   : > { %v1445_v32 = vand.u32 4294901760, %v1417_v40  ;;  %v1441_v18 = vand.u32 4294901760, %v1440_v29  ;;  %v811_v29 = vmul.f32 0.38439733, %v18358_v17 }
 0x1ad   : > { %1789 = vmatpush.msrb.mxu1 %v1625_v53  ;;  %21118 = vst [vmem:[#allocation48_spill] sm:$0xff] %v18362_v38 }
 0x1ae   : > { %1442 = vmatmul.f32.vlgmr.msra.gmra.mxu2 %v1441_v18  ;;  %1485 = vmatmul.f32.gmra.mxu3 %v1445_v32  ;;  %v1446_v47 = vsub.f32 %v1417_v40, %v1445_v32  ;;  %v813_v40 = vmul.f32 0.0, %v670_v42  ;;  %v817_v18 = vmul.f32 0.30780134, %v18362_v38 }
 0x1af   : > { %1695 = vmatpush.msra.mxu2 %v1659_v37 }
 0x1b0   : > { %1516 = vmatmul.f32.gmra.mxu0 %v1446_v47  ;;  %v1447_v35 = vand.u32 4294901760, %v1446_v47 }
 0x1b1   : > { %1698 = vmatpush.msra.mxu2 %v1665_v61 }
 0x1b2   : > { %1547 = vmatmul.f32.gmra.mxu1 %v1447_v35  ;;  %v1448_v54 = vsub.f32 %v1446_v47, %v1447_v35  ;;  %v669_v47 = vmul.f32 %v18219_v4, %v18219_v4  ;;  %v18370_v35 = vmul.f32 %v18222_v6, %v18222_v6 }
 0x1b4   : > { %v1449_v55 = vand.u32 4294901760, %v1448_v54  ;;  %21119 = vst [vmem:[#allocation49_spill] sm:$0xff] %v18370_v35  ;;  %v810_v42 = vmul.f32 0.38439733, %v18370_v35  ;;  %v812_v17 = vmul.f32 0.0, %v669_v47 }
 0x1b6   : > { %1450 = vmatmul.f32.gmra.mxu2 %v1449_v55  ;;  %1601 = vmatmul.f32.vlgmr.msrb.gmra.mxu3 %v1437_v10  ;;  %v815_v55 = vadd.f32 %v813_v40, %v811_v29  ;;  %v814_v28 = vadd.f32 %v812_v17, %v810_v42 }
 0x1b7   : > { %1859 = vmatpush.msrb.mxu3 %v18193_v49 }
 0x1b8   : > { %1632 = vmatmul.f32.vlgmr.msra.gmra.mxu0 %v18150_v33  ;;  %v819_v38 = vadd.f32 %v817_v18, %v815_v55  ;;  %v818_v23 = vadd.f32 %v816_v36, %v814_v28 }
 0x1b9   : > { %1865 = vmatpush.msrb.mxu3 %v18199_v51  ;;  %1891 = vmatpush.msra.mxu0 %v18173_v43 }
 0x1ba   : > { %1671 = vmatmul.f32.vlgmr.msra.gmra.mxu1 %v18131_v16  ;;  %v2011_v29 = vand.u32 4294901760, %v818_v23 }
 0x1bb   : > { %1894 = vmatpush.msra.mxu0 %v18181_v46  ;;  %1921 = vmatpush.msra.mxu1 %v18152_v34 }
 0x1bc   : > { %v2051_v47 = vsub.f32 %v818_v23, %v2011_v29 }
 0x1bd   : > { %1923 = vmatpush.msra.mxu1 %v18175_v44 }
 0x1be   : > { %1574 = vmatmul.f32.vlgmr.msrb.gmra.mxu2 %v1437_v10  ;;  %1605 = vmatmul.f32.gmra.mxu3 %v1445_v32 }
 0x1bf   : > { %1820 = vmatpush.msrb.mxu2 %v18152_v34 }
 0x1c0   : > { %1640 = vmatmul.f32.gmra.mxu0 %v18160_v41 }
 0x1c1   : > { %1822 = vmatpush.msrb.mxu2 %v18175_v44 }
 0x1c2   : > { %1675 = vmatmul.f32.gmra.mxu1 %v18134_v20 }
 0x1c6   : > { %1578 = vmatmul.f32.gmra.mxu2 %v1445_v32  ;;  %1731 = vmatmul.f32.vlgmr.msra.gmra.mxu3 %v18143_v25 }
 0x1c7   : > { %1983 = vmatpush.msra.mxu3 %v18152_v34 }
 0x1c8   : > { %1764 = vmatmul.f32.vlgmr.msrb.gmra.mxu0 %v18131_v16 }
 0x1c9   : > { %1985 = vmatpush.msra.mxu3 %v18175_v44 }
 0x1ca   : > { %1791 = vmatmul.f32.vlgmr.msrb.gmra.mxu1 %v18131_v16 }
 0x1ce   : > { %1701 = vmatmul.f32.vlgmr.msra.gmra.mxu2 %v18137_v21  ;;  %1737 = vmatmul.f32.gmra.mxu3 %v18148_v30 }
 0x1cf   : > { %1954 = vmatpush.msra.mxu2 %v18178_v45 }
 0x1d0   : > { %1768 = vmatmul.f32.gmra.mxu0 %v18134_v20 }
 0x1d1   : > { %1958 = vmatpush.msra.mxu2 %v18189_v48 }
 0x1d2   : > { %1795 = vmatmul.f32.gmra.mxu1 %v18134_v20 }
 0x1d6   : > { %1706 = vmatmul.f32.gmra.mxu2 %v18140_v24 }
 0x225   : > { %v18332_v61 = vpop.f32.mrf.mxu0 }
 0x227   : > { %v18334_v37 = vpop.f32.mrf.mxu1 }
 0x228   : > { %21109 = vst [vmem:[#allocation39_spill] sm:$0xff] %v18334_v37 }
 0x229   : > { %v18330_v52 = vpop.f32.mrf.mxu3 }
 0x22d   : > { %v18340_v62 = vpop.f32.mrf.mxu0 }
 0x22e   : > { %21111 = vst [vmem:[#allocation41_spill] sm:$0xff] %v18340_v62 }
 0x22f   : > { %v18342_v63 = vpop.f32.mrf.mxu1 }
 0x230   : > { %21112 = vst [vmem:[#allocation42_spill] sm:$0xff] %v18342_v63 }
 0x231   : > { %v18336_v53 = vpop.f32.mrf.mxu2  ;;  %v18338_v60 = vpop.f32.mrf.mxu3 }
 0x232   : > { %21110 = vst [vmem:[#allocation40_spill] sm:$0xff] %v18338_v60 }
 0x235   : > { %v1633_v56 = vpop.f32.mrf.mxu0 }
 0x237   : > { %v1672_v13 = vpop.f32.mrf.mxu1 }
 0x238   : > { %v1673_v54 = vadd.f32 %v1672_v13, %v1633_v56 }
 0x239   : > { %v18344_v10 = vpop.f32.mrf.mxu2  ;;  %v18346_v9 = vpop.f32.mrf.mxu3 }
 0x23a   : > { %21113 = vst [vmem:[#allocation43_spill] sm:$0xff] %v18346_v9 }
 0x23d   : > { %v1641_v11 = vpop.f32.mrf.mxu0 }
 0x23f   : > { %v1676_v39 = vpop.f32.mrf.mxu1 }
 0x240   : > { %v1677_v40 = vadd.f32 %v1676_v39, %v1641_v11 }
 0x241   : > { %v18348_v12 = vpop.f32.mrf.mxu2  ;;  %v18350_v50 = vpop.f32.mrf.mxu3 }
 0x242   : > { %21114 = vst [vmem:[#allocation44_spill] sm:$0xff] %v18348_v12  ;;  %v2009_v12 = vand.u32 4294901760, %v819_v38 }
 0x243   : > { %21115 = vst [vmem:[#allocation45_spill] sm:$0xff] %v18350_v50 }
 0x244   : > { %2010 = vmatpush.msrb.mxu0 %v2009_v12  ;;  %v2045_v13 = vsub.f32 %v819_v38, %v2009_v12 }
 0x246   : > { %v2046_v31 = vand.u32 4294901760, %v2045_v13  ;;  %2012 = vmatpush.msrb.mxu0 %v2011_v29 }
 0x247   : > { %v1792_v9 = vpop.f32.mrf.mxu1 }
 0x248   : > { %v2047_v17 = vsub.f32 %v2045_v13, %v2046_v31 }
 0x249   : > { %v18352_v15 = vpop.f32.mrf.mxu2  ;;  %v1732_v32 = vpop.f32.mrf.mxu3 }
 0x24a   : > { %21116 = vst [vmem:[#allocation46_spill] sm:$0xff] %v18352_v15  ;;  %v1765_v15 = vpop.f32.mrf.mxu0  ;;  %v2048_v28 = vand.u32 4294901760, %v2047_v17 }
 0x24c   : > { %2049 = vmatpush.msrb.mxu1 %v2048_v28 }
 0x251   : > { %v1702_v50 = vpop.f32.mrf.mxu2  ;;  %v1738_v60 = vpop.f32.mrf.mxu3 }
 0x252   : > { %v1703_v63 = vadd.f32 %v1702_v50, %v1673_v54  ;;  %v1769_v55 = vpop.f32.mrf.mxu0 }
 0x254   : > { %v1733_v62 = vadd.f32 %v1732_v32, %v1703_v63  ;;  %v2052_v63 = vand.u32 4294901760, %v2051_v47 }
 0x256   : > { %v1766_v56 = vadd.f32 %v1765_v15, %v1733_v62  ;;  %v1796_v62 = vpop.f32.mrf.mxu1  ;;  %v2053_v15 = vsub.f32 %v2051_v47, %v2052_v63 }
 0x258   : > { %v1793_v27 = vadd.f32 %v1792_v9, %v1766_v56  ;;  %v2054_v39 = vand.u32 4294901760, %v2053_v15 }
 0x259   : > { %v1707_v37 = vpop.f32.mrf.mxu2 }
 0x25a   : > { %v1800_v50 = vsel %vm830_vm0, %v1793_v27, 0  ;;  %v1708_v18 = vadd.f32 %v1707_v37, %v1677_v40  ;;  %2055 = vmatpush.msrb.mxu1 %v2054_v39  ;;  %v18432_v39 = vmul.f32 %v18211_v58, %v18111_v1  ;;  %v18448_v58 = vmul.f32 %v18227_v14, %v18125_v8 }
 0x25b   : > { %v1823_v54 = vand.u32 4294901760, %v1800_v50 }
 0x25c   : > { %v1739_v32 = vadd.f32 %v1738_v60, %v1708_v18  ;;  %21127 = vst [vmem:[#allocation57_spill] sm:$0xff] %v18432_v39 }
 0x25d   : > { %v1824_v36 = vsub.f32 %v1800_v50, %v1823_v54  ;;  %1867 = vmatmul.f32.vlgmr.msrb.gmra.mxu3 %v1823_v54  ;;  %21130 = vst [vmem:[#allocation60_spill] sm:$0xff] %v18448_v58 }
 0x25e   : > { %v1770_v11 = vadd.f32 %v1769_v55, %v1739_v32  ;;  %2111 = vmatpush.msrb.mxu3 %v2009_v12 }
 0x25f   : > { %1897 = vmatmul.f32.vlgmr.msra.gmra.mxu0 %v1824_v36  ;;  %v1825_v9 = vand.u32 4294901760, %v1824_v36 }
 0x260   : > { %v1797_v23 = vadd.f32 %v1796_v62, %v1770_v11  ;;  %2113 = vmatpush.msrb.mxu3 %v2011_v29  ;;  %2144 = vmatpush.msra.mxu0 %v2046_v31 }
 0x261   : > { %1927 = vmatmul.f32.vlgmr.msra.gmra.mxu1 %v1825_v9  ;;  %v1826_v27 = vsub.f32 %v1824_v36, %v1825_v9  ;;  %v672_v9 = vmul.f32 %v18205_v57, %v18108_v0  ;;  %v18444_v0 = vmul.f32 %v18222_v6, %v18122_v7 }
 0x262   : > { %v1803_v37 = vsel %vm830_vm0, %v1797_v23, 0  ;;  %2148 = vmatpush.msra.mxu0 %v2052_v63  ;;  %2173 = vmatpush.msra.mxu1 %v2009_v12  ;;  %v18436_v23 = vmul.f32 %v18214_v59, %v18114_v2 }
 0x263   : > { %v1831_v60 = vand.u32 4294901760, %v1803_v37  ;;  %v1827_v38 = vand.u32 4294901760, %v1826_v27  ;;  %v821_v27 = vmul.f32 0.38439733, %v18432_v39  ;;  %21129 = vst [vmem:[#allocation59_spill] sm:$0xff] %v18444_v0 }
 0x264   : > { %2175 = vmatpush.msra.mxu1 %v2011_v29  ;;  %21128 = vst [vmem:[#allocation58_spill] sm:$0xff] %v18436_v23 }
 0x265   : > { %1828 = vmatmul.f32.vlgmr.msrb.gmra.mxu2 %v1827_v38  ;;  %1871 = vmatmul.f32.gmra.mxu3 %v1831_v60  ;;  %v1832_v42 = vsub.f32 %v1803_v37, %v1831_v60  ;;  %v823_v37 = vmul.f32 0.0, %v672_v9 }
 0x266   : > { %2081 = vmatpush.msrb.mxu2 %v2045_v13 }
 0x267   : > { %1902 = vmatmul.f32.gmra.mxu0 %v1832_v42  ;;  %v1833_v56 = vand.u32 4294901760, %v1832_v42  ;;  %v825_v1 = vadd.f32 %v823_v37, %v821_v27 }
 0x268   : > { %2084 = vmatpush.msrb.mxu2 %v2051_v47 }
 0x269   : > { %1933 = vmatmul.f32.gmra.mxu1 %v1833_v56  ;;  %v1834_v40 = vsub.f32 %v1832_v42, %v1833_v56  ;;  %v827_v42 = vmul.f32 0.30780134, %v18436_v23 }
 0x26b   : > { %v1835_v31 = vand.u32 4294901760, %v1834_v40  ;;  %v820_v40 = vmul.f32 0.38439733, %v18444_v0 }
 0x26d   : > { %1836 = vmatmul.f32.gmra.mxu2 %v1835_v31  ;;  %1987 = vmatmul.f32.vlgmr.msra.gmra.mxu3 %v1823_v54 }
 0x26e   : > { %2245 = vmatpush.msra.mxu3 %v18193_v49 }
 0x26f   : > { %2018 = vmatmul.f32.vlgmr.msrb.gmra.mxu0 %v18150_v33 }
 0x270   : > { %2251 = vmatpush.msra.mxu3 %v18199_v51  ;;  %2277 = vmatpush.msrb.mxu0 %v18173_v43 }
 0x271   : > { %2057 = vmatmul.f32.vlgmr.msrb.gmra.mxu1 %v18131_v16 }
 0x272   : > { %2280 = vmatpush.msrb.mxu0 %v18181_v46  ;;  %2307 = vmatpush.msrb.mxu1 %v18152_v34 }
 0x274   : > { %2309 = vmatpush.msrb.mxu1 %v18175_v44 }
 0x275   : > { %1960 = vmatmul.f32.vlgmr.msra.gmra.mxu2 %v1823_v54  ;;  %1991 = vmatmul.f32.gmra.mxu3 %v1831_v60 }
 0x276   : > { %2206 = vmatpush.msra.mxu2 %v18152_v34 }
 0x277   : > { %2026 = vmatmul.f32.gmra.mxu0 %v18160_v41 }
 0x278   : > { %2208 = vmatpush.msra.mxu2 %v18175_v44 }
 0x279   : > { %2061 = vmatmul.f32.gmra.mxu1 %v18134_v20 }
 0x27d   : > { %1964 = vmatmul.f32.gmra.mxu2 %v1831_v60  ;;  %2117 = vmatmul.f32.vlgmr.msrb.gmra.mxu3 %v18143_v25  ;;  %v671_v60 = vmul.f32 %v18219_v4, %v18118_v5  ;;  %v829_v5 = vadd.f32 %v827_v42, %v825_v1  ;;  %v826_v4 = vmul.f32 0.30780134, %v18448_v58 }
 0x27e   : > { %2369 = vmatpush.msrb.mxu3 %v18152_v34 }
 0x27f   : > { %2150 = vmatmul.f32.vlgmr.msra.gmra.mxu0 %v18131_v16  ;;  %v822_v2 = vmul.f32 0.0, %v671_v60  ;;  %v2395_v7 = vand.u32 4294901760, %v829_v5 }
 0x280   : > { %2371 = vmatpush.msrb.mxu3 %v18175_v44 }
 0x281   : > { %2177 = vmatmul.f32.vlgmr.msra.gmra.mxu1 %v18131_v16  ;;  %v824_v39 = vadd.f32 %v822_v2, %v820_v40  ;;  %2396 = vmatpush.msra.mxu0 %v2395_v7 }
 0x283   : > { %v828_v6 = vadd.f32 %v826_v4, %v824_v39 }
 0x285   : > { %2087 = vmatmul.f32.vlgmr.msrb.gmra.mxu2 %v18137_v21  ;;  %2123 = vmatmul.f32.gmra.mxu3 %v18148_v30  ;;  %v2397_v27 = vand.u32 4294901760, %v828_v6 }
 0x286   : > { %2340 = vmatpush.msrb.mxu2 %v18178_v45 }
 0x287   : > { %2154 = vmatmul.f32.gmra.mxu0 %v18134_v20  ;;  %v2437_v0 = vsub.f32 %v828_v6, %v2397_v27 }
 0x288   : > { %2344 = vmatpush.msrb.mxu2 %v18189_v48  ;;  %2398 = vmatpush.msra.mxu0 %v2397_v27 }
 0x289   : > { %2181 = vmatmul.f32.gmra.mxu1 %v18134_v20 }
 0x28d   : > { %2092 = vmatmul.f32.gmra.mxu2 %v18140_v24 }
 0x2dc   : > { %v18406_v13 = vpop.f32.mrf.mxu0 }
 0x2de   : > { %v18408_v29 = vpop.f32.mrf.mxu1 }
 0x2e0   : > { %v18404_v12 = vpop.f32.mrf.mxu3 }
 0x2e4   : > { %v18414_v18 = vpop.f32.mrf.mxu0 }
 0x2e5   : > { %21121 = vst [vmem:[#allocation51_spill] sm:$0xff] %v18414_v18 }
 0x2e6   : > { %v18416_v17 = vpop.f32.mrf.mxu1 }
 0x2e7   : > { %21122 = vst [vmem:[#allocation52_spill] sm:$0xff] %v18416_v17 }
 0x2e8   : > { %v18410_v47 = vpop.f32.mrf.mxu2  ;;  %v18412_v50 = vpop.f32.mrf.mxu3 }
 0x2ec   : > { %v2019_v63 = vpop.f32.mrf.mxu0 }
 0x2ee   : > { %v2058_v28 = vpop.f32.mrf.mxu1 }
 0x2ef   : > { %v2059_v57 = vadd.f32 %v2058_v28, %v2019_v63  ;;  %v2431_v28 = vsub.f32 %v829_v5, %v2395_v7 }
 0x2f0   : > { %v18418_v54 = vpop.f32.mrf.mxu2  ;;  %v18420_v55 = vpop.f32.mrf.mxu3 }
 0x2f1   : > { %21123 = vst [vmem:[#allocation53_spill] sm:$0xff] %v18420_v55  ;;  %v2432_v37 = vand.u32 4294901760, %v2431_v28 }
 0x2f3   : > { %v2433_v1 = vsub.f32 %v2431_v28, %v2432_v37 }
 0x2f4   : > { %v2027_v62 = vpop.f32.mrf.mxu0 }
 0x2f5   : > { %v2434_v39 = vand.u32 4294901760, %v2433_v1 }
 0x2f6   : > { %v2062_v11 = vpop.f32.mrf.mxu1 }
 0x2f7   : > { %v2063_v8 = vadd.f32 %v2062_v11, %v2027_v62  ;;  %2435 = vmatpush.msra.mxu1 %v2434_v39 }
 0x2f8   : > { %v18422_v32 = vpop.f32.mrf.mxu2  ;;  %v18424_v36 = vpop.f32.mrf.mxu3 }
 0x2f9   : > { %21124 = vst [vmem:[#allocation54_spill] sm:$0xff] %v18422_v32 }
 0x2fa   : > { %21125 = vst [vmem:[#allocation55_spill] sm:$0xff] %v18424_v36 }
 0x2fc   : > { %v2151_v56 = vpop.f32.mrf.mxu0 }
 0x2fe   : > { %v2178_v9 = vpop.f32.mrf.mxu1 }
 0x300   : > { %v18426_v15 = vpop.f32.mrf.mxu2  ;;  %v2118_v38 = vpop.f32.mrf.mxu3 }
 0x301   : > { %21126 = vst [vmem:[#allocation56_spill] sm:$0xff] %v18426_v15  ;;  %v17453_v15 = vld [vmem:[%s18098_s22 + $0x10] sm:$0xff] }
 0x304   : > { %v2155_v2 = vpop.f32.mrf.mxu0 }
 0x308   : > { %v2088_v59 = vpop.f32.mrf.mxu2  ;;  %v2124_v3 = vpop.f32.mrf.mxu3 }
 0x309   : > { %v2089_v31 = vadd.f32 %v2088_v59, %v2059_v57 }
 0x30b   : > { %v2119_v23 = vadd.f32 %v2118_v38, %v2089_v31  ;;  %v2438_v38 = vand.u32 4294901760, %v2437_v0 }
 0x30d   : > { %v2152_v63 = vadd.f32 %v2151_v56, %v2119_v23  ;;  %v2182_v56 = vpop.f32.mrf.mxu1  ;;  %v2439_v31 = vsub.f32 %v2437_v0, %v2438_v38 }
 0x30f   : > { %v2179_v14 = vadd.f32 %v2178_v9, %v2152_v63  ;;  %v2440_v5 = vand.u32 4294901760, %v2439_v31 }
 0x310   : > { %v2093_v60 = vpop.f32.mrf.mxu2 }
 0x311   : > { %v2186_v42 = vsel %vm830_vm0, %v2179_v14, 0  ;;  %v2094_v57 = vadd.f32 %v2093_v60, %v2063_v8  ;;  %2441 = vmatpush.msra.mxu1 %v2440_v5  ;;  %v17450_v5 = vld [vmem:[%s18098_s22 + $0x18] sm:$0xff] }
 0x312   : > { %v2209_v59 = vand.u32 4294901760, %v2186_v42 }
 0x313   : > { %v2125_v40 = vadd.f32 %v2124_v3, %v2094_v57 }
 0x314   : > { %v2210_v23 = vsub.f32 %v2186_v42, %v2209_v59  ;;  %2253 = vmatmul.f32.vlgmr.msra.gmra.mxu3 %v2209_v59 }
 0x315   : > { %v2156_v62 = vadd.f32 %v2155_v2, %v2125_v40  ;;  %2497 = vmatpush.msra.mxu3 %v2395_v7 }
 0x316   : > { %2283 = vmatmul.f32.vlgmr.msrb.gmra.mxu0 %v2210_v23  ;;  %v2211_v11 = vand.u32 4294901760, %v2210_v23 }
 0x317   : > { %v2183_v4 = vadd.f32 %v2182_v56, %v2156_v62  ;;  %2499 = vmatpush.msra.mxu3 %v2397_v27  ;;  %2530 = vmatpush.msrb.mxu0 %v2432_v37 }
 0x318   : > { %2313 = vmatmul.f32.vlgmr.msrb.gmra.mxu1 %v2211_v11  ;;  %v2212_v9 = vsub.f32 %v2210_v23, %v2211_v11  ;;  %v18503_v11 = vld [vmem:[%s18098_s22 + $0x28] sm:$0xff] }
 0x319   : > { %v2189_v6 = vsel %vm830_vm0, %v2183_v4, 0  ;;  %2534 = vmatpush.msrb.mxu0 %v2438_v38  ;;  %2559 = vmatpush.msrb.mxu1 %v2395_v7  ;;  %21135 = vst [vmem:[#allocation65_spill] sm:$0xff] %v18503_v11  ;;  %v2818_v4 = vmul.f32 0.38439733, %v17450_v5 }
 0x31a   : > { %v2217_v3 = vand.u32 4294901760, %v2189_v6  ;;  %v2213_v63 = vand.u32 4294901760, %v2212_v9  ;;  %v17451_v9 = vld [vmem:[%s18098_s22 + $0x8] sm:$0xff] }
 0x31b   : > { %2561 = vmatpush.msrb.mxu1 %v2397_v27 }
 0x31c   : > { %2214 = vmatmul.f32.vlgmr.msra.gmra.mxu2 %v2213_v63  ;;  %2257 = vmatmul.f32.gmra.mxu3 %v2217_v3  ;;  %v2218_v8 = vsub.f32 %v2189_v6, %v2217_v3  ;;  %v2820_v6 = vadd.f32 %v17451_v9, %v18503_v11  ;;  %v18509_v63 = vld [vmem:[%s18098_s22 + $0x20] sm:$0xff] }
 0x31d   : > { %2467 = vmatpush.msra.mxu2 %v2431_v28  ;;  %21136 = vst [vmem:[#allocation66_spill] sm:$0xff] %v18509_v63 }
 0x31e   : > { %2288 = vmatmul.f32.gmra.mxu0 %v2218_v8  ;;  %v2219_v14 = vand.u32 4294901760, %v2218_v8 }
 0x31f   : > { %2470 = vmatpush.msra.mxu2 %v2437_v0 }
 0x320   : > { %2319 = vmatmul.f32.gmra.mxu1 %v2219_v14  ;;  %v2220_v60 = vsub.f32 %v2218_v8, %v2219_v14  ;;  %v2822_v14 = vmul.f32 0.30780134, %v2820_v6 }
 0x322   : > { %v2221_v37 = vand.u32 4294901760, %v2220_v60  ;;  %v17452_v60 = vld [vmem:[%s18098_s22] sm:$0xff] }
 0x324   : > { %2222 = vmatmul.f32.gmra.mxu2 %v2221_v37  ;;  %2373 = vmatmul.f32.vlgmr.msrb.gmra.mxu3 %v2209_v59  ;;  %v2819_v37 = vadd.f32 %v17452_v60, %v18509_v63 }
 0x325   : > { %2631 = vmatpush.msrb.mxu3 %v18193_v49 }
 0x326   : > { %2404 = vmatmul.f32.vlgmr.msra.gmra.mxu0 %v18150_v33  ;;  %v2821_v55 = vmul.f32 0.30780134, %v2819_v37 }
 0x327   : > { %2637 = vmatpush.msrb.mxu3 %v18199_v51  ;;  %2663 = vmatpush.msra.mxu0 %v18173_v43 }
 0x328   : > { %2443 = vmatmul.f32.vlgmr.msra.gmra.mxu1 %v18131_v16 }
 0x329   : > { %2666 = vmatpush.msra.mxu0 %v18181_v46  ;;  %2693 = vmatpush.msra.mxu1 %v18152_v34 }
 0x32b   : > { %2695 = vmatpush.msra.mxu1 %v18175_v44 }
 0x32c   : > { %2346 = vmatmul.f32.vlgmr.msrb.gmra.mxu2 %v2209_v59  ;;  %2377 = vmatmul.f32.gmra.mxu3 %v2217_v3 }
 0x32d   : > { %2592 = vmatpush.msrb.mxu2 %v18152_v34 }
 0x32e   : > { %2412 = vmatmul.f32.gmra.mxu0 %v18160_v41 }
 0x32f   : > { %2594 = vmatpush.msrb.mxu2 %v18175_v44 }
 0x330   : > { %2447 = vmatmul.f32.gmra.mxu1 %v18134_v20 }
 0x334   : > { %2350 = vmatmul.f32.gmra.mxu2 %v2217_v3  ;;  %2503 = vmatmul.f32.vlgmr.msra.gmra.mxu3 %v18143_v25 }
 0x335   : > { %2755 = vmatpush.msra.mxu3 %v18152_v34 }
 0x336   : > { %2536 = vmatmul.f32.vlgmr.msrb.gmra.mxu0 %v18131_v16 }
 0x337   : > { %2757 = vmatpush.msra.mxu3 %v18175_v44 }
 0x338   : > { %2563 = vmatmul.f32.vlgmr.msrb.gmra.mxu1 %v18131_v16 }
 0x33c   : > { %2473 = vmatmul.f32.vlgmr.msra.gmra.mxu2 %v18137_v21  ;;  %2509 = vmatmul.f32.gmra.mxu3 %v18148_v30 }
 0x33d   : > { %2726 = vmatpush.msra.mxu2 %v18178_v45 }
 0x33e   : > { %2540 = vmatmul.f32.gmra.mxu0 %v18134_v20 }
 0x33f   : > { %2730 = vmatpush.msra.mxu2 %v18189_v48 }
 0x340   : > { %2567 = vmatmul.f32.gmra.mxu1 %v18134_v20 }
 0x344   : > { %2478 = vmatmul.f32.gmra.mxu2 %v18140_v24 }
 0x393   : > { %v18480_v7 = vpop.f32.mrf.mxu0 }
 0x395   : > { %v18482_v28 = vpop.f32.mrf.mxu1 }
 0x397   : > { %v18478_v0 = vpop.f32.mrf.mxu3 }
 0x39b   : > { %v18488_v57 = vpop.f32.mrf.mxu0 }
 0x39d   : > { %v18490_v1 = vpop.f32.mrf.mxu1 }
 0x39e   : > { %21131 = vst [vmem:[#allocation61_spill] sm:$0xff] %v18490_v1 }
 0x39f   : > { %v18484_v27 = vpop.f32.mrf.mxu2  ;;  %v18486_v42 = vpop.f32.mrf.mxu3 }
 0x3a3   : > { %v2405_v38 = vpop.f32.mrf.mxu0 }
 0x3a5   : > { %v2444_v39 = vpop.f32.mrf.mxu1 }
 0x3a6   : > { %v2445_v8 = vadd.f32 %v2444_v39, %v2405_v38 }
 0x3a7   : > { %v18492_v59 = vpop.f32.mrf.mxu2  ;;  %v18494_v2 = vpop.f32.mrf.mxu3 }
 0x3a8   : > { %21132 = vst [vmem:[#allocation62_spill] sm:$0xff] %v18494_v2 }
 0x3ab   : > { %v2413_v56 = vpop.f32.mrf.mxu0 }
 0x3ad   : > { %v2448_v62 = vpop.f32.mrf.mxu1 }
 0x3ae   : > { %v2449_v38 = vadd.f32 %v2448_v62, %v2413_v56 }
 0x3af   : > { %v18496_v40 = vpop.f32.mrf.mxu2  ;;  %v18498_v23 = vpop.f32.mrf.mxu3 }
 0x3b0   : > { %21133 = vst [vmem:[#allocation63_spill] sm:$0xff] %v18498_v23  ;;  %v2824_v23 = vadd.f32 %v2822_v14, %v2818_v4 }
 0x3b2   : > { %v2871_v1 = vand.u32 4294901760, %v2824_v23 }
 0x3b3   : > { %v2537_v35 = vpop.f32.mrf.mxu0 }
 0x3b4   : > { %2872 = vmatpush.msrb.mxu0 %v2871_v1  ;;  %v2907_v11 = vsub.f32 %v2824_v23, %v2871_v1 }
 0x3b5   : > { %v2564_v17 = vpop.f32.mrf.mxu1 }
 0x3b6   : > { %v2908_v6 = vand.u32 4294901760, %v2907_v11 }
 0x3b7   : > { %v18500_v31 = vpop.f32.mrf.mxu2  ;;  %v2504_v3 = vpop.f32.mrf.mxu3 }
 0x3b8   : > { %21134 = vst [vmem:[#allocation64_spill] sm:$0xff] %v18500_v31  ;;  %v2817_v31 = vmul.f32 0.38439733, %v17453_v15  ;;  %v2909_v15 = vsub.f32 %v2907_v11, %v2908_v6 }
 0x3ba   : > { %v2823_v2 = vadd.f32 %v2821_v55, %v2817_v31  ;;  %v2910_v55 = vand.u32 4294901760, %v2909_v15 }
 0x3bb   : > { %v2541_v14 = vpop.f32.mrf.mxu0 }
 0x3bc   : > { %v2873_v18 = vand.u32 4294901760, %v2823_v2  ;;  %2911 = vmatpush.msrb.mxu1 %v2910_v55 }
 0x3bd   : > { %v2568_v23 = vpop.f32.mrf.mxu1 }
 0x3be   : > { %2874 = vmatpush.msrb.mxu0 %v2873_v18  ;;  %v2913_v63 = vsub.f32 %v2823_v2, %v2873_v18 }
 0x3bf   : > { %v2474_v58 = vpop.f32.mrf.mxu2  ;;  %v2510_v60 = vpop.f32.mrf.mxu3 }
 0x3c0   : > { %v2475_v36 = vadd.f32 %v2474_v58, %v2445_v8 }
 0x3c2   : > { %v2505_v5 = vadd.f32 %v2504_v3, %v2475_v36  ;;  %v2914_v36 = vand.u32 4294901760, %v2913_v63 }
 0x3c4   : > { %v2538_v9 = vadd.f32 %v2537_v35, %v2505_v5  ;;  %v2915_v31 = vsub.f32 %v2913_v63, %v2914_v36 }
 0x3c6   : > { %v2565_v39 = vadd.f32 %v2564_v17, %v2538_v9  ;;  %v2916_v62 = vand.u32 4294901760, %v2915_v31 }
 0x3c7   : > { %v2479_v32 = vpop.f32.mrf.mxu2 }
 0x3c8   : > { %v2572_v58 = vsel %vm830_vm0, %v2565_v39, 0  ;;  %v2480_v4 = vadd.f32 %v2479_v32, %v2449_v38  ;;  %2917 = vmatpush.msrb.mxu1 %v2916_v62 }
 0x3c9   : > { %v2595_v8 = vand.u32 4294901760, %v2572_v58 }
 0x3ca   : > { %v2511_v3 = vadd.f32 %v2510_v60, %v2480_v4 }
 0x3cb   : > { %v2596_v35 = vsub.f32 %v2572_v58, %v2595_v8  ;;  %2639 = vmatmul.f32.vlgmr.msrb.gmra.mxu3 %v2595_v8  ;;  %v1869_v58 = vadd.f32 %v18404_v12, %v18410_v47  ;;  %v21142_v12 = vld [vmem:[#allocation44_spill] sm:$0xff] }
 0x3cc   : > { %v2542_v56 = vadd.f32 %v2541_v14, %v2511_v3  ;;  %2973 = vmatpush.msrb.mxu3 %v2871_v1 }
 0x3cd   : > { %v2597_v17 = vand.u32 4294901760, %v2596_v35  ;;  %2669 = vmatmul.f32.vlgmr.msra.gmra.mxu0 %v2596_v35 }
 0x3ce   : > { %v2569_v2 = vadd.f32 %v2568_v23, %v2542_v56  ;;  %2975 = vmatpush.msrb.mxu3 %v2873_v18  ;;  %3006 = vmatpush.msra.mxu0 %v2908_v6  ;;  %v21145_v56 = vld [vmem:[#allocation28_spill] sm:$0xff] }
 0x3cf   : > { %v2598_v32 = vsub.f32 %v2596_v35, %v2597_v17  ;;  %2699 = vmatmul.f32.vlgmr.msra.gmra.mxu1 %v2597_v17  ;;  %v21144_v35 = vld [vmem:[#allocation32_spill] sm:$0xff] }
 0x3d0   : > { %v2575_v37 = vsel %vm830_vm0, %v2569_v2, 0  ;;  %3010 = vmatpush.msra.mxu0 %v2914_v36  ;;  %3035 = vmatpush.msra.mxu1 %v2871_v1  ;;  %v1097_v1 = vadd.f32 %v18256_v19, %v18262_v26  ;;  %v21138_v36 = vld [vmem:[#allocation39_spill] sm:$0xff]  ;;  %v21139_v19 = vld [vmem:[#allocation30_spill] sm:$0xff] }
 0x3d1   : > { %v2599_v5 = vand.u32 4294901760, %v2598_v32  ;;  %v2603_v9 = vand.u32 4294901760, %v2575_v37  ;;  %v21140_v26 = vld [vmem:[#allocation27_spill] sm:$0xff]  ;;  %v21147_v2 = vld [vmem:[#allocation54_spill] sm:$0xff] }
 0x3d2   : > { %3037 = vmatpush.msra.mxu1 %v2873_v18  ;;  %v1483_v18 = vadd.f32 %v18330_v52, %v18336_v53  ;;  %v1127_v4 = vadd.f32 %v18258_v22, %v1097_v1  ;;  %v1899_v53 = vadd.f32 %v18406_v13, %v1869_v58  ;;  %v1101_v3 = vadd.f32 %v21140_v26, %v21139_v19  ;;  %v21156_v58 = vld [vmem:[#allocation34_spill] sm:$0xff]  ;;  %v21159_v19 = vld [vmem:[#allocation45_spill] sm:$0xff] }
 0x3d3   : > { %2600 = vmatmul.f32.vlgmr.msrb.gmra.mxu2 %v2599_v5  ;;  %2643 = vmatmul.f32.gmra.mxu3 %v2603_v9  ;;  %v2604_v38 = vsub.f32 %v2575_v37, %v2603_v9  ;;  %v21149_v5 = vld [vmem:[#allocation51_spill] sm:$0xff] }
 0x3d4   : > { %2943 = vmatpush.msrb.mxu2 %v2907_v11  ;;  %v2255_v11 = vadd.f32 %v18478_v0, %v18484_v27  ;;  %v21141_v0 = vld [vmem:[#allocation26_spill] sm:$0xff]  ;;  %v1929_v13 = vadd.f32 %v18408_v29, %v1899_v53  ;;  %v1132_v17 = vadd.f32 %v21145_v56, %v1101_v3  ;;  %v21160_v3 = vld [vmem:[#allocation56_spill] sm:$0xff] }
 0x3d5   : > { %2674 = vmatmul.f32.gmra.mxu0 %v2604_v38  ;;  %v2605_v39 = vand.u32 4294901760, %v2604_v38  ;;  %v1157_v27 = vadd.f32 %v21141_v0, %v1127_v4 }
 0x3d6   : > { %2946 = vmatpush.msrb.mxu2 %v2913_v63  ;;  %v1513_v63 = vadd.f32 %v18332_v61, %v1483_v18  ;;  %v2285_v15 = vadd.f32 %v18480_v7, %v2255_v11  ;;  %v2259_v61 = vadd.f32 %v18486_v42, %v18492_v59  ;;  %v21143_v7 = vld [vmem:[#allocation41_spill] sm:$0xff]  ;;  %v21146_v59 = vld [vmem:[#allocation43_spill] sm:$0xff]  ;;  %v1962_v32 = vadd.f32 %v21147_v2, %v1929_v13 }
 0x3d7   : > { %2705 = vmatmul.f32.gmra.mxu1 %v2605_v39  ;;  %v2606_v60 = vsub.f32 %v2604_v38, %v2605_v39  ;;  %v1190_v23 = vadd.f32 %v21144_v35, %v1157_v27  ;;  %v21150_v38 = vld [vmem:[#allocation31_spill] sm:$0xff]  ;;  %v21154_v18 = vld [vmem:[#allocation61_spill] sm:$0xff] }
 0x3d8   : > { %v1543_v52 = vadd.f32 %v21138_v36, %v1513_v63  ;;  %v2315_v22 = vadd.f32 %v18482_v28, %v2285_v15  ;;  %v2290_v42 = vadd.f32 %v18488_v57, %v2259_v61  ;;  %v21148_v28 = vld [vmem:[#allocation42_spill] sm:$0xff]  ;;  %v21155_v57 = vld [vmem:[#allocation53_spill] sm:$0xff]  ;;  %v21157_v15 = vld [vmem:[#allocation52_spill] sm:$0xff] }
 0x3d9   : > { %v2607_v6 = vand.u32 4294901760, %v2606_v60  ;;  %v21152_v60 = vld [vmem:[#allocation29_spill] sm:$0xff]  ;;  %v1989_v63 = vadd.f32 %v21155_v57, %v1962_v32 }
 0x3da   : > { %v1576_v47 = vadd.f32 %v21142_v12, %v1543_v52  ;;  %v2348_v31 = vadd.f32 %v18496_v40, %v2315_v22  ;;  %v1163_v29 = vadd.f32 %v21152_v60, %v1132_v17  ;;  %v2321_v1 = vadd.f32 %v21154_v18, %v2290_v42  ;;  %v21161_v27 = vld [vmem:[#allocation33_spill] sm:$0xff] }
 0x3db   : > { %2608 = vmatmul.f32.gmra.mxu2 %v2607_v6  ;;  %2759 = vmatmul.f32.vlgmr.msra.gmra.mxu3 %v2595_v8  ;;  %v21153_v6 = vld [vmem:[#allocation46_spill] sm:$0xff] }
 0x3dc   : > { %3107 = vmatpush.msra.mxu3 %v18193_v49  ;;  %v1603_v62 = vadd.f32 %v21146_v59, %v1576_v47  ;;  %v1194_v4 = vadd.f32 %v21156_v58, %v1163_v29  ;;  %v21162_v47 = vld [vmem:[#allocation63_spill] sm:$0xff] }
 0x3dd   : > { %2880 = vmatmul.f32.vlgmr.msrb.gmra.mxu0 %v18150_v33 }
 0x3de   : > { %3113 = vmatpush.msra.mxu3 %v18199_v51  ;;  %3139 = vmatpush.msrb.mxu0 %v18173_v43  ;;  %v2769_v11 = vmul.f32 %v1603_v62, %v1603_v62  ;;  %v1221_v12 = vadd.f32 %v21161_v27, %v1194_v4 }
 0x3df   : > { %2919 = vmatmul.f32.vlgmr.msrb.gmra.mxu1 %v18131_v16 }
 0x3e0   : > { %3142 = vmatpush.msrb.mxu0 %v18181_v46  ;;  %3169 = vmatpush.msrb.mxu1 %v18152_v34  ;;  %v2768_v13 = vmul.f32 %v1221_v12, %v1221_v12 }
 0x3e2   : > { %3171 = vmatpush.msrb.mxu1 %v18175_v44 }
 0x3e3   : > { %2732 = vmatmul.f32.vlgmr.msra.gmra.mxu2 %v2595_v8  ;;  %2763 = vmatmul.f32.gmra.mxu3 %v2603_v9  ;;  %v21137_v8 = vld [vmem:[#allocation40_spill] sm:$0xff] }
 0x3e4   : > { %3068 = vmatpush.msra.mxu2 %v18152_v34  ;;  %v1487_v14 = vadd.f32 %v21137_v8, %v18344_v10  ;;  %v1873_v10 = vadd.f32 %v18412_v50, %v18418_v54  ;;  %v1217_v50 = vadd.f32 %v21150_v38, %v1190_v23  ;;  %v21151_v54 = vld [vmem:[#allocation62_spill] sm:$0xff] }
 0x3e5   : > { %2888 = vmatmul.f32.gmra.mxu0 %v18160_v41  ;;  %v2375_v39 = vadd.f32 %v21151_v54, %v2348_v31 }
 0x3e6   : > { %3070 = vmatpush.msra.mxu2 %v18175_v44  ;;  %v1518_v55 = vadd.f32 %v21143_v7, %v1487_v14  ;;  %v21158_v14 = vld [vmem:[#allocation64_spill] sm:$0xff]  ;;  %v2767_v52 = vmul.f32 %v1217_v50, %v1217_v50 }
 0x3e7   : > { %2923 = vmatmul.f32.gmra.mxu1 %v18134_v20  ;;  %v2352_v36 = vadd.f32 %v21158_v14, %v2321_v1  ;;  %v2775_v53 = vsub.f32 %v2375_v39, %v2769_v11 }
 0x3e8   : > { %v1549_v37 = vadd.f32 %v21148_v28, %v1518_v55  ;;  %v2773_v0 = vsub.f32 %v1989_v63, %v2767_v52  ;;  %v2789_v23 = vadd.f32 %v2769_v11, %v2767_v52 }
 0x3e9   : > { %v2379_v22 = vadd.f32 %v21162_v47, %v2352_v36 }
 0x3ea   : > { %v1580_v40 = vadd.f32 %v21153_v6, %v1549_v37  ;;  %v2793_v7 = vadd.f32 %v2775_v53, %v2773_v0  ;;  %v2791_v42 = vadd.f32 0.0001, %v2789_v23 }
 0x3eb   : > { %2736 = vmatmul.f32.gmra.mxu2 %v2603_v9  ;;  %2979 = vmatmul.f32.vlgmr.msrb.gmra.mxu3 %v18143_v25  ;;  %v1904_v9 = vadd.f32 %v21149_v5, %v1873_v10  ;;  %v21163_v10 = vld [vmem:[#allocation55_spill] sm:$0xff] }
 0x3ec   : > { %3231 = vmatpush.msrb.mxu3 %v18152_v34  ;;  %v1607_v26 = vadd.f32 %v21159_v19, %v1580_v40  ;;  %v2795_v56 = vadd.f32 0.0009, %v2793_v7 }
 0x3ed   : > { %3012 = vmatmul.f32.vlgmr.msra.gmra.mxu0 %v18131_v16  ;;  %v1935_v8 = vadd.f32 %v21157_v15, %v1904_v9 }
 0x3ee   : > { %3233 = vmatpush.msrb.mxu3 %v18175_v44  ;;  %v2770_v55 = vmul.f32 %v1607_v26, %v1607_v26  ;;  %v2797_v32 = vmul.f32 %v2795_v56, %v2791_v42 }
 0x3ef   : > { %3039 = vmatmul.f32.vlgmr.msra.gmra.mxu1 %v18131_v16  ;;  %v1966_v61 = vadd.f32 %v21160_v3, %v1935_v8  ;;  %v2771_v3 = vmul.f32 %v1603_v62, %v1217_v50 }
 0x3f0   : > { %v2776_v31 = vsub.f32 %v2379_v22, %v2770_v55  ;;  %v2790_v37 = vadd.f32 %v2770_v55, %v2768_v13  ;;  %17418 = vrcp.f32 %v2797_v32 }
 0x3f1   : > { %v1993_v35 = vadd.f32 %v21163_v10, %v1966_v61  ;;  %v2779_v7 = vmul.f32 2.0, %v2771_v3 }
 0x3f2   : > { %v2792_v38 = vadd.f32 0.0001, %v2790_v37 }
 0x3f3   : > { %2949 = vmatmul.f32.vlgmr.msrb.gmra.mxu2 %v18137_v21  ;;  %2985 = vmatmul.f32.gmra.mxu3 %v18148_v30  ;;  %v2774_v17 = vsub.f32 %v1993_v35, %v2768_v13 }
 0x3f4   : > { %3202 = vmatpush.msrb.mxu2 %v18178_v45 }
 0x3f5   : > { %3016 = vmatmul.f32.gmra.mxu0 %v18134_v20  ;;  %v2794_v2 = vadd.f32 %v2776_v31, %v2774_v17  ;;  %v2772_v17 = vmul.f32 %v1607_v26, %v1221_v12  ;;  %v17455_v12 = vld [vmem:[%s18208_s15 + $0x8] sm:$0xff] }
 0x3f6   : > { %3206 = vmatpush.msrb.mxu2 %v18189_v48  ;;  %v17419_v29 = vpop.eup %17418 }
 0x3f7   : > { %3043 = vmatmul.f32.gmra.mxu1 %v18134_v20  ;;  %v2796_v5 = vadd.f32 0.0009, %v2794_v2  ;;  %v2801_v40 = vmul.f32 %v17419_v29, %v2797_v32 }
 0x3f9   : > { %v2798_v39 = vmul.f32 %v2796_v5, %v2792_v38  ;;  %v2803_v63 = vsub.f32 2.0, %v2801_v40  ;;  %v18589_v38 = vld [vmem:[%s18208_s15 + $0x28] sm:$0xff] }
 0x3fb   : > { %2954 = vmatmul.f32.gmra.mxu2 %v18140_v24  ;;  %17420 = vrcp.f32 %v2798_v39  ;;  %v2805_v14 = vmul.f32 %v17419_v29, %v2803_v63  ;;  %v17454_v29 = vld [vmem:[%s18208_s15 + $0x18] sm:$0xff]  ;;  %v17456_v63 = vld [vmem:[%s18208_s15] sm:$0xff] }
 0x3fc   : > { %v2826_v26 = vmul.f32 0.38439733, %v17454_v29 }
 0x3fd   : > { %v2807_v27 = vmul.f32 %v2805_v14, %v2797_v32 }
 0x3ff   : > { %v2809_v31 = vsub.f32 2.0, %v2807_v27 }
 0x401   : > { %v17421_v57 = vpop.eup %17420  ;;  %v2811_v37 = vmul.f32 %v2809_v31, %v2805_v14 }
 0x402   : > { %v2802_v8 = vmul.f32 %v17421_v57, %v2798_v39 }
 0x404   : > { %v2804_v0 = vsub.f32 2.0, %v2802_v8 }
 0x406   : > { %v2806_v10 = vmul.f32 %v17421_v57, %v2804_v0 }
 0x408   : > { %v2808_v2 = vmul.f32 %v2806_v10, %v2798_v39  ;;  %v18595_v39 = vld [vmem:[%s18208_s15 + $0x20] sm:$0xff] }
 0x40a   : > { %v2810_v40 = vsub.f32 2.0, %v2808_v2 }
 0x44a   : > { %v2670_v28 = vpop.f32.mrf.mxu0 }
 0x44c   : > { %v2700_v9 = vpop.f32.mrf.mxu1 }
 0x44e   : > { %v2640_v59 = vpop.f32.mrf.mxu3 }
 0x452   : > { %v2675_v6 = vpop.f32.mrf.mxu0 }
 0x454   : > { %v2706_v1 = vpop.f32.mrf.mxu1 }
 0x456   : > { %v2601_v54 = vpop.f32.mrf.mxu2  ;;  %v2644_v60 = vpop.f32.mrf.mxu3 }
 0x457   : > { %v2641_v18 = vadd.f32 %v2640_v59, %v2601_v54  ;;  %v2781_v59 = vadd.f32 0.0001, %v2779_v7 }
 0x459   : > { %v2671_v58 = vadd.f32 %v2670_v28, %v2641_v18 }
 0x45a   : > { %v2881_v15 = vpop.f32.mrf.mxu0 }
 0x45b   : > { %v2701_v52 = vadd.f32 %v2700_v9, %v2671_v58  ;;  %v2780_v9 = vmul.f32 2.0, %v2772_v17  ;;  %v2827_v58 = vadd.f32 %v17456_v63, %v18595_v39 }
 0x45c   : > { %v2920_v19 = vpop.f32.mrf.mxu1 }
 0x45d   : > { %v2829_v27 = vmul.f32 0.30780134, %v2827_v58 }
 0x45e   : > { %v2609_v11 = vpop.f32.mrf.mxu2  ;;  %v2760_v4 = vpop.f32.mrf.mxu3 }
 0x45f   : > { %v2645_v36 = vadd.f32 %v2644_v60, %v2609_v11 }
 0x461   : > { %v2676_v47 = vadd.f32 %v2675_v6, %v2645_v36  ;;  %v2828_v6 = vadd.f32 %v17455_v12, %v18589_v38 }
 0x462   : > { %v2889_v23 = vpop.f32.mrf.mxu0 }
 0x463   : > { %v2707_v56 = vadd.f32 %v2706_v1, %v2676_v47  ;;  %v2921_v1 = vadd.f32 %v2920_v19, %v2881_v15  ;;  %v2830_v57 = vmul.f32 0.30780134, %v2828_v6 }
 0x464   : > { %v2924_v32 = vpop.f32.mrf.mxu1 }
 0x466   : > { %v2733_v53 = vpop.f32.mrf.mxu2  ;;  %v2764_v35 = vpop.f32.mrf.mxu3 }
 0x467   : > { %v2734_v61 = vadd.f32 %v2733_v53, %v2701_v52  ;;  %v2832_v53 = vadd.f32 %v2830_v57, %v2826_v26 }
 0x469   : > { %v2761_v22 = vadd.f32 %v2760_v4, %v2734_v61  ;;  %v2782_v4 = vadd.f32 0.0001, %v2780_v9  ;;  %v3257_v15 = vand.u32 4294901760, %v2832_v53 }
 0x46a   : > { %v3013_v14 = vpop.f32.mrf.mxu0 }
 0x46b   : > { %v2777_v55 = vsub.f32 %v2761_v22, %v2771_v3  ;;  %v17457_v3 = vld [vmem:[%s18208_s15 + $0x10] sm:$0xff]  ;;  %v2812_v22 = vmul.f32 %v2810_v40, %v2806_v10  ;;  %3258 = vmatpush.msra.mxu0 %v3257_v15 }
 0x46c   : > { %v2825_v61 = vmul.f32 0.38439733, %v17457_v3  ;;  %v3040_v0 = vpop.f32.mrf.mxu1 }
 0x46d   : > { %v2783_v13 = vmul.f32 2.0, %v2777_v55 }
 0x46e   : > { %v2737_v42 = vpop.f32.mrf.mxu2  ;;  %v2980_v18 = vpop.f32.mrf.mxu3  ;;  %v2831_v19 = vadd.f32 %v2829_v27, %v2825_v61 }
 0x46f   : > { %v2785_v62 = vadd.f32 0.0009, %v2783_v13  ;;  %v2738_v50 = vadd.f32 %v2737_v42, %v2707_v56  ;;  %v3293_v13 = vsub.f32 %v2832_v53, %v3257_v15  ;;  %v2925_v56 = vadd.f32 %v2924_v32, %v2889_v23 }
 0x470   : > { %v3259_v31 = vand.u32 4294901760, %v2831_v19 }
 0x471   : > { %v2787_v28 = vmul.f32 %v2785_v62, %v2781_v59  ;;  %v2765_v5 = vadd.f32 %v2764_v35, %v2738_v50  ;;  %v3294_v42 = vand.u32 4294901760, %v3293_v13 }
 0x472   : > { %3260 = vmatpush.msra.mxu0 %v3259_v31  ;;  %v3299_v50 = vsub.f32 %v2831_v19, %v3259_v31 }
 0x473   : > { %v2813_v54 = vmul.f32 %v2811_v37, %v2787_v28  ;;  %v2778_v60 = vsub.f32 %v2765_v5, %v2772_v17  ;;  %v3295_v28 = vsub.f32 %v3293_v13, %v3294_v42  ;;  %v3017_v5 = vpop.f32.mrf.mxu0 }
 0x474   : > { %v3300_v9 = vand.u32 4294901760, %v3299_v50  ;;  %v3044_v26 = vpop.f32.mrf.mxu1 }
 0x475   : > { %2815 = vst.msk [vmem:[%s18598_s26] sm:$0xff] %vm830_vm0, %v2813_v54  ;;  %v2784_v11 = vmul.f32 2.0, %v2778_v60  ;;  %v3296_v60 = vand.u32 4294901760, %v3295_v28 }
 0x476   : > { %v2950_v8 = vpop.f32.mrf.mxu2  ;;  %v2986_v62 = vpop.f32.mrf.mxu3  ;;  %v3301_v12 = vsub.f32 %v3299_v50, %v3300_v9 }
 0x477   : > { %v2786_v36 = vadd.f32 0.0009, %v2784_v11  ;;  %v2951_v52 = vadd.f32 %v2950_v8, %v2921_v1  ;;  %3297 = vmatpush.msra.mxu1 %v3296_v60 }
 0x478   : > { %v3302_v6 = vand.u32 4294901760, %v3301_v12  ;;  %v21177_v12 = vld [vmem:[#allocation38_spill] sm:$0xff] }
 0x479   : > { %v2788_v47 = vmul.f32 %v2786_v36, %v2782_v4  ;;  %v2981_v7 = vadd.f32 %v2980_v18, %v2951_v52 }
 0x47a   : > { %3303 = vmatpush.msra.mxu1 %v3302_v6 }
 0x47b   : > { %v2814_v55 = vmul.f32 %v2812_v22, %v2788_v47  ;;  %v3014_v35 = vadd.f32 %v3013_v14, %v2981_v7 }
 0x47d   : > { %2816 = vst.msk [vmem:[%s18598_s26 + $0x8] sm:$0xff] %vm830_vm0, %v2814_v55  ;;  %v3041_v17 = vadd.f32 %v3040_v0, %v3014_v35 }
 0x47e   : > { %v2955_v59 = vpop.f32.mrf.mxu2 }
 0x47f   : > { %v3048_v2 = vsel %vm830_vm0, %v3041_v17, 0  ;;  %v2956_v10 = vadd.f32 %v2955_v59, %v2925_v56  ;;  %v21172_v17 = vld [vmem:[#allocation36_spill] sm:$0xff]  ;;  %v21173_v59 = vld [vmem:[#allocation35_spill] sm:$0xff] }
 0x480   : > { %v3071_v37 = vand.u32 4294901760, %v3048_v2 }
 0x481   : > { %v2987_v54 = vadd.f32 %v2986_v62, %v2956_v10 }
 0x482   : > { %v3072_v29 = vsub.f32 %v3048_v2, %v3071_v37  ;;  %3115 = vmatmul.f32.vlgmr.msra.gmra.mxu3 %v3071_v37 }
 0x483   : > { %v3018_v23 = vadd.f32 %v3017_v5, %v2987_v54  ;;  %3359 = vmatpush.msra.mxu3 %v3257_v15  ;;  %v21176_v5 = vld [vmem:[#allocation37_spill] sm:$0xff] }
 0x484   : > { %v3073_v32 = vand.u32 4294901760, %v3072_v29  ;;  %3145 = vmatmul.f32.vlgmr.msrb.gmra.mxu0 %v3072_v29 }
 0x485   : > { %v3045_v40 = vadd.f32 %v3044_v26, %v3018_v23  ;;  %3361 = vmatpush.msra.mxu3 %v3259_v31  ;;  %3392 = vmatpush.msrb.mxu0 %v3294_v42  ;;  %v2834_v42 = vmul.f32 0.38439733, %v21172_v17  ;;  %v2833_v23 = vmul.f32 0.38439733, %v21177_v12  ;;  %v21188_v17 = vld [vmem:[#allocation50_spill] sm:$0xff] }
 0x486   : > { %v3074_v18 = vsub.f32 %v3072_v29, %v3073_v32  ;;  %3175 = vmatmul.f32.vlgmr.msrb.gmra.mxu1 %v3073_v32 }
 0x487   : > { %v3051_v1 = vsel %vm830_vm0, %v3045_v40, 0  ;;  %3396 = vmatpush.msrb.mxu0 %v3300_v9  ;;  %3421 = vmatpush.msrb.mxu1 %v3257_v15 }
 0x488   : > { %v3075_v11 = vand.u32 4294901760, %v3074_v18  ;;  %v3079_v57 = vand.u32 4294901760, %v3051_v1 }
 0x489   : > { %3423 = vmatpush.msrb.mxu1 %v3259_v31  ;;  %v21170_v31 = vld [vmem:[#allocation65_spill] sm:$0xff] }
 0x48a   : > { %3076 = vmatmul.f32.vlgmr.msra.gmra.mxu2 %v3075_v11  ;;  %3119 = vmatmul.f32.gmra.mxu3 %v3079_v57  ;;  %v3080_v63 = vsub.f32 %v3051_v1, %v3079_v57  ;;  %v18659_v56 = vmul.f32 %v21170_v31, %v21170_v31 }
 0x48b   : > { %3329 = vmatpush.msra.mxu2 %v3293_v13 }
 0x48c   : > { %3150 = vmatmul.f32.gmra.mxu0 %v3080_v63  ;;  %v3081_v58 = vand.u32 4294901760, %v3080_v63  ;;  %21171 = vst [vmem:[#allocation41_spill] sm:$0xff] %v18659_v56  ;;  %v2836_v62 = vadd.f32 %v18659_v56, %v21173_v59 }
 0x48d   : > { %3332 = vmatpush.msra.mxu2 %v3299_v50  ;;  %v21174_v50 = vld [vmem:[#allocation66_spill] sm:$0xff] }
 0x48e   : > { %3181 = vmatmul.f32.gmra.mxu1 %v3081_v58  ;;  %v3082_v4 = vsub.f32 %v3080_v63, %v3081_v58  ;;  %v18666_v2 = vmul.f32 %v21174_v50, %v21174_v50 }
 0x490   : > { %v3083_v8 = vand.u32 4294901760, %v3082_v4  ;;  %21175 = vst [vmem:[#allocation32_spill] sm:$0xff] %v18666_v2  ;;  %v2835_v9 = vadd.f32 %v18666_v2, %v21176_v5 }
 0x492   : > { %3084 = vmatmul.f32.gmra.mxu2 %v3083_v8  ;;  %3235 = vmatmul.f32.vlgmr.msrb.gmra.mxu3 %v3071_v37  ;;  %v2837_v32 = vmul.f32 0.30780134, %v2835_v9 }
 0x493   : > { %3493 = vmatpush.msrb.mxu3 %v18193_v49 }
 0x494   : > { %3266 = vmatmul.f32.vlgmr.msra.gmra.mxu0 %v18150_v33  ;;  %v2839_v1 = vadd.f32 %v2837_v32, %v2833_v23 }
 0x495   : > { %3499 = vmatpush.msrb.mxu3 %v18199_v51  ;;  %3525 = vmatpush.msra.mxu0 %v18173_v43 }
 0x496   : > { %3305 = vmatmul.f32.vlgmr.msra.gmra.mxu1 %v18131_v16  ;;  %v3645_v63 = vand.u32 4294901760, %v2839_v1 }
 0x497   : > { %3528 = vmatpush.msra.mxu0 %v18181_v46  ;;  %3555 = vmatpush.msra.mxu1 %v18152_v34 }
 0x499   : > { %3557 = vmatpush.msra.mxu1 %v18175_v44 }
 0x49a   : > { %3208 = vmatmul.f32.vlgmr.msrb.gmra.mxu2 %v3071_v37  ;;  %3239 = vmatmul.f32.gmra.mxu3 %v3079_v57  ;;  %v2838_v37 = vmul.f32 0.30780134, %v2836_v62 }
 0x49b   : > { %3454 = vmatpush.msrb.mxu2 %v18152_v34 }
 0x49c   : > { %3274 = vmatmul.f32.gmra.mxu0 %v18160_v41  ;;  %v2840_v26 = vadd.f32 %v2838_v37, %v2834_v42 }
 0x49d   : > { %3456 = vmatpush.msrb.mxu2 %v18175_v44 }
 0x49e   : > { %3309 = vmatmul.f32.gmra.mxu1 %v18134_v20  ;;  %v3643_v18 = vand.u32 4294901760, %v2840_v26 }
 0x4a2   : > { %3212 = vmatmul.f32.gmra.mxu2 %v3079_v57  ;;  %3365 = vmatmul.f32.vlgmr.msra.gmra.mxu3 %v18143_v25  ;;  %v3679_v57 = vsub.f32 %v2840_v26, %v3643_v18 }
 0x4a3   : > { %3617 = vmatpush.msra.mxu3 %v18152_v34 }
 0x4a4   : > { %3398 = vmatmul.f32.vlgmr.msrb.gmra.mxu0 %v18131_v16  ;;  %v3680_v8 = vand.u32 4294901760, %v3679_v57 }
 0x4a5   : > { %3619 = vmatpush.msra.mxu3 %v18175_v44  ;;  %3644 = vmatpush.msrb.mxu0 %v3643_v18 }
 0x4a6   : > { %3425 = vmatmul.f32.vlgmr.msrb.gmra.mxu1 %v18131_v16  ;;  %v3681_v62 = vsub.f32 %v3679_v57, %v3680_v8 }
 0x4a7   : > { %3646 = vmatpush.msrb.mxu0 %v3645_v63 }
 0x4a8   : > { %v3682_v5 = vand.u32 4294901760, %v3681_v62 }
 0x4aa   : > { %3335 = vmatmul.f32.vlgmr.msra.gmra.mxu2 %v18137_v21  ;;  %3371 = vmatmul.f32.gmra.mxu3 %v18148_v30 }
 0x4ab   : > { %3588 = vmatpush.msra.mxu2 %v18178_v45  ;;  %3683 = vmatpush.msrb.mxu1 %v3682_v5 }
 0x4ac   : > { %3402 = vmatmul.f32.gmra.mxu0 %v18134_v20 }
 0x4ad   : > { %3592 = vmatpush.msra.mxu2 %v18189_v48 }
 0x4ae   : > { %3429 = vmatmul.f32.gmra.mxu1 %v18134_v20 }
 0x4b2   : > { %3340 = vmatmul.f32.gmra.mxu2 %v18140_v24 }
 0x501   : > { %v18635_v36 = vpop.f32.mrf.mxu0 }
 0x503   : > { %v18637_v52 = vpop.f32.mrf.mxu1 }
 0x505   : > { %v18633_v14 = vpop.f32.mrf.mxu3 }
 0x509   : > { %v18643_v61 = vpop.f32.mrf.mxu0 }
 0x50a   : > { %21164 = vst [vmem:[#allocation40_spill] sm:$0xff] %v18643_v61 }
 0x50b   : > { %v18645_v0 = vpop.f32.mrf.mxu1 }
 0x50c   : > { %21165 = vst [vmem:[#allocation39_spill] sm:$0xff] %v18645_v0 }
 0x50d   : > { %v18639_v53 = vpop.f32.mrf.mxu2  ;;  %v18641_v3 = vpop.f32.mrf.mxu3 }
 0x511   : > { %v3267_v22 = vpop.f32.mrf.mxu0 }
 0x513   : > { %v3306_v15 = vpop.f32.mrf.mxu1 }
 0x514   : > { %v3307_v28 = vadd.f32 %v3306_v15, %v3267_v22  ;;  %v3685_v22 = vsub.f32 %v2839_v1, %v3645_v63 }
 0x515   : > { %v18647_v27 = vpop.f32.mrf.mxu2  ;;  %v18649_v47 = vpop.f32.mrf.mxu3 }
 0x516   : > { %21166 = vst [vmem:[#allocation30_spill] sm:$0xff] %v18649_v47  ;;  %v3686_v50 = vand.u32 4294901760, %v3685_v22 }
 0x518   : > { %v3687_v9 = vsub.f32 %v3685_v22, %v3686_v50 }
 0x519   : > { %v3275_v55 = vpop.f32.mrf.mxu0 }
 0x51b   : > { %v3310_v13 = vpop.f32.mrf.mxu1 }
 0x51c   : > { %v3311_v58 = vadd.f32 %v3310_v13, %v3275_v55  ;;  %v3688_v13 = vand.u32 4294901760, %v3687_v9 }
 0x51d   : > { %v18651_v7 = vpop.f32.mrf.mxu2  ;;  %v18653_v19 = vpop.f32.mrf.mxu3 }
 0x51e   : > { %21167 = vst [vmem:[#allocation27_spill] sm:$0xff] %v18651_v7  ;;  %3689 = vmatpush.msrb.mxu1 %v3688_v13  ;;  %v21185_v13 = vld [vmem:[#allocation47_spill] sm:$0xff] }
 0x51f   : > { %21168 = vst [vmem:[#allocation26_spill] sm:$0xff] %v18653_v19 }
 0x521   : > { %v3399_v60 = vpop.f32.mrf.mxu0 }
 0x523   : > { %v3426_v6 = vpop.f32.mrf.mxu1 }
 0x525   : > { %v18655_v35 = vpop.f32.mrf.mxu2  ;;  %v3366_v10 = vpop.f32.mrf.mxu3 }
 0x526   : > { %21169 = vst [vmem:[#allocation44_spill] sm:$0xff] %v18655_v35 }
 0x52d   : > { %v3336_v54 = vpop.f32.mrf.mxu2  ;;  %v3372_v31 = vpop.f32.mrf.mxu3 }
 0x52e   : > { %v3337_v29 = vadd.f32 %v3336_v54, %v3307_v28 }
 0x530   : > { %v3367_v40 = vadd.f32 %v3366_v10, %v3337_v29  ;;  %v3403_v10 = vpop.f32.mrf.mxu0 }
 0x532   : > { %v3400_v11 = vadd.f32 %v3399_v60, %v3367_v40  ;;  %v3430_v60 = vpop.f32.mrf.mxu1 }
 0x534   : > { %v3427_v4 = vadd.f32 %v3426_v6, %v3400_v11 }
 0x535   : > { %v3341_v15 = vpop.f32.mrf.mxu2 }
 0x536   : > { %v3434_v42 = vsel %vm830_vm0, %v3427_v4, 0  ;;  %v3342_v59 = vadd.f32 %v3341_v15, %v3311_v58 }
 0x537   : > { %v3457_v28 = vand.u32 4294901760, %v3434_v42 }
 0x538   : > { %v3373_v37 = vadd.f32 %v3372_v31, %v3342_v59 }
 0x539   : > { %v3458_v54 = vsub.f32 %v3434_v42, %v3457_v28  ;;  %3501 = vmatmul.f32.vlgmr.msrb.gmra.mxu3 %v3457_v28 }
 0x53a   : > { %v3404_v55 = vadd.f32 %v3403_v10, %v3373_v37  ;;  %3745 = vmatpush.msrb.mxu3 %v3643_v18 }
 0x53b   : > { %v3459_v29 = vand.u32 4294901760, %v3458_v54  ;;  %3531 = vmatmul.f32.vlgmr.msra.gmra.mxu0 %v3458_v54 }
 0x53c   : > { %v3431_v26 = vadd.f32 %v3430_v60, %v3404_v55  ;;  %3747 = vmatpush.msrb.mxu3 %v3645_v63  ;;  %3778 = vmatpush.msra.mxu0 %v3680_v8  ;;  %v21184_v60 = vld [vmem:[#allocation48_spill] sm:$0xff] }
 0x53d   : > { %v3460_v23 = vsub.f32 %v3458_v54, %v3459_v29  ;;  %3561 = vmatmul.f32.vlgmr.msra.gmra.mxu1 %v3459_v29  ;;  %v18723_v54 = vmul.f32 %v18589_v38, %v18589_v38  ;;  %v2842_v55 = vmul.f32 0.38439733, %v21184_v60  ;;  %v2841_v60 = vmul.f32 0.38439733, %v21188_v17 }
 0x53e   : > { %v3437_v32 = vsel %vm830_vm0, %v3431_v26, 0  ;;  %3807 = vmatpush.msra.mxu1 %v3643_v18  ;;  %3782 = vmatpush.msra.mxu0 %v3686_v50  ;;  %v18730_v26 = vmul.f32 %v18595_v39, %v18595_v39 }
 0x53f   : > { %v3461_v6 = vand.u32 4294901760, %v3460_v23  ;;  %v3465_v40 = vand.u32 4294901760, %v3437_v32  ;;  %21183 = vst [vmem:[#allocation31_spill] sm:$0xff] %v18723_v54  ;;  %v2844_v29 = vadd.f32 %v18723_v54, %v21185_v13 }
 0x540   : > { %3809 = vmatpush.msra.mxu1 %v3645_v63  ;;  %21186 = vst [vmem:[#allocation62_spill] sm:$0xff] %v18730_v26 }
 0x541   : > { %3462 = vmatmul.f32.vlgmr.msrb.gmra.mxu2 %v3461_v6  ;;  %3505 = vmatmul.f32.gmra.mxu3 %v3465_v40  ;;  %v3466_v1 = vsub.f32 %v3437_v32, %v3465_v40  ;;  %v2846_v6 = vmul.f32 0.30780134, %v2844_v29 }
 0x542   : > { %3715 = vmatpush.msrb.mxu2 %v3679_v57 }
 0x543   : > { %3536 = vmatmul.f32.gmra.mxu0 %v3466_v1  ;;  %v3467_v11 = vand.u32 4294901760, %v3466_v1  ;;  %v2848_v2 = vadd.f32 %v2846_v6, %v2842_v55 }
 0x544   : > { %3718 = vmatpush.msrb.mxu2 %v3685_v22 }
 0x545   : > { %3567 = vmatmul.f32.gmra.mxu1 %v3467_v11  ;;  %v3468_v58 = vsub.f32 %v3466_v1, %v3467_v11  ;;  %v4029_v13 = vand.u32 4294901760, %v2848_v2 }
 0x547   : > { %v3469_v4 = vand.u32 4294901760, %v3468_v58  ;;  %v4065_v35 = vsub.f32 %v2848_v2, %v4029_v13 }
 0x549   : > { %3470 = vmatmul.f32.gmra.mxu2 %v3469_v4  ;;  %3621 = vmatmul.f32.vlgmr.msra.gmra.mxu3 %v3457_v28  ;;  %v4066_v29 = vand.u32 4294901760, %v4065_v35 }
 0x54a   : > { %3879 = vmatpush.msra.mxu3 %v18193_v49 }
 0x54b   : > { %3652 = vmatmul.f32.vlgmr.msrb.gmra.mxu0 %v18150_v33  ;;  %v4067_v6 = vsub.f32 %v4065_v35, %v4066_v29 }
 0x54c   : > { %3885 = vmatpush.msra.mxu3 %v18199_v51  ;;  %3911 = vmatpush.msrb.mxu0 %v18173_v43 }
 0x54d   : > { %3691 = vmatmul.f32.vlgmr.msrb.gmra.mxu1 %v18131_v16 }
 0x54e   : > { %3914 = vmatpush.msrb.mxu0 %v18181_v46  ;;  %3941 = vmatpush.msrb.mxu1 %v18152_v34 }
 0x550   : > { %3943 = vmatpush.msrb.mxu1 %v18175_v44 }
 0x551   : > { %3594 = vmatmul.f32.vlgmr.msra.gmra.mxu2 %v3457_v28  ;;  %3625 = vmatmul.f32.gmra.mxu3 %v3465_v40 }
 0x552   : > { %3840 = vmatpush.msra.mxu2 %v18152_v34 }
 0x553   : > { %3660 = vmatmul.f32.gmra.mxu0 %v18160_v41 }
 0x554   : > { %3842 = vmatpush.msra.mxu2 %v18175_v44 }
 0x555   : > { %3695 = vmatmul.f32.gmra.mxu1 %v18134_v20 }
 0x559   : > { %3598 = vmatmul.f32.gmra.mxu2 %v3465_v40  ;;  %3751 = vmatmul.f32.vlgmr.msrb.gmra.mxu3 %v18143_v25  ;;  %v21187_v40 = vld [vmem:[#allocation49_spill] sm:$0xff] }
 0x55a   : > { %4003 = vmatpush.msrb.mxu3 %v18152_v34  ;;  %v2843_v1 = vadd.f32 %v18730_v26, %v21187_v40 }
 0x55b   : > { %3784 = vmatmul.f32.vlgmr.msra.gmra.mxu0 %v18131_v16 }
 0x55c   : > { %4005 = vmatpush.msrb.mxu3 %v18175_v44  ;;  %v2845_v56 = vmul.f32 0.30780134, %v2843_v1  ;;  %4030 = vmatpush.msra.mxu0 %v4029_v13 }
 0x55d   : > { %3811 = vmatmul.f32.vlgmr.msra.gmra.mxu1 %v18131_v16 }
 0x55e   : > { %v2847_v54 = vadd.f32 %v2845_v56, %v2841_v60  ;;  %v4068_v56 = vand.u32 4294901760, %v4067_v6 }
 0x560   : > { %4069 = vmatpush.msra.mxu1 %v4068_v56 }
 0x561   : > { %3721 = vmatmul.f32.vlgmr.msrb.gmra.mxu2 %v18137_v21  ;;  %3757 = vmatmul.f32.gmra.mxu3 %v18148_v30 }
 0x562   : > { %3974 = vmatpush.msrb.mxu2 %v18178_v45 }
 0x563   : > { %3788 = vmatmul.f32.gmra.mxu0 %v18134_v20 }
 0x564   : > { %3978 = vmatpush.msrb.mxu2 %v18189_v48 }
 0x565   : > { %3815 = vmatmul.f32.gmra.mxu1 %v18134_v20 }
 0x569   : > { %3726 = vmatmul.f32.gmra.mxu2 %v18140_v24 }
 0x5b8   : > { %v18699_v57 = vpop.f32.mrf.mxu0 }
 0x5ba   : > { %v18701_v63 = vpop.f32.mrf.mxu1 }
 0x5bc   : > { %v18697_v18 = vpop.f32.mrf.mxu3 }
 0x5c0   : > { %v18707_v15 = vpop.f32.mrf.mxu0 }
 0x5c1   : > { %21178 = vst [vmem:[#allocation28_spill] sm:$0xff] %v18707_v15 }
 0x5c2   : > { %v18709_v31 = vpop.f32.mrf.mxu1 }
 0x5c3   : > { %21179 = vst [vmem:[#allocation43_spill] sm:$0xff] %v18709_v31 }
 0x5c4   : > { %v18703_v8 = vpop.f32.mrf.mxu2  ;;  %v18705_v22 = vpop.f32.mrf.mxu3 }
 0x5c8   : > { %v3653_v62 = vpop.f32.mrf.mxu0 }
 0x5ca   : > { %v3692_v28 = vpop.f32.mrf.mxu1 }
 0x5cb   : > { %v3693_v32 = vadd.f32 %v3692_v28, %v3653_v62 }
 0x5cc   : > { %v18711_v42 = vpop.f32.mrf.mxu2  ;;  %v18713_v59 = vpop.f32.mrf.mxu3 }
 0x5cd   : > { %21180 = vst [vmem:[#allocation54_spill] sm:$0xff] %v18713_v59 }
 0x5d0   : > { %v3661_v37 = vpop.f32.mrf.mxu0 }
 0x5d2   : > { %v3696_v9 = vpop.f32.mrf.mxu1 }
 0x5d3   : > { %v3697_v62 = vadd.f32 %v3696_v9, %v3661_v37 }
 0x5d4   : > { %v18715_v50 = vpop.f32.mrf.mxu2  ;;  %v18717_v10 = vpop.f32.mrf.mxu3 }
 0x5d5   : > { %21181 = vst [vmem:[#allocation42_spill] sm:$0xff] %v18717_v10 }
 0x5d8   : > { %v3785_v58 = vpop.f32.mrf.mxu0 }
 0x5da   : > { %v3812_v12 = vpop.f32.mrf.mxu1 }
 0x5dc   : > { %v18719_v5 = vpop.f32.mrf.mxu2  ;;  %v3752_v23 = vpop.f32.mrf.mxu3 }
 0x5dd   : > { %21182 = vst [vmem:[#allocation51_spill] sm:$0xff] %v18719_v5  ;;  %v4031_v5 = vand.u32 4294901760, %v2847_v54 }
 0x5df   : > { %4032 = vmatpush.msra.mxu0 %v4031_v5  ;;  %v4071_v26 = vsub.f32 %v2847_v54, %v4031_v5 }
 0x5e0   : > { %v3789_v1 = vpop.f32.mrf.mxu0 }
 0x5e2   : > { %v3816_v2 = vpop.f32.mrf.mxu1 }
 0x5e4   : > { %v3722_v11 = vpop.f32.mrf.mxu2  ;;  %v3758_v40 = vpop.f32.mrf.mxu3 }
 0x5e5   : > { %v3723_v4 = vadd.f32 %v3722_v11, %v3693_v32 }
 0x5e7   : > { %v3753_v19 = vadd.f32 %v3752_v23, %v3723_v4  ;;  %v4072_v23 = vand.u32 4294901760, %v4071_v26 }
 0x5e9   : > { %v3786_v10 = vadd.f32 %v3785_v58, %v3753_v19  ;;  %v4073_v60 = vsub.f32 %v4071_v26, %v4072_v23 }
 0x5eb   : > { %v3813_v28 = vadd.f32 %v3812_v12, %v3786_v10  ;;  %v4074_v10 = vand.u32 4294901760, %v4073_v60 }
 0x5ec   : > { %v3727_v0 = vpop.f32.mrf.mxu2 }
 0x5ed   : > { %v3820_v55 = vsel %vm830_vm0, %v3813_v28, 0  ;;  %v3728_v32 = vadd.f32 %v3727_v0, %v3697_v62  ;;  %4075 = vmatpush.msra.mxu1 %v4074_v10  ;;  %v18786_v10 = vld [vmem:[%s18098_s22 + $0x28] sm:$0xff] }
 0x5ee   : > { %v3843_v11 = vand.u32 4294901760, %v3820_v55 }
 0x5ef   : > { %v3759_v4 = vadd.f32 %v3758_v40, %v3728_v32 }
 0x5f0   : > { %v3844_v19 = vsub.f32 %v3820_v55, %v3843_v11  ;;  %3887 = vmatmul.f32.vlgmr.msra.gmra.mxu3 %v3843_v11 }
 0x5f1   : > { %v3790_v37 = vadd.f32 %v3789_v1, %v3759_v4  ;;  %4131 = vmatpush.msra.mxu3 %v4029_v13 }
 0x5f2   : > { %v3845_v12 = vand.u32 4294901760, %v3844_v19  ;;  %3917 = vmatmul.f32.vlgmr.msrb.gmra.mxu0 %v3844_v19 }
 0x5f3   : > { %v3817_v9 = vadd.f32 %v3816_v2, %v3790_v37  ;;  %4133 = vmatpush.msra.mxu3 %v4031_v5  ;;  %4164 = vmatpush.msrb.mxu0 %v4066_v29 }
 0x5f4   : > { %v3846_v0 = vsub.f32 %v3844_v19, %v3845_v12  ;;  %3947 = vmatmul.f32.vlgmr.msrb.gmra.mxu1 %v3845_v12 }
 0x5f5   : > { %v3823_v54 = vsel %vm830_vm0, %v3817_v9, 0  ;;  %4168 = vmatpush.msrb.mxu0 %v4072_v23  ;;  %4193 = vmatpush.msrb.mxu1 %v4029_v13  ;;  %v18790_v9 = vmul.f32 %v18786_v10, %v18589_v38 }
 0x5f6   : > { %v3847_v58 = vand.u32 4294901760, %v3846_v0  ;;  %v3851_v62 = vand.u32 4294901760, %v3823_v54  ;;  %v21199_v0 = vld [vmem:[#allocation58_spill] sm:$0xff] }
 0x5f7   : > { %4195 = vmatpush.msrb.mxu1 %v4031_v5  ;;  %21198 = vst [vmem:[#allocation33_spill] sm:$0xff] %v18790_v9 }
 0x5f8   : > { %3848 = vmatmul.f32.vlgmr.msra.gmra.mxu2 %v3847_v58  ;;  %3891 = vmatmul.f32.gmra.mxu3 %v3851_v62  ;;  %v3852_v28 = vsub.f32 %v3823_v54, %v3851_v62  ;;  %v2850_v54 = vmul.f32 0.38439733, %v21199_v0  ;;  %v21200_v58 = vld [vmem:[#allocation57_spill] sm:$0xff]  ;;  %v21203_v0 = vld [vmem:[#allocation60_spill] sm:$0xff] }
 0x5f9   : > { %4101 = vmatpush.msra.mxu2 %v4065_v35 }
 0x5fa   : > { %3922 = vmatmul.f32.gmra.mxu0 %v3852_v28  ;;  %v3853_v40 = vand.u32 4294901760, %v3852_v28 }
 0x5fb   : > { %4104 = vmatpush.msra.mxu2 %v4071_v26 }
 0x5fc   : > { %3953 = vmatmul.f32.gmra.mxu1 %v3853_v40  ;;  %v3854_v55 = vsub.f32 %v3852_v28, %v3853_v40  ;;  %v18796_v28 = vld [vmem:[%s18098_s22 + $0x20] sm:$0xff] }
 0x5fd   : > { %v18800_v40 = vmul.f32 %v18796_v28, %v18595_v39 }
 0x5fe   : > { %v3855_v29 = vand.u32 4294901760, %v3854_v55 }
 0x5ff   : > { %21201 = vst [vmem:[#allocation63_spill] sm:$0xff] %v18800_v40 }
 0x600   : > { %3856 = vmatmul.f32.gmra.mxu2 %v3855_v29  ;;  %4007 = vmatmul.f32.vlgmr.msrb.gmra.mxu3 %v3843_v11 }
 0x601   : > { %4265 = vmatpush.msrb.mxu3 %v18193_v49 }
 0x602   : > { %4038 = vmatmul.f32.vlgmr.msra.gmra.mxu0 %v18150_v33 }
 0x603   : > { %4271 = vmatpush.msrb.mxu3 %v18199_v51  ;;  %4297 = vmatpush.msra.mxu0 %v18173_v43 }
 0x604   : > { %4077 = vmatmul.f32.vlgmr.msra.gmra.mxu1 %v18131_v16 }
 0x605   : > { %4300 = vmatpush.msra.mxu0 %v18181_v46  ;;  %4327 = vmatpush.msra.mxu1 %v18152_v34 }
 0x607   : > { %4329 = vmatpush.msra.mxu1 %v18175_v44 }
 0x608   : > { %3980 = vmatmul.f32.vlgmr.msrb.gmra.mxu2 %v3843_v11  ;;  %4011 = vmatmul.f32.gmra.mxu3 %v3851_v62 }
 0x609   : > { %4226 = vmatpush.msrb.mxu2 %v18152_v34 }
 0x60a   : > { %4046 = vmatmul.f32.gmra.mxu0 %v18160_v41 }
 0x60b   : > { %4228 = vmatpush.msrb.mxu2 %v18175_v44 }
 0x60c   : > { %4081 = vmatmul.f32.gmra.mxu1 %v18134_v20 }
 0x610   : > { %3984 = vmatmul.f32.gmra.mxu2 %v3851_v62  ;;  %4137 = vmatmul.f32.vlgmr.msra.gmra.mxu3 %v18143_v25  ;;  %v2852_v62 = vadd.f32 %v18790_v9, %v21200_v58 }
 0x611   : > { %4389 = vmatpush.msra.mxu3 %v18152_v34 }
 0x612   : > { %4170 = vmatmul.f32.vlgmr.msrb.gmra.mxu0 %v18131_v16  ;;  %v2854_v17 = vmul.f32 0.30780134, %v2852_v62 }
 0x613   : > { %4391 = vmatpush.msra.mxu3 %v18175_v44 }
 0x614   : > { %4197 = vmatmul.f32.vlgmr.msrb.gmra.mxu1 %v18131_v16  ;;  %v2856_v47 = vadd.f32 %v2854_v17, %v2850_v54 }
 0x618   : > { %4107 = vmatmul.f32.vlgmr.msra.gmra.mxu2 %v18137_v21  ;;  %4143 = vmatmul.f32.gmra.mxu3 %v18148_v30 }
 0x619   : > { %4360 = vmatpush.msra.mxu2 %v18178_v45 }
 0x61a   : > { %4174 = vmatmul.f32.gmra.mxu0 %v18134_v20 }
 0x61b   : > { %4364 = vmatpush.msra.mxu2 %v18189_v48 }
 0x61c   : > { %4201 = vmatmul.f32.gmra.mxu1 %v18134_v20 }
 0x620   : > { %4112 = vmatmul.f32.gmra.mxu2 %v18140_v24 }
 0x66f   : > { %v18763_v5 = vpop.f32.mrf.mxu0 }
 0x671   : > { %v18765_v26 = vpop.f32.mrf.mxu1 }
 0x672   : > { %21189 = vst [vmem:[#allocation29_spill] sm:$0xff] %v18765_v26 }
 0x673   : > { %v18761_v35 = vpop.f32.mrf.mxu3 }
 0x677   : > { %v18771_v6 = vpop.f32.mrf.mxu0 }
 0x678   : > { %21191 = vst [vmem:[#allocation61_spill] sm:$0xff] %v18771_v6  ;;  %v2849_v6 = vmul.f32 0.38439733, %v21203_v0 }
 0x679   : > { %v18773_v11 = vpop.f32.mrf.mxu1 }
 0x67a   : > { %21192 = vst [vmem:[#allocation53_spill] sm:$0xff] %v18773_v11 }
 0x67b   : > { %v18767_v13 = vpop.f32.mrf.mxu2  ;;  %v18769_v32 = vpop.f32.mrf.mxu3 }
 0x67c   : > { %21190 = vst [vmem:[#allocation46_spill] sm:$0xff] %v18769_v32 }
 0x67f   : > { %v4039_v4 = vpop.f32.mrf.mxu0 }
 0x681   : > { %v4078_v19 = vpop.f32.mrf.mxu1 }
 0x682   : > { %v4079_v29 = vadd.f32 %v4078_v19, %v4039_v4 }
 0x683   : > { %v18775_v1 = vpop.f32.mrf.mxu2  ;;  %v18777_v23 = vpop.f32.mrf.mxu3 }
 0x684   : > { %21193 = vst [vmem:[#allocation34_spill] sm:$0xff] %v18775_v1 }
 0x685   : > { %21194 = vst [vmem:[#allocation52_spill] sm:$0xff] %v18777_v23 }
 0x687   : > { %v4047_v60 = vpop.f32.mrf.mxu0 }
 0x689   : > { %v4082_v12 = vpop.f32.mrf.mxu1 }
 0x68a   : > { %v4083_v4 = vadd.f32 %v4082_v12, %v4047_v60 }
 0x68b   : > { %v18779_v56 = vpop.f32.mrf.mxu2  ;;  %v18781_v2 = vpop.f32.mrf.mxu3 }
 0x68c   : > { %21195 = vst [vmem:[#allocation64_spill] sm:$0xff] %v18779_v56  ;;  %v4415_v56 = vand.u32 4294901760, %v2856_v47 }
 0x68d   : > { %21196 = vst [vmem:[#allocation45_spill] sm:$0xff] %v18781_v2  ;;  %v21202_v2 = vld [vmem:[#allocation59_spill] sm:$0xff] }
 0x68e   : > { %4416 = vmatpush.msrb.mxu0 %v4415_v56  ;;  %v4451_v39 = vsub.f32 %v2856_v47, %v4415_v56 }
 0x68f   : > { %v4171_v38 = vpop.f32.mrf.mxu0 }
 0x690   : > { %v4452_v62 = vand.u32 4294901760, %v4451_v39 }
 0x691   : > { %v4198_v58 = vpop.f32.mrf.mxu1 }
 0x692   : > { %v4453_v54 = vsub.f32 %v4451_v39, %v4452_v62 }
 0x693   : > { %v18783_v37 = vpop.f32.mrf.mxu2  ;;  %v4138_v55 = vpop.f32.mrf.mxu3 }
 0x694   : > { %21197 = vst [vmem:[#allocation56_spill] sm:$0xff] %v18783_v37  ;;  %v2851_v37 = vadd.f32 %v18800_v40, %v21202_v2 }
 0x696   : > { %v2853_v31 = vmul.f32 0.30780134, %v2851_v37 }
 0x698   : > { %v2855_v59 = vadd.f32 %v2853_v31, %v2849_v6  ;;  %v4454_v31 = vand.u32 4294901760, %v4453_v54 }
 0x699   : > { %v4202_v47 = vpop.f32.mrf.mxu1 }
 0x69a   : > { %v4417_v26 = vand.u32 4294901760, %v2855_v59  ;;  %4455 = vmatpush.msrb.mxu1 %v4454_v31 }
 0x69b   : > { %v4108_v11 = vpop.f32.mrf.mxu2  ;;  %v4144_v7 = vpop.f32.mrf.mxu3 }
 0x69c   : > { %v4109_v23 = vadd.f32 %v4108_v11, %v4079_v29  ;;  %4418 = vmatpush.msrb.mxu0 %v4417_v26  ;;  %v4457_v2 = vsub.f32 %v2855_v59, %v4417_v26 }
 0x69e   : > { %v4139_v9 = vadd.f32 %v4138_v55, %v4109_v23  ;;  %v4458_v37 = vand.u32 4294901760, %v4457_v2  ;;  %v4175_v23 = vpop.f32.mrf.mxu0 }
 0x6a0   : > { %v4172_v61 = vadd.f32 %v4171_v38, %v4139_v9  ;;  %v4459_v6 = vsub.f32 %v4457_v2, %v4458_v37 }
 0x6a2   : > { %v4199_v19 = vadd.f32 %v4198_v58, %v4172_v61  ;;  %v4460_v61 = vand.u32 4294901760, %v4459_v6 }
 0x6a3   : > { %v4113_v40 = vpop.f32.mrf.mxu2 }
 0x6a4   : > { %v4206_v17 = vsel %vm830_vm0, %v4199_v19, 0  ;;  %v4114_v11 = vadd.f32 %v4113_v40, %v4083_v4  ;;  %4461 = vmatpush.msrb.mxu1 %v4460_v61 }
 0x6a5   : > { %v4229_v29 = vand.u32 4294901760, %v4206_v17 }
 0x6a6   : > { %v4145_v55 = vadd.f32 %v4144_v7, %v4114_v11 }
 0x6a7   : > { %v4230_v9 = vsub.f32 %v4206_v17, %v4229_v29  ;;  %4273 = vmatmul.f32.vlgmr.msrb.gmra.mxu3 %v4229_v29 }
 0x6a8   : > { %v4176_v60 = vadd.f32 %v4175_v23, %v4145_v55  ;;  %4517 = vmatpush.msrb.mxu3 %v4415_v56 }
 0x6a9   : > { %v4231_v59 = vand.u32 4294901760, %v4230_v9  ;;  %4303 = vmatmul.f32.vlgmr.msra.gmra.mxu0 %v4230_v9 }
 0x6aa   : > { %v4203_v12 = vadd.f32 %v4202_v47, %v4176_v60  ;;  %4519 = vmatpush.msrb.mxu3 %v4417_v26  ;;  %4550 = vmatpush.msra.mxu0 %v4452_v62 }
 0x6ab   : > { %v4232_v40 = vsub.f32 %v4230_v9, %v4231_v59  ;;  %4333 = vmatmul.f32.vlgmr.msra.gmra.mxu1 %v4231_v59  ;;  %v18856_v59 = vld [vmem:[%s18098_s22 + $0x38] sm:$0xff] }
 0x6ac   : > { %v4209_v38 = vsel %vm830_vm0, %v4203_v12, 0  ;;  %4579 = vmatpush.msra.mxu1 %v4415_v56  ;;  %4554 = vmatpush.msra.mxu0 %v4458_v37  ;;  %21211 = vst [vmem:[#allocation57_spill] sm:$0xff] %v18856_v59  ;;  %v4839_v12 = vmul.f32 0.38439733, %v18786_v10 }
 0x6ad   : > { %v4233_v7 = vand.u32 4294901760, %v4232_v40  ;;  %v4237_v58 = vand.u32 4294901760, %v4209_v38  ;;  %v17460_v40 = vld [vmem:[%s18098_s22 + $0x18] sm:$0xff] }
 0x6ae   : > { %4581 = vmatpush.msra.mxu1 %v4417_v26 }
 0x6af   : > { %4234 = vmatmul.f32.vlgmr.msrb.gmra.mxu2 %v4233_v7  ;;  %4277 = vmatmul.f32.gmra.mxu3 %v4237_v58  ;;  %v4238_v4 = vsub.f32 %v4209_v38, %v4237_v58  ;;  %v4841_v38 = vadd.f32 %v17460_v40, %v18856_v59 }
 0x6b0   : > { %4487 = vmatpush.msrb.mxu2 %v4451_v39 }
 0x6b1   : > { %4308 = vmatmul.f32.gmra.mxu0 %v4238_v4  ;;  %v4239_v19 = vand.u32 4294901760, %v4238_v4 }
 0x6b2   : > { %4490 = vmatpush.msrb.mxu2 %v4457_v2 }
 0x6b3   : > { %4339 = vmatmul.f32.gmra.mxu1 %v4239_v19  ;;  %v4240_v17 = vsub.f32 %v4238_v4, %v4239_v19  ;;  %v4843_v19 = vmul.f32 0.30780134, %v4841_v38 }
 0x6b5   : > { %v4241_v11 = vand.u32 4294901760, %v4240_v17  ;;  %v17461_v17 = vld [vmem:[%s18098_s22 + $0x10] sm:$0xff] }
 0x6b7   : > { %4242 = vmatmul.f32.gmra.mxu2 %v4241_v11  ;;  %4393 = vmatmul.f32.vlgmr.msra.gmra.mxu3 %v4229_v29 }
 0x6b8   : > { %4651 = vmatpush.msra.mxu3 %v18193_v49 }
 0x6b9   : > { %4424 = vmatmul.f32.vlgmr.msrb.gmra.mxu0 %v18150_v33 }
 0x6ba   : > { %4657 = vmatpush.msra.mxu3 %v18199_v51  ;;  %4683 = vmatpush.msrb.mxu0 %v18173_v43 }
 0x6bb   : > { %4463 = vmatmul.f32.vlgmr.msrb.gmra.mxu1 %v18131_v16 }
 0x6bc   : > { %4686 = vmatpush.msrb.mxu0 %v18181_v46  ;;  %4713 = vmatpush.msrb.mxu1 %v18152_v34 }
 0x6be   : > { %4715 = vmatpush.msrb.mxu1 %v18175_v44 }
 0x6bf   : > { %4366 = vmatmul.f32.vlgmr.msra.gmra.mxu2 %v4229_v29  ;;  %4397 = vmatmul.f32.gmra.mxu3 %v4237_v58 }
 0x6c0   : > { %4612 = vmatpush.msra.mxu2 %v18152_v34 }
 0x6c1   : > { %4432 = vmatmul.f32.gmra.mxu0 %v18160_v41 }
 0x6c2   : > { %4614 = vmatpush.msra.mxu2 %v18175_v44 }
 0x6c3   : > { %4467 = vmatmul.f32.gmra.mxu1 %v18134_v20 }
 0x6c7   : > { %4370 = vmatmul.f32.gmra.mxu2 %v4237_v58  ;;  %4523 = vmatmul.f32.vlgmr.msrb.gmra.mxu3 %v18143_v25  ;;  %v18862_v58 = vld [vmem:[%s18098_s22 + $0x30] sm:$0xff] }
 0x6c8   : > { %4775 = vmatpush.msrb.mxu3 %v18152_v34  ;;  %21212 = vst [vmem:[#allocation59_spill] sm:$0xff] %v18862_v58  ;;  %v4840_v11 = vadd.f32 %v17461_v17, %v18862_v58 }
 0x6c9   : > { %4556 = vmatmul.f32.vlgmr.msra.gmra.mxu0 %v18131_v16 }
 0x6ca   : > { %4777 = vmatpush.msrb.mxu3 %v18175_v44 }
 0x6cb   : > { %4583 = vmatmul.f32.vlgmr.msra.gmra.mxu1 %v18131_v16 }
 0x6cf   : > { %4493 = vmatmul.f32.vlgmr.msrb.gmra.mxu2 %v18137_v21  ;;  %4529 = vmatmul.f32.gmra.mxu3 %v18148_v30 }
 0x6d0   : > { %4746 = vmatpush.msrb.mxu2 %v18178_v45 }
 0x6d1   : > { %4560 = vmatmul.f32.gmra.mxu0 %v18134_v20 }
 0x6d2   : > { %4750 = vmatpush.msrb.mxu2 %v18189_v48 }
 0x6d3   : > { %4587 = vmatmul.f32.gmra.mxu1 %v18134_v20 }
 0x6d7   : > { %4498 = vmatmul.f32.gmra.mxu2 %v18140_v24 }
 0x726   : > { %v18833_v56 = vpop.f32.mrf.mxu0 }
 0x728   : > { %v18835_v39 = vpop.f32.mrf.mxu1 }
 0x729   : > { %21204 = vst [vmem:[#allocation55_spill] sm:$0xff] %v18835_v39 }
 0x72a   : > { %v18831_v26 = vpop.f32.mrf.mxu3 }
 0x72e   : > { %v18841_v54 = vpop.f32.mrf.mxu0 }
 0x72f   : > { %21205 = vst [vmem:[#allocation65_spill] sm:$0xff] %v18841_v54 }
 0x730   : > { %v18843_v37 = vpop.f32.mrf.mxu1 }
 0x731   : > { %21206 = vst [vmem:[#allocation35_spill] sm:$0xff] %v18843_v37 }
 0x732   : > { %v18837_v62 = vpop.f32.mrf.mxu2  ;;  %v18839_v2 = vpop.f32.mrf.mxu3 }
 0x736   : > { %v4425_v55 = vpop.f32.mrf.mxu0 }
 0x738   : > { %v4464_v6 = vpop.f32.mrf.mxu1 }
 0x739   : > { %v4465_v4 = vadd.f32 %v4464_v6, %v4425_v55 }
 0x73a   : > { %v18845_v29 = vpop.f32.mrf.mxu2  ;;  %v18847_v23 = vpop.f32.mrf.mxu3 }
 0x73b   : > { %21207 = vst [vmem:[#allocation66_spill] sm:$0xff] %v18847_v23  ;;  %v4838_v23 = vmul.f32 0.38439733, %v18796_v28 }
 0x73e   : > { %v4433_v47 = vpop.f32.mrf.mxu0 }
 0x740   : > { %v4468_v61 = vpop.f32.mrf.mxu1 }
 0x741   : > { %v4469_v55 = vadd.f32 %v4468_v61, %v4433_v47 }
 0x742   : > { %v18849_v31 = vpop.f32.mrf.mxu2  ;;  %v18851_v9 = vpop.f32.mrf.mxu3 }
 0x743   : > { %21208 = vst [vmem:[#allocation37_spill] sm:$0xff] %v18849_v31  ;;  %v4842_v31 = vmul.f32 0.30780134, %v4840_v11 }
 0x744   : > { %21209 = vst [vmem:[#allocation47_spill] sm:$0xff] %v18851_v9 }
 0x745   : > { %v4844_v1 = vadd.f32 %v4842_v31, %v4838_v23 }
 0x746   : > { %v4557_v9 = vpop.f32.mrf.mxu0 }
 0x747   : > { %v4894_v15 = vand.u32 4294901760, %v4844_v1 }
 0x748   : > { %v4584_v54 = vpop.f32.mrf.mxu1 }
 0x749   : > { %v4934_v58 = vsub.f32 %v4844_v1, %v4894_v15 }
 0x74a   : > { %v18853_v60 = vpop.f32.mrf.mxu2  ;;  %v4524_v7 = vpop.f32.mrf.mxu3 }
 0x74b   : > { %21210 = vst [vmem:[#allocation49_spill] sm:$0xff] %v18853_v60  ;;  %v4845_v60 = vadd.f32 %v4843_v19, %v4839_v12 }
 0x74d   : > { %v4892_v32 = vand.u32 4294901760, %v4845_v60 }
 0x74e   : > { %v4561_v19 = vpop.f32.mrf.mxu0 }
 0x74f   : > { %4893 = vmatpush.msra.mxu0 %v4892_v32  ;;  %v4928_v59 = vsub.f32 %v4845_v60, %v4892_v32 }
 0x751   : > { %v4929_v38 = vand.u32 4294901760, %v4928_v59  ;;  %4895 = vmatpush.msra.mxu0 %v4894_v15 }
 0x752   : > { %v4494_v0 = vpop.f32.mrf.mxu2  ;;  %v4530_v17 = vpop.f32.mrf.mxu3 }
 0x753   : > { %v4495_v37 = vadd.f32 %v4494_v0, %v4465_v4  ;;  %v4930_v28 = vsub.f32 %v4928_v59, %v4929_v38 }
 0x755   : > { %v4525_v10 = vadd.f32 %v4524_v7, %v4495_v37  ;;  %v4935_v37 = vand.u32 4294901760, %v4934_v58  ;;  %v4931_v23 = vand.u32 4294901760, %v4930_v28 }
 0x757   : > { %v4558_v40 = vadd.f32 %v4557_v9, %v4525_v10  ;;  %v4588_v9 = vpop.f32.mrf.mxu1  ;;  %v4936_v60 = vsub.f32 %v4934_v58, %v4935_v37  ;;  %4932 = vmatpush.msra.mxu1 %v4931_v23 }
 0x759   : > { %v4585_v6 = vadd.f32 %v4584_v54, %v4558_v40  ;;  %v4937_v61 = vand.u32 4294901760, %v4936_v60  ;;  %v21224_v60 = vld [vmem:[#allocation43_spill] sm:$0xff] }
 0x75a   : > { %v4499_v39 = vpop.f32.mrf.mxu2 }
 0x75b   : > { %v4592_v0 = vsel %vm830_vm0, %v4585_v6, 0  ;;  %v4500_v12 = vadd.f32 %v4499_v39, %v4469_v55  ;;  %4938 = vmatpush.msra.mxu1 %v4937_v61 }
 0x75c   : > { %v4615_v4 = vand.u32 4294901760, %v4592_v0 }
 0x75d   : > { %v4531_v7 = vadd.f32 %v4530_v17, %v4500_v12 }
 0x75e   : > { %v4616_v31 = vsub.f32 %v4592_v0, %v4615_v4  ;;  %4659 = vmatmul.f32.vlgmr.msra.gmra.mxu3 %v4615_v4  ;;  %v3889_v0 = vadd.f32 %v18761_v35, %v18767_v13 }
 0x75f   : > { %v4562_v47 = vadd.f32 %v4561_v19, %v4531_v7  ;;  %4994 = vmatpush.msra.mxu3 %v4892_v32  ;;  %v21219_v7 = vld [vmem:[#allocation37_spill] sm:$0xff] }
 0x760   : > { %v4617_v54 = vand.u32 4294901760, %v4616_v31  ;;  %4689 = vmatmul.f32.vlgmr.msrb.gmra.mxu0 %v4616_v31 }
 0x761   : > { %v4589_v1 = vadd.f32 %v4588_v9, %v4562_v47  ;;  %4996 = vmatpush.msra.mxu3 %v4894_v15  ;;  %5027 = vmatpush.msrb.mxu0 %v4929_v38 }
 0x762   : > { %v4618_v39 = vsub.f32 %v4616_v31, %v4617_v54  ;;  %4719 = vmatmul.f32.vlgmr.msrb.gmra.mxu1 %v4617_v54  ;;  %v21225_v54 = vld [vmem:[#allocation61_spill] sm:$0xff] }
 0x763   : > { %v4595_v11 = vsel %vm830_vm0, %v4589_v1, 0  ;;  %5031 = vmatpush.msrb.mxu0 %v4935_v37  ;;  %5056 = vmatpush.msrb.mxu1 %v4892_v32  ;;  %v3117_v32 = vadd.f32 %v18633_v14, %v18639_v53  ;;  %v3121_v14 = vadd.f32 %v18641_v3, %v18647_v27  ;;  %v4279_v53 = vadd.f32 %v18839_v2, %v18845_v29  ;;  %v21220_v27 = vld [vmem:[#allocation40_spill] sm:$0xff]  ;;  %v21221_v2 = vld [vmem:[#allocation65_spill] sm:$0xff]  ;;  %v21226_v1 = vld [vmem:[#allocation30_spill] sm:$0xff] }
 0x764   : > { %v4619_v10 = vand.u32 4294901760, %v4618_v39  ;;  %v4623_v40 = vand.u32 4294901760, %v4595_v11 }
 0x765   : > { %5058 = vmatpush.msrb.mxu1 %v4894_v15  ;;  %v3503_v15 = vadd.f32 %v18697_v18, %v18703_v8  ;;  %v3147_v12 = vadd.f32 %v18635_v36, %v3117_v32  ;;  %v3919_v8 = vadd.f32 %v18763_v5, %v3889_v0  ;;  %v21213_v36 = vld [vmem:[#allocation55_spill] sm:$0xff]  ;;  %v21218_v5 = vld [vmem:[#allocation29_spill] sm:$0xff]  ;;  %v3152_v23 = vadd.f32 %v21220_v27, %v3121_v14  ;;  %v21232_v0 = vld [vmem:[#allocation44_spill] sm:$0xff] }
 0x766   : > { %4620 = vmatmul.f32.vlgmr.msra.gmra.mxu2 %v4619_v10  ;;  %4663 = vmatmul.f32.gmra.mxu3 %v4623_v40  ;;  %v4624_v55 = vsub.f32 %v4595_v11, %v4623_v40  ;;  %v4310_v29 = vadd.f32 %v21221_v2, %v4279_v53  ;;  %v21227_v11 = vld [vmem:[#allocation66_spill] sm:$0xff] }
 0x767   : > { %4964 = vmatpush.msra.mxu2 %v4928_v59  ;;  %v4275_v59 = vadd.f32 %v18831_v26, %v18837_v62  ;;  %v21214_v26 = vld [vmem:[#allocation28_spill] sm:$0xff]  ;;  %v21215_v62 = vld [vmem:[#allocation34_spill] sm:$0xff]  ;;  %v3949_v37 = vadd.f32 %v21218_v5, %v3919_v8  ;;  %v21239_v5 = vld [vmem:[#allocation45_spill] sm:$0xff] }
 0x768   : > { %4694 = vmatmul.f32.gmra.mxu0 %v4624_v55  ;;  %v4625_v6 = vand.u32 4294901760, %v4624_v55 }
 0x769   : > { %4967 = vmatpush.msra.mxu2 %v4934_v58  ;;  %v3533_v58 = vadd.f32 %v18699_v57, %v3503_v15  ;;  %v4305_v28 = vadd.f32 %v18833_v56, %v4275_v59  ;;  %v3177_v57 = vadd.f32 %v18637_v52, %v3147_v12  ;;  %v21222_v52 = vld [vmem:[#allocation54_spill] sm:$0xff]  ;;  %v21231_v59 = vld [vmem:[#allocation52_spill] sm:$0xff] }
 0x76a   : > { %4725 = vmatmul.f32.gmra.mxu1 %v4625_v6  ;;  %v4626_v17 = vsub.f32 %v4624_v55, %v4625_v6  ;;  %v21229_v6 = vld [vmem:[#allocation51_spill] sm:$0xff] }
 0x76b   : > { %v3563_v18 = vadd.f32 %v18701_v63, %v3533_v58  ;;  %v4335_v13 = vadd.f32 %v21213_v36, %v4305_v28  ;;  %v21217_v63 = vld [vmem:[#allocation27_spill] sm:$0xff]  ;;  %v21233_v28 = vld [vmem:[#allocation53_spill] sm:$0xff]  ;;  %v21236_v36 = vld [vmem:[#allocation56_spill] sm:$0xff] }
 0x76c   : > { %v4627_v38 = vand.u32 4294901760, %v4626_v17  ;;  %v3210_v19 = vadd.f32 %v21217_v63, %v3177_v57  ;;  %v21235_v57 = vld [vmem:[#allocation42_spill] sm:$0xff] }
 0x76d   : > { %v3596_v35 = vadd.f32 %v18715_v50, %v3563_v18  ;;  %v4368_v3 = vadd.f32 %v21219_v7, %v4335_v13  ;;  %v21223_v50 = vld [vmem:[#allocation64_spill] sm:$0xff]  ;;  %v21234_v18 = vld [vmem:[#allocation49_spill] sm:$0xff] }
 0x76e   : > { %4628 = vmatmul.f32.gmra.mxu2 %v4627_v38  ;;  %4779 = vmatmul.f32.vlgmr.msrb.gmra.mxu3 %v4615_v4  ;;  %v3982_v9 = vadd.f32 %v21223_v50, %v3949_v37  ;;  %v3237_v39 = vadd.f32 %v21226_v1, %v3210_v19  ;;  %v21230_v38 = vld [vmem:[#allocation35_spill] sm:$0xff] }
 0x76f   : > { %5128 = vmatpush.msrb.mxu3 %v18193_v49  ;;  %v3623_v31 = vadd.f32 %v21222_v52, %v3596_v35  ;;  %v4395_v10 = vadd.f32 %v21227_v11, %v4368_v3  ;;  %v4341_v15 = vadd.f32 %v21230_v38, %v4310_v29 }
 0x770   : > { %4901 = vmatmul.f32.vlgmr.msra.gmra.mxu0 %v18150_v33  ;;  %v4009_v58 = vadd.f32 %v21231_v59, %v3982_v9  ;;  %v4787_v14 = vmul.f32 %v3237_v39, %v3237_v39 }
 0x771   : > { %5134 = vmatpush.msrb.mxu3 %v18199_v51  ;;  %5160 = vmatpush.msra.mxu0 %v18173_v43  ;;  %v4789_v32 = vmul.f32 %v3623_v31, %v3623_v31  ;;  %v4372_v8 = vadd.f32 %v21234_v18, %v4341_v15 }
 0x772   : > { %4940 = vmatmul.f32.vlgmr.msra.gmra.mxu1 %v18131_v16 }
 0x773   : > { %5163 = vmatpush.msra.mxu0 %v18181_v46  ;;  %5190 = vmatpush.msra.mxu1 %v18152_v34  ;;  %v4795_v53 = vsub.f32 %v4395_v10, %v4789_v32  ;;  %v4809_v7 = vadd.f32 %v4789_v32, %v4787_v14 }
 0x775   : > { %5192 = vmatpush.msra.mxu1 %v18175_v44  ;;  %v4811_v29 = vadd.f32 0.0001, %v4809_v7 }
 0x776   : > { %4752 = vmatmul.f32.vlgmr.msrb.gmra.mxu2 %v4615_v4  ;;  %4783 = vmatmul.f32.gmra.mxu3 %v4623_v40  ;;  %v3507_v4 = vadd.f32 %v18705_v22, %v18711_v42  ;;  %v21216_v22 = vld [vmem:[#allocation46_spill] sm:$0xff] }
 0x777   : > { %5089 = vmatpush.msrb.mxu2 %v18152_v34  ;;  %v3893_v42 = vadd.f32 %v21216_v22, %v21215_v62  ;;  %v21238_v22 = vld [vmem:[#allocation47_spill] sm:$0xff] }
 0x778   : > { %4909 = vmatmul.f32.gmra.mxu0 %v18160_v41  ;;  %v3538_v56 = vadd.f32 %v21214_v26, %v3507_v4  ;;  %v4793_v26 = vsub.f32 %v4009_v58, %v4787_v14 }
 0x779   : > { %5091 = vmatpush.msrb.mxu2 %v18175_v44  ;;  %v3924_v61 = vadd.f32 %v21225_v54, %v3893_v42  ;;  %v4399_v42 = vadd.f32 %v21238_v22, %v4372_v8 }
 0x77a   : > { %4944 = vmatmul.f32.gmra.mxu1 %v18134_v20  ;;  %v3569_v47 = vadd.f32 %v21224_v60, %v3538_v56  ;;  %v21237_v56 = vld [vmem:[#allocation26_spill] sm:$0xff]  ;;  %v4813_v63 = vadd.f32 %v4795_v53, %v4793_v26 }
 0x77b   : > { %v3955_v4 = vadd.f32 %v21233_v28, %v3924_v61 }
 0x77c   : > { %v3600_v17 = vadd.f32 %v21229_v6, %v3569_v47 }
 0x77d   : > { %v3986_v13 = vadd.f32 %v21236_v36, %v3955_v4  ;;  %v4791_v36 = vmul.f32 %v3623_v31, %v3237_v39 }
 0x77e   : > { %4756 = vmatmul.f32.gmra.mxu2 %v4623_v40  ;;  %5000 = vmatmul.f32.vlgmr.msra.gmra.mxu3 %v18143_v25  ;;  %v21228_v40 = vld [vmem:[#allocation39_spill] sm:$0xff]  ;;  %v3627_v35 = vadd.f32 %v21235_v57, %v3600_v17 }
 0x77f   : > { %5252 = vmatpush.msra.mxu3 %v18152_v34  ;;  %v3183_v55 = vadd.f32 %v21228_v40, %v3152_v23  ;;  %v4013_v37 = vadd.f32 %v21239_v5, %v3986_v13  ;;  %v4815_v23 = vadd.f32 0.0009, %v4813_v63  ;;  %v4799_v63 = vmul.f32 2.0, %v4791_v36 }
 0x780   : > { %5033 = vmatmul.f32.vlgmr.msrb.gmra.mxu0 %v18131_v16  ;;  %v4790_v19 = vmul.f32 %v3627_v35, %v3627_v35 }
 0x781   : > { %5254 = vmatpush.msra.mxu3 %v18175_v44  ;;  %v3214_v12 = vadd.f32 %v21232_v0, %v3183_v55  ;;  %v4817_v9 = vmul.f32 %v4815_v23, %v4811_v29 }
 0x782   : > { %5060 = vmatmul.f32.vlgmr.msrb.gmra.mxu1 %v18131_v16  ;;  %v4796_v27 = vsub.f32 %v4399_v42, %v4790_v19 }
 0x783   : > { %v3241_v62 = vadd.f32 %v21237_v56, %v3214_v12  ;;  %17422 = vrcp.f32 %v4817_v9 }
 0x785   : > { %v4788_v3 = vmul.f32 %v3241_v62, %v3241_v62 }
 0x786   : > { %4970 = vmatmul.f32.vlgmr.msra.gmra.mxu2 %v18137_v21  ;;  %5006 = vmatmul.f32.gmra.mxu3 %v18148_v30 }
 0x787   : > { %5223 = vmatpush.msra.mxu2 %v18178_v45  ;;  %v4794_v2 = vsub.f32 %v4013_v37, %v4788_v3  ;;  %v4810_v47 = vadd.f32 %v4790_v19, %v4788_v3 }
 0x788   : > { %5037 = vmatmul.f32.gmra.mxu0 %v18134_v20 }
 0x789   : > { %5227 = vmatpush.msra.mxu2 %v18189_v48  ;;  %v4814_v50 = vadd.f32 %v4796_v27, %v4794_v2  ;;  %v4812_v1 = vadd.f32 0.0001, %v4810_v47  ;;  %v17423_v55 = vpop.eup %17422  ;;  %v4792_v2 = vmul.f32 %v3627_v35, %v3241_v62  ;;  %v17463_v62 = vld [vmem:[%s18208_s15 + $0x18] sm:$0xff] }
 0x78a   : > { %5064 = vmatmul.f32.gmra.mxu1 %v18134_v20  ;;  %v4821_v17 = vmul.f32 %v17423_v55, %v4817_v9 }
 0x78b   : > { %v4816_v54 = vadd.f32 0.0009, %v4814_v50 }
 0x78c   : > { %v4823_v58 = vsub.f32 2.0, %v4821_v17 }
 0x78d   : > { %v4818_v10 = vmul.f32 %v4816_v54, %v4812_v1  ;;  %v18942_v1 = vld [vmem:[%s18208_s15 + $0x38] sm:$0xff] }
 0x78e   : > { %4975 = vmatmul.f32.gmra.mxu2 %v18140_v24  ;;  %v4825_v18 = vmul.f32 %v17423_v55, %v4823_v58  ;;  %v17462_v55 = vld [vmem:[%s18208_s15 + $0x28] sm:$0xff]  ;;  %v17464_v58 = vld [vmem:[%s18208_s15 + $0x10] sm:$0xff] }
 0x78f   : > { %17424 = vrcp.f32 %v4818_v10  ;;  %v4847_v35 = vmul.f32 0.38439733, %v17462_v55 }
 0x790   : > { %v4827_v56 = vmul.f32 %v4825_v18, %v4817_v9 }
 0x792   : > { %v4829_v27 = vsub.f32 2.0, %v4827_v56 }
 0x794   : > { %v4831_v47 = vmul.f32 %v4829_v27, %v4825_v18 }
 0x795   : > { %v17425_v59 = vpop.eup %17424 }
 0x796   : > { %v4822_v4 = vmul.f32 %v17425_v59, %v4818_v10 }
 0x798   : > { %v4824_v26 = vsub.f32 2.0, %v4822_v4 }
 0x79a   : > { %v4826_v5 = vmul.f32 %v17425_v59, %v4824_v26 }
 0x79c   : > { %v4828_v50 = vmul.f32 %v4826_v5, %v4818_v10  ;;  %v18948_v10 = vld [vmem:[%s18208_s15 + $0x30] sm:$0xff] }
 0x79e   : > { %v4830_v17 = vsub.f32 2.0, %v4828_v50 }
 0x7dd   : > { %v4690_v60 = vpop.f32.mrf.mxu0 }
 0x7df   : > { %v4720_v61 = vpop.f32.mrf.mxu1 }
 0x7e1   : > { %v4660_v52 = vpop.f32.mrf.mxu3 }
 0x7e5   : > { %v4695_v6 = vpop.f32.mrf.mxu0 }
 0x7e7   : > { %v4726_v15 = vpop.f32.mrf.mxu1 }
 0x7e9   : > { %v4621_v11 = vpop.f32.mrf.mxu2  ;;  %v4664_v40 = vpop.f32.mrf.mxu3 }
 0x7ea   : > { %v4661_v38 = vadd.f32 %v4660_v52, %v4621_v11  ;;  %v4801_v52 = vadd.f32 0.0001, %v4799_v63 }
 0x7ec   : > { %v4691_v0 = vadd.f32 %v4690_v60, %v4661_v38 }
 0x7ed   : > { %v4902_v28 = vpop.f32.mrf.mxu0 }
 0x7ee   : > { %v4721_v14 = vadd.f32 %v4720_v61, %v4691_v0  ;;  %v4800_v61 = vmul.f32 2.0, %v4792_v2  ;;  %v4848_v0 = vadd.f32 %v17464_v58, %v18948_v10 }
 0x7ef   : > { %v4941_v57 = vpop.f32.mrf.mxu1 }
 0x7f0   : > { %v4850_v56 = vmul.f32 0.30780134, %v4848_v0 }
 0x7f1   : > { %v4629_v32 = vpop.f32.mrf.mxu2  ;;  %v4780_v12 = vpop.f32.mrf.mxu3 }
 0x7f2   : > { %v4665_v8 = vadd.f32 %v4664_v40, %v4629_v32 }
 0x7f4   : > { %v4696_v22 = vadd.f32 %v4695_v6, %v4665_v8  ;;  %v4849_v6 = vadd.f32 %v17463_v62, %v18942_v1 }
 0x7f5   : > { %v4910_v7 = vpop.f32.mrf.mxu0 }
 0x7f6   : > { %v4727_v23 = vadd.f32 %v4726_v15, %v4696_v22  ;;  %v4942_v15 = vadd.f32 %v4941_v57, %v4902_v28  ;;  %v4851_v59 = vmul.f32 0.30780134, %v4849_v6 }
 0x7f7   : > { %v4945_v9 = vpop.f32.mrf.mxu1 }
 0x7f9   : > { %v4753_v53 = vpop.f32.mrf.mxu2  ;;  %v4784_v37 = vpop.f32.mrf.mxu3 }
 0x7fa   : > { %v4754_v13 = vadd.f32 %v4753_v53, %v4721_v14  ;;  %v4853_v53 = vadd.f32 %v4851_v59, %v4847_v35 }
 0x7fc   : > { %v4781_v42 = vadd.f32 %v4780_v12, %v4754_v13  ;;  %v4802_v12 = vadd.f32 0.0001, %v4800_v61  ;;  %v5278_v28 = vand.u32 4294901760, %v4853_v53 }
 0x7fd   : > { %v5034_v18 = vpop.f32.mrf.mxu0 }
 0x7fe   : > { %v4797_v19 = vsub.f32 %v4781_v42, %v4791_v36  ;;  %v17465_v36 = vld [vmem:[%s18208_s15 + $0x20] sm:$0xff]  ;;  %v4832_v42 = vmul.f32 %v4830_v17, %v4826_v5  ;;  %5279 = vmatpush.msrb.mxu0 %v5278_v28 }
 0x7ff   : > { %v4846_v13 = vmul.f32 0.38439733, %v17465_v36  ;;  %v5061_v26 = vpop.f32.mrf.mxu1 }
 0x800   : > { %v4803_v3 = vmul.f32 2.0, %v4797_v19 }
 0x801   : > { %v4757_v29 = vpop.f32.mrf.mxu2  ;;  %v5001_v38 = vpop.f32.mrf.mxu3  ;;  %v4852_v57 = vadd.f32 %v4850_v56, %v4846_v13 }
 0x802   : > { %v4805_v31 = vadd.f32 0.0009, %v4803_v3  ;;  %v4758_v39 = vadd.f32 %v4757_v29, %v4727_v23  ;;  %v5314_v3 = vsub.f32 %v4853_v53, %v5278_v28  ;;  %v4946_v23 = vadd.f32 %v4945_v9, %v4910_v7 }
 0x803   : > { %v5280_v27 = vand.u32 4294901760, %v4852_v57 }
 0x804   : > { %v4807_v60 = vmul.f32 %v4805_v31, %v4801_v52  ;;  %v4785_v54 = vadd.f32 %v4784_v37, %v4758_v39  ;;  %v5315_v29 = vand.u32 4294901760, %v5314_v3 }
 0x805   : > { %5281 = vmatpush.msrb.mxu0 %v5280_v27  ;;  %v5320_v39 = vsub.f32 %v4852_v57, %v5280_v27 }
 0x806   : > { %v4833_v11 = vmul.f32 %v4831_v47, %v4807_v60  ;;  %v4798_v40 = vsub.f32 %v4785_v54, %v4792_v2  ;;  %v5316_v60 = vsub.f32 %v5314_v3, %v5315_v29  ;;  %v5038_v54 = vpop.f32.mrf.mxu0 }
 0x807   : > { %v5321_v61 = vand.u32 4294901760, %v5320_v39  ;;  %v5065_v35 = vpop.f32.mrf.mxu1 }
 0x808   : > { %17276 = vst.msk [vmem:[%s18598_s26 + $0x10] sm:$0xff] %vm830_vm0, %v4833_v11  ;;  %v4804_v32 = vmul.f32 2.0, %v4798_v40  ;;  %v5317_v40 = vand.u32 4294901760, %v5316_v60 }
 0x809   : > { %v4971_v4 = vpop.f32.mrf.mxu2  ;;  %v5007_v31 = vpop.f32.mrf.mxu3  ;;  %v5322_v62 = vsub.f32 %v5320_v39, %v5321_v61 }
 0x80a   : > { %v4806_v8 = vadd.f32 0.0009, %v4804_v32  ;;  %v4972_v14 = vadd.f32 %v4971_v4, %v4942_v15  ;;  %5318 = vmatpush.msrb.mxu1 %v5317_v40 }
 0x80b   : > { %v5323_v6 = vand.u32 4294901760, %v5322_v62  ;;  %v21253_v62 = vld [vmem:[#allocation32_spill] sm:$0xff] }
 0x80c   : > { %v4808_v22 = vmul.f32 %v4806_v8, %v4802_v12  ;;  %v5002_v63 = vadd.f32 %v5001_v38, %v4972_v14 }
 0x80d   : > { %5324 = vmatpush.msrb.mxu1 %v5323_v6 }
 0x80e   : > { %v4834_v19 = vmul.f32 %v4832_v42, %v4808_v22  ;;  %v5035_v37 = vadd.f32 %v5034_v18, %v5002_v63 }
 0x810   : > { %17277 = vst.msk [vmem:[%s18598_s26 + $0x18] sm:$0xff] %vm830_vm0, %v4834_v19  ;;  %v5062_v2 = vadd.f32 %v5061_v26, %v5035_v37 }
 0x811   : > { %v4976_v52 = vpop.f32.mrf.mxu2 }
 0x812   : > { %v5069_v50 = vsel %vm830_vm0, %v5062_v2, 0  ;;  %v4977_v5 = vadd.f32 %v4976_v52, %v4946_v23  ;;  %v21248_v2 = vld [vmem:[#allocation41_spill] sm:$0xff]  ;;  %v21249_v52 = vld [vmem:[#allocation36_spill] sm:$0xff] }
 0x813   : > { %v5092_v47 = vand.u32 4294901760, %v5069_v50 }
 0x814   : > { %v5008_v11 = vadd.f32 %v5007_v31, %v4977_v5 }
 0x815   : > { %v5093_v55 = vsub.f32 %v5069_v50, %v5092_v47  ;;  %5136 = vmatmul.f32.vlgmr.msrb.gmra.mxu3 %v5092_v47 }
 0x816   : > { %v5039_v7 = vadd.f32 %v5038_v54, %v5008_v11  ;;  %5380 = vmatpush.msrb.mxu3 %v5278_v28  ;;  %v21252_v54 = vld [vmem:[#allocation38_spill] sm:$0xff] }
 0x817   : > { %v5094_v9 = vand.u32 4294901760, %v5093_v55  ;;  %5166 = vmatmul.f32.vlgmr.msra.gmra.mxu0 %v5093_v55 }
 0x818   : > { %v5066_v17 = vadd.f32 %v5065_v35, %v5039_v7  ;;  %5382 = vmatpush.msrb.mxu3 %v5280_v27  ;;  %5413 = vmatpush.msra.mxu0 %v5315_v29  ;;  %v4855_v29 = vmul.f32 0.38439733, %v21248_v2  ;;  %v4854_v7 = vmul.f32 0.38439733, %v21253_v62  ;;  %v21264_v2 = vld [vmem:[#allocation62_spill] sm:$0xff] }
 0x819   : > { %v5095_v38 = vsub.f32 %v5093_v55, %v5094_v9  ;;  %5196 = vmatmul.f32.vlgmr.msra.gmra.mxu1 %v5094_v9 }
 0x81a   : > { %v5072_v15 = vsel %vm830_vm0, %v5066_v17, 0  ;;  %5417 = vmatpush.msra.mxu0 %v5321_v61  ;;  %5442 = vmatpush.msra.mxu1 %v5278_v28 }
 0x81b   : > { %v5096_v32 = vand.u32 4294901760, %v5095_v38  ;;  %v5100_v59 = vand.u32 4294901760, %v5072_v15 }
 0x81c   : > { %5444 = vmatpush.msra.mxu1 %v5280_v27  ;;  %v21246_v27 = vld [vmem:[#allocation57_spill] sm:$0xff] }
 0x81d   : > { %5097 = vmatmul.f32.vlgmr.msrb.gmra.mxu2 %v5096_v32  ;;  %5140 = vmatmul.f32.gmra.mxu3 %v5100_v59  ;;  %v5101_v58 = vsub.f32 %v5072_v15, %v5100_v59  ;;  %v19009_v23 = vmul.f32 %v21246_v27, %v21246_v27 }
 0x81e   : > { %5350 = vmatpush.msrb.mxu2 %v5314_v3 }
 0x81f   : > { %5171 = vmatmul.f32.gmra.mxu0 %v5101_v58  ;;  %v5102_v0 = vand.u32 4294901760, %v5101_v58  ;;  %21247 = vst [vmem:[#allocation37_spill] sm:$0xff] %v19009_v23  ;;  %v4857_v31 = vadd.f32 %v19009_v23, %v21249_v52 }
 0x820   : > { %5353 = vmatpush.msrb.mxu2 %v5320_v39  ;;  %v21250_v39 = vld [vmem:[#allocation59_spill] sm:$0xff] }
 0x821   : > { %5202 = vmatmul.f32.gmra.mxu1 %v5102_v0  ;;  %v5103_v12 = vsub.f32 %v5101_v58, %v5102_v0  ;;  %v19016_v50 = vmul.f32 %v21250_v39, %v21250_v39 }
 0x823   : > { %v5104_v4 = vand.u32 4294901760, %v5103_v12  ;;  %21251 = vst [vmem:[#allocation40_spill] sm:$0xff] %v19016_v50  ;;  %v4856_v61 = vadd.f32 %v19016_v50, %v21252_v54 }
 0x825   : > { %5105 = vmatmul.f32.gmra.mxu2 %v5104_v4  ;;  %5256 = vmatmul.f32.vlgmr.msra.gmra.mxu3 %v5092_v47  ;;  %v4858_v9 = vmul.f32 0.30780134, %v4856_v61 }
 0x826   : > { %5514 = vmatpush.msra.mxu3 %v18193_v49 }
 0x827   : > { %5287 = vmatmul.f32.vlgmr.msrb.gmra.mxu0 %v18150_v33  ;;  %v4860_v15 = vadd.f32 %v4858_v9, %v4854_v7 }
 0x828   : > { %5520 = vmatpush.msra.mxu3 %v18199_v51  ;;  %5546 = vmatpush.msrb.mxu0 %v18173_v43 }
 0x829   : > { %5326 = vmatmul.f32.vlgmr.msrb.gmra.mxu1 %v18131_v16  ;;  %v5666_v58 = vand.u32 4294901760, %v4860_v15 }
 0x82a   : > { %5549 = vmatpush.msrb.mxu0 %v18181_v46  ;;  %5576 = vmatpush.msrb.mxu1 %v18152_v34 }
 0x82c   : > { %5578 = vmatpush.msrb.mxu1 %v18175_v44 }
 0x82d   : > { %5229 = vmatmul.f32.vlgmr.msra.gmra.mxu2 %v5092_v47  ;;  %5260 = vmatmul.f32.gmra.mxu3 %v5100_v59  ;;  %v4859_v47 = vmul.f32 0.30780134, %v4857_v31 }
 0x82e   : > { %5475 = vmatpush.msra.mxu2 %v18152_v34 }
 0x82f   : > { %5295 = vmatmul.f32.gmra.mxu0 %v18160_v41  ;;  %v4861_v35 = vadd.f32 %v4859_v47, %v4855_v29 }
 0x830   : > { %5477 = vmatpush.msra.mxu2 %v18175_v44 }
 0x831   : > { %5330 = vmatmul.f32.gmra.mxu1 %v18134_v20  ;;  %v5664_v38 = vand.u32 4294901760, %v4861_v35 }
 0x835   : > { %5233 = vmatmul.f32.gmra.mxu2 %v5100_v59  ;;  %5386 = vmatmul.f32.vlgmr.msrb.gmra.mxu3 %v18143_v25  ;;  %v5700_v59 = vsub.f32 %v4861_v35, %v5664_v38 }
 0x836   : > { %5638 = vmatpush.msrb.mxu3 %v18152_v34 }
 0x837   : > { %5419 = vmatmul.f32.vlgmr.msra.gmra.mxu0 %v18131_v16  ;;  %v5701_v4 = vand.u32 4294901760, %v5700_v59 }
 0x838   : > { %5640 = vmatpush.msrb.mxu3 %v18175_v44  ;;  %5665 = vmatpush.msra.mxu0 %v5664_v38 }
 0x839   : > { %5446 = vmatmul.f32.vlgmr.msra.gmra.mxu1 %v18131_v16  ;;  %v5702_v31 = vsub.f32 %v5700_v59, %v5701_v4 }
 0x83a   : > { %5667 = vmatpush.msra.mxu0 %v5666_v58 }
 0x83b   : > { %v5703_v54 = vand.u32 4294901760, %v5702_v31 }
 0x83d   : > { %5356 = vmatmul.f32.vlgmr.msrb.gmra.mxu2 %v18137_v21  ;;  %5392 = vmatmul.f32.gmra.mxu3 %v18148_v30 }
 0x83e   : > { %5609 = vmatpush.msrb.mxu2 %v18178_v45  ;;  %5704 = vmatpush.msra.mxu1 %v5703_v54 }
 0x83f   : > { %5423 = vmatmul.f32.gmra.mxu0 %v18134_v20 }
 0x840   : > { %5613 = vmatpush.msrb.mxu2 %v18189_v48 }
 0x841   : > { %5450 = vmatmul.f32.gmra.mxu1 %v18134_v20 }
 0x845   : > { %5361 = vmatmul.f32.gmra.mxu2 %v18140_v24 }
 0x894   : > { %v18985_v8 = vpop.f32.mrf.mxu0 }
 0x896   : > { %v18987_v14 = vpop.f32.mrf.mxu1 }
 0x898   : > { %v18983_v18 = vpop.f32.mrf.mxu3 }
 0x89c   : > { %v18993_v13 = vpop.f32.mrf.mxu0 }
 0x89d   : > { %21240 = vst [vmem:[#allocation55_spill] sm:$0xff] %v18993_v13 }
 0x89e   : > { %v18995_v26 = vpop.f32.mrf.mxu1 }
 0x89f   : > { %21241 = vst [vmem:[#allocation28_spill] sm:$0xff] %v18995_v26 }
 0x8a0   : > { %v18989_v53 = vpop.f32.mrf.mxu2  ;;  %v18991_v36 = vpop.f32.mrf.mxu3 }
 0x8a4   : > { %v5288_v42 = vpop.f32.mrf.mxu0 }
 0x8a6   : > { %v5327_v28 = vpop.f32.mrf.mxu1 }
 0x8a7   : > { %v5328_v60 = vadd.f32 %v5327_v28, %v5288_v42  ;;  %v5706_v42 = vsub.f32 %v4860_v15, %v5666_v58 }
 0x8a8   : > { %v18997_v56 = vpop.f32.mrf.mxu2  ;;  %v18999_v22 = vpop.f32.mrf.mxu3 }
 0x8a9   : > { %21242 = vst [vmem:[#allocation34_spill] sm:$0xff] %v18999_v22  ;;  %v5707_v39 = vand.u32 4294901760, %v5706_v42 }
 0x8ab   : > { %v5708_v61 = vsub.f32 %v5706_v42, %v5707_v39 }
 0x8ac   : > { %v5296_v19 = vpop.f32.mrf.mxu0 }
 0x8ae   : > { %v5331_v3 = vpop.f32.mrf.mxu1 }
 0x8af   : > { %v5332_v0 = vadd.f32 %v5331_v3, %v5296_v19  ;;  %v5709_v3 = vand.u32 4294901760, %v5708_v61 }
 0x8b0   : > { %v19001_v63 = vpop.f32.mrf.mxu2  ;;  %v19003_v57 = vpop.f32.mrf.mxu3 }
 0x8b1   : > { %21243 = vst [vmem:[#allocation46_spill] sm:$0xff] %v19001_v63  ;;  %5710 = vmatpush.msra.mxu1 %v5709_v3  ;;  %v21261_v3 = vld [vmem:[#allocation48_spill] sm:$0xff] }
 0x8b2   : > { %21244 = vst [vmem:[#allocation27_spill] sm:$0xff] %v19003_v57 }
 0x8b4   : > { %v5420_v40 = vpop.f32.mrf.mxu0 }
 0x8b6   : > { %v5447_v6 = vpop.f32.mrf.mxu1 }
 0x8b8   : > { %v19005_v37 = vpop.f32.mrf.mxu2  ;;  %v5387_v5 = vpop.f32.mrf.mxu3 }
 0x8b9   : > { %21245 = vst [vmem:[#allocation29_spill] sm:$0xff] %v19005_v37 }
 0x8c0   : > { %v5357_v11 = vpop.f32.mrf.mxu2  ;;  %v5393_v27 = vpop.f32.mrf.mxu3 }
 0x8c1   : > { %v5358_v55 = vadd.f32 %v5357_v11, %v5328_v60 }
 0x8c3   : > { %v5388_v17 = vadd.f32 %v5387_v5, %v5358_v55  ;;  %v5424_v5 = vpop.f32.mrf.mxu0 }
 0x8c5   : > { %v5421_v32 = vadd.f32 %v5420_v40, %v5388_v17  ;;  %v5451_v40 = vpop.f32.mrf.mxu1 }
 0x8c7   : > { %v5448_v12 = vadd.f32 %v5447_v6, %v5421_v32 }
 0x8c8   : > { %v5362_v28 = vpop.f32.mrf.mxu2 }
 0x8c9   : > { %v5455_v29 = vsel %vm830_vm0, %v5448_v12, 0  ;;  %v5363_v52 = vadd.f32 %v5362_v28, %v5332_v0 }
 0x8ca   : > { %v5478_v60 = vand.u32 4294901760, %v5455_v29 }
 0x8cb   : > { %v5394_v47 = vadd.f32 %v5393_v27, %v5363_v52 }
 0x8cc   : > { %v5479_v11 = vsub.f32 %v5455_v29, %v5478_v60  ;;  %5522 = vmatmul.f32.vlgmr.msra.gmra.mxu3 %v5478_v60 }
 0x8cd   : > { %v5425_v19 = vadd.f32 %v5424_v5, %v5394_v47  ;;  %5766 = vmatpush.msra.mxu3 %v5664_v38 }
 0x8ce   : > { %v5480_v55 = vand.u32 4294901760, %v5479_v11  ;;  %5552 = vmatmul.f32.vlgmr.msrb.gmra.mxu0 %v5479_v11 }
 0x8cf   : > { %v5452_v35 = vadd.f32 %v5451_v40, %v5425_v19  ;;  %5768 = vmatpush.msra.mxu3 %v5666_v58  ;;  %5799 = vmatpush.msrb.mxu0 %v5701_v4  ;;  %v21260_v40 = vld [vmem:[#allocation31_spill] sm:$0xff] }
 0x8d0   : > { %v5481_v7 = vsub.f32 %v5479_v11, %v5480_v55  ;;  %5582 = vmatmul.f32.vlgmr.msrb.gmra.mxu1 %v5480_v55  ;;  %v19073_v11 = vmul.f32 %v18942_v1, %v18942_v1  ;;  %v4863_v19 = vmul.f32 0.38439733, %v21260_v40  ;;  %v4862_v40 = vmul.f32 0.38439733, %v21264_v2 }
 0x8d1   : > { %v5458_v9 = vsel %vm830_vm0, %v5452_v35, 0  ;;  %5828 = vmatpush.msrb.mxu1 %v5664_v38  ;;  %5803 = vmatpush.msrb.mxu0 %v5707_v39  ;;  %v19080_v35 = vmul.f32 %v18948_v10, %v18948_v10 }
 0x8d2   : > { %v5482_v6 = vand.u32 4294901760, %v5481_v7  ;;  %v5486_v17 = vand.u32 4294901760, %v5458_v9  ;;  %21259 = vst [vmem:[#allocation30_spill] sm:$0xff] %v19073_v11  ;;  %v4865_v55 = vadd.f32 %v19073_v11, %v21261_v3 }
 0x8d3   : > { %5830 = vmatpush.msrb.mxu1 %v5666_v58  ;;  %21262 = vst [vmem:[#allocation66_spill] sm:$0xff] %v19080_v35 }
 0x8d4   : > { %5483 = vmatmul.f32.vlgmr.msra.gmra.mxu2 %v5482_v6  ;;  %5526 = vmatmul.f32.gmra.mxu3 %v5486_v17  ;;  %v5487_v15 = vsub.f32 %v5458_v9, %v5486_v17  ;;  %v4867_v6 = vmul.f32 0.30780134, %v4865_v55 }
 0x8d5   : > { %5736 = vmatpush.msra.mxu2 %v5700_v59 }
 0x8d6   : > { %5557 = vmatmul.f32.gmra.mxu0 %v5487_v15  ;;  %v5488_v32 = vand.u32 4294901760, %v5487_v15  ;;  %v4869_v50 = vadd.f32 %v4867_v6, %v4863_v19 }
 0x8d7   : > { %5739 = vmatpush.msra.mxu2 %v5706_v42 }
 0x8d8   : > { %5588 = vmatmul.f32.gmra.mxu1 %v5488_v32  ;;  %v5489_v0 = vsub.f32 %v5487_v15, %v5488_v32  ;;  %v6050_v3 = vand.u32 4294901760, %v4869_v50 }
 0x8da   : > { %v5490_v12 = vand.u32 4294901760, %v5489_v0  ;;  %v6086_v37 = vsub.f32 %v4869_v50, %v6050_v3 }
 0x8dc   : > { %5491 = vmatmul.f32.gmra.mxu2 %v5490_v12  ;;  %5642 = vmatmul.f32.vlgmr.msrb.gmra.mxu3 %v5478_v60  ;;  %v6087_v55 = vand.u32 4294901760, %v6086_v37 }
 0x8dd   : > { %5900 = vmatpush.msrb.mxu3 %v18193_v49 }
 0x8de   : > { %5673 = vmatmul.f32.vlgmr.msra.gmra.mxu0 %v18150_v33  ;;  %v6088_v6 = vsub.f32 %v6086_v37, %v6087_v55 }
 0x8df   : > { %5906 = vmatpush.msrb.mxu3 %v18199_v51  ;;  %5932 = vmatpush.msra.mxu0 %v18173_v43 }
 0x8e0   : > { %5712 = vmatmul.f32.vlgmr.msra.gmra.mxu1 %v18131_v16 }
 0x8e1   : > { %5935 = vmatpush.msra.mxu0 %v18181_v46  ;;  %5962 = vmatpush.msra.mxu1 %v18152_v34 }
 0x8e3   : > { %5964 = vmatpush.msra.mxu1 %v18175_v44 }
 0x8e4   : > { %5615 = vmatmul.f32.vlgmr.msrb.gmra.mxu2 %v5478_v60  ;;  %5646 = vmatmul.f32.gmra.mxu3 %v5486_v17 }
 0x8e5   : > { %5861 = vmatpush.msrb.mxu2 %v18152_v34 }
 0x8e6   : > { %5681 = vmatmul.f32.gmra.mxu0 %v18160_v41 }
 0x8e7   : > { %5863 = vmatpush.msrb.mxu2 %v18175_v44 }
 0x8e8   : > { %5716 = vmatmul.f32.gmra.mxu1 %v18134_v20 }
 0x8ec   : > { %5619 = vmatmul.f32.gmra.mxu2 %v5486_v17  ;;  %5772 = vmatmul.f32.vlgmr.msra.gmra.mxu3 %v18143_v25  ;;  %v21263_v17 = vld [vmem:[#allocation50_spill] sm:$0xff] }
 0x8ed   : > { %6024 = vmatpush.msra.mxu3 %v18152_v34  ;;  %v4864_v15 = vadd.f32 %v19080_v35, %v21263_v17 }
 0x8ee   : > { %5805 = vmatmul.f32.vlgmr.msrb.gmra.mxu0 %v18131_v16 }
 0x8ef   : > { %6026 = vmatpush.msra.mxu3 %v18175_v44  ;;  %v4866_v23 = vmul.f32 0.30780134, %v4864_v15  ;;  %6051 = vmatpush.msrb.mxu0 %v6050_v3 }
 0x8f0   : > { %5832 = vmatmul.f32.vlgmr.msrb.gmra.mxu1 %v18131_v16 }
 0x8f1   : > { %v4868_v11 = vadd.f32 %v4866_v23, %v4862_v40  ;;  %v6089_v23 = vand.u32 4294901760, %v6088_v6 }
 0x8f3   : > { %6090 = vmatpush.msrb.mxu1 %v6089_v23 }
 0x8f4   : > { %5742 = vmatmul.f32.vlgmr.msra.gmra.mxu2 %v18137_v21  ;;  %5778 = vmatmul.f32.gmra.mxu3 %v18148_v30 }
 0x8f5   : > { %5995 = vmatpush.msra.mxu2 %v18178_v45 }
 0x8f6   : > { %5809 = vmatmul.f32.gmra.mxu0 %v18134_v20 }
 0x8f7   : > { %5999 = vmatpush.msra.mxu2 %v18189_v48 }
 0x8f8   : > { %5836 = vmatmul.f32.gmra.mxu1 %v18134_v20 }
 0x8fc   : > { %5747 = vmatmul.f32.gmra.mxu2 %v18140_v24 }
 0x94b   : > { %v19049_v59 = vpop.f32.mrf.mxu0 }
 0x94d   : > { %v19051_v58 = vpop.f32.mrf.mxu1 }
 0x94f   : > { %v19047_v38 = vpop.f32.mrf.mxu3 }
 0x953   : > { %v19057_v28 = vpop.f32.mrf.mxu0 }
 0x954   : > { %21254 = vst [vmem:[#allocation65_spill] sm:$0xff] %v19057_v28 }
 0x955   : > { %v19059_v27 = vpop.f32.mrf.mxu1 }
 0x956   : > { %21255 = vst [vmem:[#allocation54_spill] sm:$0xff] %v19059_v27 }
 0x957   : > { %v19053_v4 = vpop.f32.mrf.mxu2  ;;  %v19055_v42 = vpop.f32.mrf.mxu3 }
 0x95b   : > { %v5674_v31 = vpop.f32.mrf.mxu0 }
 0x95d   : > { %v5713_v60 = vpop.f32.mrf.mxu1 }
 0x95e   : > { %v5714_v9 = vadd.f32 %v5713_v60, %v5674_v31 }
 0x95f   : > { %v19061_v29 = vpop.f32.mrf.mxu2  ;;  %v19063_v52 = vpop.f32.mrf.mxu3 }
 0x960   : > { %21256 = vst [vmem:[#allocation64_spill] sm:$0xff] %v19063_v52 }
 0x963   : > { %v5682_v47 = vpop.f32.mrf.mxu0 }
 0x965   : > { %v5717_v61 = vpop.f32.mrf.mxu1 }
 0x966   : > { %v5718_v31 = vadd.f32 %v5717_v61, %v5682_v47 }
 0x967   : > { %v19065_v39 = vpop.f32.mrf.mxu2  ;;  %v19067_v5 = vpop.f32.mrf.mxu3 }
 0x968   : > { %21257 = vst [vmem:[#allocation43_spill] sm:$0xff] %v19067_v5 }
 0x96b   : > { %v5806_v0 = vpop.f32.mrf.mxu0 }
 0x96d   : > { %v5833_v62 = vpop.f32.mrf.mxu1 }
 0x96f   : > { %v19069_v54 = vpop.f32.mrf.mxu2  ;;  %v5773_v7 = vpop.f32.mrf.mxu3 }
 0x970   : > { %21258 = vst [vmem:[#allocation61_spill] sm:$0xff] %v19069_v54  ;;  %v6052_v54 = vand.u32 4294901760, %v4868_v11 }
 0x972   : > { %6053 = vmatpush.msrb.mxu0 %v6052_v54  ;;  %v6092_v35 = vsub.f32 %v4868_v11, %v6052_v54 }
 0x973   : > { %v5810_v15 = vpop.f32.mrf.mxu0 }
 0x975   : > { %v5837_v50 = vpop.f32.mrf.mxu1 }
 0x977   : > { %v5743_v32 = vpop.f32.mrf.mxu2  ;;  %v5779_v17 = vpop.f32.mrf.mxu3 }
 0x978   : > { %v5744_v12 = vadd.f32 %v5743_v32, %v5714_v9 }
 0x97a   : > { %v5774_v57 = vadd.f32 %v5773_v7, %v5744_v12  ;;  %v6093_v7 = vand.u32 4294901760, %v6092_v35 }
 0x97c   : > { %v5807_v5 = vadd.f32 %v5806_v0, %v5774_v57  ;;  %v6094_v40 = vsub.f32 %v6092_v35, %v6093_v7 }
 0x97e   : > { %v5834_v60 = vadd.f32 %v5833_v62, %v5807_v5  ;;  %v6095_v5 = vand.u32 4294901760, %v6094_v40 }
 0x97f   : > { %v5748_v26 = vpop.f32.mrf.mxu2 }
 0x980   : > { %v5841_v19 = vsel %vm830_vm0, %v5834_v60, 0  ;;  %v5749_v9 = vadd.f32 %v5748_v26, %v5718_v31  ;;  %6096 = vmatpush.msrb.mxu1 %v6095_v5  ;;  %v19136_v5 = vld [vmem:[%s18098_s22 + $0x38] sm:$0xff] }
 0x981   : > { %v5864_v32 = vand.u32 4294901760, %v5841_v19 }
 0x982   : > { %v5780_v12 = vadd.f32 %v5779_v17, %v5749_v9 }
 0x983   : > { %v5865_v57 = vsub.f32 %v5841_v19, %v5864_v32  ;;  %5908 = vmatmul.f32.vlgmr.msrb.gmra.mxu3 %v5864_v32 }
 0x984   : > { %v5811_v47 = vadd.f32 %v5810_v15, %v5780_v12  ;;  %6152 = vmatpush.msrb.mxu3 %v6050_v3 }
 0x985   : > { %v5866_v62 = vand.u32 4294901760, %v5865_v57  ;;  %5938 = vmatmul.f32.vlgmr.msra.gmra.mxu0 %v5865_v57 }
 0x986   : > { %v5838_v61 = vadd.f32 %v5837_v50, %v5811_v47  ;;  %6154 = vmatpush.msrb.mxu3 %v6052_v54  ;;  %6185 = vmatpush.msra.mxu0 %v6087_v55 }
 0x987   : > { %v5867_v26 = vsub.f32 %v5865_v57, %v5866_v62  ;;  %5968 = vmatmul.f32.vlgmr.msra.gmra.mxu1 %v5866_v62 }
 0x988   : > { %v5844_v11 = vsel %vm830_vm0, %v5838_v61, 0  ;;  %6189 = vmatpush.msra.mxu0 %v6093_v7  ;;  %6214 = vmatpush.msra.mxu1 %v6050_v3  ;;  %v19140_v61 = vmul.f32 %v19136_v5, %v18942_v1 }
 0x989   : > { %v5868_v0 = vand.u32 4294901760, %v5867_v26  ;;  %v5872_v31 = vand.u32 4294901760, %v5844_v11  ;;  %v21275_v26 = vld [vmem:[#allocation33_spill] sm:$0xff] }
 0x98a   : > { %6216 = vmatpush.msra.mxu1 %v6052_v54  ;;  %21274 = vst [vmem:[#allocation26_spill] sm:$0xff] %v19140_v61 }
 0x98b   : > { %5869 = vmatmul.f32.vlgmr.msrb.gmra.mxu2 %v5868_v0  ;;  %5912 = vmatmul.f32.gmra.mxu3 %v5872_v31  ;;  %v5873_v60 = vsub.f32 %v5844_v11, %v5872_v31  ;;  %v4871_v11 = vmul.f32 0.38439733, %v21275_v26  ;;  %v21276_v0 = vld [vmem:[#allocation58_spill] sm:$0xff]  ;;  %v21279_v26 = vld [vmem:[#allocation63_spill] sm:$0xff] }
 0x98c   : > { %6122 = vmatpush.msrb.mxu2 %v6086_v37 }
 0x98d   : > { %5943 = vmatmul.f32.gmra.mxu0 %v5873_v60  ;;  %v5874_v17 = vand.u32 4294901760, %v5873_v60 }
 0x98e   : > { %6125 = vmatpush.msrb.mxu2 %v6092_v35 }
 0x98f   : > { %5974 = vmatmul.f32.gmra.mxu1 %v5874_v17  ;;  %v5875_v19 = vsub.f32 %v5873_v60, %v5874_v17  ;;  %v19146_v60 = vld [vmem:[%s18098_s22 + $0x30] sm:$0xff] }
 0x990   : > { %v19150_v17 = vmul.f32 %v19146_v60, %v18948_v10 }
 0x991   : > { %v5876_v55 = vand.u32 4294901760, %v5875_v19 }
 0x992   : > { %21277 = vst [vmem:[#allocation47_spill] sm:$0xff] %v19150_v17 }
 0x993   : > { %5877 = vmatmul.f32.gmra.mxu2 %v5876_v55  ;;  %6028 = vmatmul.f32.vlgmr.msra.gmra.mxu3 %v5864_v32 }
 0x994   : > { %6286 = vmatpush.msra.mxu3 %v18193_v49 }
 0x995   : > { %6059 = vmatmul.f32.vlgmr.msrb.gmra.mxu0 %v18150_v33 }
 0x996   : > { %6292 = vmatpush.msra.mxu3 %v18199_v51  ;;  %6318 = vmatpush.msrb.mxu0 %v18173_v43 }
 0x997   : > { %6098 = vmatmul.f32.vlgmr.msrb.gmra.mxu1 %v18131_v16 }
 0x998   : > { %6321 = vmatpush.msrb.mxu0 %v18181_v46  ;;  %6348 = vmatpush.msrb.mxu1 %v18152_v34 }
 0x99a   : > { %6350 = vmatpush.msrb.mxu1 %v18175_v44 }
 0x99b   : > { %6001 = vmatmul.f32.vlgmr.msra.gmra.mxu2 %v5864_v32  ;;  %6032 = vmatmul.f32.gmra.mxu3 %v5872_v31 }
 0x99c   : > { %6247 = vmatpush.msra.mxu2 %v18152_v34 }
 0x99d   : > { %6067 = vmatmul.f32.gmra.mxu0 %v18160_v41 }
 0x99e   : > { %6249 = vmatpush.msra.mxu2 %v18175_v44 }
 0x99f   : > { %6102 = vmatmul.f32.gmra.mxu1 %v18134_v20 }
 0x9a3   : > { %6005 = vmatmul.f32.gmra.mxu2 %v5872_v31  ;;  %6158 = vmatmul.f32.vlgmr.msrb.gmra.mxu3 %v18143_v25  ;;  %v4873_v31 = vadd.f32 %v19140_v61, %v21276_v0 }
 0x9a4   : > { %6410 = vmatpush.msrb.mxu3 %v18152_v34 }
 0x9a5   : > { %6191 = vmatmul.f32.vlgmr.msra.gmra.mxu0 %v18131_v16  ;;  %v4875_v2 = vmul.f32 0.30780134, %v4873_v31 }
 0x9a6   : > { %6412 = vmatpush.msrb.mxu3 %v18175_v44 }
 0x9a7   : > { %6218 = vmatmul.f32.vlgmr.msra.gmra.mxu1 %v18131_v16  ;;  %v4877_v22 = vadd.f32 %v4875_v2, %v4871_v11 }
 0x9ab   : > { %6128 = vmatmul.f32.vlgmr.msrb.gmra.mxu2 %v18137_v21  ;;  %6164 = vmatmul.f32.gmra.mxu3 %v18148_v30 }
 0x9ac   : > { %6381 = vmatpush.msrb.mxu2 %v18178_v45 }
 0x9ad   : > { %6195 = vmatmul.f32.gmra.mxu0 %v18134_v20 }
 0x9ae   : > { %6385 = vmatpush.msrb.mxu2 %v18189_v48 }
 0x9af   : > { %6222 = vmatmul.f32.gmra.mxu1 %v18134_v20 }
 0x9b3   : > { %6133 = vmatmul.f32.gmra.mxu2 %v18140_v24 }
 0xa02   : > { %v19113_v54 = vpop.f32.mrf.mxu0 }
 0xa04   : > { %v19115_v35 = vpop.f32.mrf.mxu1 }
 0xa05   : > { %21265 = vst [vmem:[#allocation39_spill] sm:$0xff] %v19115_v35 }
 0xa06   : > { %v19111_v37 = vpop.f32.mrf.mxu3 }
 0xa0a   : > { %v19121_v6 = vpop.f32.mrf.mxu0 }
 0xa0b   : > { %21267 = vst [vmem:[#allocation35_spill] sm:$0xff] %v19121_v6  ;;  %v4870_v6 = vmul.f32 0.38439733, %v21279_v26 }
 0xa0c   : > { %v19123_v32 = vpop.f32.mrf.mxu1 }
 0xa0d   : > { %21268 = vst [vmem:[#allocation52_spill] sm:$0xff] %v19123_v32 }
 0xa0e   : > { %v19117_v3 = vpop.f32.mrf.mxu2  ;;  %v19119_v9 = vpop.f32.mrf.mxu3 }
 0xa0f   : > { %21266 = vst [vmem:[#allocation51_spill] sm:$0xff] %v19119_v9 }
 0xa12   : > { %v6060_v12 = vpop.f32.mrf.mxu0 }
 0xa14   : > { %v6099_v57 = vpop.f32.mrf.mxu1 }
 0xa15   : > { %v6100_v55 = vadd.f32 %v6099_v57, %v6060_v12 }
 0xa16   : > { %v19125_v15 = vpop.f32.mrf.mxu2  ;;  %v19127_v7 = vpop.f32.mrf.mxu3 }
 0xa17   : > { %21269 = vst [vmem:[#allocation44_spill] sm:$0xff] %v19125_v15 }
 0xa18   : > { %21270 = vst [vmem:[#allocation53_spill] sm:$0xff] %v19127_v7 }
 0xa1a   : > { %v6068_v40 = vpop.f32.mrf.mxu0 }
 0xa1c   : > { %v6103_v62 = vpop.f32.mrf.mxu1 }
 0xa1d   : > { %v6104_v12 = vadd.f32 %v6103_v62, %v6068_v40 }
 0xa1e   : > { %v19129_v23 = vpop.f32.mrf.mxu2  ;;  %v19131_v50 = vpop.f32.mrf.mxu3 }
 0xa1f   : > { %21271 = vst [vmem:[#allocation49_spill] sm:$0xff] %v19129_v23  ;;  %v6436_v23 = vand.u32 4294901760, %v4877_v22 }
 0xa20   : > { %21272 = vst [vmem:[#allocation42_spill] sm:$0xff] %v19131_v50  ;;  %v21278_v50 = vld [vmem:[#allocation60_spill] sm:$0xff] }
 0xa21   : > { %6437 = vmatpush.msra.mxu0 %v6436_v23  ;;  %v6472_v10 = vsub.f32 %v4877_v22, %v6436_v23 }
 0xa22   : > { %v6192_v1 = vpop.f32.mrf.mxu0 }
 0xa23   : > { %v6473_v31 = vand.u32 4294901760, %v6472_v10 }
 0xa24   : > { %v6219_v0 = vpop.f32.mrf.mxu1 }
 0xa25   : > { %v6474_v11 = vsub.f32 %v6472_v10, %v6473_v31 }
 0xa26   : > { %v19133_v47 = vpop.f32.mrf.mxu2  ;;  %v6159_v19 = vpop.f32.mrf.mxu3 }
 0xa27   : > { %21273 = vst [vmem:[#allocation56_spill] sm:$0xff] %v19133_v47  ;;  %v4872_v47 = vadd.f32 %v19150_v17, %v21278_v50 }
 0xa29   : > { %v4874_v27 = vmul.f32 0.30780134, %v4872_v47 }
 0xa2b   : > { %v4876_v52 = vadd.f32 %v4874_v27, %v4870_v6  ;;  %v6475_v27 = vand.u32 4294901760, %v6474_v11 }
 0xa2c   : > { %v6223_v22 = vpop.f32.mrf.mxu1 }
 0xa2d   : > { %v6438_v35 = vand.u32 4294901760, %v4876_v52  ;;  %6476 = vmatpush.msra.mxu1 %v6475_v27 }
 0xa2e   : > { %v6129_v32 = vpop.f32.mrf.mxu2  ;;  %v6165_v63 = vpop.f32.mrf.mxu3 }
 0xa2f   : > { %v6130_v7 = vadd.f32 %v6129_v32, %v6100_v55  ;;  %6439 = vmatpush.msra.mxu0 %v6438_v35  ;;  %v6478_v50 = vsub.f32 %v4876_v52, %v6438_v35 }
 0xa31   : > { %v6160_v61 = vadd.f32 %v6159_v19, %v6130_v7  ;;  %v6479_v47 = vand.u32 4294901760, %v6478_v50  ;;  %v6196_v7 = vpop.f32.mrf.mxu0 }
 0xa33   : > { %v6193_v13 = vadd.f32 %v6192_v1, %v6160_v61  ;;  %v6480_v6 = vsub.f32 %v6478_v50, %v6479_v47 }
 0xa35   : > { %v6220_v57 = vadd.f32 %v6219_v0, %v6193_v13  ;;  %v6481_v13 = vand.u32 4294901760, %v6480_v6 }
 0xa36   : > { %v6134_v17 = vpop.f32.mrf.mxu2 }
 0xa37   : > { %v6227_v2 = vsel %vm830_vm0, %v6220_v57, 0  ;;  %v6135_v32 = vadd.f32 %v6134_v17, %v6104_v12  ;;  %6482 = vmatpush.msra.mxu1 %v6481_v13 }
 0xa38   : > { %v6250_v55 = vand.u32 4294901760, %v6227_v2 }
 0xa39   : > { %v6166_v19 = vadd.f32 %v6165_v63, %v6135_v32 }
 0xa3a   : > { %v6251_v61 = vsub.f32 %v6227_v2, %v6250_v55  ;;  %6294 = vmatmul.f32.vlgmr.msra.gmra.mxu3 %v6250_v55 }
 0xa3b   : > { %v6197_v40 = vadd.f32 %v6196_v7, %v6166_v19  ;;  %6538 = vmatpush.msra.mxu3 %v6436_v23 }
 0xa3c   : > { %v6252_v52 = vand.u32 4294901760, %v6251_v61  ;;  %6324 = vmatmul.f32.vlgmr.msrb.gmra.mxu0 %v6251_v61 }
 0xa3d   : > { %v6224_v62 = vadd.f32 %v6223_v22, %v6197_v40  ;;  %6540 = vmatpush.msra.mxu3 %v6438_v35  ;;  %6571 = vmatpush.msrb.mxu0 %v6473_v31 }
 0xa3e   : > { %v6253_v17 = vsub.f32 %v6251_v61, %v6252_v52  ;;  %6354 = vmatmul.f32.vlgmr.msrb.gmra.mxu1 %v6252_v52  ;;  %v19206_v52 = vld [vmem:[%s18098_s22 + $0x48] sm:$0xff] }
 0xa3f   : > { %v6230_v1 = vsel %vm830_vm0, %v6224_v62, 0  ;;  %6600 = vmatpush.msrb.mxu1 %v6436_v23  ;;  %6575 = vmatpush.msrb.mxu0 %v6479_v47  ;;  %21287 = vst [vmem:[#allocation58_spill] sm:$0xff] %v19206_v52  ;;  %v6860_v62 = vmul.f32 0.38439733, %v19136_v5 }
 0xa40   : > { %v6254_v63 = vand.u32 4294901760, %v6253_v17  ;;  %v6258_v0 = vand.u32 4294901760, %v6230_v1  ;;  %v17468_v17 = vld [vmem:[%s18098_s22 + $0x28] sm:$0xff] }
 0xa41   : > { %6602 = vmatpush.msrb.mxu1 %v6438_v35 }
 0xa42   : > { %6255 = vmatmul.f32.vlgmr.msra.gmra.mxu2 %v6254_v63  ;;  %6298 = vmatmul.f32.gmra.mxu3 %v6258_v0  ;;  %v6259_v12 = vsub.f32 %v6230_v1, %v6258_v0  ;;  %v6862_v1 = vadd.f32 %v17468_v17, %v19206_v52 }
 0xa43   : > { %6508 = vmatpush.msra.mxu2 %v6472_v10 }
 0xa44   : > { %6329 = vmatmul.f32.gmra.mxu0 %v6259_v12  ;;  %v6260_v57 = vand.u32 4294901760, %v6259_v12 }
 0xa45   : > { %6511 = vmatpush.msra.mxu2 %v6478_v50 }
 0xa46   : > { %6360 = vmatmul.f32.gmra.mxu1 %v6260_v57  ;;  %v6261_v2 = vsub.f32 %v6259_v12, %v6260_v57  ;;  %v6864_v57 = vmul.f32 0.30780134, %v6862_v1 }
 0xa48   : > { %v6262_v32 = vand.u32 4294901760, %v6261_v2  ;;  %v17469_v2 = vld [vmem:[%s18098_s22 + $0x20] sm:$0xff] }
 0xa4a   : > { %6263 = vmatmul.f32.gmra.mxu2 %v6262_v32  ;;  %6414 = vmatmul.f32.vlgmr.msrb.gmra.mxu3 %v6250_v55 }
 0xa4b   : > { %6672 = vmatpush.msrb.mxu3 %v18193_v49 }
 0xa4c   : > { %6445 = vmatmul.f32.vlgmr.msra.gmra.mxu0 %v18150_v33 }
 0xa4d   : > { %6678 = vmatpush.msrb.mxu3 %v18199_v51  ;;  %6704 = vmatpush.msra.mxu0 %v18173_v43 }
 0xa4e   : > { %6484 = vmatmul.f32.vlgmr.msra.gmra.mxu1 %v18131_v16 }
 0xa4f   : > { %6707 = vmatpush.msra.mxu0 %v18181_v46  ;;  %6734 = vmatpush.msra.mxu1 %v18152_v34 }
 0xa51   : > { %6736 = vmatpush.msra.mxu1 %v18175_v44 }
 0xa52   : > { %6387 = vmatmul.f32.vlgmr.msrb.gmra.mxu2 %v6250_v55  ;;  %6418 = vmatmul.f32.gmra.mxu3 %v6258_v0 }
 0xa53   : > { %6633 = vmatpush.msrb.mxu2 %v18152_v34 }
 0xa54   : > { %6453 = vmatmul.f32.gmra.mxu0 %v18160_v41 }
 0xa55   : > { %6635 = vmatpush.msrb.mxu2 %v18175_v44 }
 0xa56   : > { %6488 = vmatmul.f32.gmra.mxu1 %v18134_v20 }
 0xa5a   : > { %6391 = vmatmul.f32.gmra.mxu2 %v6258_v0  ;;  %6544 = vmatmul.f32.vlgmr.msra.gmra.mxu3 %v18143_v25  ;;  %v19212_v0 = vld [vmem:[%s18098_s22 + $0x40] sm:$0xff] }
 0xa5b   : > { %6796 = vmatpush.msra.mxu3 %v18152_v34  ;;  %21288 = vst [vmem:[#allocation60_spill] sm:$0xff] %v19212_v0  ;;  %v6861_v32 = vadd.f32 %v17469_v2, %v19212_v0 }
 0xa5c   : > { %6577 = vmatmul.f32.vlgmr.msrb.gmra.mxu0 %v18131_v16 }
 0xa5d   : > { %6798 = vmatpush.msra.mxu3 %v18175_v44 }
 0xa5e   : > { %6604 = vmatmul.f32.vlgmr.msrb.gmra.mxu1 %v18131_v16 }
 0xa62   : > { %6514 = vmatmul.f32.vlgmr.msra.gmra.mxu2 %v18137_v21  ;;  %6550 = vmatmul.f32.gmra.mxu3 %v18148_v30 }
 0xa63   : > { %6767 = vmatpush.msra.mxu2 %v18178_v45 }
 0xa64   : > { %6581 = vmatmul.f32.gmra.mxu0 %v18134_v20 }
 0xa65   : > { %6771 = vmatpush.msra.mxu2 %v18189_v48 }
 0xa66   : > { %6608 = vmatmul.f32.gmra.mxu1 %v18134_v20 }
 0xa6a   : > { %6519 = vmatmul.f32.gmra.mxu2 %v18140_v24 }
 0xab9   : > { %v19183_v23 = vpop.f32.mrf.mxu0 }
 0xabb   : > { %v19185_v10 = vpop.f32.mrf.mxu1 }
 0xabc   : > { %21280 = vst [vmem:[#allocation45_spill] sm:$0xff] %v19185_v10 }
 0xabd   : > { %v19181_v35 = vpop.f32.mrf.mxu3 }
 0xac1   : > { %v19191_v11 = vpop.f32.mrf.mxu0 }
 0xac2   : > { %21281 = vst [vmem:[#allocation57_spill] sm:$0xff] %v19191_v11 }
 0xac3   : > { %v19193_v47 = vpop.f32.mrf.mxu1 }
 0xac4   : > { %21282 = vst [vmem:[#allocation36_spill] sm:$0xff] %v19193_v47 }
 0xac5   : > { %v19187_v31 = vpop.f32.mrf.mxu2  ;;  %v19189_v50 = vpop.f32.mrf.mxu3 }
 0xac9   : > { %v6446_v19 = vpop.f32.mrf.mxu0 }
 0xacb   : > { %v6485_v6 = vpop.f32.mrf.mxu1 }
 0xacc   : > { %v6486_v12 = vadd.f32 %v6485_v6, %v6446_v19 }
 0xacd   : > { %v19195_v55 = vpop.f32.mrf.mxu2  ;;  %v19197_v7 = vpop.f32.mrf.mxu3 }
 0xace   : > { %21283 = vst [vmem:[#allocation59_spill] sm:$0xff] %v19197_v7  ;;  %v6859_v7 = vmul.f32 0.38439733, %v19146_v60 }
 0xad1   : > { %v6454_v22 = vpop.f32.mrf.mxu0 }
 0xad3   : > { %v6489_v13 = vpop.f32.mrf.mxu1 }
 0xad4   : > { %v6490_v19 = vadd.f32 %v6489_v13, %v6454_v22 }
 0xad5   : > { %v19199_v27 = vpop.f32.mrf.mxu2  ;;  %v19201_v61 = vpop.f32.mrf.mxu3 }
 0xad6   : > { %21284 = vst [vmem:[#allocation38_spill] sm:$0xff] %v19199_v27  ;;  %v6863_v27 = vmul.f32 0.30780134, %v6861_v32 }
 0xad7   : > { %21285 = vst [vmem:[#allocation48_spill] sm:$0xff] %v19201_v61 }
 0xad8   : > { %v6865_v15 = vadd.f32 %v6863_v27, %v6859_v7 }
 0xad9   : > { %v6578_v61 = vpop.f32.mrf.mxu0 }
 0xada   : > { %v6915_v28 = vand.u32 4294901760, %v6865_v15 }
 0xadb   : > { %v6605_v11 = vpop.f32.mrf.mxu1 }
 0xadc   : > { %v6955_v0 = vsub.f32 %v6865_v15, %v6915_v28 }
 0xadd   : > { %v19203_v40 = vpop.f32.mrf.mxu2  ;;  %v6545_v63 = vpop.f32.mrf.mxu3 }
 0xade   : > { %21286 = vst [vmem:[#allocation50_spill] sm:$0xff] %v19203_v40  ;;  %v6866_v40 = vadd.f32 %v6864_v57, %v6860_v62 }
 0xae0   : > { %v6913_v9 = vand.u32 4294901760, %v6866_v40 }
 0xae1   : > { %v6582_v57 = vpop.f32.mrf.mxu0 }
 0xae2   : > { %6914 = vmatpush.msrb.mxu0 %v6913_v9  ;;  %v6949_v52 = vsub.f32 %v6866_v40, %v6913_v9 }
 0xae4   : > { %v6950_v1 = vand.u32 4294901760, %v6949_v52  ;;  %6916 = vmatpush.msrb.mxu0 %v6915_v28 }
 0xae5   : > { %v6515_v26 = vpop.f32.mrf.mxu2  ;;  %v6551_v2 = vpop.f32.mrf.mxu3 }
 0xae6   : > { %v6516_v47 = vadd.f32 %v6515_v26, %v6486_v12  ;;  %v6951_v60 = vsub.f32 %v6949_v52, %v6950_v1 }
 0xae8   : > { %v6546_v5 = vadd.f32 %v6545_v63, %v6516_v47  ;;  %v6956_v47 = vand.u32 4294901760, %v6955_v0  ;;  %v6952_v7 = vand.u32 4294901760, %v6951_v60 }
 0xaea   : > { %v6579_v17 = vadd.f32 %v6578_v61, %v6546_v5  ;;  %v6609_v61 = vpop.f32.mrf.mxu1  ;;  %v6957_v40 = vsub.f32 %v6955_v0, %v6956_v47  ;;  %6953 = vmatpush.msrb.mxu1 %v6952_v7 }
 0xaec   : > { %v6606_v6 = vadd.f32 %v6605_v11, %v6579_v17  ;;  %v6958_v13 = vand.u32 4294901760, %v6957_v40  ;;  %v21300_v40 = vld [vmem:[#allocation54_spill] sm:$0xff] }
 0xaed   : > { %v6520_v10 = vpop.f32.mrf.mxu2 }
 0xaee   : > { %v6613_v26 = vsel %vm830_vm0, %v6606_v6, 0  ;;  %v6521_v62 = vadd.f32 %v6520_v10, %v6490_v19  ;;  %6959 = vmatpush.msrb.mxu1 %v6958_v13 }
 0xaef   : > { %v6636_v12 = vand.u32 4294901760, %v6613_v26 }
 0xaf0   : > { %v6552_v63 = vadd.f32 %v6551_v2, %v6521_v62 }
 0xaf1   : > { %v6637_v27 = vsub.f32 %v6613_v26, %v6636_v12  ;;  %6680 = vmatmul.f32.vlgmr.msrb.gmra.mxu3 %v6636_v12  ;;  %v5910_v26 = vadd.f32 %v19111_v37, %v19117_v3 }
 0xaf2   : > { %v6583_v22 = vadd.f32 %v6582_v57, %v6552_v63  ;;  %7015 = vmatpush.msrb.mxu3 %v6913_v9  ;;  %v21295_v63 = vld [vmem:[#allocation38_spill] sm:$0xff] }
 0xaf3   : > { %v6638_v11 = vand.u32 4294901760, %v6637_v27  ;;  %6710 = vmatmul.f32.vlgmr.msra.gmra.mxu0 %v6637_v27 }
 0xaf4   : > { %v6610_v15 = vadd.f32 %v6609_v61, %v6583_v22  ;;  %7017 = vmatpush.msrb.mxu3 %v6915_v28  ;;  %7048 = vmatpush.msra.mxu0 %v6950_v1 }
 0xaf5   : > { %v6639_v10 = vsub.f32 %v6637_v27, %v6638_v11  ;;  %6740 = vmatmul.f32.vlgmr.msra.gmra.mxu1 %v6638_v11  ;;  %v21301_v11 = vld [vmem:[#allocation35_spill] sm:$0xff] }
 0xaf6   : > { %v6616_v32 = vsel %vm830_vm0, %v6610_v15, 0  ;;  %7052 = vmatpush.msra.mxu0 %v6956_v47  ;;  %7077 = vmatpush.msra.mxu1 %v6913_v9  ;;  %v5138_v9 = vadd.f32 %v18983_v18, %v18989_v53  ;;  %v5142_v18 = vadd.f32 %v18991_v36, %v18997_v56  ;;  %v6300_v53 = vadd.f32 %v19189_v50, %v19195_v55  ;;  %v21296_v56 = vld [vmem:[#allocation55_spill] sm:$0xff]  ;;  %v21297_v50 = vld [vmem:[#allocation57_spill] sm:$0xff]  ;;  %v21302_v15 = vld [vmem:[#allocation34_spill] sm:$0xff] }
 0xaf7   : > { %v6640_v5 = vand.u32 4294901760, %v6639_v10  ;;  %v6644_v17 = vand.u32 4294901760, %v6616_v32 }
 0xaf8   : > { %7079 = vmatpush.msra.mxu1 %v6915_v28  ;;  %v5524_v28 = vadd.f32 %v19047_v38, %v19053_v4  ;;  %v5168_v62 = vadd.f32 %v18985_v8, %v5138_v9  ;;  %v5940_v4 = vadd.f32 %v19113_v54, %v5910_v26  ;;  %v21289_v8 = vld [vmem:[#allocation45_spill] sm:$0xff]  ;;  %v21294_v54 = vld [vmem:[#allocation39_spill] sm:$0xff]  ;;  %v5173_v7 = vadd.f32 %v21296_v56, %v5142_v18 }
 0xaf9   : > { %6641 = vmatmul.f32.vlgmr.msrb.gmra.mxu2 %v6640_v5  ;;  %6684 = vmatmul.f32.gmra.mxu3 %v6644_v17  ;;  %v6645_v19 = vsub.f32 %v6616_v32, %v6644_v17  ;;  %v6331_v55 = vadd.f32 %v21297_v50, %v6300_v53  ;;  %v21303_v32 = vld [vmem:[#allocation59_spill] sm:$0xff]  ;;  %v21308_v26 = vld [vmem:[#allocation29_spill] sm:$0xff] }
 0xafa   : > { %6985 = vmatpush.msrb.mxu2 %v6949_v52  ;;  %v6296_v52 = vadd.f32 %v19181_v35, %v19187_v31  ;;  %v21290_v35 = vld [vmem:[#allocation65_spill] sm:$0xff]  ;;  %v21291_v31 = vld [vmem:[#allocation44_spill] sm:$0xff]  ;;  %v5970_v47 = vadd.f32 %v21294_v54, %v5940_v4  ;;  %v21315_v54 = vld [vmem:[#allocation42_spill] sm:$0xff] }
 0xafb   : > { %6715 = vmatmul.f32.gmra.mxu0 %v6645_v19  ;;  %v6646_v6 = vand.u32 4294901760, %v6645_v19 }
 0xafc   : > { %6988 = vmatpush.msrb.mxu2 %v6955_v0  ;;  %v5554_v0 = vadd.f32 %v19049_v59, %v5524_v28  ;;  %v6326_v60 = vadd.f32 %v19183_v23, %v6296_v52  ;;  %v5198_v59 = vadd.f32 %v18987_v14, %v5168_v62  ;;  %v21298_v14 = vld [vmem:[#allocation64_spill] sm:$0xff]  ;;  %v21307_v52 = vld [vmem:[#allocation53_spill] sm:$0xff] }
 0xafd   : > { %6746 = vmatmul.f32.gmra.mxu1 %v6646_v6  ;;  %v6647_v2 = vsub.f32 %v6645_v19, %v6646_v6  ;;  %v21305_v6 = vld [vmem:[#allocation61_spill] sm:$0xff] }
 0xafe   : > { %v5584_v38 = vadd.f32 %v19051_v58, %v5554_v0  ;;  %v6356_v3 = vadd.f32 %v21289_v8, %v6326_v60  ;;  %v21293_v58 = vld [vmem:[#allocation46_spill] sm:$0xff]  ;;  %v21309_v60 = vld [vmem:[#allocation52_spill] sm:$0xff] }
 0xaff   : > { %v6648_v1 = vand.u32 4294901760, %v6647_v2  ;;  %v5231_v57 = vadd.f32 %v21293_v58, %v5198_v59  ;;  %v21311_v59 = vld [vmem:[#allocation43_spill] sm:$0xff]  ;;  %v21312_v8 = vld [vmem:[#allocation56_spill] sm:$0xff] }
 0xb00   : > { %v5617_v37 = vadd.f32 %v19065_v39, %v5584_v38  ;;  %v6389_v36 = vadd.f32 %v21295_v63, %v6356_v3  ;;  %v21299_v39 = vld [vmem:[#allocation49_spill] sm:$0xff]  ;;  %v21310_v38 = vld [vmem:[#allocation50_spill] sm:$0xff] }
 0xb01   : > { %6649 = vmatmul.f32.gmra.mxu2 %v6648_v1  ;;  %6800 = vmatmul.f32.vlgmr.msra.gmra.mxu3 %v6636_v12  ;;  %v6003_v61 = vadd.f32 %v21299_v39, %v5970_v47  ;;  %v5258_v10 = vadd.f32 %v21302_v15, %v5231_v57  ;;  %v21306_v1 = vld [vmem:[#allocation36_spill] sm:$0xff] }
 0xb02   : > { %7149 = vmatpush.msra.mxu3 %v18193_v49  ;;  %v5644_v27 = vadd.f32 %v21298_v14, %v5617_v37  ;;  %v6416_v5 = vadd.f32 %v21303_v32, %v6389_v36  ;;  %v6362_v28 = vadd.f32 %v21306_v1, %v6331_v55 }
 0xb03   : > { %6922 = vmatmul.f32.vlgmr.msrb.gmra.mxu0 %v18150_v33  ;;  %v6030_v0 = vadd.f32 %v21307_v52, %v6003_v61  ;;  %v6808_v18 = vmul.f32 %v5258_v10, %v5258_v10 }
 0xb04   : > { %7155 = vmatpush.msra.mxu3 %v18199_v51  ;;  %7181 = vmatpush.msrb.mxu0 %v18173_v43  ;;  %v6810_v9 = vmul.f32 %v5644_v27, %v5644_v27  ;;  %v6393_v4 = vadd.f32 %v21310_v38, %v6362_v28 }
 0xb05   : > { %6961 = vmatmul.f32.vlgmr.msrb.gmra.mxu1 %v18131_v16 }
 0xb06   : > { %7184 = vmatpush.msrb.mxu0 %v18181_v46  ;;  %7211 = vmatpush.msrb.mxu1 %v18152_v34  ;;  %v6816_v53 = vsub.f32 %v6416_v5, %v6810_v9  ;;  %v6830_v63 = vadd.f32 %v6810_v9, %v6808_v18 }
 0xb08   : > { %7213 = vmatpush.msrb.mxu1 %v18175_v44  ;;  %v6832_v55 = vadd.f32 0.0001, %v6830_v63 }
 0xb09   : > { %6773 = vmatmul.f32.vlgmr.msra.gmra.mxu2 %v6636_v12  ;;  %6804 = vmatmul.f32.gmra.mxu3 %v6644_v17  ;;  %v5528_v12 = vadd.f32 %v19055_v42, %v19061_v29  ;;  %v21292_v42 = vld [vmem:[#allocation51_spill] sm:$0xff] }
 0xb0a   : > { %7110 = vmatpush.msra.mxu2 %v18152_v34  ;;  %v5914_v29 = vadd.f32 %v21292_v42, %v21291_v31  ;;  %v21314_v42 = vld [vmem:[#allocation48_spill] sm:$0xff] }
 0xb0b   : > { %6930 = vmatmul.f32.gmra.mxu0 %v18160_v41  ;;  %v5559_v23 = vadd.f32 %v21290_v35, %v5528_v12  ;;  %v6814_v35 = vsub.f32 %v6030_v0, %v6808_v18 }
 0xb0c   : > { %7112 = vmatpush.msra.mxu2 %v18175_v44  ;;  %v5945_v13 = vadd.f32 %v21301_v11, %v5914_v29  ;;  %v6420_v29 = vadd.f32 %v21314_v42, %v6393_v4 }
 0xb0d   : > { %6965 = vmatmul.f32.gmra.mxu1 %v18134_v20  ;;  %v5590_v22 = vadd.f32 %v21300_v40, %v5559_v23  ;;  %v21313_v23 = vld [vmem:[#allocation27_spill] sm:$0xff]  ;;  %v6834_v58 = vadd.f32 %v6816_v53, %v6814_v35 }
 0xb0e   : > { %v5976_v12 = vadd.f32 %v21309_v60, %v5945_v13 }
 0xb0f   : > { %v5621_v2 = vadd.f32 %v21305_v6, %v5590_v22 }
 0xb10   : > { %v6007_v3 = vadd.f32 %v21312_v8, %v5976_v12  ;;  %v6812_v8 = vmul.f32 %v5644_v27, %v5258_v10 }
 0xb11   : > { %6777 = vmatmul.f32.gmra.mxu2 %v6644_v17  ;;  %7021 = vmatmul.f32.vlgmr.msrb.gmra.mxu3 %v18143_v25  ;;  %v21304_v17 = vld [vmem:[#allocation28_spill] sm:$0xff]  ;;  %v5648_v37 = vadd.f32 %v21311_v59, %v5621_v2 }
 0xb12   : > { %7273 = vmatpush.msrb.mxu3 %v18152_v34  ;;  %v5204_v19 = vadd.f32 %v21304_v17, %v5173_v7  ;;  %v6034_v47 = vadd.f32 %v21315_v54, %v6007_v3  ;;  %v6836_v7 = vadd.f32 0.0009, %v6834_v58  ;;  %v6820_v58 = vmul.f32 2.0, %v6812_v8 }
 0xb13   : > { %7054 = vmatmul.f32.vlgmr.msra.gmra.mxu0 %v18131_v16  ;;  %v6811_v57 = vmul.f32 %v5648_v37, %v5648_v37 }
 0xb14   : > { %7275 = vmatpush.msrb.mxu3 %v18175_v44  ;;  %v5235_v62 = vadd.f32 %v21308_v26, %v5204_v19  ;;  %v6838_v61 = vmul.f32 %v6836_v7, %v6832_v55 }
 0xb15   : > { %7081 = vmatmul.f32.vlgmr.msra.gmra.mxu1 %v18131_v16  ;;  %v6817_v56 = vsub.f32 %v6420_v29, %v6811_v57 }
 0xb16   : > { %v5262_v31 = vadd.f32 %v21313_v23, %v5235_v62  ;;  %17426 = vrcp.f32 %v6838_v61 }
 0xb18   : > { %v6809_v36 = vmul.f32 %v5262_v31, %v5262_v31 }
 0xb19   : > { %6991 = vmatmul.f32.vlgmr.msrb.gmra.mxu2 %v18137_v21  ;;  %7027 = vmatmul.f32.gmra.mxu3 %v18148_v30 }
 0xb1a   : > { %7244 = vmatpush.msrb.mxu2 %v18178_v45  ;;  %v6815_v50 = vsub.f32 %v6034_v47, %v6809_v36  ;;  %v6831_v22 = vadd.f32 %v6811_v57, %v6809_v36 }
 0xb1b   : > { %7058 = vmatmul.f32.gmra.mxu0 %v18134_v20 }
 0xb1c   : > { %7248 = vmatpush.msrb.mxu2 %v18189_v48  ;;  %v6835_v39 = vadd.f32 %v6817_v56, %v6815_v50  ;;  %v6833_v15 = vadd.f32 0.0001, %v6831_v22  ;;  %v17427_v19 = vpop.eup %17426  ;;  %v6813_v50 = vmul.f32 %v5648_v37, %v5262_v31  ;;  %v17471_v31 = vld [vmem:[%s18208_s15 + $0x28] sm:$0xff] }
 0xb1d   : > { %7085 = vmatmul.f32.gmra.mxu1 %v18134_v20  ;;  %v6842_v2 = vmul.f32 %v17427_v19, %v6838_v61 }
 0xb1e   : > { %v6837_v11 = vadd.f32 0.0009, %v6835_v39 }
 0xb1f   : > { %v6844_v0 = vsub.f32 2.0, %v6842_v2 }
 0xb20   : > { %v6839_v5 = vmul.f32 %v6837_v11, %v6833_v15  ;;  %v19292_v15 = vld [vmem:[%s18208_s15 + $0x48] sm:$0xff] }
 0xb21   : > { %6996 = vmatmul.f32.gmra.mxu2 %v18140_v24  ;;  %v6846_v38 = vmul.f32 %v17427_v19, %v6844_v0  ;;  %v17470_v19 = vld [vmem:[%s18208_s15 + $0x38] sm:$0xff]  ;;  %v17472_v0 = vld [vmem:[%s18208_s15 + $0x20] sm:$0xff] }
 0xb22   : > { %17428 = vrcp.f32 %v6839_v5  ;;  %v6868_v37 = vmul.f32 0.38439733, %v17470_v19 }
 0xb23   : > { %v6848_v23 = vmul.f32 %v6846_v38, %v6838_v61 }
 0xb25   : > { %v6850_v56 = vsub.f32 2.0, %v6848_v23 }
 0xb27   : > { %v6852_v22 = vmul.f32 %v6850_v56, %v6846_v38 }
 0xb28   : > { %v17429_v52 = vpop.eup %17428 }
 0xb29   : > { %v6843_v12 = vmul.f32 %v17429_v52, %v6839_v5 }
 0xb2b   : > { %v6845_v35 = vsub.f32 2.0, %v6843_v12 }
 0xb2d   : > { %v6847_v54 = vmul.f32 %v17429_v52, %v6845_v35 }
 0xb2f   : > { %v6849_v39 = vmul.f32 %v6847_v54, %v6839_v5  ;;  %v19298_v5 = vld [vmem:[%s18208_s15 + $0x40] sm:$0xff] }
 0xb31   : > { %v6851_v2 = vsub.f32 2.0, %v6849_v39 }
 0xb70   : > { %v6711_v40 = vpop.f32.mrf.mxu0 }
 0xb72   : > { %v6741_v13 = vpop.f32.mrf.mxu1 }
 0xb74   : > { %v6681_v14 = vpop.f32.mrf.mxu3 }
 0xb78   : > { %v6716_v6 = vpop.f32.mrf.mxu0 }
 0xb7a   : > { %v6747_v28 = vpop.f32.mrf.mxu1 }
 0xb7c   : > { %v6642_v32 = vpop.f32.mrf.mxu2  ;;  %v6685_v17 = vpop.f32.mrf.mxu3 }
 0xb7d   : > { %v6682_v1 = vadd.f32 %v6681_v14, %v6642_v32  ;;  %v6822_v14 = vadd.f32 0.0001, %v6820_v58 }
 0xb7f   : > { %v6712_v26 = vadd.f32 %v6711_v40, %v6682_v1 }
 0xb80   : > { %v6923_v60 = vpop.f32.mrf.mxu0 }
 0xb81   : > { %v6742_v18 = vadd.f32 %v6741_v13, %v6712_v26  ;;  %v6821_v13 = vmul.f32 2.0, %v6813_v50  ;;  %v6869_v26 = vadd.f32 %v17472_v0, %v19298_v5 }
 0xb82   : > { %v6962_v59 = vpop.f32.mrf.mxu1 }
 0xb83   : > { %v6871_v23 = vmul.f32 0.30780134, %v6869_v26 }
 0xb84   : > { %v6650_v9 = vpop.f32.mrf.mxu2  ;;  %v6801_v62 = vpop.f32.mrf.mxu3 }
 0xb85   : > { %v6686_v4 = vadd.f32 %v6685_v17, %v6650_v9 }
 0xb87   : > { %v6717_v42 = vadd.f32 %v6716_v6, %v6686_v4  ;;  %v6870_v6 = vadd.f32 %v17471_v31, %v19292_v15 }
 0xb88   : > { %v6931_v63 = vpop.f32.mrf.mxu0 }
 0xb89   : > { %v6748_v7 = vadd.f32 %v6747_v28, %v6717_v42  ;;  %v6963_v28 = vadd.f32 %v6962_v59, %v6923_v60  ;;  %v6872_v52 = vmul.f32 0.30780134, %v6870_v6 }
 0xb8a   : > { %v6966_v61 = vpop.f32.mrf.mxu1 }
 0xb8c   : > { %v6774_v53 = vpop.f32.mrf.mxu2  ;;  %v6805_v47 = vpop.f32.mrf.mxu3 }
 0xb8d   : > { %v6775_v3 = vadd.f32 %v6774_v53, %v6742_v18  ;;  %v6874_v53 = vadd.f32 %v6872_v52, %v6868_v37 }
 0xb8f   : > { %v6802_v29 = vadd.f32 %v6801_v62, %v6775_v3  ;;  %v6823_v62 = vadd.f32 0.0001, %v6821_v13  ;;  %v7299_v60 = vand.u32 4294901760, %v6874_v53 }
 0xb90   : > { %v7055_v38 = vpop.f32.mrf.mxu0 }
 0xb91   : > { %v6818_v57 = vsub.f32 %v6802_v29, %v6812_v8  ;;  %v17473_v8 = vld [vmem:[%s18208_s15 + $0x30] sm:$0xff]  ;;  %v6853_v29 = vmul.f32 %v6851_v2, %v6847_v54  ;;  %7300 = vmatpush.msra.mxu0 %v7299_v60 }
 0xb92   : > { %v6867_v3 = vmul.f32 0.38439733, %v17473_v8  ;;  %v7082_v35 = vpop.f32.mrf.mxu1 }
 0xb93   : > { %v6824_v36 = vmul.f32 2.0, %v6818_v57 }
 0xb94   : > { %v6778_v55 = vpop.f32.mrf.mxu2  ;;  %v7022_v1 = vpop.f32.mrf.mxu3  ;;  %v6873_v59 = vadd.f32 %v6871_v23, %v6867_v3 }
 0xb95   : > { %v6826_v27 = vadd.f32 0.0009, %v6824_v36  ;;  %v6779_v10 = vadd.f32 %v6778_v55, %v6748_v7  ;;  %v7335_v36 = vsub.f32 %v6874_v53, %v7299_v60  ;;  %v6967_v7 = vadd.f32 %v6966_v61, %v6931_v63 }
 0xb96   : > { %v7301_v56 = vand.u32 4294901760, %v6873_v59 }
 0xb97   : > { %v6828_v40 = vmul.f32 %v6826_v27, %v6822_v14  ;;  %v6806_v11 = vadd.f32 %v6805_v47, %v6779_v10  ;;  %v7336_v55 = vand.u32 4294901760, %v7335_v36 }
 0xb98   : > { %7302 = vmatpush.msra.mxu0 %v7301_v56  ;;  %v7341_v10 = vsub.f32 %v6873_v59, %v7301_v56 }
 0xb99   : > { %v6854_v32 = vmul.f32 %v6852_v22, %v6828_v40  ;;  %v6819_v17 = vsub.f32 %v6806_v11, %v6813_v50  ;;  %v7337_v40 = vsub.f32 %v7335_v36, %v7336_v55  ;;  %v7059_v11 = vpop.f32.mrf.mxu0 }
 0xb9a   : > { %v7342_v13 = vand.u32 4294901760, %v7341_v10  ;;  %v7086_v37 = vpop.f32.mrf.mxu1 }
 0xb9b   : > { %17278 = vst.msk [vmem:[%s18598_s26 + $0x20] sm:$0xff] %vm830_vm0, %v6854_v32  ;;  %v6825_v9 = vmul.f32 2.0, %v6819_v17  ;;  %v7338_v17 = vand.u32 4294901760, %v7337_v40 }
 0xb9c   : > { %v6992_v12 = vpop.f32.mrf.mxu2  ;;  %v7028_v27 = vpop.f32.mrf.mxu3  ;;  %v7343_v31 = vsub.f32 %v7341_v10, %v7342_v13 }
 0xb9d   : > { %v6827_v4 = vadd.f32 0.0009, %v6825_v9  ;;  %v6993_v18 = vadd.f32 %v6992_v12, %v6963_v28  ;;  %7339 = vmatpush.msra.mxu1 %v7338_v17 }
 0xb9e   : > { %v7344_v6 = vand.u32 4294901760, %v7343_v31  ;;  %v21329_v31 = vld [vmem:[#allocation40_spill] sm:$0xff] }
 0xb9f   : > { %v6829_v42 = vmul.f32 %v6827_v4, %v6823_v62  ;;  %v7023_v58 = vadd.f32 %v7022_v1, %v6993_v18 }
 0xba0   : > { %7345 = vmatpush.msra.mxu1 %v7344_v6 }
 0xba1   : > { %v6855_v57 = vmul.f32 %v6853_v29, %v6829_v42  ;;  %v7056_v47 = vadd.f32 %v7055_v38, %v7023_v58 }
 0xba3   : > { %17279 = vst.msk [vmem:[%s18598_s26 + $0x28] sm:$0xff] %vm830_vm0, %v6855_v57  ;;  %v7083_v50 = vadd.f32 %v7082_v35, %v7056_v47 }
 0xba4   : > { %v6997_v14 = vpop.f32.mrf.mxu2 }
 0xba5   : > { %v7090_v39 = vsel %vm830_vm0, %v7083_v50, 0  ;;  %v6998_v54 = vadd.f32 %v6997_v14, %v6967_v7  ;;  %v21324_v50 = vld [vmem:[#allocation37_spill] sm:$0xff] }
 0xba6   : > { %v7113_v22 = vand.u32 4294901760, %v7090_v39  ;;  %v21325_v14 = vld [vmem:[#allocation41_spill] sm:$0xff] }
 0xba7   : > { %v7029_v32 = vadd.f32 %v7028_v27, %v6998_v54 }
 0xba8   : > { %v7114_v19 = vsub.f32 %v7090_v39, %v7113_v22  ;;  %7157 = vmatmul.f32.vlgmr.msra.gmra.mxu3 %v7113_v22 }
 0xba9   : > { %v7060_v63 = vadd.f32 %v7059_v11, %v7029_v32  ;;  %7401 = vmatpush.msra.mxu3 %v7299_v60  ;;  %v21328_v11 = vld [vmem:[#allocation32_spill] sm:$0xff] }
 0xbaa   : > { %v7115_v61 = vand.u32 4294901760, %v7114_v19  ;;  %7187 = vmatmul.f32.vlgmr.msrb.gmra.mxu0 %v7114_v19 }
 0xbab   : > { %v7087_v2 = vadd.f32 %v7086_v37, %v7060_v63  ;;  %7403 = vmatpush.msra.mxu3 %v7301_v56  ;;  %7434 = vmatpush.msrb.mxu0 %v7336_v55  ;;  %v6876_v55 = vmul.f32 0.38439733, %v21324_v50  ;;  %v6875_v63 = vmul.f32 0.38439733, %v21329_v31  ;;  %v21340_v50 = vld [vmem:[#allocation66_spill] sm:$0xff] }
 0xbac   : > { %v7116_v1 = vsub.f32 %v7114_v19, %v7115_v61  ;;  %7217 = vmatmul.f32.vlgmr.msrb.gmra.mxu1 %v7115_v61 }
 0xbad   : > { %v7093_v28 = vsel %vm830_vm0, %v7087_v2, 0  ;;  %7438 = vmatpush.msrb.mxu0 %v7342_v13  ;;  %7463 = vmatpush.msrb.mxu1 %v7299_v60 }
 0xbae   : > { %v7117_v9 = vand.u32 4294901760, %v7116_v1  ;;  %v7121_v52 = vand.u32 4294901760, %v7093_v28 }
 0xbaf   : > { %7465 = vmatpush.msrb.mxu1 %v7301_v56  ;;  %v21322_v56 = vld [vmem:[#allocation58_spill] sm:$0xff] }
 0xbb0   : > { %7118 = vmatmul.f32.vlgmr.msra.gmra.mxu2 %v7117_v9  ;;  %7161 = vmatmul.f32.gmra.mxu3 %v7121_v52  ;;  %v7122_v0 = vsub.f32 %v7093_v28, %v7121_v52  ;;  %v19359_v7 = vmul.f32 %v21322_v56, %v21322_v56 }
 0xbb1   : > { %7371 = vmatpush.msra.mxu2 %v7335_v36 }
 0xbb2   : > { %7192 = vmatmul.f32.gmra.mxu0 %v7122_v0  ;;  %v7123_v26 = vand.u32 4294901760, %v7122_v0  ;;  %21323 = vst [vmem:[#allocation38_spill] sm:$0xff] %v19359_v7  ;;  %v6878_v27 = vadd.f32 %v19359_v7, %v21325_v14 }
 0xbb3   : > { %7374 = vmatpush.msra.mxu2 %v7341_v10  ;;  %v21326_v10 = vld [vmem:[#allocation60_spill] sm:$0xff] }
 0xbb4   : > { %7223 = vmatmul.f32.gmra.mxu1 %v7123_v26  ;;  %v7124_v62 = vsub.f32 %v7122_v0, %v7123_v26  ;;  %v19366_v39 = vmul.f32 %v21326_v10, %v21326_v10 }
 0xbb6   : > { %v7125_v12 = vand.u32 4294901760, %v7124_v62  ;;  %21327 = vst [vmem:[#allocation55_spill] sm:$0xff] %v19366_v39  ;;  %v6877_v13 = vadd.f32 %v19366_v39, %v21328_v11 }
 0xbb8   : > { %7126 = vmatmul.f32.gmra.mxu2 %v7125_v12  ;;  %7277 = vmatmul.f32.vlgmr.msrb.gmra.mxu3 %v7113_v22  ;;  %v6879_v61 = vmul.f32 0.30780134, %v6877_v13 }
 0xbb9   : > { %7535 = vmatpush.msrb.mxu3 %v18193_v49 }
 0xbba   : > { %7308 = vmatmul.f32.vlgmr.msra.gmra.mxu0 %v18150_v33  ;;  %v6881_v28 = vadd.f32 %v6879_v61, %v6875_v63 }
 0xbbb   : > { %7541 = vmatpush.msrb.mxu3 %v18199_v51  ;;  %7567 = vmatpush.msra.mxu0 %v18173_v43 }
 0xbbc   : > { %7347 = vmatmul.f32.vlgmr.msra.gmra.mxu1 %v18131_v16  ;;  %v7687_v0 = vand.u32 4294901760, %v6881_v28 }
 0xbbd   : > { %7570 = vmatpush.msra.mxu0 %v18181_v46  ;;  %7597 = vmatpush.msra.mxu1 %v18152_v34 }
 0xbbf   : > { %7599 = vmatpush.msra.mxu1 %v18175_v44 }
 0xbc0   : > { %7250 = vmatmul.f32.vlgmr.msrb.gmra.mxu2 %v7113_v22  ;;  %7281 = vmatmul.f32.gmra.mxu3 %v7121_v52  ;;  %v6880_v22 = vmul.f32 0.30780134, %v6878_v27 }
 0xbc1   : > { %7496 = vmatpush.msrb.mxu2 %v18152_v34 }
 0xbc2   : > { %7316 = vmatmul.f32.gmra.mxu0 %v18160_v41  ;;  %v6882_v37 = vadd.f32 %v6880_v22, %v6876_v55 }
 0xbc3   : > { %7498 = vmatpush.msrb.mxu2 %v18175_v44 }
 0xbc4   : > { %7351 = vmatmul.f32.gmra.mxu1 %v18134_v20  ;;  %v7685_v1 = vand.u32 4294901760, %v6882_v37 }
 0xbc8   : > { %7254 = vmatmul.f32.gmra.mxu2 %v7121_v52  ;;  %7407 = vmatmul.f32.vlgmr.msra.gmra.mxu3 %v18143_v25  ;;  %v7721_v52 = vsub.f32 %v6882_v37, %v7685_v1 }
 0xbc9   : > { %7659 = vmatpush.msra.mxu3 %v18152_v34 }
 0xbca   : > { %7440 = vmatmul.f32.vlgmr.msrb.gmra.mxu0 %v18131_v16  ;;  %v7722_v12 = vand.u32 4294901760, %v7721_v52 }
 0xbcb   : > { %7661 = vmatpush.msra.mxu3 %v18175_v44  ;;  %7686 = vmatpush.msrb.mxu0 %v7685_v1 }
 0xbcc   : > { %7467 = vmatmul.f32.vlgmr.msrb.gmra.mxu1 %v18131_v16  ;;  %v7723_v27 = vsub.f32 %v7721_v52, %v7722_v12 }
 0xbcd   : > { %7688 = vmatpush.msrb.mxu0 %v7687_v0 }
 0xbce   : > { %v7724_v11 = vand.u32 4294901760, %v7723_v27 }
 0xbd0   : > { %7377 = vmatmul.f32.vlgmr.msra.gmra.mxu2 %v18137_v21  ;;  %7413 = vmatmul.f32.gmra.mxu3 %v18148_v30 }
 0xbd1   : > { %7630 = vmatpush.msra.mxu2 %v18178_v45  ;;  %7725 = vmatpush.msrb.mxu1 %v7724_v11 }
 0xbd2   : > { %7444 = vmatmul.f32.gmra.mxu0 %v18134_v20 }
 0xbd3   : > { %7634 = vmatpush.msra.mxu2 %v18189_v48 }
 0xbd4   : > { %7471 = vmatmul.f32.gmra.mxu1 %v18134_v20 }
 0xbd8   : > { %7382 = vmatmul.f32.gmra.mxu2 %v18140_v24 }
 0xc27   : > { %v19335_v4 = vpop.f32.mrf.mxu0 }
 0xc29   : > { %v19337_v18 = vpop.f32.mrf.mxu1 }
 0xc2b   : > { %v19333_v38 = vpop.f32.mrf.mxu3 }
 0xc2f   : > { %v19343_v3 = vpop.f32.mrf.mxu0 }
 0xc30   : > { %21316 = vst [vmem:[#allocation45_spill] sm:$0xff] %v19343_v3 }
 0xc31   : > { %v19345_v35 = vpop.f32.mrf.mxu1 }
 0xc32   : > { %21317 = vst [vmem:[#allocation65_spill] sm:$0xff] %v19345_v35 }
 0xc33   : > { %v19339_v53 = vpop.f32.mrf.mxu2  ;;  %v19341_v8 = vpop.f32.mrf.mxu3 }
 0xc37   : > { %v7309_v29 = vpop.f32.mrf.mxu0 }
 0xc39   : > { %v7348_v60 = vpop.f32.mrf.mxu1 }
 0xc3a   : > { %v7349_v40 = vadd.f32 %v7348_v60, %v7309_v29  ;;  %v7727_v29 = vsub.f32 %v6881_v28, %v7687_v0 }
 0xc3b   : > { %v19347_v23 = vpop.f32.mrf.mxu2  ;;  %v19349_v42 = vpop.f32.mrf.mxu3 }
 0xc3c   : > { %21318 = vst [vmem:[#allocation44_spill] sm:$0xff] %v19349_v42  ;;  %v7728_v10 = vand.u32 4294901760, %v7727_v29 }
 0xc3e   : > { %v7729_v13 = vsub.f32 %v7727_v29, %v7728_v10 }
 0xc3f   : > { %v7317_v57 = vpop.f32.mrf.mxu0 }
 0xc41   : > { %v7352_v36 = vpop.f32.mrf.mxu1 }
 0xc42   : > { %v7353_v26 = vadd.f32 %v7352_v36, %v7317_v57  ;;  %v7730_v36 = vand.u32 4294901760, %v7729_v13 }
 0xc43   : > { %v19351_v58 = vpop.f32.mrf.mxu2  ;;  %v19353_v59 = vpop.f32.mrf.mxu3 }
 0xc44   : > { %21319 = vst [vmem:[#allocation51_spill] sm:$0xff] %v19351_v58  ;;  %7731 = vmatpush.msrb.mxu1 %v7730_v36  ;;  %v21337_v36 = vld [vmem:[#allocation31_spill] sm:$0xff] }
 0xc45   : > { %21320 = vst [vmem:[#allocation46_spill] sm:$0xff] %v19353_v59 }
 0xc47   : > { %v7441_v17 = vpop.f32.mrf.mxu0 }
 0xc49   : > { %v7468_v6 = vpop.f32.mrf.mxu1 }
 0xc4b   : > { %v19355_v47 = vpop.f32.mrf.mxu2  ;;  %v7408_v54 = vpop.f32.mrf.mxu3 }
 0xc4c   : > { %21321 = vst [vmem:[#allocation39_spill] sm:$0xff] %v19355_v47 }
 0xc53   : > { %v7378_v32 = vpop.f32.mrf.mxu2  ;;  %v7414_v56 = vpop.f32.mrf.mxu3 }
 0xc54   : > { %v7379_v19 = vadd.f32 %v7378_v32, %v7349_v40 }
 0xc56   : > { %v7409_v2 = vadd.f32 %v7408_v54, %v7379_v19  ;;  %v7445_v54 = vpop.f32.mrf.mxu0 }
 0xc58   : > { %v7442_v9 = vadd.f32 %v7441_v17, %v7409_v2  ;;  %v7472_v17 = vpop.f32.mrf.mxu1 }
 0xc5a   : > { %v7469_v62 = vadd.f32 %v7468_v6, %v7442_v9 }
 0xc5b   : > { %v7383_v60 = vpop.f32.mrf.mxu2 }
 0xc5c   : > { %v7476_v55 = vsel %vm830_vm0, %v7469_v62, 0  ;;  %v7384_v14 = vadd.f32 %v7383_v60, %v7353_v26 }
 0xc5d   : > { %v7499_v40 = vand.u32 4294901760, %v7476_v55 }
 0xc5e   : > { %v7415_v22 = vadd.f32 %v7414_v56, %v7384_v14 }
 0xc5f   : > { %v7500_v32 = vsub.f32 %v7476_v55, %v7499_v40  ;;  %7543 = vmatmul.f32.vlgmr.msrb.gmra.mxu3 %v7499_v40 }
 0xc60   : > { %v7446_v57 = vadd.f32 %v7445_v54, %v7415_v22  ;;  %7787 = vmatpush.msrb.mxu3 %v7685_v1 }
 0xc61   : > { %v7501_v19 = vand.u32 4294901760, %v7500_v32  ;;  %7573 = vmatmul.f32.vlgmr.msra.gmra.mxu0 %v7500_v32 }
 0xc62   : > { %v7473_v37 = vadd.f32 %v7472_v17, %v7446_v57  ;;  %7789 = vmatpush.msrb.mxu3 %v7687_v0  ;;  %7820 = vmatpush.msra.mxu0 %v7722_v12  ;;  %v21336_v17 = vld [vmem:[#allocation30_spill] sm:$0xff] }
 0xc63   : > { %v7502_v63 = vsub.f32 %v7500_v32, %v7501_v19  ;;  %7603 = vmatmul.f32.vlgmr.msra.gmra.mxu1 %v7501_v19  ;;  %v19423_v32 = vmul.f32 %v19292_v15, %v19292_v15  ;;  %v6884_v57 = vmul.f32 0.38439733, %v21336_v17  ;;  %v6883_v17 = vmul.f32 0.38439733, %v21340_v50 }
 0xc64   : > { %v7479_v61 = vsel %vm830_vm0, %v7473_v37, 0  ;;  %7849 = vmatpush.msra.mxu1 %v7685_v1  ;;  %7824 = vmatpush.msra.mxu0 %v7728_v10  ;;  %v19430_v37 = vmul.f32 %v19298_v5, %v19298_v5 }
 0xc65   : > { %v7503_v6 = vand.u32 4294901760, %v7502_v63  ;;  %v7507_v2 = vand.u32 4294901760, %v7479_v61  ;;  %21335 = vst [vmem:[#allocation34_spill] sm:$0xff] %v19423_v32  ;;  %v6886_v19 = vadd.f32 %v19423_v32, %v21337_v36 }
 0xc66   : > { %7851 = vmatpush.msra.mxu1 %v7687_v0  ;;  %21338 = vst [vmem:[#allocation59_spill] sm:$0xff] %v19430_v37 }
 0xc67   : > { %7504 = vmatmul.f32.vlgmr.msrb.gmra.mxu2 %v7503_v6  ;;  %7547 = vmatmul.f32.gmra.mxu3 %v7507_v2  ;;  %v7508_v28 = vsub.f32 %v7479_v61, %v7507_v2  ;;  %v6888_v6 = vmul.f32 0.30780134, %v6886_v19 }
 0xc68   : > { %7757 = vmatpush.msrb.mxu2 %v7721_v52 }
 0xc69   : > { %7578 = vmatmul.f32.gmra.mxu0 %v7508_v28  ;;  %v7509_v9 = vand.u32 4294901760, %v7508_v28  ;;  %v6890_v39 = vadd.f32 %v6888_v6, %v6884_v57 }
 0xc6a   : > { %7760 = vmatpush.msrb.mxu2 %v7727_v29 }
 0xc6b   : > { %7609 = vmatmul.f32.gmra.mxu1 %v7509_v9  ;;  %v7510_v26 = vsub.f32 %v7508_v28, %v7509_v9  ;;  %v8071_v36 = vand.u32 4294901760, %v6890_v39 }
 0xc6d   : > { %v7511_v62 = vand.u32 4294901760, %v7510_v26  ;;  %v8107_v47 = vsub.f32 %v6890_v39, %v8071_v36 }
 0xc6f   : > { %7512 = vmatmul.f32.gmra.mxu2 %v7511_v62  ;;  %7663 = vmatmul.f32.vlgmr.msra.gmra.mxu3 %v7499_v40  ;;  %v8108_v19 = vand.u32 4294901760, %v8107_v47 }
 0xc70   : > { %7921 = vmatpush.msra.mxu3 %v18193_v49 }
 0xc71   : > { %7694 = vmatmul.f32.vlgmr.msrb.gmra.mxu0 %v18150_v33  ;;  %v8109_v6 = vsub.f32 %v8107_v47, %v8108_v19 }
 0xc72   : > { %7927 = vmatpush.msra.mxu3 %v18199_v51  ;;  %7953 = vmatpush.msrb.mxu0 %v18173_v43 }
 0xc73   : > { %7733 = vmatmul.f32.vlgmr.msrb.gmra.mxu1 %v18131_v16 }
 0xc74   : > { %7956 = vmatpush.msrb.mxu0 %v18181_v46  ;;  %7983 = vmatpush.msrb.mxu1 %v18152_v34 }
 0xc76   : > { %7985 = vmatpush.msrb.mxu1 %v18175_v44 }
 0xc77   : > { %7636 = vmatmul.f32.vlgmr.msra.gmra.mxu2 %v7499_v40  ;;  %7667 = vmatmul.f32.gmra.mxu3 %v7507_v2 }
 0xc78   : > { %7882 = vmatpush.msra.mxu2 %v18152_v34 }
 0xc79   : > { %7702 = vmatmul.f32.gmra.mxu0 %v18160_v41 }
 0xc7a   : > { %7884 = vmatpush.msra.mxu2 %v18175_v44 }
 0xc7b   : > { %7737 = vmatmul.f32.gmra.mxu1 %v18134_v20 }
 0xc7f   : > { %7640 = vmatmul.f32.gmra.mxu2 %v7507_v2  ;;  %7793 = vmatmul.f32.vlgmr.msrb.gmra.mxu3 %v18143_v25  ;;  %v21339_v2 = vld [vmem:[#allocation62_spill] sm:$0xff] }
 0xc80   : > { %8045 = vmatpush.msrb.mxu3 %v18152_v34  ;;  %v6885_v28 = vadd.f32 %v19430_v37, %v21339_v2 }
 0xc81   : > { %7826 = vmatmul.f32.vlgmr.msra.gmra.mxu0 %v18131_v16 }
 0xc82   : > { %8047 = vmatpush.msrb.mxu3 %v18175_v44  ;;  %v6887_v7 = vmul.f32 0.30780134, %v6885_v28  ;;  %8072 = vmatpush.msra.mxu0 %v8071_v36 }
 0xc83   : > { %7853 = vmatmul.f32.vlgmr.msra.gmra.mxu1 %v18131_v16 }
 0xc84   : > { %v6889_v32 = vadd.f32 %v6887_v7, %v6883_v17  ;;  %v8110_v7 = vand.u32 4294901760, %v8109_v6 }
 0xc86   : > { %8111 = vmatpush.msra.mxu1 %v8110_v7 }
 0xc87   : > { %7763 = vmatmul.f32.vlgmr.msrb.gmra.mxu2 %v18137_v21  ;;  %7799 = vmatmul.f32.gmra.mxu3 %v18148_v30 }
 0xc88   : > { %8016 = vmatpush.msrb.mxu2 %v18178_v45 }
 0xc89   : > { %7830 = vmatmul.f32.gmra.mxu0 %v18134_v20 }
 0xc8a   : > { %8020 = vmatpush.msrb.mxu2 %v18189_v48 }
 0xc8b   : > { %7857 = vmatmul.f32.gmra.mxu1 %v18134_v20 }
 0xc8f   : > { %7768 = vmatmul.f32.gmra.mxu2 %v18140_v24 }
 0xcde   : > { %v19399_v52 = vpop.f32.mrf.mxu0 }
 0xce0   : > { %v19401_v0 = vpop.f32.mrf.mxu1 }
 0xce2   : > { %v19397_v1 = vpop.f32.mrf.mxu3 }
 0xce6   : > { %v19407_v60 = vpop.f32.mrf.mxu0 }
 0xce7   : > { %21330 = vst [vmem:[#allocation57_spill] sm:$0xff] %v19407_v60 }
 0xce8   : > { %v19409_v56 = vpop.f32.mrf.mxu1 }
 0xce9   : > { %21331 = vst [vmem:[#allocation64_spill] sm:$0xff] %v19409_v56 }
 0xcea   : > { %v19403_v12 = vpop.f32.mrf.mxu2  ;;  %v19405_v29 = vpop.f32.mrf.mxu3 }
 0xcee   : > { %v7695_v27 = vpop.f32.mrf.mxu0 }
 0xcf0   : > { %v7734_v40 = vpop.f32.mrf.mxu1 }
 0xcf1   : > { %v7735_v61 = vadd.f32 %v7734_v40, %v7695_v27 }
 0xcf2   : > { %v19411_v55 = vpop.f32.mrf.mxu2  ;;  %v19413_v14 = vpop.f32.mrf.mxu3 }
 0xcf3   : > { %21332 = vst [vmem:[#allocation49_spill] sm:$0xff] %v19413_v14 }
 0xcf6   : > { %v7703_v22 = vpop.f32.mrf.mxu0 }
 0xcf8   : > { %v7738_v13 = vpop.f32.mrf.mxu1 }
 0xcf9   : > { %v7739_v27 = vadd.f32 %v7738_v13, %v7703_v22 }
 0xcfa   : > { %v19415_v10 = vpop.f32.mrf.mxu2  ;;  %v19417_v54 = vpop.f32.mrf.mxu3 }
 0xcfb   : > { %21333 = vst [vmem:[#allocation54_spill] sm:$0xff] %v19417_v54 }
 0xcfe   : > { %v7827_v26 = vpop.f32.mrf.mxu0 }
 0xd00   : > { %v7854_v31 = vpop.f32.mrf.mxu1 }
 0xd02   : > { %v19419_v11 = vpop.f32.mrf.mxu2  ;;  %v7794_v63 = vpop.f32.mrf.mxu3 }
 0xd03   : > { %21334 = vst [vmem:[#allocation35_spill] sm:$0xff] %v19419_v11  ;;  %v8073_v11 = vand.u32 4294901760, %v6889_v32 }
 0xd05   : > { %8074 = vmatpush.msra.mxu0 %v8073_v11  ;;  %v8113_v37 = vsub.f32 %v6889_v32, %v8073_v11 }
 0xd06   : > { %v7831_v28 = vpop.f32.mrf.mxu0 }
 0xd08   : > { %v7858_v39 = vpop.f32.mrf.mxu1 }
 0xd0a   : > { %v7764_v9 = vpop.f32.mrf.mxu2  ;;  %v7800_v2 = vpop.f32.mrf.mxu3 }
 0xd0b   : > { %v7765_v62 = vadd.f32 %v7764_v9, %v7735_v61 }
 0xd0d   : > { %v7795_v59 = vadd.f32 %v7794_v63, %v7765_v62  ;;  %v8114_v63 = vand.u32 4294901760, %v8113_v37 }
 0xd0f   : > { %v7828_v54 = vadd.f32 %v7827_v26, %v7795_v59  ;;  %v8115_v17 = vsub.f32 %v8113_v37, %v8114_v63 }
 0xd11   : > { %v7855_v40 = vadd.f32 %v7854_v31, %v7828_v54  ;;  %v8116_v54 = vand.u32 4294901760, %v8115_v17 }
 0xd12   : > { %v7769_v35 = vpop.f32.mrf.mxu2 }
 0xd13   : > { %v7862_v57 = vsel %vm830_vm0, %v7855_v40, 0  ;;  %v7770_v61 = vadd.f32 %v7769_v35, %v7739_v27  ;;  %8117 = vmatpush.msra.mxu1 %v8116_v54  ;;  %v19486_v54 = vld [vmem:[%s18098_s22 + $0x48] sm:$0xff] }
 0xd14   : > { %v7885_v9 = vand.u32 4294901760, %v7862_v57 }
 0xd15   : > { %v7801_v62 = vadd.f32 %v7800_v2, %v7770_v61 }
 0xd16   : > { %v7886_v59 = vsub.f32 %v7862_v57, %v7885_v9  ;;  %7929 = vmatmul.f32.vlgmr.msra.gmra.mxu3 %v7885_v9 }
 0xd17   : > { %v7832_v22 = vadd.f32 %v7831_v28, %v7801_v62  ;;  %8173 = vmatpush.msra.mxu3 %v8071_v36 }
 0xd18   : > { %v7887_v31 = vand.u32 4294901760, %v7886_v59  ;;  %7959 = vmatmul.f32.vlgmr.msrb.gmra.mxu0 %v7886_v59 }
 0xd19   : > { %v7859_v13 = vadd.f32 %v7858_v39, %v7832_v22  ;;  %8175 = vmatpush.msra.mxu3 %v8073_v11  ;;  %8206 = vmatpush.msrb.mxu0 %v8108_v19 }
 0xd1a   : > { %v7888_v35 = vsub.f32 %v7886_v59, %v7887_v31  ;;  %7989 = vmatmul.f32.vlgmr.msrb.gmra.mxu1 %v7887_v31 }
 0xd1b   : > { %v7865_v32 = vsel %vm830_vm0, %v7859_v13, 0  ;;  %8210 = vmatpush.msrb.mxu0 %v8114_v63  ;;  %8235 = vmatpush.msrb.mxu1 %v8071_v36  ;;  %v19490_v13 = vmul.f32 %v19486_v54, %v19292_v15 }
 0xd1c   : > { %v7889_v26 = vand.u32 4294901760, %v7888_v35  ;;  %v7893_v27 = vand.u32 4294901760, %v7865_v32  ;;  %v21351_v35 = vld [vmem:[#allocation26_spill] sm:$0xff] }
 0xd1d   : > { %8237 = vmatpush.msrb.mxu1 %v8073_v11  ;;  %21350 = vst [vmem:[#allocation27_spill] sm:$0xff] %v19490_v13 }
 0xd1e   : > { %7890 = vmatmul.f32.vlgmr.msra.gmra.mxu2 %v7889_v26  ;;  %7933 = vmatmul.f32.gmra.mxu3 %v7893_v27  ;;  %v7894_v40 = vsub.f32 %v7865_v32, %v7893_v27  ;;  %v6892_v32 = vmul.f32 0.38439733, %v21351_v35  ;;  %v21352_v26 = vld [vmem:[#allocation33_spill] sm:$0xff]  ;;  %v21355_v35 = vld [vmem:[#allocation47_spill] sm:$0xff] }
 0xd1f   : > { %8143 = vmatpush.msra.mxu2 %v8107_v47 }
 0xd20   : > { %7964 = vmatmul.f32.gmra.mxu0 %v7894_v40  ;;  %v7895_v2 = vand.u32 4294901760, %v7894_v40 }
 0xd21   : > { %8146 = vmatpush.msra.mxu2 %v8113_v37 }
 0xd22   : > { %7995 = vmatmul.f32.gmra.mxu1 %v7895_v2  ;;  %v7896_v57 = vsub.f32 %v7894_v40, %v7895_v2  ;;  %v19496_v40 = vld [vmem:[%s18098_s22 + $0x40] sm:$0xff] }
 0xd23   : > { %v19500_v2 = vmul.f32 %v19496_v40, %v19298_v5 }
 0xd24   : > { %v7897_v19 = vand.u32 4294901760, %v7896_v57 }
 0xd25   : > { %21353 = vst [vmem:[#allocation48_spill] sm:$0xff] %v19500_v2 }
 0xd26   : > { %7898 = vmatmul.f32.gmra.mxu2 %v7897_v19  ;;  %8049 = vmatmul.f32.vlgmr.msrb.gmra.mxu3 %v7885_v9 }
 0xd27   : > { %8307 = vmatpush.msrb.mxu3 %v18193_v49 }
 0xd28   : > { %8080 = vmatmul.f32.vlgmr.msra.gmra.mxu0 %v18150_v33 }
 0xd29   : > { %8313 = vmatpush.msrb.mxu3 %v18199_v51  ;;  %8339 = vmatpush.msra.mxu0 %v18173_v43 }
 0xd2a   : > { %8119 = vmatmul.f32.vlgmr.msra.gmra.mxu1 %v18131_v16 }
 0xd2b   : > { %8342 = vmatpush.msra.mxu0 %v18181_v46  ;;  %8369 = vmatpush.msra.mxu1 %v18152_v34 }
 0xd2d   : > { %8371 = vmatpush.msra.mxu1 %v18175_v44 }
 0xd2e   : > { %8022 = vmatmul.f32.vlgmr.msrb.gmra.mxu2 %v7885_v9  ;;  %8053 = vmatmul.f32.gmra.mxu3 %v7893_v27 }
 0xd2f   : > { %8268 = vmatpush.msrb.mxu2 %v18152_v34 }
 0xd30   : > { %8088 = vmatmul.f32.gmra.mxu0 %v18160_v41 }
 0xd31   : > { %8270 = vmatpush.msrb.mxu2 %v18175_v44 }
 0xd32   : > { %8123 = vmatmul.f32.gmra.mxu1 %v18134_v20 }
 0xd36   : > { %8026 = vmatmul.f32.gmra.mxu2 %v7893_v27  ;;  %8179 = vmatmul.f32.vlgmr.msra.gmra.mxu3 %v18143_v25  ;;  %v6894_v27 = vadd.f32 %v19490_v13, %v21352_v26 }
 0xd37   : > { %8431 = vmatpush.msra.mxu3 %v18152_v34 }
 0xd38   : > { %8212 = vmatmul.f32.vlgmr.msrb.gmra.mxu0 %v18131_v16  ;;  %v6896_v50 = vmul.f32 0.30780134, %v6894_v27 }
 0xd39   : > { %8433 = vmatpush.msra.mxu3 %v18175_v44 }
 0xd3a   : > { %8239 = vmatmul.f32.vlgmr.msrb.gmra.mxu1 %v18131_v16  ;;  %v6898_v42 = vadd.f32 %v6896_v50, %v6892_v32 }
 0xd3e   : > { %8149 = vmatmul.f32.vlgmr.msra.gmra.mxu2 %v18137_v21  ;;  %8185 = vmatmul.f32.gmra.mxu3 %v18148_v30 }
 0xd3f   : > { %8402 = vmatpush.msra.mxu2 %v18178_v45 }
 0xd40   : > { %8216 = vmatmul.f32.gmra.mxu0 %v18134_v20 }
 0xd41   : > { %8406 = vmatpush.msra.mxu2 %v18189_v48 }
 0xd42   : > { %8243 = vmatmul.f32.gmra.mxu1 %v18134_v20 }
 0xd46   : > { %8154 = vmatmul.f32.gmra.mxu2 %v18140_v24 }
 0xd95   : > { %v19463_v11 = vpop.f32.mrf.mxu0 }
 0xd97   : > { %v19465_v37 = vpop.f32.mrf.mxu1 }
 0xd98   : > { %21341 = vst [vmem:[#allocation28_spill] sm:$0xff] %v19465_v37 }
 0xd99   : > { %v19461_v47 = vpop.f32.mrf.mxu3 }
 0xd9d   : > { %v19471_v6 = vpop.f32.mrf.mxu0 }
 0xd9e   : > { %21343 = vst [vmem:[#allocation36_spill] sm:$0xff] %v19471_v6  ;;  %v6891_v6 = vmul.f32 0.38439733, %v21355_v35 }
 0xd9f   : > { %v19473_v9 = vpop.f32.mrf.mxu1 }
 0xda0   : > { %21344 = vst [vmem:[#allocation53_spill] sm:$0xff] %v19473_v9 }
 0xda1   : > { %v19467_v36 = vpop.f32.mrf.mxu2  ;;  %v19469_v61 = vpop.f32.mrf.mxu3 }
 0xda2   : > { %21342 = vst [vmem:[#allocation61_spill] sm:$0xff] %v19469_v61 }
 0xda5   : > { %v8081_v62 = vpop.f32.mrf.mxu0 }
 0xda7   : > { %v8120_v59 = vpop.f32.mrf.mxu1 }
 0xda8   : > { %v8121_v19 = vadd.f32 %v8120_v59, %v8081_v62 }
 0xda9   : > { %v19475_v28 = vpop.f32.mrf.mxu2  ;;  %v19477_v63 = vpop.f32.mrf.mxu3 }
 0xdaa   : > { %21345 = vst [vmem:[#allocation29_spill] sm:$0xff] %v19475_v28 }
 0xdab   : > { %21346 = vst [vmem:[#allocation52_spill] sm:$0xff] %v19477_v63 }
 0xdad   : > { %v8089_v17 = vpop.f32.mrf.mxu0 }
 0xdaf   : > { %v8124_v31 = vpop.f32.mrf.mxu1 }
 0xdb0   : > { %v8125_v62 = vadd.f32 %v8124_v31, %v8089_v17 }
 0xdb1   : > { %v19479_v7 = vpop.f32.mrf.mxu2  ;;  %v19481_v39 = vpop.f32.mrf.mxu3 }
 0xdb2   : > { %21347 = vst [vmem:[#allocation50_spill] sm:$0xff] %v19479_v7  ;;  %v8457_v7 = vand.u32 4294901760, %v6898_v42 }
 0xdb3   : > { %21348 = vst [vmem:[#allocation43_spill] sm:$0xff] %v19481_v39  ;;  %v21354_v39 = vld [vmem:[#allocation63_spill] sm:$0xff] }
 0xdb4   : > { %8458 = vmatpush.msrb.mxu0 %v8457_v7  ;;  %v8493_v5 = vsub.f32 %v6898_v42, %v8457_v7 }
 0xdb5   : > { %v8213_v15 = vpop.f32.mrf.mxu0 }
 0xdb6   : > { %v8494_v27 = vand.u32 4294901760, %v8493_v5 }
 0xdb7   : > { %v8240_v26 = vpop.f32.mrf.mxu1 }
 0xdb8   : > { %v8495_v32 = vsub.f32 %v8493_v5, %v8494_v27 }
 0xdb9   : > { %v19483_v22 = vpop.f32.mrf.mxu2  ;;  %v8180_v57 = vpop.f32.mrf.mxu3 }
 0xdba   : > { %21349 = vst [vmem:[#allocation56_spill] sm:$0xff] %v19483_v22  ;;  %v6893_v22 = vadd.f32 %v19500_v2, %v21354_v39 }
 0xdbc   : > { %v6895_v56 = vmul.f32 0.30780134, %v6893_v22 }
 0xdbe   : > { %v6897_v14 = vadd.f32 %v6895_v56, %v6891_v6  ;;  %v8496_v56 = vand.u32 4294901760, %v8495_v32 }
 0xdbf   : > { %v8244_v42 = vpop.f32.mrf.mxu1 }
 0xdc0   : > { %v8459_v37 = vand.u32 4294901760, %v6897_v14  ;;  %8497 = vmatpush.msrb.mxu1 %v8496_v56 }
 0xdc1   : > { %v8150_v9 = vpop.f32.mrf.mxu2  ;;  %v8186_v58 = vpop.f32.mrf.mxu3 }
 0xdc2   : > { %v8151_v63 = vadd.f32 %v8150_v9, %v8121_v19  ;;  %8460 = vmatpush.msrb.mxu0 %v8459_v37  ;;  %v8499_v39 = vsub.f32 %v6897_v14, %v8459_v37 }
 0xdc4   : > { %v8181_v13 = vadd.f32 %v8180_v57, %v8151_v63  ;;  %v8500_v22 = vand.u32 4294901760, %v8499_v39  ;;  %v8217_v63 = vpop.f32.mrf.mxu0 }
 0xdc6   : > { %v8214_v3 = vadd.f32 %v8213_v15, %v8181_v13  ;;  %v8501_v6 = vsub.f32 %v8499_v39, %v8500_v22 }
 0xdc8   : > { %v8241_v59 = vadd.f32 %v8240_v26, %v8214_v3  ;;  %v8502_v3 = vand.u32 4294901760, %v8501_v6 }
 0xdc9   : > { %v8155_v2 = vpop.f32.mrf.mxu2 }
 0xdca   : > { %v8248_v50 = vsel %vm830_vm0, %v8241_v59, 0  ;;  %v8156_v9 = vadd.f32 %v8155_v2, %v8125_v62  ;;  %8503 = vmatpush.msrb.mxu1 %v8502_v3 }
 0xdcb   : > { %v8271_v19 = vand.u32 4294901760, %v8248_v50 }
 0xdcc   : > { %v8187_v57 = vadd.f32 %v8186_v58, %v8156_v9 }
 0xdcd   : > { %v8272_v13 = vsub.f32 %v8248_v50, %v8271_v19  ;;  %8315 = vmatmul.f32.vlgmr.msrb.gmra.mxu3 %v8271_v19 }
 0xdce   : > { %v8218_v17 = vadd.f32 %v8217_v63, %v8187_v57  ;;  %8559 = vmatpush.msrb.mxu3 %v8457_v7 }
 0xdcf   : > { %v8273_v14 = vand.u32 4294901760, %v8272_v13  ;;  %8345 = vmatmul.f32.vlgmr.msra.gmra.mxu0 %v8272_v13 }
 0xdd0   : > { %v8245_v31 = vadd.f32 %v8244_v42, %v8218_v17  ;;  %8561 = vmatpush.msrb.mxu3 %v8459_v37  ;;  %8592 = vmatpush.msra.mxu0 %v8494_v27 }
 0xdd1   : > { %v8274_v2 = vsub.f32 %v8272_v13, %v8273_v14  ;;  %8375 = vmatmul.f32.vlgmr.msra.gmra.mxu1 %v8273_v14  ;;  %v19556_v14 = vld [vmem:[%s18098_s22 + $0x58] sm:$0xff] }
 0xdd2   : > { %v8251_v15 = vsel %vm830_vm0, %v8245_v31, 0  ;;  %8621 = vmatpush.msra.mxu1 %v8457_v7  ;;  %8596 = vmatpush.msra.mxu0 %v8500_v22  ;;  %21363 = vst [vmem:[#allocation33_spill] sm:$0xff] %v19556_v14  ;;  %v8881_v31 = vmul.f32 0.38439733, %v19486_v54 }
 0xdd3   : > { %v8275_v58 = vand.u32 4294901760, %v8274_v2  ;;  %v8279_v26 = vand.u32 4294901760, %v8251_v15  ;;  %v17476_v2 = vld [vmem:[%s18098_s22 + $0x38] sm:$0xff] }
 0xdd4   : > { %8623 = vmatpush.msra.mxu1 %v8459_v37 }
 0xdd5   : > { %8276 = vmatmul.f32.vlgmr.msrb.gmra.mxu2 %v8275_v58  ;;  %8319 = vmatmul.f32.gmra.mxu3 %v8279_v26  ;;  %v8280_v62 = vsub.f32 %v8251_v15, %v8279_v26  ;;  %v8883_v15 = vadd.f32 %v17476_v2, %v19556_v14 }
 0xdd6   : > { %8529 = vmatpush.msrb.mxu2 %v8493_v5 }
 0xdd7   : > { %8350 = vmatmul.f32.gmra.mxu0 %v8280_v62  ;;  %v8281_v59 = vand.u32 4294901760, %v8280_v62 }
 0xdd8   : > { %8532 = vmatpush.msrb.mxu2 %v8499_v39 }
 0xdd9   : > { %8381 = vmatmul.f32.gmra.mxu1 %v8281_v59  ;;  %v8282_v50 = vsub.f32 %v8280_v62, %v8281_v59  ;;  %v8885_v59 = vmul.f32 0.30780134, %v8883_v15 }
 0xddb   : > { %v8283_v9 = vand.u32 4294901760, %v8282_v50  ;;  %v17477_v50 = vld [vmem:[%s18098_s22 + $0x30] sm:$0xff] }
 0xddd   : > { %8284 = vmatmul.f32.gmra.mxu2 %v8283_v9  ;;  %8435 = vmatmul.f32.vlgmr.msra.gmra.mxu3 %v8271_v19 }
 0xdde   : > { %8693 = vmatpush.msra.mxu3 %v18193_v49 }
 0xddf   : > { %8466 = vmatmul.f32.vlgmr.msrb.gmra.mxu0 %v18150_v33 }
 0xde0   : > { %8699 = vmatpush.msra.mxu3 %v18199_v51  ;;  %8725 = vmatpush.msrb.mxu0 %v18173_v43 }
 0xde1   : > { %8505 = vmatmul.f32.vlgmr.msrb.gmra.mxu1 %v18131_v16 }
 0xde2   : > { %8728 = vmatpush.msrb.mxu0 %v18181_v46  ;;  %8755 = vmatpush.msrb.mxu1 %v18152_v34 }
 0xde4   : > { %8757 = vmatpush.msrb.mxu1 %v18175_v44 }
 0xde5   : > { %8408 = vmatmul.f32.vlgmr.msra.gmra.mxu2 %v8271_v19  ;;  %8439 = vmatmul.f32.gmra.mxu3 %v8279_v26 }
 0xde6   : > { %8654 = vmatpush.msra.mxu2 %v18152_v34 }
 0xde7   : > { %8474 = vmatmul.f32.gmra.mxu0 %v18160_v41 }
 0xde8   : > { %8656 = vmatpush.msra.mxu2 %v18175_v44 }
 0xde9   : > { %8509 = vmatmul.f32.gmra.mxu1 %v18134_v20 }
 0xded   : > { %8412 = vmatmul.f32.gmra.mxu2 %v8279_v26  ;;  %8565 = vmatmul.f32.vlgmr.msrb.gmra.mxu3 %v18143_v25  ;;  %v19562_v26 = vld [vmem:[%s18098_s22 + $0x50] sm:$0xff] }
 0xdee   : > { %8817 = vmatpush.msrb.mxu3 %v18152_v34  ;;  %21364 = vst [vmem:[#allocation63_spill] sm:$0xff] %v19562_v26  ;;  %v8882_v9 = vadd.f32 %v17477_v50, %v19562_v26 }
 0xdef   : > { %8598 = vmatmul.f32.vlgmr.msra.gmra.mxu0 %v18131_v16 }
 0xdf0   : > { %8819 = vmatpush.msrb.mxu3 %v18175_v44 }
 0xdf1   : > { %8625 = vmatmul.f32.vlgmr.msra.gmra.mxu1 %v18131_v16 }
 0xdf5   : > { %8535 = vmatmul.f32.vlgmr.msrb.gmra.mxu2 %v18137_v21  ;;  %8571 = vmatmul.f32.gmra.mxu3 %v18148_v30 }
 0xdf6   : > { %8788 = vmatpush.msrb.mxu2 %v18178_v45 }
 0xdf7   : > { %8602 = vmatmul.f32.gmra.mxu0 %v18134_v20 }
 0xdf8   : > { %8792 = vmatpush.msrb.mxu2 %v18189_v48 }
 0xdf9   : > { %8629 = vmatmul.f32.gmra.mxu1 %v18134_v20 }
 0xdfd   : > { %8540 = vmatmul.f32.gmra.mxu2 %v18140_v24 }
 0xe4c   : > { %v19533_v7 = vpop.f32.mrf.mxu0 }
 0xe4e   : > { %v19535_v5 = vpop.f32.mrf.mxu1 }
 0xe4f   : > { %21356 = vst [vmem:[#allocation42_spill] sm:$0xff] %v19535_v5 }
 0xe50   : > { %v19531_v37 = vpop.f32.mrf.mxu3 }
 0xe54   : > { %v19541_v32 = vpop.f32.mrf.mxu0 }
 0xe55   : > { %21357 = vst [vmem:[#allocation58_spill] sm:$0xff] %v19541_v32 }
 0xe56   : > { %v19543_v22 = vpop.f32.mrf.mxu1 }
 0xe57   : > { %21358 = vst [vmem:[#allocation41_spill] sm:$0xff] %v19543_v22 }
 0xe58   : > { %v19537_v27 = vpop.f32.mrf.mxu2  ;;  %v19539_v39 = vpop.f32.mrf.mxu3 }
 0xe5c   : > { %v8467_v57 = vpop.f32.mrf.mxu0 }
 0xe5e   : > { %v8506_v6 = vpop.f32.mrf.mxu1 }
 0xe5f   : > { %v8507_v62 = vadd.f32 %v8506_v6, %v8467_v57 }
 0xe60   : > { %v19545_v19 = vpop.f32.mrf.mxu2  ;;  %v19547_v63 = vpop.f32.mrf.mxu3 }
 0xe61   : > { %21359 = vst [vmem:[#allocation60_spill] sm:$0xff] %v19547_v63  ;;  %v8880_v63 = vmul.f32 0.38439733, %v19496_v40 }
 0xe64   : > { %v8475_v42 = vpop.f32.mrf.mxu0 }
 0xe66   : > { %v8510_v3 = vpop.f32.mrf.mxu1 }
 0xe67   : > { %v8511_v57 = vadd.f32 %v8510_v3, %v8475_v42 }
 0xe68   : > { %v19549_v56 = vpop.f32.mrf.mxu2  ;;  %v19551_v13 = vpop.f32.mrf.mxu3 }
 0xe69   : > { %21360 = vst [vmem:[#allocation32_spill] sm:$0xff] %v19549_v56  ;;  %v8884_v56 = vmul.f32 0.30780134, %v8882_v9 }
 0xe6a   : > { %21361 = vst [vmem:[#allocation31_spill] sm:$0xff] %v19551_v13 }
 0xe6b   : > { %v8886_v28 = vadd.f32 %v8884_v56, %v8880_v63 }
 0xe6c   : > { %v8599_v13 = vpop.f32.mrf.mxu0 }
 0xe6d   : > { %v8936_v60 = vand.u32 4294901760, %v8886_v28 }
 0xe6e   : > { %v8626_v32 = vpop.f32.mrf.mxu1 }
 0xe6f   : > { %v8976_v26 = vsub.f32 %v8886_v28, %v8936_v60 }
 0xe70   : > { %v19553_v17 = vpop.f32.mrf.mxu2  ;;  %v8566_v58 = vpop.f32.mrf.mxu3 }
 0xe71   : > { %21362 = vst [vmem:[#allocation62_spill] sm:$0xff] %v19553_v17  ;;  %v8887_v17 = vadd.f32 %v8885_v59, %v8881_v31 }
 0xe73   : > { %v8934_v61 = vand.u32 4294901760, %v8887_v17 }
 0xe74   : > { %v8603_v59 = vpop.f32.mrf.mxu0 }
 0xe75   : > { %8935 = vmatpush.msra.mxu0 %v8934_v61  ;;  %v8970_v14 = vsub.f32 %v8887_v17, %v8934_v61 }
 0xe77   : > { %v8971_v15 = vand.u32 4294901760, %v8970_v14  ;;  %8937 = vmatpush.msra.mxu0 %v8936_v60 }
 0xe78   : > { %v8536_v35 = vpop.f32.mrf.mxu2  ;;  %v8572_v50 = vpop.f32.mrf.mxu3 }
 0xe79   : > { %v8537_v22 = vadd.f32 %v8536_v35, %v8507_v62  ;;  %v8972_v40 = vsub.f32 %v8970_v14, %v8971_v15 }
 0xe7b   : > { %v8567_v54 = vadd.f32 %v8566_v58, %v8537_v22  ;;  %v8977_v22 = vand.u32 4294901760, %v8976_v26  ;;  %v8973_v63 = vand.u32 4294901760, %v8972_v40 }
 0xe7d   : > { %v8600_v2 = vadd.f32 %v8599_v13, %v8567_v54  ;;  %v8630_v13 = vpop.f32.mrf.mxu1  ;;  %v8978_v17 = vsub.f32 %v8976_v26, %v8977_v22  ;;  %8974 = vmatpush.msra.mxu1 %v8973_v63 }
 0xe7f   : > { %v8627_v6 = vadd.f32 %v8626_v32, %v8600_v2  ;;  %v8979_v3 = vand.u32 4294901760, %v8978_v17  ;;  %v21376_v17 = vld [vmem:[#allocation64_spill] sm:$0xff] }
 0xe80   : > { %v8541_v5 = vpop.f32.mrf.mxu2 }
 0xe81   : > { %v8634_v35 = vsel %vm830_vm0, %v8627_v6, 0  ;;  %v8542_v31 = vadd.f32 %v8541_v5, %v8511_v57  ;;  %8980 = vmatpush.msra.mxu1 %v8979_v3 }
 0xe82   : > { %v8657_v62 = vand.u32 4294901760, %v8634_v35 }
 0xe83   : > { %v8573_v58 = vadd.f32 %v8572_v50, %v8542_v31 }
 0xe84   : > { %v8658_v56 = vsub.f32 %v8634_v35, %v8657_v62  ;;  %8701 = vmatmul.f32.vlgmr.msra.gmra.mxu3 %v8657_v62  ;;  %v7931_v35 = vadd.f32 %v19461_v47, %v19467_v36 }
 0xe85   : > { %v8604_v42 = vadd.f32 %v8603_v59, %v8573_v58  ;;  %9036 = vmatpush.msra.mxu3 %v8934_v61  ;;  %v21371_v58 = vld [vmem:[#allocation32_spill] sm:$0xff] }
 0xe86   : > { %v8659_v32 = vand.u32 4294901760, %v8658_v56  ;;  %8731 = vmatmul.f32.vlgmr.msrb.gmra.mxu0 %v8658_v56 }
 0xe87   : > { %v8631_v28 = vadd.f32 %v8630_v13, %v8604_v42  ;;  %9038 = vmatpush.msra.mxu3 %v8936_v60  ;;  %9069 = vmatpush.msrb.mxu0 %v8971_v15 }
 0xe88   : > { %v8660_v5 = vsub.f32 %v8658_v56, %v8659_v32  ;;  %8761 = vmatmul.f32.vlgmr.msrb.gmra.mxu1 %v8659_v32  ;;  %v21377_v32 = vld [vmem:[#allocation36_spill] sm:$0xff] }
 0xe89   : > { %v8637_v9 = vsel %vm830_vm0, %v8631_v28, 0  ;;  %9073 = vmatpush.msrb.mxu0 %v8977_v22  ;;  %9098 = vmatpush.msrb.mxu1 %v8934_v61  ;;  %v7159_v61 = vadd.f32 %v19333_v38, %v19339_v53  ;;  %v7163_v38 = vadd.f32 %v19341_v8, %v19347_v23  ;;  %v8321_v53 = vadd.f32 %v19539_v39, %v19545_v19  ;;  %v21372_v23 = vld [vmem:[#allocation45_spill] sm:$0xff]  ;;  %v21373_v39 = vld [vmem:[#allocation58_spill] sm:$0xff]  ;;  %v21378_v28 = vld [vmem:[#allocation44_spill] sm:$0xff] }
 0xe8a   : > { %v8661_v54 = vand.u32 4294901760, %v8660_v5  ;;  %v8665_v2 = vand.u32 4294901760, %v8637_v9 }
 0xe8b   : > { %9100 = vmatpush.msrb.mxu1 %v8936_v60  ;;  %v7545_v60 = vadd.f32 %v19397_v1, %v19403_v12  ;;  %v7189_v31 = vadd.f32 %v19335_v4, %v7159_v61  ;;  %v7961_v12 = vadd.f32 %v19463_v11, %v7931_v35  ;;  %v21365_v4 = vld [vmem:[#allocation42_spill] sm:$0xff]  ;;  %v21370_v11 = vld [vmem:[#allocation28_spill] sm:$0xff]  ;;  %v7194_v63 = vadd.f32 %v21372_v23, %v7163_v38  ;;  %v21384_v35 = vld [vmem:[#allocation39_spill] sm:$0xff] }
 0xe8c   : > { %8662 = vmatmul.f32.vlgmr.msra.gmra.mxu2 %v8661_v54  ;;  %8705 = vmatmul.f32.gmra.mxu3 %v8665_v2  ;;  %v8666_v57 = vsub.f32 %v8637_v9, %v8665_v2  ;;  %v8352_v19 = vadd.f32 %v21373_v39, %v8321_v53  ;;  %v21379_v9 = vld [vmem:[#allocation60_spill] sm:$0xff] }
 0xe8d   : > { %9006 = vmatpush.msra.mxu2 %v8970_v14  ;;  %v8317_v14 = vadd.f32 %v19531_v37, %v19537_v27  ;;  %v21366_v37 = vld [vmem:[#allocation57_spill] sm:$0xff]  ;;  %v7991_v22 = vadd.f32 %v21370_v11, %v7961_v12  ;;  %v21391_v11 = vld [vmem:[#allocation43_spill] sm:$0xff] }
 0xe8e   : > { %8736 = vmatmul.f32.gmra.mxu0 %v8666_v57  ;;  %v8667_v6 = vand.u32 4294901760, %v8666_v57  ;;  %v21367_v27 = vld [vmem:[#allocation29_spill] sm:$0xff] }
 0xe8f   : > { %9009 = vmatpush.msra.mxu2 %v8976_v26  ;;  %v7575_v26 = vadd.f32 %v19399_v52, %v7545_v60  ;;  %v8347_v40 = vadd.f32 %v19533_v7, %v8317_v14  ;;  %v7219_v52 = vadd.f32 %v19337_v18, %v7189_v31  ;;  %v21374_v18 = vld [vmem:[#allocation49_spill] sm:$0xff]  ;;  %v21383_v14 = vld [vmem:[#allocation52_spill] sm:$0xff] }
 0xe90   : > { %8767 = vmatmul.f32.gmra.mxu1 %v8667_v6  ;;  %v8668_v50 = vsub.f32 %v8666_v57, %v8667_v6  ;;  %v21381_v6 = vld [vmem:[#allocation35_spill] sm:$0xff] }
 0xe91   : > { %v7605_v1 = vadd.f32 %v19401_v0, %v7575_v26  ;;  %v8377_v36 = vadd.f32 %v21365_v4, %v8347_v40  ;;  %v21369_v0 = vld [vmem:[#allocation51_spill] sm:$0xff]  ;;  %v21385_v40 = vld [vmem:[#allocation53_spill] sm:$0xff]  ;;  %v21388_v4 = vld [vmem:[#allocation56_spill] sm:$0xff] }
 0xe92   : > { %v8669_v15 = vand.u32 4294901760, %v8668_v50  ;;  %v7252_v59 = vadd.f32 %v21369_v0, %v7219_v52  ;;  %v21387_v52 = vld [vmem:[#allocation54_spill] sm:$0xff] }
 0xe93   : > { %v7638_v47 = vadd.f32 %v19415_v10, %v7605_v1  ;;  %v8410_v8 = vadd.f32 %v21371_v58, %v8377_v36  ;;  %v21375_v10 = vld [vmem:[#allocation50_spill] sm:$0xff] }
 0xe94   : > { %8670 = vmatmul.f32.gmra.mxu2 %v8669_v15  ;;  %8821 = vmatmul.f32.vlgmr.msrb.gmra.mxu3 %v8657_v62  ;;  %v8024_v13 = vadd.f32 %v21375_v10, %v7991_v22  ;;  %v7279_v5 = vadd.f32 %v21378_v28, %v7252_v59  ;;  %v21382_v15 = vld [vmem:[#allocation41_spill] sm:$0xff]  ;;  %v21386_v1 = vld [vmem:[#allocation62_spill] sm:$0xff] }
 0xe95   : > { %9170 = vmatpush.msrb.mxu3 %v18193_v49  ;;  %v7665_v56 = vadd.f32 %v21374_v18, %v7638_v47  ;;  %v8437_v54 = vadd.f32 %v21379_v9, %v8410_v8  ;;  %v8383_v60 = vadd.f32 %v21382_v15, %v8352_v19 }
 0xe96   : > { %8943 = vmatmul.f32.vlgmr.msra.gmra.mxu0 %v18150_v33  ;;  %v8051_v26 = vadd.f32 %v21383_v14, %v8024_v13  ;;  %v8829_v38 = vmul.f32 %v7279_v5, %v7279_v5 }
 0xe97   : > { %9176 = vmatpush.msrb.mxu3 %v18199_v51  ;;  %9202 = vmatpush.msra.mxu0 %v18173_v43  ;;  %v8831_v61 = vmul.f32 %v7665_v56, %v7665_v56  ;;  %v8414_v12 = vadd.f32 %v21386_v1, %v8383_v60 }
 0xe98   : > { %8982 = vmatmul.f32.vlgmr.msra.gmra.mxu1 %v18131_v16 }
 0xe99   : > { %9205 = vmatpush.msra.mxu0 %v18181_v46  ;;  %9232 = vmatpush.msra.mxu1 %v18152_v34  ;;  %v8837_v53 = vsub.f32 %v8437_v54, %v8831_v61  ;;  %v8851_v58 = vadd.f32 %v8831_v61, %v8829_v38 }
 0xe9b   : > { %9234 = vmatpush.msra.mxu1 %v18175_v44  ;;  %v8853_v19 = vadd.f32 0.0001, %v8851_v58 }
 0xe9c   : > { %8794 = vmatmul.f32.vlgmr.msrb.gmra.mxu2 %v8657_v62  ;;  %8825 = vmatmul.f32.gmra.mxu3 %v8665_v2  ;;  %v7549_v62 = vadd.f32 %v19405_v29, %v19411_v55  ;;  %v21368_v29 = vld [vmem:[#allocation61_spill] sm:$0xff] }
 0xe9d   : > { %9131 = vmatpush.msrb.mxu2 %v18152_v34  ;;  %v7935_v55 = vadd.f32 %v21368_v29, %v21367_v27  ;;  %v21390_v29 = vld [vmem:[#allocation31_spill] sm:$0xff] }
 0xe9e   : > { %8951 = vmatmul.f32.gmra.mxu0 %v18160_v41  ;;  %v7580_v7 = vadd.f32 %v21366_v37, %v7549_v62  ;;  %v8835_v37 = vsub.f32 %v8051_v26, %v8829_v38 }
 0xe9f   : > { %9133 = vmatpush.msrb.mxu2 %v18175_v44  ;;  %v7966_v3 = vadd.f32 %v21377_v32, %v7935_v55  ;;  %v8441_v55 = vadd.f32 %v21390_v29, %v8414_v12 }
 0xea0   : > { %8986 = vmatmul.f32.gmra.mxu1 %v18134_v20  ;;  %v7611_v42 = vadd.f32 %v21376_v17, %v7580_v7  ;;  %v21389_v7 = vld [vmem:[#allocation46_spill] sm:$0xff]  ;;  %v8855_v0 = vadd.f32 %v8837_v53, %v8835_v37 }
 0xea1   : > { %v7997_v62 = vadd.f32 %v21385_v40, %v7966_v3 }
 0xea2   : > { %v7642_v50 = vadd.f32 %v21381_v6, %v7611_v42 }
 0xea3   : > { %v8028_v36 = vadd.f32 %v21388_v4, %v7997_v62  ;;  %v8833_v4 = vmul.f32 %v7665_v56, %v7279_v5 }
 0xea4   : > { %8798 = vmatmul.f32.gmra.mxu2 %v8665_v2  ;;  %9042 = vmatmul.f32.vlgmr.msra.gmra.mxu3 %v18143_v25  ;;  %v21380_v2 = vld [vmem:[#allocation65_spill] sm:$0xff]  ;;  %v7669_v47 = vadd.f32 %v21387_v52, %v7642_v50 }
 0xea5   : > { %9294 = vmatpush.msra.mxu3 %v18152_v34  ;;  %v7225_v57 = vadd.f32 %v21380_v2, %v7194_v63  ;;  %v8055_v22 = vadd.f32 %v21391_v11, %v8028_v36  ;;  %v8857_v63 = vadd.f32 0.0009, %v8855_v0  ;;  %v8841_v0 = vmul.f32 2.0, %v8833_v4 }
 0xea6   : > { %9075 = vmatmul.f32.vlgmr.msrb.gmra.mxu0 %v18131_v16  ;;  %v8832_v59 = vmul.f32 %v7669_v47, %v7669_v47 }
 0xea7   : > { %9296 = vmatpush.msra.mxu3 %v18175_v44  ;;  %v7256_v31 = vadd.f32 %v21384_v35, %v7225_v57  ;;  %v8859_v13 = vmul.f32 %v8857_v63, %v8853_v19 }
 0xea8   : > { %9102 = vmatmul.f32.vlgmr.msrb.gmra.mxu1 %v18131_v16  ;;  %v8838_v23 = vsub.f32 %v8441_v55, %v8832_v59 }
 0xea9   : > { %v7283_v27 = vadd.f32 %v21389_v7, %v7256_v31  ;;  %17430 = vrcp.f32 %v8859_v13 }
 0xeab   : > { %v8830_v8 = vmul.f32 %v7283_v27, %v7283_v27 }
 0xeac   : > { %9012 = vmatmul.f32.vlgmr.msra.gmra.mxu2 %v18137_v21  ;;  %9048 = vmatmul.f32.gmra.mxu3 %v18148_v30 }
 0xead   : > { %9265 = vmatpush.msra.mxu2 %v18178_v45  ;;  %v8836_v39 = vsub.f32 %v8055_v22, %v8830_v8  ;;  %v8852_v42 = vadd.f32 %v8832_v59, %v8830_v8 }
 0xeae   : > { %9079 = vmatmul.f32.gmra.mxu0 %v18134_v20 }
 0xeaf   : > { %9269 = vmatpush.msra.mxu2 %v18189_v48  ;;  %v8856_v10 = vadd.f32 %v8838_v23, %v8836_v39  ;;  %v8854_v28 = vadd.f32 0.0001, %v8852_v42  ;;  %v17431_v57 = vpop.eup %17430  ;;  %v8834_v39 = vmul.f32 %v7669_v47, %v7283_v27  ;;  %v17479_v27 = vld [vmem:[%s18208_s15 + $0x38] sm:$0xff] }
 0xeb0   : > { %9106 = vmatmul.f32.gmra.mxu1 %v18134_v20  ;;  %v8863_v50 = vmul.f32 %v17431_v57, %v8859_v13 }
 0xeb1   : > { %v8858_v32 = vadd.f32 0.0009, %v8856_v10 }
 0xeb2   : > { %v8865_v26 = vsub.f32 2.0, %v8863_v50 }
 0xeb3   : > { %v8860_v54 = vmul.f32 %v8858_v32, %v8854_v28  ;;  %v19642_v28 = vld [vmem:[%s18208_s15 + $0x58] sm:$0xff] }
 0xeb4   : > { %9017 = vmatmul.f32.gmra.mxu2 %v18140_v24  ;;  %v8867_v1 = vmul.f32 %v17431_v57, %v8865_v26  ;;  %v17478_v57 = vld [vmem:[%s18208_s15 + $0x48] sm:$0xff]  ;;  %v17480_v26 = vld [vmem:[%s18208_s15 + $0x30] sm:$0xff] }
 0xeb5   : > { %17432 = vrcp.f32 %v8860_v54  ;;  %v8889_v47 = vmul.f32 0.38439733, %v17478_v57 }
 0xeb6   : > { %v8869_v7 = vmul.f32 %v8867_v1, %v8859_v13 }
 0xeb8   : > { %v8871_v23 = vsub.f32 2.0, %v8869_v7 }
 0xeba   : > { %v8873_v42 = vmul.f32 %v8871_v23, %v8867_v1 }
 0xebb   : > { %v17433_v14 = vpop.eup %17432 }
 0xebc   : > { %v8864_v62 = vmul.f32 %v17433_v14, %v8860_v54 }
 0xebe   : > { %v8866_v37 = vsub.f32 2.0, %v8864_v62 }
 0xec0   : > { %v8868_v11 = vmul.f32 %v17433_v14, %v8866_v37 }
 0xec2   : > { %v8870_v10 = vmul.f32 %v8868_v11, %v8860_v54  ;;  %v19648_v54 = vld [vmem:[%s18208_s15 + $0x50] sm:$0xff] }
 0xec4   : > { %v8872_v50 = vsub.f32 2.0, %v8870_v10 }
 0xf03   : > { %v8732_v17 = vpop.f32.mrf.mxu0 }
 0xf05   : > { %v8762_v3 = vpop.f32.mrf.mxu1 }
 0xf07   : > { %v8702_v18 = vpop.f32.mrf.mxu3 }
 0xf0b   : > { %v8737_v6 = vpop.f32.mrf.mxu0 }
 0xf0d   : > { %v8768_v60 = vpop.f32.mrf.mxu1 }
 0xf0f   : > { %v8663_v9 = vpop.f32.mrf.mxu2  ;;  %v8706_v2 = vpop.f32.mrf.mxu3 }
 0xf10   : > { %v8703_v15 = vadd.f32 %v8702_v18, %v8663_v9  ;;  %v8843_v18 = vadd.f32 0.0001, %v8841_v0 }
 0xf12   : > { %v8733_v35 = vadd.f32 %v8732_v17, %v8703_v15 }
 0xf13   : > { %v8944_v40 = vpop.f32.mrf.mxu0 }
 0xf14   : > { %v8763_v38 = vadd.f32 %v8762_v3, %v8733_v35  ;;  %v8842_v3 = vmul.f32 2.0, %v8834_v39  ;;  %v8890_v35 = vadd.f32 %v17480_v26, %v19648_v54 }
 0xf15   : > { %v8983_v52 = vpop.f32.mrf.mxu1 }
 0xf16   : > { %v8892_v7 = vmul.f32 0.30780134, %v8890_v35 }
 0xf17   : > { %v8671_v61 = vpop.f32.mrf.mxu2  ;;  %v8822_v31 = vpop.f32.mrf.mxu3 }
 0xf18   : > { %v8707_v12 = vadd.f32 %v8706_v2, %v8671_v61 }
 0xf1a   : > { %v8738_v29 = vadd.f32 %v8737_v6, %v8707_v12  ;;  %v8891_v6 = vadd.f32 %v17479_v27, %v19642_v28 }
 0xf1b   : > { %v8952_v58 = vpop.f32.mrf.mxu0 }
 0xf1c   : > { %v8769_v63 = vadd.f32 %v8768_v60, %v8738_v29  ;;  %v8984_v60 = vadd.f32 %v8983_v52, %v8944_v40  ;;  %v8893_v14 = vmul.f32 0.30780134, %v8891_v6 }
 0xf1d   : > { %v8987_v13 = vpop.f32.mrf.mxu1 }
 0xf1f   : > { %v8795_v53 = vpop.f32.mrf.mxu2  ;;  %v8826_v22 = vpop.f32.mrf.mxu3 }
 0xf20   : > { %v8796_v36 = vadd.f32 %v8795_v53, %v8763_v38  ;;  %v8895_v53 = vadd.f32 %v8893_v14, %v8889_v47 }
 0xf22   : > { %v8823_v55 = vadd.f32 %v8822_v31, %v8796_v36  ;;  %v8844_v31 = vadd.f32 0.0001, %v8842_v3  ;;  %v9320_v40 = vand.u32 4294901760, %v8895_v53 }
 0xf23   : > { %v9076_v1 = vpop.f32.mrf.mxu0 }
 0xf24   : > { %v8839_v59 = vsub.f32 %v8823_v55, %v8833_v4  ;;  %v17481_v4 = vld [vmem:[%s18208_s15 + $0x40] sm:$0xff]  ;;  %v8874_v55 = vmul.f32 %v8872_v50, %v8868_v11  ;;  %9321 = vmatpush.msrb.mxu0 %v9320_v40 }
 0xf25   : > { %v8888_v36 = vmul.f32 0.38439733, %v17481_v4  ;;  %v9103_v37 = vpop.f32.mrf.mxu1 }
 0xf26   : > { %v8845_v8 = vmul.f32 2.0, %v8839_v59 }
 0xf27   : > { %v8799_v19 = vpop.f32.mrf.mxu2  ;;  %v9043_v15 = vpop.f32.mrf.mxu3  ;;  %v8894_v52 = vadd.f32 %v8892_v7, %v8888_v36 }
 0xf28   : > { %v8847_v56 = vadd.f32 0.0009, %v8845_v8  ;;  %v8800_v5 = vadd.f32 %v8799_v19, %v8769_v63  ;;  %v9356_v8 = vsub.f32 %v8895_v53, %v9320_v40  ;;  %v8988_v63 = vadd.f32 %v8987_v13, %v8952_v58 }
 0xf29   : > { %v9322_v23 = vand.u32 4294901760, %v8894_v52 }
 0xf2a   : > { %v8849_v17 = vmul.f32 %v8847_v56, %v8843_v18  ;;  %v8827_v32 = vadd.f32 %v8826_v22, %v8800_v5  ;;  %v9357_v19 = vand.u32 4294901760, %v9356_v8 }
 0xf2b   : > { %9323 = vmatpush.msrb.mxu0 %v9322_v23  ;;  %v9362_v5 = vsub.f32 %v8894_v52, %v9322_v23 }
 0xf2c   : > { %v8875_v9 = vmul.f32 %v8873_v42, %v8849_v17  ;;  %v8840_v2 = vsub.f32 %v8827_v32, %v8834_v39  ;;  %v9358_v17 = vsub.f32 %v9356_v8, %v9357_v19  ;;  %v9080_v32 = vpop.f32.mrf.mxu0 }
 0xf2d   : > { %v9363_v3 = vand.u32 4294901760, %v9362_v5  ;;  %v9107_v47 = vpop.f32.mrf.mxu1 }
 0xf2e   : > { %17280 = vst.msk [vmem:[%s18598_s26 + $0x30] sm:$0xff] %vm830_vm0, %v8875_v9  ;;  %v8846_v61 = vmul.f32 2.0, %v8840_v2  ;;  %v9359_v2 = vand.u32 4294901760, %v9358_v17 }
 0xf2f   : > { %v9013_v62 = vpop.f32.mrf.mxu2  ;;  %v9049_v56 = vpop.f32.mrf.mxu3  ;;  %v9364_v27 = vsub.f32 %v9362_v5, %v9363_v3 }
 0xf30   : > { %v8848_v12 = vadd.f32 0.0009, %v8846_v61  ;;  %v9014_v38 = vadd.f32 %v9013_v62, %v8984_v60  ;;  %9360 = vmatpush.msrb.mxu1 %v9359_v2 }
 0xf31   : > { %v9365_v6 = vand.u32 4294901760, %v9364_v27  ;;  %v21405_v27 = vld [vmem:[#allocation55_spill] sm:$0xff] }
 0xf32   : > { %v8850_v29 = vmul.f32 %v8848_v12, %v8844_v31  ;;  %v9044_v0 = vadd.f32 %v9043_v15, %v9014_v38 }
 0xf33   : > { %9366 = vmatpush.msrb.mxu1 %v9365_v6 }
 0xf34   : > { %v8876_v59 = vmul.f32 %v8874_v55, %v8850_v29  ;;  %v9077_v22 = vadd.f32 %v9076_v1, %v9044_v0 }
 0xf36   : > { %17281 = vst.msk [vmem:[%s18598_s26 + $0x38] sm:$0xff] %vm830_vm0, %v8876_v59  ;;  %v9104_v39 = vadd.f32 %v9103_v37, %v9077_v22 }
 0xf37   : > { %v9018_v18 = vpop.f32.mrf.mxu2 }
 0xf38   : > { %v9111_v10 = vsel %vm830_vm0, %v9104_v39, 0  ;;  %v9019_v11 = vadd.f32 %v9018_v18, %v8988_v63  ;;  %v21400_v39 = vld [vmem:[#allocation38_spill] sm:$0xff]  ;;  %v21401_v18 = vld [vmem:[#allocation37_spill] sm:$0xff] }
 0xf39   : > { %v9134_v42 = vand.u32 4294901760, %v9111_v10 }
 0xf3a   : > { %v9050_v9 = vadd.f32 %v9049_v56, %v9019_v11 }
 0xf3b   : > { %v9135_v57 = vsub.f32 %v9111_v10, %v9134_v42  ;;  %9178 = vmatmul.f32.vlgmr.msrb.gmra.mxu3 %v9134_v42 }
 0xf3c   : > { %v9081_v58 = vadd.f32 %v9080_v32, %v9050_v9  ;;  %9422 = vmatpush.msrb.mxu3 %v9320_v40  ;;  %v21404_v32 = vld [vmem:[#allocation40_spill] sm:$0xff] }
 0xf3d   : > { %v9136_v13 = vand.u32 4294901760, %v9135_v57  ;;  %9208 = vmatmul.f32.vlgmr.msra.gmra.mxu0 %v9135_v57 }
 0xf3e   : > { %v9108_v50 = vadd.f32 %v9107_v47, %v9081_v58  ;;  %9424 = vmatpush.msrb.mxu3 %v9322_v23  ;;  %9455 = vmatpush.msra.mxu0 %v9357_v19  ;;  %v8897_v19 = vmul.f32 0.38439733, %v21400_v39  ;;  %v8896_v58 = vmul.f32 0.38439733, %v21405_v27  ;;  %v21416_v39 = vld [vmem:[#allocation59_spill] sm:$0xff] }
 0xf3f   : > { %v9137_v15 = vsub.f32 %v9135_v57, %v9136_v13  ;;  %9238 = vmatmul.f32.vlgmr.msra.gmra.mxu1 %v9136_v13 }
 0xf40   : > { %v9114_v60 = vsel %vm830_vm0, %v9108_v50, 0  ;;  %9459 = vmatpush.msra.mxu0 %v9363_v3  ;;  %9484 = vmatpush.msra.mxu1 %v9320_v40 }
 0xf41   : > { %v9138_v61 = vand.u32 4294901760, %v9137_v15  ;;  %v9142_v14 = vand.u32 4294901760, %v9114_v60 }
 0xf42   : > { %9486 = vmatpush.msra.mxu1 %v9322_v23  ;;  %v21398_v23 = vld [vmem:[#allocation33_spill] sm:$0xff] }
 0xf43   : > { %9139 = vmatmul.f32.vlgmr.msrb.gmra.mxu2 %v9138_v61  ;;  %9182 = vmatmul.f32.gmra.mxu3 %v9142_v14  ;;  %v9143_v26 = vsub.f32 %v9114_v60, %v9142_v14  ;;  %v19709_v63 = vmul.f32 %v21398_v23, %v21398_v23 }
 0xf44   : > { %9392 = vmatpush.msrb.mxu2 %v9356_v8 }
 0xf45   : > { %9213 = vmatmul.f32.gmra.mxu0 %v9143_v26  ;;  %v9144_v35 = vand.u32 4294901760, %v9143_v26  ;;  %21399 = vst [vmem:[#allocation32_spill] sm:$0xff] %v19709_v63  ;;  %v8899_v56 = vadd.f32 %v19709_v63, %v21401_v18 }
 0xf46   : > { %9395 = vmatpush.msrb.mxu2 %v9362_v5  ;;  %v21402_v5 = vld [vmem:[#allocation63_spill] sm:$0xff] }
 0xf47   : > { %9244 = vmatmul.f32.gmra.mxu1 %v9144_v35  ;;  %v9145_v31 = vsub.f32 %v9143_v26, %v9144_v35  ;;  %v19716_v10 = vmul.f32 %v21402_v5, %v21402_v5 }
 0xf49   : > { %v9146_v62 = vand.u32 4294901760, %v9145_v31  ;;  %21403 = vst [vmem:[#allocation45_spill] sm:$0xff] %v19716_v10  ;;  %v8898_v3 = vadd.f32 %v19716_v10, %v21404_v32 }
 0xf4b   : > { %9147 = vmatmul.f32.gmra.mxu2 %v9146_v62  ;;  %9298 = vmatmul.f32.vlgmr.msra.gmra.mxu3 %v9134_v42  ;;  %v8900_v13 = vmul.f32 0.30780134, %v8898_v3 }
 0xf4c   : > { %9556 = vmatpush.msra.mxu3 %v18193_v49 }
 0xf4d   : > { %9329 = vmatmul.f32.vlgmr.msrb.gmra.mxu0 %v18150_v33  ;;  %v8902_v60 = vadd.f32 %v8900_v13, %v8896_v58 }
 0xf4e   : > { %9562 = vmatpush.msra.mxu3 %v18199_v51  ;;  %9588 = vmatpush.msrb.mxu0 %v18173_v43 }
 0xf4f   : > { %9368 = vmatmul.f32.vlgmr.msrb.gmra.mxu1 %v18131_v16  ;;  %v9708_v26 = vand.u32 4294901760, %v8902_v60 }
 0xf50   : > { %9591 = vmatpush.msrb.mxu0 %v18181_v46  ;;  %9618 = vmatpush.msrb.mxu1 %v18152_v34 }
 0xf52   : > { %9620 = vmatpush.msrb.mxu1 %v18175_v44 }
 0xf53   : > { %9271 = vmatmul.f32.vlgmr.msra.gmra.mxu2 %v9134_v42  ;;  %9302 = vmatmul.f32.gmra.mxu3 %v9142_v14  ;;  %v8901_v42 = vmul.f32 0.30780134, %v8899_v56 }
 0xf54   : > { %9517 = vmatpush.msra.mxu2 %v18152_v34 }
 0xf55   : > { %9337 = vmatmul.f32.gmra.mxu0 %v18160_v41  ;;  %v8903_v47 = vadd.f32 %v8901_v42, %v8897_v19 }
 0xf56   : > { %9519 = vmatpush.msra.mxu2 %v18175_v44 }
 0xf57   : > { %9372 = vmatmul.f32.gmra.mxu1 %v18134_v20  ;;  %v9706_v15 = vand.u32 4294901760, %v8903_v47 }
 0xf5b   : > { %9275 = vmatmul.f32.gmra.mxu2 %v9142_v14  ;;  %9428 = vmatmul.f32.vlgmr.msrb.gmra.mxu3 %v18143_v25  ;;  %v9742_v14 = vsub.f32 %v8903_v47, %v9706_v15 }
 0xf5c   : > { %9680 = vmatpush.msrb.mxu3 %v18152_v34 }
 0xf5d   : > { %9461 = vmatmul.f32.vlgmr.msra.gmra.mxu0 %v18131_v16  ;;  %v9743_v62 = vand.u32 4294901760, %v9742_v14 }
 0xf5e   : > { %9682 = vmatpush.msrb.mxu3 %v18175_v44  ;;  %9707 = vmatpush.msra.mxu0 %v9706_v15 }
 0xf5f   : > { %9488 = vmatmul.f32.vlgmr.msra.gmra.mxu1 %v18131_v16  ;;  %v9744_v56 = vsub.f32 %v9742_v14, %v9743_v62 }
 0xf60   : > { %9709 = vmatpush.msra.mxu0 %v9708_v26 }
 0xf61   : > { %v9745_v32 = vand.u32 4294901760, %v9744_v56 }
 0xf63   : > { %9398 = vmatmul.f32.vlgmr.msrb.gmra.mxu2 %v18137_v21  ;;  %9434 = vmatmul.f32.gmra.mxu3 %v18148_v30 }
 0xf64   : > { %9651 = vmatpush.msrb.mxu2 %v18178_v45  ;;  %9746 = vmatpush.msra.mxu1 %v9745_v32 }
 0xf65   : > { %9465 = vmatmul.f32.gmra.mxu0 %v18134_v20 }
 0xf66   : > { %9655 = vmatpush.msrb.mxu2 %v18189_v48 }
 0xf67   : > { %9492 = vmatmul.f32.gmra.mxu1 %v18134_v20 }
 0xf6b   : > { %9403 = vmatmul.f32.gmra.mxu2 %v18140_v24 }
 0xfba   : > { %v19685_v12 = vpop.f32.mrf.mxu0 }
 0xfbc   : > { %v19687_v38 = vpop.f32.mrf.mxu1 }
 0xfbe   : > { %v19683_v1 = vpop.f32.mrf.mxu3 }
 0xfc2   : > { %v19693_v36 = vpop.f32.mrf.mxu0 }
 0xfc3   : > { %21392 = vst [vmem:[#allocation42_spill] sm:$0xff] %v19693_v36 }
 0xfc4   : > { %v19695_v37 = vpop.f32.mrf.mxu1 }
 0xfc5   : > { %21393 = vst [vmem:[#allocation57_spill] sm:$0xff] %v19695_v37 }
 0xfc6   : > { %v19689_v53 = vpop.f32.mrf.mxu2  ;;  %v19691_v4 = vpop.f32.mrf.mxu3 }
 0xfca   : > { %v9330_v55 = vpop.f32.mrf.mxu0 }
 0xfcc   : > { %v9369_v40 = vpop.f32.mrf.mxu1 }
 0xfcd   : > { %v9370_v17 = vadd.f32 %v9369_v40, %v9330_v55  ;;  %v9748_v55 = vsub.f32 %v8902_v60, %v9708_v26 }
 0xfce   : > { %v19697_v7 = vpop.f32.mrf.mxu2  ;;  %v19699_v29 = vpop.f32.mrf.mxu3 }
 0xfcf   : > { %21394 = vst [vmem:[#allocation29_spill] sm:$0xff] %v19699_v29  ;;  %v9749_v5 = vand.u32 4294901760, %v9748_v55 }
 0xfd1   : > { %v9750_v3 = vsub.f32 %v9748_v55, %v9749_v5 }
 0xfd2   : > { %v9338_v59 = vpop.f32.mrf.mxu0 }
 0xfd4   : > { %v9373_v8 = vpop.f32.mrf.mxu1 }
 0xfd5   : > { %v9374_v35 = vadd.f32 %v9373_v8, %v9338_v59  ;;  %v9751_v8 = vand.u32 4294901760, %v9750_v3 }
 0xfd6   : > { %v19701_v0 = vpop.f32.mrf.mxu2  ;;  %v19703_v52 = vpop.f32.mrf.mxu3 }
 0xfd7   : > { %21395 = vst [vmem:[#allocation61_spill] sm:$0xff] %v19701_v0  ;;  %9752 = vmatpush.msra.mxu1 %v9751_v8  ;;  %v21413_v8 = vld [vmem:[#allocation30_spill] sm:$0xff] }
 0xfd8   : > { %21396 = vst [vmem:[#allocation51_spill] sm:$0xff] %v19703_v52 }
 0xfda   : > { %v9462_v2 = vpop.f32.mrf.mxu0 }
 0xfdc   : > { %v9489_v6 = vpop.f32.mrf.mxu1 }
 0xfde   : > { %v19705_v22 = vpop.f32.mrf.mxu2  ;;  %v9429_v11 = vpop.f32.mrf.mxu3 }
 0xfdf   : > { %21397 = vst [vmem:[#allocation28_spill] sm:$0xff] %v19705_v22 }
 0xfe6   : > { %v9399_v9 = vpop.f32.mrf.mxu2  ;;  %v9435_v23 = vpop.f32.mrf.mxu3 }
 0xfe7   : > { %v9400_v57 = vadd.f32 %v9399_v9, %v9370_v17 }
 0xfe9   : > { %v9430_v50 = vadd.f32 %v9429_v11, %v9400_v57  ;;  %v9466_v11 = vpop.f32.mrf.mxu0 }
 0xfeb   : > { %v9463_v61 = vadd.f32 %v9462_v2, %v9430_v50  ;;  %v9493_v2 = vpop.f32.mrf.mxu1 }
 0xfed   : > { %v9490_v31 = vadd.f32 %v9489_v6, %v9463_v61 }
 0xfee   : > { %v9404_v40 = vpop.f32.mrf.mxu2 }
 0xfef   : > { %v9497_v19 = vsel %vm830_vm0, %v9490_v31, 0  ;;  %v9405_v18 = vadd.f32 %v9404_v40, %v9374_v35 }
 0xff0   : > { %v9520_v17 = vand.u32 4294901760, %v9497_v19 }
 0xff1   : > { %v9436_v42 = vadd.f32 %v9435_v23, %v9405_v18 }
 0xff2   : > { %v9521_v9 = vsub.f32 %v9497_v19, %v9520_v17  ;;  %9564 = vmatmul.f32.vlgmr.msra.gmra.mxu3 %v9520_v17 }
 0xff3   : > { %v9467_v59 = vadd.f32 %v9466_v11, %v9436_v42  ;;  %9808 = vmatpush.msra.mxu3 %v9706_v15 }
 0xff4   : > { %v9522_v57 = vand.u32 4294901760, %v9521_v9  ;;  %9594 = vmatmul.f32.vlgmr.msrb.gmra.mxu0 %v9521_v9 }
 0xff5   : > { %v9494_v47 = vadd.f32 %v9493_v2, %v9467_v59  ;;  %9810 = vmatpush.msra.mxu3 %v9708_v26  ;;  %9841 = vmatpush.msrb.mxu0 %v9743_v62  ;;  %v21412_v2 = vld [vmem:[#allocation34_spill] sm:$0xff] }
 0xff6   : > { %v9523_v58 = vsub.f32 %v9521_v9, %v9522_v57  ;;  %9624 = vmatmul.f32.vlgmr.msrb.gmra.mxu1 %v9522_v57  ;;  %v19773_v9 = vmul.f32 %v19642_v28, %v19642_v28  ;;  %v8905_v59 = vmul.f32 0.38439733, %v21412_v2  ;;  %v8904_v2 = vmul.f32 0.38439733, %v21416_v39 }
 0xff7   : > { %v9500_v13 = vsel %vm830_vm0, %v9494_v47, 0  ;;  %9870 = vmatpush.msrb.mxu1 %v9706_v15  ;;  %9845 = vmatpush.msrb.mxu0 %v9749_v5  ;;  %v19780_v47 = vmul.f32 %v19648_v54, %v19648_v54 }
 0xff8   : > { %v9524_v6 = vand.u32 4294901760, %v9523_v58  ;;  %v9528_v50 = vand.u32 4294901760, %v9500_v13  ;;  %21411 = vst [vmem:[#allocation44_spill] sm:$0xff] %v19773_v9  ;;  %v8907_v57 = vadd.f32 %v19773_v9, %v21413_v8 }
 0xff9   : > { %9872 = vmatpush.msrb.mxu1 %v9708_v26  ;;  %21414 = vst [vmem:[#allocation60_spill] sm:$0xff] %v19780_v47 }
 0xffa   : > { %9525 = vmatmul.f32.vlgmr.msra.gmra.mxu2 %v9524_v6  ;;  %9568 = vmatmul.f32.gmra.mxu3 %v9528_v50  ;;  %v9529_v60 = vsub.f32 %v9500_v13, %v9528_v50  ;;  %v8909_v6 = vmul.f32 0.30780134, %v8907_v57 }
 0xffb   : > { %9778 = vmatpush.msra.mxu2 %v9742_v14 }
 0xffc   : > { %9599 = vmatmul.f32.gmra.mxu0 %v9529_v60  ;;  %v9530_v61 = vand.u32 4294901760, %v9529_v60  ;;  %v8911_v10 = vadd.f32 %v8909_v6, %v8905_v59 }
 0xffd   : > { %9781 = vmatpush.msra.mxu2 %v9748_v55 }
 0xffe   : > { %9630 = vmatmul.f32.gmra.mxu1 %v9530_v61  ;;  %v9531_v35 = vsub.f32 %v9529_v60, %v9530_v61  ;;  %v10092_v8 = vand.u32 4294901760, %v8911_v10 }
0x1000   : > { %v9532_v31 = vand.u32 4294901760, %v9531_v35  ;;  %v10128_v22 = vsub.f32 %v8911_v10, %v10092_v8 }
0x1002   : > { %9533 = vmatmul.f32.gmra.mxu2 %v9532_v31  ;;  %9684 = vmatmul.f32.vlgmr.msrb.gmra.mxu3 %v9520_v17  ;;  %v10129_v57 = vand.u32 4294901760, %v10128_v22 }
0x1003   : > { %9942 = vmatpush.msrb.mxu3 %v18193_v49 }
0x1004   : > { %9715 = vmatmul.f32.vlgmr.msra.gmra.mxu0 %v18150_v33  ;;  %v10130_v6 = vsub.f32 %v10128_v22, %v10129_v57 }
0x1005   : > { %9948 = vmatpush.msrb.mxu3 %v18199_v51  ;;  %9974 = vmatpush.msra.mxu0 %v18173_v43 }
0x1006   : > { %9754 = vmatmul.f32.vlgmr.msra.gmra.mxu1 %v18131_v16 }
0x1007   : > { %9977 = vmatpush.msra.mxu0 %v18181_v46  ;;  %10004 = vmatpush.msra.mxu1 %v18152_v34 }
0x1009   : > { %10006 = vmatpush.msra.mxu1 %v18175_v44 }
0x100a   : > { %9657 = vmatmul.f32.vlgmr.msrb.gmra.mxu2 %v9520_v17  ;;  %9688 = vmatmul.f32.gmra.mxu3 %v9528_v50 }
0x100b   : > { %9903 = vmatpush.msrb.mxu2 %v18152_v34 }
0x100c   : > { %9723 = vmatmul.f32.gmra.mxu0 %v18160_v41 }
0x100d   : > { %9905 = vmatpush.msrb.mxu2 %v18175_v44 }
0x100e   : > { %9758 = vmatmul.f32.gmra.mxu1 %v18134_v20 }
0x1012   : > { %9661 = vmatmul.f32.gmra.mxu2 %v9528_v50  ;;  %9814 = vmatmul.f32.vlgmr.msra.gmra.mxu3 %v18143_v25  ;;  %v21415_v50 = vld [vmem:[#allocation66_spill] sm:$0xff] }
0x1013   : > { %10066 = vmatpush.msra.mxu3 %v18152_v34  ;;  %v8906_v60 = vadd.f32 %v19780_v47, %v21415_v50 }
0x1014   : > { %9847 = vmatmul.f32.vlgmr.msrb.gmra.mxu0 %v18131_v16 }
0x1015   : > { %10068 = vmatpush.msra.mxu3 %v18175_v44  ;;  %v8908_v63 = vmul.f32 0.30780134, %v8906_v60  ;;  %10093 = vmatpush.msrb.mxu0 %v10092_v8 }
0x1016   : > { %9874 = vmatmul.f32.vlgmr.msrb.gmra.mxu1 %v18131_v16 }
0x1017   : > { %v8910_v9 = vadd.f32 %v8908_v63, %v8904_v2  ;;  %v10131_v63 = vand.u32 4294901760, %v10130_v6 }
0x1019   : > { %10132 = vmatpush.msrb.mxu1 %v10131_v63 }
0x101a   : > { %9784 = vmatmul.f32.vlgmr.msra.gmra.mxu2 %v18137_v21  ;;  %9820 = vmatmul.f32.gmra.mxu3 %v18148_v30 }
0x101b   : > { %10037 = vmatpush.msra.mxu2 %v18178_v45 }
0x101c   : > { %9851 = vmatmul.f32.gmra.mxu0 %v18134_v20 }
0x101d   : > { %10041 = vmatpush.msra.mxu2 %v18189_v48 }
0x101e   : > { %9878 = vmatmul.f32.gmra.mxu1 %v18134_v20 }
0x1022   : > { %9789 = vmatmul.f32.gmra.mxu2 %v18140_v24 }
0x1071   : > { %v19749_v14 = vpop.f32.mrf.mxu0 }
0x1073   : > { %v19751_v26 = vpop.f32.mrf.mxu1 }
0x1075   : > { %v19747_v15 = vpop.f32.mrf.mxu3 }
0x1079   : > { %v19757_v40 = vpop.f32.mrf.mxu0 }
0x107a   : > { %21406 = vst [vmem:[#allocation58_spill] sm:$0xff] %v19757_v40 }
0x107b   : > { %v19759_v23 = vpop.f32.mrf.mxu1 }
0x107c   : > { %21407 = vst [vmem:[#allocation49_spill] sm:$0xff] %v19759_v23 }
0x107d   : > { %v19753_v62 = vpop.f32.mrf.mxu2  ;;  %v19755_v55 = vpop.f32.mrf.mxu3 }
0x1081   : > { %v9716_v56 = vpop.f32.mrf.mxu0 }
0x1083   : > { %v9755_v17 = vpop.f32.mrf.mxu1 }
0x1084   : > { %v9756_v13 = vadd.f32 %v9755_v17, %v9716_v56 }
0x1085   : > { %v19761_v19 = vpop.f32.mrf.mxu2  ;;  %v19763_v18 = vpop.f32.mrf.mxu3 }
0x1086   : > { %21408 = vst [vmem:[#allocation50_spill] sm:$0xff] %v19763_v18 }
0x1089   : > { %v9724_v42 = vpop.f32.mrf.mxu0 }
0x108b   : > { %v9759_v3 = vpop.f32.mrf.mxu1 }
0x108c   : > { %v9760_v56 = vadd.f32 %v9759_v3, %v9724_v42 }
0x108d   : > { %v19765_v5 = vpop.f32.mrf.mxu2  ;;  %v19767_v11 = vpop.f32.mrf.mxu3 }
0x108e   : > { %21409 = vst [vmem:[#allocation64_spill] sm:$0xff] %v19767_v11 }
0x1091   : > { %v9848_v35 = vpop.f32.mrf.mxu0 }
0x1093   : > { %v9875_v27 = vpop.f32.mrf.mxu1 }
0x1095   : > { %v19769_v32 = vpop.f32.mrf.mxu2  ;;  %v9815_v58 = vpop.f32.mrf.mxu3 }
0x1096   : > { %21410 = vst [vmem:[#allocation36_spill] sm:$0xff] %v19769_v32  ;;  %v10094_v32 = vand.u32 4294901760, %v8910_v9 }
0x1098   : > { %10095 = vmatpush.msrb.mxu0 %v10094_v32  ;;  %v10134_v47 = vsub.f32 %v8910_v9, %v10094_v32 }
0x1099   : > { %v9852_v60 = vpop.f32.mrf.mxu0 }
0x109b   : > { %v9879_v10 = vpop.f32.mrf.mxu1 }
0x109d   : > { %v9785_v61 = vpop.f32.mrf.mxu2  ;;  %v9821_v50 = vpop.f32.mrf.mxu3 }
0x109e   : > { %v9786_v31 = vadd.f32 %v9785_v61, %v9756_v13 }
0x10a0   : > { %v9816_v52 = vadd.f32 %v9815_v58, %v9786_v31  ;;  %v10135_v58 = vand.u32 4294901760, %v10134_v47 }
0x10a2   : > { %v9849_v11 = vadd.f32 %v9848_v35, %v9816_v52  ;;  %v10136_v2 = vsub.f32 %v10134_v47, %v10135_v58 }
0x10a4   : > { %v9876_v17 = vadd.f32 %v9875_v27, %v9849_v11  ;;  %v10137_v11 = vand.u32 4294901760, %v10136_v2 }
0x10a5   : > { %v9790_v37 = vpop.f32.mrf.mxu2 }
0x10a6   : > { %v9883_v59 = vsel %vm830_vm0, %v9876_v17, 0  ;;  %v9791_v13 = vadd.f32 %v9790_v37, %v9760_v56  ;;  %10138 = vmatpush.msrb.mxu1 %v10137_v11  ;;  %v19836_v11 = vld [vmem:[%s18098_s22 + $0x58] sm:$0xff] }
0x10a7   : > { %v9906_v61 = vand.u32 4294901760, %v9883_v59 }
0x10a8   : > { %v9822_v31 = vadd.f32 %v9821_v50, %v9791_v13 }
0x10a9   : > { %v9907_v52 = vsub.f32 %v9883_v59, %v9906_v61  ;;  %9950 = vmatmul.f32.vlgmr.msrb.gmra.mxu3 %v9906_v61 }
0x10aa   : > { %v9853_v42 = vadd.f32 %v9852_v60, %v9822_v31  ;;  %10194 = vmatpush.msrb.mxu3 %v10092_v8 }
0x10ab   : > { %v9908_v27 = vand.u32 4294901760, %v9907_v52  ;;  %9980 = vmatmul.f32.vlgmr.msra.gmra.mxu0 %v9907_v52 }
0x10ac   : > { %v9880_v3 = vadd.f32 %v9879_v10, %v9853_v42  ;;  %10196 = vmatpush.msrb.mxu3 %v10094_v32  ;;  %10227 = vmatpush.msra.mxu0 %v10129_v57 }
0x10ad   : > { %v9909_v37 = vsub.f32 %v9907_v52, %v9908_v27  ;;  %10010 = vmatmul.f32.vlgmr.msra.gmra.mxu1 %v9908_v27 }
0x10ae   : > { %v9886_v9 = vsel %vm830_vm0, %v9880_v3, 0  ;;  %10231 = vmatpush.msra.mxu0 %v10135_v58  ;;  %10256 = vmatpush.msra.mxu1 %v10092_v8  ;;  %v19840_v3 = vmul.f32 %v19836_v11, %v19642_v28 }
0x10af   : > { %v9910_v35 = vand.u32 4294901760, %v9909_v37  ;;  %v9914_v56 = vand.u32 4294901760, %v9886_v9  ;;  %v21427_v37 = vld [vmem:[#allocation27_spill] sm:$0xff] }
0x10b0   : > { %10258 = vmatpush.msra.mxu1 %v10094_v32  ;;  %21426 = vst [vmem:[#allocation46_spill] sm:$0xff] %v19840_v3 }
0x10b1   : > { %9911 = vmatmul.f32.vlgmr.msrb.gmra.mxu2 %v9910_v35  ;;  %9954 = vmatmul.f32.gmra.mxu3 %v9914_v56  ;;  %v9915_v17 = vsub.f32 %v9886_v9, %v9914_v56  ;;  %v8913_v9 = vmul.f32 0.38439733, %v21427_v37  ;;  %v21428_v35 = vld [vmem:[#allocation26_spill] sm:$0xff]  ;;  %v21431_v37 = vld [vmem:[#allocation48_spill] sm:$0xff] }
0x10b2   : > { %10164 = vmatpush.msrb.mxu2 %v10128_v22 }
0x10b3   : > { %9985 = vmatmul.f32.gmra.mxu0 %v9915_v17  ;;  %v9916_v50 = vand.u32 4294901760, %v9915_v17 }
0x10b4   : > { %10167 = vmatpush.msrb.mxu2 %v10134_v47 }
0x10b5   : > { %10016 = vmatmul.f32.gmra.mxu1 %v9916_v50  ;;  %v9917_v59 = vsub.f32 %v9915_v17, %v9916_v50  ;;  %v19846_v17 = vld [vmem:[%s18098_s22 + $0x50] sm:$0xff] }
0x10b6   : > { %v19850_v50 = vmul.f32 %v19846_v17, %v19648_v54 }
0x10b7   : > { %v9918_v57 = vand.u32 4294901760, %v9917_v59 }
0x10b8   : > { %21429 = vst [vmem:[#allocation31_spill] sm:$0xff] %v19850_v50 }
0x10b9   : > { %9919 = vmatmul.f32.gmra.mxu2 %v9918_v57  ;;  %10070 = vmatmul.f32.vlgmr.msra.gmra.mxu3 %v9906_v61 }
0x10ba   : > { %10328 = vmatpush.msra.mxu3 %v18193_v49 }
0x10bb   : > { %10101 = vmatmul.f32.vlgmr.msrb.gmra.mxu0 %v18150_v33 }
0x10bc   : > { %10334 = vmatpush.msra.mxu3 %v18199_v51  ;;  %10360 = vmatpush.msrb.mxu0 %v18173_v43 }
0x10bd   : > { %10140 = vmatmul.f32.vlgmr.msrb.gmra.mxu1 %v18131_v16 }
0x10be   : > { %10363 = vmatpush.msrb.mxu0 %v18181_v46  ;;  %10390 = vmatpush.msrb.mxu1 %v18152_v34 }
0x10c0   : > { %10392 = vmatpush.msrb.mxu1 %v18175_v44 }
0x10c1   : > { %10043 = vmatmul.f32.vlgmr.msra.gmra.mxu2 %v9906_v61  ;;  %10074 = vmatmul.f32.gmra.mxu3 %v9914_v56 }
0x10c2   : > { %10289 = vmatpush.msra.mxu2 %v18152_v34 }
0x10c3   : > { %10109 = vmatmul.f32.gmra.mxu0 %v18160_v41 }
0x10c4   : > { %10291 = vmatpush.msra.mxu2 %v18175_v44 }
0x10c5   : > { %10144 = vmatmul.f32.gmra.mxu1 %v18134_v20 }
0x10c9   : > { %10047 = vmatmul.f32.gmra.mxu2 %v9914_v56  ;;  %10200 = vmatmul.f32.vlgmr.msrb.gmra.mxu3 %v18143_v25  ;;  %v8915_v56 = vadd.f32 %v19840_v3, %v21428_v35 }
0x10ca   : > { %10452 = vmatpush.msrb.mxu3 %v18152_v34 }
0x10cb   : > { %10233 = vmatmul.f32.vlgmr.msra.gmra.mxu0 %v18131_v16  ;;  %v8917_v39 = vmul.f32 0.30780134, %v8915_v56 }
0x10cc   : > { %10454 = vmatpush.msrb.mxu3 %v18175_v44 }
0x10cd   : > { %10260 = vmatmul.f32.vlgmr.msra.gmra.mxu1 %v18131_v16  ;;  %v8919_v29 = vadd.f32 %v8917_v39, %v8913_v9 }
0x10d1   : > { %10170 = vmatmul.f32.vlgmr.msrb.gmra.mxu2 %v18137_v21  ;;  %10206 = vmatmul.f32.gmra.mxu3 %v18148_v30 }
0x10d2   : > { %10423 = vmatpush.msrb.mxu2 %v18178_v45 }
0x10d3   : > { %10237 = vmatmul.f32.gmra.mxu0 %v18134_v20 }
0x10d4   : > { %10427 = vmatpush.msrb.mxu2 %v18189_v48 }
0x10d5   : > { %10264 = vmatmul.f32.gmra.mxu1 %v18134_v20 }
0x10d9   : > { %10175 = vmatmul.f32.gmra.mxu2 %v18140_v24 }
0x1128   : > { %v19813_v32 = vpop.f32.mrf.mxu0 }
0x112a   : > { %v19815_v47 = vpop.f32.mrf.mxu1 }
0x112b   : > { %21417 = vst [vmem:[#allocation65_spill] sm:$0xff] %v19815_v47 }
0x112c   : > { %v19811_v22 = vpop.f32.mrf.mxu3 }
0x1130   : > { %v19821_v6 = vpop.f32.mrf.mxu0 }
0x1131   : > { %21419 = vst [vmem:[#allocation41_spill] sm:$0xff] %v19821_v6  ;;  %v8912_v6 = vmul.f32 0.38439733, %v21431_v37 }
0x1132   : > { %v19823_v61 = vpop.f32.mrf.mxu1 }
0x1133   : > { %21420 = vst [vmem:[#allocation52_spill] sm:$0xff] %v19823_v61 }
0x1134   : > { %v19817_v8 = vpop.f32.mrf.mxu2  ;;  %v19819_v13 = vpop.f32.mrf.mxu3 }
0x1135   : > { %21418 = vst [vmem:[#allocation35_spill] sm:$0xff] %v19819_v13 }
0x1138   : > { %v10102_v31 = vpop.f32.mrf.mxu0 }
0x113a   : > { %v10141_v52 = vpop.f32.mrf.mxu1 }
0x113b   : > { %v10142_v57 = vadd.f32 %v10141_v52, %v10102_v31 }
0x113c   : > { %v19825_v60 = vpop.f32.mrf.mxu2  ;;  %v19827_v58 = vpop.f32.mrf.mxu3 }
0x113d   : > { %21421 = vst [vmem:[#allocation39_spill] sm:$0xff] %v19825_v60 }
0x113e   : > { %21422 = vst [vmem:[#allocation53_spill] sm:$0xff] %v19827_v58 }
0x1140   : > { %v10110_v2 = vpop.f32.mrf.mxu0 }
0x1142   : > { %v10145_v27 = vpop.f32.mrf.mxu1 }
0x1143   : > { %v10146_v31 = vadd.f32 %v10145_v27, %v10110_v2 }
0x1144   : > { %v19829_v63 = vpop.f32.mrf.mxu2  ;;  %v19831_v10 = vpop.f32.mrf.mxu3 }
0x1145   : > { %21423 = vst [vmem:[#allocation62_spill] sm:$0xff] %v19829_v63  ;;  %v10478_v63 = vand.u32 4294901760, %v8919_v29 }
0x1146   : > { %21424 = vst [vmem:[#allocation54_spill] sm:$0xff] %v19831_v10  ;;  %v21430_v10 = vld [vmem:[#allocation47_spill] sm:$0xff] }
0x1147   : > { %10479 = vmatpush.msra.mxu0 %v10478_v63  ;;  %v10514_v54 = vsub.f32 %v8919_v29, %v10478_v63 }
0x1148   : > { %v10234_v28 = vpop.f32.mrf.mxu0 }
0x1149   : > { %v10515_v56 = vand.u32 4294901760, %v10514_v54 }
0x114a   : > { %v10261_v35 = vpop.f32.mrf.mxu1 }
0x114b   : > { %v10516_v9 = vsub.f32 %v10514_v54, %v10515_v56 }
0x114c   : > { %v19833_v42 = vpop.f32.mrf.mxu2  ;;  %v10201_v59 = vpop.f32.mrf.mxu3 }
0x114d   : > { %21425 = vst [vmem:[#allocation56_spill] sm:$0xff] %v19833_v42  ;;  %v8914_v42 = vadd.f32 %v19850_v50, %v21430_v10 }
0x114f   : > { %v8916_v23 = vmul.f32 0.30780134, %v8914_v42 }
0x1151   : > { %v8918_v18 = vadd.f32 %v8916_v23, %v8912_v6  ;;  %v10517_v23 = vand.u32 4294901760, %v10516_v9 }
0x1152   : > { %v10265_v29 = vpop.f32.mrf.mxu1 }
0x1153   : > { %v10480_v47 = vand.u32 4294901760, %v8918_v18  ;;  %10518 = vmatpush.msra.mxu1 %v10517_v23 }
0x1154   : > { %v10171_v61 = vpop.f32.mrf.mxu2  ;;  %v10207_v0 = vpop.f32.mrf.mxu3 }
0x1155   : > { %v10172_v58 = vadd.f32 %v10171_v61, %v10142_v57  ;;  %10481 = vmatpush.msra.mxu0 %v10480_v47  ;;  %v10520_v10 = vsub.f32 %v8918_v18, %v10480_v47 }
0x1157   : > { %v10202_v3 = vadd.f32 %v10201_v59, %v10172_v58  ;;  %v10521_v42 = vand.u32 4294901760, %v10520_v10  ;;  %v10238_v58 = vpop.f32.mrf.mxu0 }
0x1159   : > { %v10235_v36 = vadd.f32 %v10234_v28, %v10202_v3  ;;  %v10522_v6 = vsub.f32 %v10520_v10, %v10521_v42 }
0x115b   : > { %v10262_v52 = vadd.f32 %v10261_v35, %v10235_v36  ;;  %v10523_v36 = vand.u32 4294901760, %v10522_v6 }
0x115c   : > { %v10176_v50 = vpop.f32.mrf.mxu2 }
0x115d   : > { %v10269_v39 = vsel %vm830_vm0, %v10262_v52, 0  ;;  %v10177_v61 = vadd.f32 %v10176_v50, %v10146_v31  ;;  %10524 = vmatpush.msra.mxu1 %v10523_v36 }
0x115e   : > { %v10292_v57 = vand.u32 4294901760, %v10269_v39 }
0x115f   : > { %v10208_v59 = vadd.f32 %v10207_v0, %v10177_v61 }
0x1160   : > { %v10293_v3 = vsub.f32 %v10269_v39, %v10292_v57  ;;  %10336 = vmatmul.f32.vlgmr.msra.gmra.mxu3 %v10292_v57 }
0x1161   : > { %v10239_v2 = vadd.f32 %v10238_v58, %v10208_v59  ;;  %10580 = vmatpush.msra.mxu3 %v10478_v63 }
0x1162   : > { %v10294_v18 = vand.u32 4294901760, %v10293_v3  ;;  %10366 = vmatmul.f32.vlgmr.msrb.gmra.mxu0 %v10293_v3 }
0x1163   : > { %v10266_v27 = vadd.f32 %v10265_v29, %v10239_v2  ;;  %10582 = vmatpush.msra.mxu3 %v10480_v47  ;;  %10613 = vmatpush.msrb.mxu0 %v10515_v56 }
0x1164   : > { %v10295_v50 = vsub.f32 %v10293_v3, %v10294_v18  ;;  %10396 = vmatmul.f32.vlgmr.msrb.gmra.mxu1 %v10294_v18  ;;  %v19906_v18 = vld [vmem:[%s18098_s22 + $0x68] sm:$0xff] }
0x1165   : > { %v10272_v28 = vsel %vm830_vm0, %v10266_v27, 0  ;;  %10642 = vmatpush.msrb.mxu1 %v10478_v63  ;;  %10617 = vmatpush.msrb.mxu0 %v10521_v42  ;;  %21439 = vst [vmem:[#allocation26_spill] sm:$0xff] %v19906_v18  ;;  %v10902_v27 = vmul.f32 0.38439733, %v19836_v11 }
0x1166   : > { %v10296_v0 = vand.u32 4294901760, %v10295_v50  ;;  %v10300_v35 = vand.u32 4294901760, %v10272_v28  ;;  %v17484_v50 = vld [vmem:[%s18098_s22 + $0x48] sm:$0xff] }
0x1167   : > { %10644 = vmatpush.msrb.mxu1 %v10480_v47 }
0x1168   : > { %10297 = vmatmul.f32.vlgmr.msra.gmra.mxu2 %v10296_v0  ;;  %10340 = vmatmul.f32.gmra.mxu3 %v10300_v35  ;;  %v10301_v31 = vsub.f32 %v10272_v28, %v10300_v35  ;;  %v10904_v28 = vadd.f32 %v17484_v50, %v19906_v18 }
0x1169   : > { %10550 = vmatpush.msra.mxu2 %v10514_v54 }
0x116a   : > { %10371 = vmatmul.f32.gmra.mxu0 %v10301_v31  ;;  %v10302_v52 = vand.u32 4294901760, %v10301_v31 }
0x116b   : > { %10553 = vmatpush.msra.mxu2 %v10520_v10 }
0x116c   : > { %10402 = vmatmul.f32.gmra.mxu1 %v10302_v52  ;;  %v10303_v39 = vsub.f32 %v10301_v31, %v10302_v52  ;;  %v10906_v52 = vmul.f32 0.30780134, %v10904_v28 }
0x116e   : > { %v10304_v61 = vand.u32 4294901760, %v10303_v39  ;;  %v17485_v39 = vld [vmem:[%s18098_s22 + $0x40] sm:$0xff] }
0x1170   : > { %10305 = vmatmul.f32.gmra.mxu2 %v10304_v61  ;;  %10456 = vmatmul.f32.vlgmr.msrb.gmra.mxu3 %v10292_v57 }
0x1171   : > { %10714 = vmatpush.msrb.mxu3 %v18193_v49 }
0x1172   : > { %10487 = vmatmul.f32.vlgmr.msra.gmra.mxu0 %v18150_v33 }
0x1173   : > { %10720 = vmatpush.msrb.mxu3 %v18199_v51  ;;  %10746 = vmatpush.msra.mxu0 %v18173_v43 }
0x1174   : > { %10526 = vmatmul.f32.vlgmr.msra.gmra.mxu1 %v18131_v16 }
0x1175   : > { %10749 = vmatpush.msra.mxu0 %v18181_v46  ;;  %10776 = vmatpush.msra.mxu1 %v18152_v34 }
0x1177   : > { %10778 = vmatpush.msra.mxu1 %v18175_v44 }
0x1178   : > { %10429 = vmatmul.f32.vlgmr.msrb.gmra.mxu2 %v10292_v57  ;;  %10460 = vmatmul.f32.gmra.mxu3 %v10300_v35 }
0x1179   : > { %10675 = vmatpush.msrb.mxu2 %v18152_v34 }
0x117a   : > { %10495 = vmatmul.f32.gmra.mxu0 %v18160_v41 }
0x117b   : > { %10677 = vmatpush.msrb.mxu2 %v18175_v44 }
0x117c   : > { %10530 = vmatmul.f32.gmra.mxu1 %v18134_v20 }
0x1180   : > { %10433 = vmatmul.f32.gmra.mxu2 %v10300_v35  ;;  %10586 = vmatmul.f32.vlgmr.msra.gmra.mxu3 %v18143_v25  ;;  %v19912_v35 = vld [vmem:[%s18098_s22 + $0x60] sm:$0xff] }
0x1181   : > { %10838 = vmatpush.msra.mxu3 %v18152_v34  ;;  %21440 = vst [vmem:[#allocation47_spill] sm:$0xff] %v19912_v35  ;;  %v10903_v61 = vadd.f32 %v17485_v39, %v19912_v35 }
0x1182   : > { %10619 = vmatmul.f32.vlgmr.msrb.gmra.mxu0 %v18131_v16 }
0x1183   : > { %10840 = vmatpush.msra.mxu3 %v18175_v44 }
0x1184   : > { %10646 = vmatmul.f32.vlgmr.msrb.gmra.mxu1 %v18131_v16 }
0x1188   : > { %10556 = vmatmul.f32.vlgmr.msra.gmra.mxu2 %v18137_v21  ;;  %10592 = vmatmul.f32.gmra.mxu3 %v18148_v30 }
0x1189   : > { %10809 = vmatpush.msra.mxu2 %v18178_v45 }
0x118a   : > { %10623 = vmatmul.f32.gmra.mxu0 %v18134_v20 }
0x118b   : > { %10813 = vmatpush.msra.mxu2 %v18189_v48 }
0x118c   : > { %10650 = vmatmul.f32.gmra.mxu1 %v18134_v20 }
0x1190   : > { %10561 = vmatmul.f32.gmra.mxu2 %v18140_v24 }
0x11df   : > { %v19883_v63 = vpop.f32.mrf.mxu0 }
0x11e1   : > { %v19885_v54 = vpop.f32.mrf.mxu1 }
0x11e2   : > { %21432 = vst [vmem:[#allocation43_spill] sm:$0xff] %v19885_v54 }
0x11e3   : > { %v19881_v47 = vpop.f32.mrf.mxu3 }
0x11e7   : > { %v19891_v9 = vpop.f32.mrf.mxu0 }
0x11e8   : > { %21433 = vst [vmem:[#allocation33_spill] sm:$0xff] %v19891_v9 }
0x11e9   : > { %v19893_v42 = vpop.f32.mrf.mxu1 }
0x11ea   : > { %21434 = vst [vmem:[#allocation37_spill] sm:$0xff] %v19893_v42 }
0x11eb   : > { %v19887_v56 = vpop.f32.mrf.mxu2  ;;  %v19889_v10 = vpop.f32.mrf.mxu3 }
0x11ef   : > { %v10488_v59 = vpop.f32.mrf.mxu0 }
0x11f1   : > { %v10527_v6 = vpop.f32.mrf.mxu1 }
0x11f2   : > { %v10528_v31 = vadd.f32 %v10527_v6, %v10488_v59 }
0x11f3   : > { %v19895_v57 = vpop.f32.mrf.mxu2  ;;  %v19897_v58 = vpop.f32.mrf.mxu3 }
0x11f4   : > { %21435 = vst [vmem:[#allocation63_spill] sm:$0xff] %v19897_v58  ;;  %v10901_v58 = vmul.f32 0.38439733, %v19846_v17 }
0x11f7   : > { %v10496_v29 = vpop.f32.mrf.mxu0 }
0x11f9   : > { %v10531_v36 = vpop.f32.mrf.mxu1 }
0x11fa   : > { %v10532_v59 = vadd.f32 %v10531_v36, %v10496_v29 }
0x11fb   : > { %v19899_v23 = vpop.f32.mrf.mxu2  ;;  %v19901_v3 = vpop.f32.mrf.mxu3 }
0x11fc   : > { %21436 = vst [vmem:[#allocation40_spill] sm:$0xff] %v19899_v23  ;;  %v10905_v23 = vmul.f32 0.30780134, %v10903_v61 }
0x11fd   : > { %21437 = vst [vmem:[#allocation30_spill] sm:$0xff] %v19901_v3 }
0x11fe   : > { %v10907_v60 = vadd.f32 %v10905_v23, %v10901_v58 }
0x11ff   : > { %v10620_v3 = vpop.f32.mrf.mxu0 }
0x1200   : > { %v10957_v40 = vand.u32 4294901760, %v10907_v60 }
0x1201   : > { %v10647_v9 = vpop.f32.mrf.mxu1 }
0x1202   : > { %v10997_v35 = vsub.f32 %v10907_v60, %v10957_v40 }
0x1203   : > { %v19903_v2 = vpop.f32.mrf.mxu2  ;;  %v10587_v0 = vpop.f32.mrf.mxu3 }
0x1204   : > { %21438 = vst [vmem:[#allocation66_spill] sm:$0xff] %v19903_v2  ;;  %v10908_v2 = vadd.f32 %v10906_v52, %v10902_v27 }
0x1206   : > { %v10955_v13 = vand.u32 4294901760, %v10908_v2 }
0x1207   : > { %v10624_v52 = vpop.f32.mrf.mxu0 }
0x1208   : > { %10956 = vmatpush.msrb.mxu0 %v10955_v13  ;;  %v10991_v18 = vsub.f32 %v10908_v2, %v10955_v13 }
0x120a   : > { %v10992_v28 = vand.u32 4294901760, %v10991_v18  ;;  %10958 = vmatpush.msrb.mxu0 %v10957_v40 }
0x120b   : > { %v10557_v37 = vpop.f32.mrf.mxu2  ;;  %v10593_v39 = vpop.f32.mrf.mxu3 }
0x120c   : > { %v10558_v42 = vadd.f32 %v10557_v37, %v10528_v31  ;;  %v10993_v17 = vsub.f32 %v10991_v18, %v10992_v28 }
0x120e   : > { %v10588_v11 = vadd.f32 %v10587_v0, %v10558_v42  ;;  %v10998_v42 = vand.u32 4294901760, %v10997_v35  ;;  %v10994_v58 = vand.u32 4294901760, %v10993_v17 }
0x1210   : > { %v10621_v50 = vadd.f32 %v10620_v3, %v10588_v11  ;;  %v10651_v3 = vpop.f32.mrf.mxu1  ;;  %v10999_v2 = vsub.f32 %v10997_v35, %v10998_v42  ;;  %10995 = vmatpush.msrb.mxu1 %v10994_v58 }
0x1212   : > { %v10648_v6 = vadd.f32 %v10647_v9, %v10621_v50  ;;  %v11000_v36 = vand.u32 4294901760, %v10999_v2  ;;  %v21452_v2 = vld [vmem:[#allocation49_spill] sm:$0xff] }
0x1213   : > { %v10562_v54 = vpop.f32.mrf.mxu2 }
0x1214   : > { %v10655_v37 = vsel %vm830_vm0, %v10648_v6, 0  ;;  %v10563_v27 = vadd.f32 %v10562_v54, %v10532_v59  ;;  %11001 = vmatpush.msrb.mxu1 %v11000_v36 }
0x1215   : > { %v10678_v31 = vand.u32 4294901760, %v10655_v37 }
0x1216   : > { %v10594_v0 = vadd.f32 %v10593_v39, %v10563_v27 }
0x1217   : > { %v10679_v23 = vsub.f32 %v10655_v37, %v10678_v31  ;;  %10722 = vmatmul.f32.vlgmr.msrb.gmra.mxu3 %v10678_v31  ;;  %v9952_v37 = vadd.f32 %v19811_v22, %v19817_v8 }
0x1218   : > { %v10625_v29 = vadd.f32 %v10624_v52, %v10594_v0  ;;  %11057 = vmatpush.msrb.mxu3 %v10955_v13  ;;  %v21447_v0 = vld [vmem:[#allocation40_spill] sm:$0xff] }
0x1219   : > { %v10680_v9 = vand.u32 4294901760, %v10679_v23  ;;  %10752 = vmatmul.f32.vlgmr.msra.gmra.mxu0 %v10679_v23 }
0x121a   : > { %v10652_v60 = vadd.f32 %v10651_v3, %v10625_v29  ;;  %11059 = vmatpush.msrb.mxu3 %v10957_v40  ;;  %11090 = vmatpush.msra.mxu0 %v10992_v28 }
0x121b   : > { %v10681_v54 = vsub.f32 %v10679_v23, %v10680_v9  ;;  %10782 = vmatmul.f32.vlgmr.msra.gmra.mxu1 %v10680_v9  ;;  %v21453_v9 = vld [vmem:[#allocation41_spill] sm:$0xff] }
0x121c   : > { %v10658_v61 = vsel %vm830_vm0, %v10652_v60, 0  ;;  %11094 = vmatpush.msra.mxu0 %v10998_v42  ;;  %11119 = vmatpush.msra.mxu1 %v10955_v13  ;;  %v9180_v13 = vadd.f32 %v19683_v1, %v19689_v53  ;;  %v9184_v1 = vadd.f32 %v19691_v4, %v19697_v7  ;;  %v10342_v53 = vadd.f32 %v19889_v10, %v19895_v57  ;;  %v21448_v7 = vld [vmem:[#allocation42_spill] sm:$0xff]  ;;  %v21449_v10 = vld [vmem:[#allocation33_spill] sm:$0xff] }
0x121d   : > { %v10682_v11 = vand.u32 4294901760, %v10681_v54  ;;  %v10686_v50 = vand.u32 4294901760, %v10658_v61  ;;  %v21454_v60 = vld [vmem:[#allocation29_spill] sm:$0xff] }
0x121e   : > { %11121 = vmatpush.msra.mxu1 %v10957_v40  ;;  %v9566_v40 = vadd.f32 %v19747_v15, %v19753_v62  ;;  %v9210_v27 = vadd.f32 %v19685_v12, %v9180_v13  ;;  %v9982_v62 = vadd.f32 %v19813_v32, %v9952_v37  ;;  %v21441_v12 = vld [vmem:[#allocation43_spill] sm:$0xff]  ;;  %v21446_v32 = vld [vmem:[#allocation65_spill] sm:$0xff]  ;;  %v9215_v58 = vadd.f32 %v21448_v7, %v9184_v1  ;;  %v21460_v37 = vld [vmem:[#allocation28_spill] sm:$0xff] }
0x121f   : > { %10683 = vmatmul.f32.vlgmr.msrb.gmra.mxu2 %v10682_v11  ;;  %10726 = vmatmul.f32.gmra.mxu3 %v10686_v50  ;;  %v10687_v59 = vsub.f32 %v10658_v61, %v10686_v50  ;;  %v10373_v57 = vadd.f32 %v21449_v10, %v10342_v53  ;;  %v21455_v61 = vld [vmem:[#allocation63_spill] sm:$0xff] }
0x1220   : > { %11027 = vmatpush.msrb.mxu2 %v10991_v18  ;;  %v10338_v18 = vadd.f32 %v19881_v47, %v19887_v56  ;;  %v21442_v47 = vld [vmem:[#allocation58_spill] sm:$0xff]  ;;  %v21443_v56 = vld [vmem:[#allocation39_spill] sm:$0xff]  ;;  %v10012_v42 = vadd.f32 %v21446_v32, %v9982_v62 }
0x1221   : > { %10757 = vmatmul.f32.gmra.mxu0 %v10687_v59  ;;  %v10688_v6 = vand.u32 4294901760, %v10687_v59  ;;  %v21467_v32 = vld [vmem:[#allocation54_spill] sm:$0xff] }
0x1222   : > { %11030 = vmatpush.msrb.mxu2 %v10997_v35  ;;  %v9596_v35 = vadd.f32 %v19749_v14, %v9566_v40  ;;  %v10368_v17 = vadd.f32 %v19883_v63, %v10338_v18  ;;  %v9240_v14 = vadd.f32 %v19687_v38, %v9210_v27  ;;  %v21450_v38 = vld [vmem:[#allocation50_spill] sm:$0xff]  ;;  %v21459_v18 = vld [vmem:[#allocation53_spill] sm:$0xff] }
0x1223   : > { %10788 = vmatmul.f32.gmra.mxu1 %v10688_v6  ;;  %v10689_v39 = vsub.f32 %v10687_v59, %v10688_v6  ;;  %v21457_v6 = vld [vmem:[#allocation36_spill] sm:$0xff] }
0x1224   : > { %v9626_v15 = vadd.f32 %v19751_v26, %v9596_v35  ;;  %v10398_v8 = vadd.f32 %v21441_v12, %v10368_v17  ;;  %v21445_v26 = vld [vmem:[#allocation61_spill] sm:$0xff]  ;;  %v21461_v17 = vld [vmem:[#allocation52_spill] sm:$0xff] }
0x1225   : > { %v10690_v28 = vand.u32 4294901760, %v10689_v39  ;;  %v9273_v52 = vadd.f32 %v21445_v26, %v9240_v14  ;;  %v21463_v14 = vld [vmem:[#allocation64_spill] sm:$0xff] }
0x1226   : > { %v9659_v22 = vadd.f32 %v19765_v5, %v9626_v15  ;;  %v10431_v4 = vadd.f32 %v21447_v0, %v10398_v8  ;;  %v21451_v5 = vld [vmem:[#allocation62_spill] sm:$0xff]  ;;  %v21464_v12 = vld [vmem:[#allocation56_spill] sm:$0xff] }
0x1227   : > { %10691 = vmatmul.f32.gmra.mxu2 %v10690_v28  ;;  %10842 = vmatmul.f32.vlgmr.msra.gmra.mxu3 %v10678_v31  ;;  %v10045_v3 = vadd.f32 %v21451_v5, %v10012_v42  ;;  %v9300_v54 = vadd.f32 %v21454_v60, %v9273_v52  ;;  %v21458_v28 = vld [vmem:[#allocation37_spill] sm:$0xff]  ;;  %v21462_v15 = vld [vmem:[#allocation66_spill] sm:$0xff] }
0x1228   : > { %11191 = vmatpush.msra.mxu3 %v18193_v49  ;;  %v9686_v23 = vadd.f32 %v21450_v38, %v9659_v22  ;;  %v10458_v11 = vadd.f32 %v21455_v61, %v10431_v4  ;;  %v10404_v40 = vadd.f32 %v21458_v28, %v10373_v57 }
0x1229   : > { %10964 = vmatmul.f32.vlgmr.msrb.gmra.mxu0 %v18150_v33  ;;  %v10072_v35 = vadd.f32 %v21459_v18, %v10045_v3  ;;  %v10850_v1 = vmul.f32 %v9300_v54, %v9300_v54 }
0x122a   : > { %11197 = vmatpush.msra.mxu3 %v18199_v51  ;;  %11223 = vmatpush.msrb.mxu0 %v18173_v43  ;;  %v10852_v13 = vmul.f32 %v9686_v23, %v9686_v23  ;;  %v10435_v62 = vadd.f32 %v21462_v15, %v10404_v40 }
0x122b   : > { %11003 = vmatmul.f32.vlgmr.msrb.gmra.mxu1 %v18131_v16 }
0x122c   : > { %11226 = vmatpush.msrb.mxu0 %v18181_v46  ;;  %11253 = vmatpush.msrb.mxu1 %v18152_v34  ;;  %v10858_v53 = vsub.f32 %v10458_v11, %v10852_v13  ;;  %v10872_v0 = vadd.f32 %v10852_v13, %v10850_v1 }
0x122e   : > { %11255 = vmatpush.msrb.mxu1 %v18175_v44  ;;  %v10874_v57 = vadd.f32 0.0001, %v10872_v0 }
0x122f   : > { %10815 = vmatmul.f32.vlgmr.msra.gmra.mxu2 %v10678_v31  ;;  %10846 = vmatmul.f32.gmra.mxu3 %v10686_v50  ;;  %v9570_v31 = vadd.f32 %v19755_v55, %v19761_v19  ;;  %v21444_v55 = vld [vmem:[#allocation35_spill] sm:$0xff] }
0x1230   : > { %11152 = vmatpush.msra.mxu2 %v18152_v34  ;;  %v9956_v19 = vadd.f32 %v21444_v55, %v21443_v56  ;;  %v21466_v55 = vld [vmem:[#allocation30_spill] sm:$0xff] }
0x1231   : > { %10972 = vmatmul.f32.gmra.mxu0 %v18160_v41  ;;  %v9601_v63 = vadd.f32 %v21442_v47, %v9570_v31  ;;  %v10856_v47 = vsub.f32 %v10072_v35, %v10850_v1 }
0x1232   : > { %11154 = vmatpush.msra.mxu2 %v18175_v44  ;;  %v9987_v36 = vadd.f32 %v21453_v9, %v9956_v19  ;;  %v10462_v19 = vadd.f32 %v21466_v55, %v10435_v62 }
0x1233   : > { %11007 = vmatmul.f32.gmra.mxu1 %v18134_v20  ;;  %v9632_v29 = vadd.f32 %v21452_v2, %v9601_v63  ;;  %v21465_v63 = vld [vmem:[#allocation51_spill] sm:$0xff]  ;;  %v10876_v26 = vadd.f32 %v10858_v53, %v10856_v47 }
0x1234   : > { %v10018_v31 = vadd.f32 %v21461_v17, %v9987_v36 }
0x1235   : > { %v9663_v39 = vadd.f32 %v21457_v6, %v9632_v29 }
0x1236   : > { %v10049_v8 = vadd.f32 %v21464_v12, %v10018_v31  ;;  %v10854_v12 = vmul.f32 %v9686_v23, %v9300_v54 }
0x1237   : > { %10819 = vmatmul.f32.gmra.mxu2 %v10686_v50  ;;  %11063 = vmatmul.f32.vlgmr.msrb.gmra.mxu3 %v18143_v25  ;;  %v21456_v50 = vld [vmem:[#allocation57_spill] sm:$0xff]  ;;  %v9690_v22 = vadd.f32 %v21463_v14, %v9663_v39 }
0x1238   : > { %11315 = vmatpush.msrb.mxu3 %v18152_v34  ;;  %v9246_v59 = vadd.f32 %v21456_v50, %v9215_v58  ;;  %v10076_v42 = vadd.f32 %v21467_v32, %v10049_v8  ;;  %v10878_v58 = vadd.f32 0.0009, %v10876_v26  ;;  %v10862_v26 = vmul.f32 2.0, %v10854_v12 }
0x1239   : > { %11096 = vmatmul.f32.vlgmr.msra.gmra.mxu0 %v18131_v16  ;;  %v10853_v52 = vmul.f32 %v9690_v22, %v9690_v22 }
0x123a   : > { %11317 = vmatpush.msrb.mxu3 %v18175_v44  ;;  %v9277_v27 = vadd.f32 %v21460_v37, %v9246_v59  ;;  %v10880_v3 = vmul.f32 %v10878_v58, %v10874_v57 }
0x123b   : > { %11123 = vmatmul.f32.vlgmr.msra.gmra.mxu1 %v18131_v16  ;;  %v10859_v7 = vsub.f32 %v10462_v19, %v10853_v52 }
0x123c   : > { %v9304_v56 = vadd.f32 %v21465_v63, %v9277_v27  ;;  %17434 = vrcp.f32 %v10880_v3 }
0x123e   : > { %v10851_v4 = vmul.f32 %v9304_v56, %v9304_v56 }
0x123f   : > { %11033 = vmatmul.f32.vlgmr.msrb.gmra.mxu2 %v18137_v21  ;;  %11069 = vmatmul.f32.gmra.mxu3 %v18148_v30 }
0x1240   : > { %11286 = vmatpush.msrb.mxu2 %v18178_v45  ;;  %v10857_v10 = vsub.f32 %v10076_v42, %v10851_v4  ;;  %v10873_v29 = vadd.f32 %v10853_v52, %v10851_v4 }
0x1241   : > { %11100 = vmatmul.f32.gmra.mxu0 %v18134_v20 }
0x1242   : > { %11290 = vmatpush.msrb.mxu2 %v18189_v48  ;;  %v10877_v5 = vadd.f32 %v10859_v7, %v10857_v10  ;;  %v10875_v60 = vadd.f32 0.0001, %v10873_v29  ;;  %v17435_v59 = vpop.eup %17434  ;;  %v10855_v10 = vmul.f32 %v9690_v22, %v9304_v56  ;;  %v17487_v56 = vld [vmem:[%s18208_s15 + $0x48] sm:$0xff] }
0x1243   : > { %11127 = vmatmul.f32.gmra.mxu1 %v18134_v20  ;;  %v10884_v39 = vmul.f32 %v17435_v59, %v10880_v3 }
0x1244   : > { %v10879_v9 = vadd.f32 0.0009, %v10877_v5 }
0x1245   : > { %v10886_v35 = vsub.f32 2.0, %v10884_v39 }
0x1246   : > { %v10881_v11 = vmul.f32 %v10879_v9, %v10875_v60  ;;  %v19992_v60 = vld [vmem:[%s18208_s15 + $0x68] sm:$0xff] }
0x1247   : > { %11038 = vmatmul.f32.gmra.mxu2 %v18140_v24  ;;  %v10888_v15 = vmul.f32 %v17435_v59, %v10886_v35  ;;  %v17486_v59 = vld [vmem:[%s18208_s15 + $0x58] sm:$0xff]  ;;  %v17488_v35 = vld [vmem:[%s18208_s15 + $0x40] sm:$0xff] }
0x1248   : > { %17436 = vrcp.f32 %v10881_v11  ;;  %v10910_v22 = vmul.f32 0.38439733, %v17486_v59 }
0x1249   : > { %v10890_v63 = vmul.f32 %v10888_v15, %v10880_v3 }
0x124b   : > { %v10892_v7 = vsub.f32 2.0, %v10890_v63 }
0x124d   : > { %v10894_v29 = vmul.f32 %v10892_v7, %v10888_v15 }
0x124e   : > { %v17437_v18 = vpop.eup %17436 }
0x124f   : > { %v10885_v31 = vmul.f32 %v17437_v18, %v10881_v11 }
0x1251   : > { %v10887_v47 = vsub.f32 2.0, %v10885_v31 }
0x1253   : > { %v10889_v32 = vmul.f32 %v17437_v18, %v10887_v47 }
0x1255   : > { %v10891_v5 = vmul.f32 %v10889_v32, %v10881_v11  ;;  %v19998_v11 = vld [vmem:[%s18208_s15 + $0x60] sm:$0xff] }
0x1257   : > { %v10893_v39 = vsub.f32 2.0, %v10891_v5 }
0x1296   : > { %v10753_v2 = vpop.f32.mrf.mxu0 }
0x1298   : > { %v10783_v36 = vpop.f32.mrf.mxu1 }
0x129a   : > { %v10723_v38 = vpop.f32.mrf.mxu3 }
0x129e   : > { %v10758_v6 = vpop.f32.mrf.mxu0 }
0x12a0   : > { %v10789_v40 = vpop.f32.mrf.mxu1 }
0x12a2   : > { %v10684_v61 = vpop.f32.mrf.mxu2  ;;  %v10727_v50 = vpop.f32.mrf.mxu3 }
0x12a3   : > { %v10724_v28 = vadd.f32 %v10723_v38, %v10684_v61  ;;  %v10864_v38 = vadd.f32 0.0001, %v10862_v26 }
0x12a5   : > { %v10754_v37 = vadd.f32 %v10753_v2, %v10724_v28 }
0x12a6   : > { %v10965_v17 = vpop.f32.mrf.mxu0 }
0x12a7   : > { %v10784_v1 = vadd.f32 %v10783_v36, %v10754_v37  ;;  %v10863_v36 = vmul.f32 2.0, %v10855_v10  ;;  %v10911_v37 = vadd.f32 %v17488_v35, %v19998_v11 }
0x12a8   : > { %v11004_v14 = vpop.f32.mrf.mxu1 }
0x12a9   : > { %v10913_v63 = vmul.f32 0.30780134, %v10911_v37 }
0x12aa   : > { %v10692_v13 = vpop.f32.mrf.mxu2  ;;  %v10843_v27 = vpop.f32.mrf.mxu3 }
0x12ab   : > { %v10728_v62 = vadd.f32 %v10727_v50, %v10692_v13 }
0x12ad   : > { %v10759_v55 = vadd.f32 %v10758_v6, %v10728_v62  ;;  %v10912_v6 = vadd.f32 %v17487_v56, %v19992_v60 }
0x12ae   : > { %v10973_v0 = vpop.f32.mrf.mxu0 }
0x12af   : > { %v10790_v58 = vadd.f32 %v10789_v40, %v10759_v55  ;;  %v11005_v40 = vadd.f32 %v11004_v14, %v10965_v17  ;;  %v10914_v18 = vmul.f32 0.30780134, %v10912_v6 }
0x12b0   : > { %v11008_v3 = vpop.f32.mrf.mxu1 }
0x12b2   : > { %v10816_v53 = vpop.f32.mrf.mxu2  ;;  %v10847_v42 = vpop.f32.mrf.mxu3 }
0x12b3   : > { %v10817_v8 = vadd.f32 %v10816_v53, %v10784_v1  ;;  %v10916_v53 = vadd.f32 %v10914_v18, %v10910_v22 }
0x12b5   : > { %v10844_v19 = vadd.f32 %v10843_v27, %v10817_v8  ;;  %v10865_v27 = vadd.f32 0.0001, %v10863_v36  ;;  %v11341_v17 = vand.u32 4294901760, %v10916_v53 }
0x12b6   : > { %v11097_v15 = vpop.f32.mrf.mxu0 }
0x12b7   : > { %v10860_v52 = vsub.f32 %v10844_v19, %v10854_v12  ;;  %v17489_v12 = vld [vmem:[%s18208_s15 + $0x50] sm:$0xff]  ;;  %v10895_v19 = vmul.f32 %v10893_v39, %v10889_v32  ;;  %11342 = vmatpush.msra.mxu0 %v11341_v17 }
0x12b8   : > { %v10909_v8 = vmul.f32 0.38439733, %v17489_v12  ;;  %v11124_v47 = vpop.f32.mrf.mxu1 }
0x12b9   : > { %v10866_v4 = vmul.f32 2.0, %v10860_v52 }
0x12ba   : > { %v10820_v57 = vpop.f32.mrf.mxu2  ;;  %v11064_v28 = vpop.f32.mrf.mxu3  ;;  %v10915_v14 = vadd.f32 %v10913_v63, %v10909_v8 }
0x12bb   : > { %v10868_v23 = vadd.f32 0.0009, %v10866_v4  ;;  %v10821_v54 = vadd.f32 %v10820_v57, %v10790_v58  ;;  %v11377_v4 = vsub.f32 %v10916_v53, %v11341_v17  ;;  %v11009_v58 = vadd.f32 %v11008_v3, %v10973_v0 }
0x12bc   : > { %v11343_v7 = vand.u32 4294901760, %v10915_v14 }
0x12bd   : > { %v10870_v2 = vmul.f32 %v10868_v23, %v10864_v38  ;;  %v10848_v9 = vadd.f32 %v10847_v42, %v10821_v54  ;;  %v11378_v57 = vand.u32 4294901760, %v11377_v4 }
0x12be   : > { %11344 = vmatpush.msra.mxu0 %v11343_v7  ;;  %v11383_v54 = vsub.f32 %v10915_v14, %v11343_v7 }
0x12bf   : > { %v10896_v61 = vmul.f32 %v10894_v29, %v10870_v2  ;;  %v10861_v50 = vsub.f32 %v10848_v9, %v10855_v10  ;;  %v11379_v2 = vsub.f32 %v11377_v4, %v11378_v57  ;;  %v11101_v9 = vpop.f32.mrf.mxu0 }
0x12c0   : > { %v11384_v36 = vand.u32 4294901760, %v11383_v54  ;;  %v11128_v22 = vpop.f32.mrf.mxu1 }
0x12c1   : > { %17282 = vst.msk [vmem:[%s18598_s26 + $0x40] sm:$0xff] %vm830_vm0, %v10896_v61  ;;  %v10867_v13 = vmul.f32 2.0, %v10861_v50  ;;  %v11380_v50 = vand.u32 4294901760, %v11379_v2 }
0x12c2   : > { %v11034_v31 = vpop.f32.mrf.mxu2  ;;  %v11070_v23 = vpop.f32.mrf.mxu3  ;;  %v11385_v56 = vsub.f32 %v11383_v54, %v11384_v36 }
0x12c3   : > { %v10869_v62 = vadd.f32 0.0009, %v10867_v13  ;;  %v11035_v1 = vadd.f32 %v11034_v31, %v11005_v40  ;;  %11381 = vmatpush.msra.mxu1 %v11380_v50 }
0x12c4   : > { %v11386_v6 = vand.u32 4294901760, %v11385_v56  ;;  %v21481_v56 = vld [vmem:[#allocation45_spill] sm:$0xff] }
0x12c5   : > { %v10871_v55 = vmul.f32 %v10869_v62, %v10865_v27  ;;  %v11065_v26 = vadd.f32 %v11064_v28, %v11035_v1 }
0x12c6   : > { %11387 = vmatpush.msra.mxu1 %v11386_v6 }
0x12c7   : > { %v10897_v52 = vmul.f32 %v10895_v19, %v10871_v55  ;;  %v11098_v42 = vadd.f32 %v11097_v15, %v11065_v26 }
0x12c9   : > { %17283 = vst.msk [vmem:[%s18598_s26 + $0x48] sm:$0xff] %vm830_vm0, %v10897_v52  ;;  %v11125_v10 = vadd.f32 %v11124_v47, %v11098_v42 }
0x12ca   : > { %v11039_v38 = vpop.f32.mrf.mxu2 }
0x12cb   : > { %v11132_v5 = vsel %vm830_vm0, %v11125_v10, 0  ;;  %v11040_v32 = vadd.f32 %v11039_v38, %v11009_v58  ;;  %v21476_v10 = vld [vmem:[#allocation32_spill] sm:$0xff]  ;;  %v21477_v38 = vld [vmem:[#allocation38_spill] sm:$0xff] }
0x12cc   : > { %v11155_v29 = vand.u32 4294901760, %v11132_v5 }
0x12cd   : > { %v11071_v61 = vadd.f32 %v11070_v23, %v11040_v32 }
0x12ce   : > { %v11156_v59 = vsub.f32 %v11132_v5, %v11155_v29  ;;  %11199 = vmatmul.f32.vlgmr.msra.gmra.mxu3 %v11155_v29 }
0x12cf   : > { %v11102_v0 = vadd.f32 %v11101_v9, %v11071_v61  ;;  %11443 = vmatpush.msra.mxu3 %v11341_v17  ;;  %v21480_v9 = vld [vmem:[#allocation55_spill] sm:$0xff] }
0x12d0   : > { %v11157_v3 = vand.u32 4294901760, %v11156_v59  ;;  %11229 = vmatmul.f32.vlgmr.msrb.gmra.mxu0 %v11156_v59 }
0x12d1   : > { %v11129_v39 = vadd.f32 %v11128_v22, %v11102_v0  ;;  %11445 = vmatpush.msra.mxu3 %v11343_v7  ;;  %11476 = vmatpush.msrb.mxu0 %v11378_v57  ;;  %v10918_v57 = vmul.f32 0.38439733, %v21476_v10  ;;  %v10917_v0 = vmul.f32 0.38439733, %v21481_v56  ;;  %v21492_v10 = vld [vmem:[#allocation60_spill] sm:$0xff] }
0x12d2   : > { %v11158_v28 = vsub.f32 %v11156_v59, %v11157_v3  ;;  %11259 = vmatmul.f32.vlgmr.msrb.gmra.mxu1 %v11157_v3 }
0x12d3   : > { %v11135_v40 = vsel %vm830_vm0, %v11129_v39, 0  ;;  %11480 = vmatpush.msrb.mxu0 %v11384_v36  ;;  %11505 = vmatpush.msrb.mxu1 %v11341_v17 }
0x12d4   : > { %v11159_v13 = vand.u32 4294901760, %v11158_v28  ;;  %v11163_v18 = vand.u32 4294901760, %v11135_v40 }
0x12d5   : > { %11507 = vmatpush.msrb.mxu1 %v11343_v7  ;;  %v21474_v7 = vld [vmem:[#allocation26_spill] sm:$0xff] }
0x12d6   : > { %11160 = vmatmul.f32.vlgmr.msra.gmra.mxu2 %v11159_v13  ;;  %11203 = vmatmul.f32.gmra.mxu3 %v11163_v18  ;;  %v11164_v35 = vsub.f32 %v11135_v40, %v11163_v18  ;;  %v20059_v58 = vmul.f32 %v21474_v7, %v21474_v7 }
0x12d7   : > { %11413 = vmatpush.msra.mxu2 %v11377_v4 }
0x12d8   : > { %11234 = vmatmul.f32.gmra.mxu0 %v11164_v35  ;;  %v11165_v37 = vand.u32 4294901760, %v11164_v35  ;;  %21475 = vst [vmem:[#allocation40_spill] sm:$0xff] %v20059_v58  ;;  %v10920_v23 = vadd.f32 %v20059_v58, %v21477_v38 }
0x12d9   : > { %11416 = vmatpush.msra.mxu2 %v11383_v54  ;;  %v21478_v54 = vld [vmem:[#allocation47_spill] sm:$0xff] }
0x12da   : > { %11265 = vmatmul.f32.gmra.mxu1 %v11165_v37  ;;  %v11166_v27 = vsub.f32 %v11164_v35, %v11165_v37  ;;  %v20066_v5 = vmul.f32 %v21478_v54, %v21478_v54 }
0x12dc   : > { %v11167_v31 = vand.u32 4294901760, %v11166_v27  ;;  %21479 = vst [vmem:[#allocation42_spill] sm:$0xff] %v20066_v5  ;;  %v10919_v36 = vadd.f32 %v20066_v5, %v21480_v9 }
0x12de   : > { %11168 = vmatmul.f32.gmra.mxu2 %v11167_v31  ;;  %11319 = vmatmul.f32.vlgmr.msrb.gmra.mxu3 %v11155_v29  ;;  %v10921_v3 = vmul.f32 0.30780134, %v10919_v36 }
0x12df   : > { %11577 = vmatpush.msrb.mxu3 %v18193_v49 }
0x12e0   : > { %11350 = vmatmul.f32.vlgmr.msra.gmra.mxu0 %v18150_v33  ;;  %v10923_v40 = vadd.f32 %v10921_v3, %v10917_v0 }
0x12e1   : > { %11583 = vmatpush.msrb.mxu3 %v18199_v51  ;;  %11609 = vmatpush.msra.mxu0 %v18173_v43 }
0x12e2   : > { %11389 = vmatmul.f32.vlgmr.msra.gmra.mxu1 %v18131_v16  ;;  %v11729_v35 = vand.u32 4294901760, %v10923_v40 }
0x12e3   : > { %11612 = vmatpush.msra.mxu0 %v18181_v46  ;;  %11639 = vmatpush.msra.mxu1 %v18152_v34 }
0x12e5   : > { %11641 = vmatpush.msra.mxu1 %v18175_v44 }
0x12e6   : > { %11292 = vmatmul.f32.vlgmr.msrb.gmra.mxu2 %v11155_v29  ;;  %11323 = vmatmul.f32.gmra.mxu3 %v11163_v18  ;;  %v10922_v29 = vmul.f32 0.30780134, %v10920_v23 }
0x12e7   : > { %11538 = vmatpush.msrb.mxu2 %v18152_v34 }
0x12e8   : > { %11358 = vmatmul.f32.gmra.mxu0 %v18160_v41  ;;  %v10924_v22 = vadd.f32 %v10922_v29, %v10918_v57 }
0x12e9   : > { %11540 = vmatpush.msrb.mxu2 %v18175_v44 }
0x12ea   : > { %11393 = vmatmul.f32.gmra.mxu1 %v18134_v20  ;;  %v11727_v28 = vand.u32 4294901760, %v10924_v22 }
0x12ee   : > { %11296 = vmatmul.f32.gmra.mxu2 %v11163_v18  ;;  %11449 = vmatmul.f32.vlgmr.msra.gmra.mxu3 %v18143_v25  ;;  %v11763_v18 = vsub.f32 %v10924_v22, %v11727_v28 }
0x12ef   : > { %11701 = vmatpush.msra.mxu3 %v18152_v34 }
0x12f0   : > { %11482 = vmatmul.f32.vlgmr.msrb.gmra.mxu0 %v18131_v16  ;;  %v11764_v31 = vand.u32 4294901760, %v11763_v18 }
0x12f1   : > { %11703 = vmatpush.msra.mxu3 %v18175_v44  ;;  %11728 = vmatpush.msrb.mxu0 %v11727_v28 }
0x12f2   : > { %11509 = vmatmul.f32.vlgmr.msrb.gmra.mxu1 %v18131_v16  ;;  %v11765_v23 = vsub.f32 %v11763_v18, %v11764_v31 }
0x12f3   : > { %11730 = vmatpush.msrb.mxu0 %v11729_v35 }
0x12f4   : > { %v11766_v9 = vand.u32 4294901760, %v11765_v23 }
0x12f6   : > { %11419 = vmatmul.f32.vlgmr.msra.gmra.mxu2 %v18137_v21  ;;  %11455 = vmatmul.f32.gmra.mxu3 %v18148_v30 }
0x12f7   : > { %11672 = vmatpush.msra.mxu2 %v18178_v45  ;;  %11767 = vmatpush.msrb.mxu1 %v11766_v9 }
0x12f8   : > { %11486 = vmatmul.f32.gmra.mxu0 %v18134_v20 }
0x12f9   : > { %11676 = vmatpush.msra.mxu2 %v18189_v48 }
0x12fa   : > { %11513 = vmatmul.f32.gmra.mxu1 %v18134_v20 }
0x12fe   : > { %11424 = vmatmul.f32.gmra.mxu2 %v18140_v24 }
0x134d   : > { %v20035_v62 = vpop.f32.mrf.mxu0 }
0x134f   : > { %v20037_v1 = vpop.f32.mrf.mxu1 }
0x1351   : > { %v20033_v15 = vpop.f32.mrf.mxu3 }
0x1355   : > { %v20043_v8 = vpop.f32.mrf.mxu0 }
0x1356   : > { %21468 = vst [vmem:[#allocation43_spill] sm:$0xff] %v20043_v8 }
0x1357   : > { %v20045_v47 = vpop.f32.mrf.mxu1 }
0x1358   : > { %21469 = vst [vmem:[#allocation58_spill] sm:$0xff] %v20045_v47 }
0x1359   : > { %v20039_v53 = vpop.f32.mrf.mxu2  ;;  %v20041_v12 = vpop.f32.mrf.mxu3 }
0x135d   : > { %v11351_v19 = vpop.f32.mrf.mxu0 }
0x135f   : > { %v11390_v17 = vpop.f32.mrf.mxu1 }
0x1360   : > { %v11391_v2 = vadd.f32 %v11390_v17, %v11351_v19  ;;  %v11769_v19 = vsub.f32 %v10923_v40, %v11729_v35 }
0x1361   : > { %v20047_v63 = vpop.f32.mrf.mxu2  ;;  %v20049_v55 = vpop.f32.mrf.mxu3 }
0x1362   : > { %21470 = vst [vmem:[#allocation39_spill] sm:$0xff] %v20049_v55  ;;  %v11770_v54 = vand.u32 4294901760, %v11769_v19 }
0x1364   : > { %v11771_v36 = vsub.f32 %v11769_v19, %v11770_v54 }
0x1365   : > { %v11359_v52 = vpop.f32.mrf.mxu0 }
0x1367   : > { %v11394_v4 = vpop.f32.mrf.mxu1 }
0x1368   : > { %v11395_v37 = vadd.f32 %v11394_v4, %v11359_v52  ;;  %v11772_v4 = vand.u32 4294901760, %v11771_v36 }
0x1369   : > { %v20051_v26 = vpop.f32.mrf.mxu2  ;;  %v20053_v14 = vpop.f32.mrf.mxu3 }
0x136a   : > { %21471 = vst [vmem:[#allocation35_spill] sm:$0xff] %v20051_v26  ;;  %11773 = vmatpush.msrb.mxu1 %v11772_v4  ;;  %v21489_v4 = vld [vmem:[#allocation34_spill] sm:$0xff] }
0x136b   : > { %21472 = vst [vmem:[#allocation61_spill] sm:$0xff] %v20053_v14 }
0x136d   : > { %v11483_v50 = vpop.f32.mrf.mxu0 }
0x136f   : > { %v11510_v6 = vpop.f32.mrf.mxu1 }
0x1371   : > { %v20055_v42 = vpop.f32.mrf.mxu2  ;;  %v11450_v32 = vpop.f32.mrf.mxu3 }
0x1372   : > { %21473 = vst [vmem:[#allocation65_spill] sm:$0xff] %v20055_v42 }
0x1379   : > { %v11420_v61 = vpop.f32.mrf.mxu2  ;;  %v11456_v7 = vpop.f32.mrf.mxu3 }
0x137a   : > { %v11421_v59 = vadd.f32 %v11420_v61, %v11391_v2 }
0x137c   : > { %v11451_v39 = vadd.f32 %v11450_v32, %v11421_v59  ;;  %v11487_v32 = vpop.f32.mrf.mxu0 }
0x137e   : > { %v11484_v13 = vadd.f32 %v11483_v50, %v11451_v39  ;;  %v11514_v50 = vpop.f32.mrf.mxu1 }
0x1380   : > { %v11511_v27 = vadd.f32 %v11510_v6, %v11484_v13 }
0x1381   : > { %v11425_v17 = vpop.f32.mrf.mxu2 }
0x1382   : > { %v11518_v57 = vsel %vm830_vm0, %v11511_v27, 0  ;;  %v11426_v38 = vadd.f32 %v11425_v17, %v11395_v37 }
0x1383   : > { %v11541_v2 = vand.u32 4294901760, %v11518_v57 }
0x1384   : > { %v11457_v29 = vadd.f32 %v11456_v7, %v11426_v38 }
0x1385   : > { %v11542_v61 = vsub.f32 %v11518_v57, %v11541_v2  ;;  %11585 = vmatmul.f32.vlgmr.msrb.gmra.mxu3 %v11541_v2 }
0x1386   : > { %v11488_v52 = vadd.f32 %v11487_v32, %v11457_v29  ;;  %11829 = vmatpush.msrb.mxu3 %v11727_v28 }
0x1387   : > { %v11543_v59 = vand.u32 4294901760, %v11542_v61  ;;  %11615 = vmatmul.f32.vlgmr.msra.gmra.mxu0 %v11542_v61 }
0x1388   : > { %v11515_v22 = vadd.f32 %v11514_v50, %v11488_v52  ;;  %11831 = vmatpush.msrb.mxu3 %v11729_v35  ;;  %11862 = vmatpush.msra.mxu0 %v11764_v31  ;;  %v21488_v50 = vld [vmem:[#allocation44_spill] sm:$0xff] }
0x1389   : > { %v11544_v0 = vsub.f32 %v11542_v61, %v11543_v59  ;;  %11645 = vmatmul.f32.vlgmr.msra.gmra.mxu1 %v11543_v59  ;;  %v20123_v61 = vmul.f32 %v19992_v60, %v19992_v60  ;;  %v10926_v52 = vmul.f32 0.38439733, %v21488_v50  ;;  %v10925_v50 = vmul.f32 0.38439733, %v21492_v10 }
0x138a   : > { %v11521_v3 = vsel %vm830_vm0, %v11515_v22, 0  ;;  %11891 = vmatpush.msra.mxu1 %v11727_v28  ;;  %11866 = vmatpush.msra.mxu0 %v11770_v54  ;;  %v20130_v22 = vmul.f32 %v19998_v11, %v19998_v11 }
0x138b   : > { %v11545_v6 = vand.u32 4294901760, %v11544_v0  ;;  %v11549_v39 = vand.u32 4294901760, %v11521_v3  ;;  %21487 = vst [vmem:[#allocation29_spill] sm:$0xff] %v20123_v61  ;;  %v10928_v59 = vadd.f32 %v20123_v61, %v21489_v4 }
0x138c   : > { %11893 = vmatpush.msra.mxu1 %v11729_v35  ;;  %21490 = vst [vmem:[#allocation63_spill] sm:$0xff] %v20130_v22 }
0x138d   : > { %11546 = vmatmul.f32.vlgmr.msrb.gmra.mxu2 %v11545_v6  ;;  %11589 = vmatmul.f32.gmra.mxu3 %v11549_v39  ;;  %v11550_v40 = vsub.f32 %v11521_v3, %v11549_v39  ;;  %v10930_v6 = vmul.f32 0.30780134, %v10928_v59 }
0x138e   : > { %11799 = vmatpush.msrb.mxu2 %v11763_v18 }
0x138f   : > { %11620 = vmatmul.f32.gmra.mxu0 %v11550_v40  ;;  %v11551_v13 = vand.u32 4294901760, %v11550_v40  ;;  %v10932_v5 = vadd.f32 %v10930_v6, %v10926_v52 }
0x1390   : > { %11802 = vmatpush.msrb.mxu2 %v11769_v19 }
0x1391   : > { %11651 = vmatmul.f32.gmra.mxu1 %v11551_v13  ;;  %v11552_v37 = vsub.f32 %v11550_v40, %v11551_v13  ;;  %v12113_v4 = vand.u32 4294901760, %v10932_v5 }
0x1393   : > { %v11553_v27 = vand.u32 4294901760, %v11552_v37  ;;  %v12149_v42 = vsub.f32 %v10932_v5, %v12113_v4 }
0x1395   : > { %11554 = vmatmul.f32.gmra.mxu2 %v11553_v27  ;;  %11705 = vmatmul.f32.vlgmr.msra.gmra.mxu3 %v11541_v2  ;;  %v12150_v59 = vand.u32 4294901760, %v12149_v42 }
0x1396   : > { %11963 = vmatpush.msra.mxu3 %v18193_v49 }
0x1397   : > { %11736 = vmatmul.f32.vlgmr.msrb.gmra.mxu0 %v18150_v33  ;;  %v12151_v6 = vsub.f32 %v12149_v42, %v12150_v59 }
0x1398   : > { %11969 = vmatpush.msra.mxu3 %v18199_v51  ;;  %11995 = vmatpush.msrb.mxu0 %v18173_v43 }
0x1399   : > { %11775 = vmatmul.f32.vlgmr.msrb.gmra.mxu1 %v18131_v16 }
0x139a   : > { %11998 = vmatpush.msrb.mxu0 %v18181_v46  ;;  %12025 = vmatpush.msrb.mxu1 %v18152_v34 }
0x139c   : > { %12027 = vmatpush.msrb.mxu1 %v18175_v44 }
0x139d   : > { %11678 = vmatmul.f32.vlgmr.msra.gmra.mxu2 %v11541_v2  ;;  %11709 = vmatmul.f32.gmra.mxu3 %v11549_v39 }
0x139e   : > { %11924 = vmatpush.msra.mxu2 %v18152_v34 }
0x139f   : > { %11744 = vmatmul.f32.gmra.mxu0 %v18160_v41 }
0x13a0   : > { %11926 = vmatpush.msra.mxu2 %v18175_v44 }
0x13a1   : > { %11779 = vmatmul.f32.gmra.mxu1 %v18134_v20 }
0x13a5   : > { %11682 = vmatmul.f32.gmra.mxu2 %v11549_v39  ;;  %11835 = vmatmul.f32.vlgmr.msrb.gmra.mxu3 %v18143_v25  ;;  %v21491_v39 = vld [vmem:[#allocation59_spill] sm:$0xff] }
0x13a6   : > { %12087 = vmatpush.msrb.mxu3 %v18152_v34  ;;  %v10927_v40 = vadd.f32 %v20130_v22, %v21491_v39 }
0x13a7   : > { %11868 = vmatmul.f32.vlgmr.msra.gmra.mxu0 %v18131_v16 }
0x13a8   : > { %12089 = vmatpush.msrb.mxu3 %v18175_v44  ;;  %v10929_v58 = vmul.f32 0.30780134, %v10927_v40  ;;  %12114 = vmatpush.msra.mxu0 %v12113_v4 }
0x13a9   : > { %11895 = vmatmul.f32.vlgmr.msra.gmra.mxu1 %v18131_v16 }
0x13aa   : > { %v10931_v61 = vadd.f32 %v10929_v58, %v10925_v50  ;;  %v12152_v58 = vand.u32 4294901760, %v12151_v6 }
0x13ac   : > { %12153 = vmatpush.msra.mxu1 %v12152_v58 }
0x13ad   : > { %11805 = vmatmul.f32.vlgmr.msrb.gmra.mxu2 %v18137_v21  ;;  %11841 = vmatmul.f32.gmra.mxu3 %v18148_v30 }
0x13ae   : > { %12058 = vmatpush.msrb.mxu2 %v18178_v45 }
0x13af   : > { %11872 = vmatmul.f32.gmra.mxu0 %v18134_v20 }
0x13b0   : > { %12062 = vmatpush.msrb.mxu2 %v18189_v48 }
0x13b1   : > { %11899 = vmatmul.f32.gmra.mxu1 %v18134_v20 }
0x13b5   : > { %11810 = vmatmul.f32.gmra.mxu2 %v18140_v24 }
0x1404   : > { %v20099_v18 = vpop.f32.mrf.mxu0 }
0x1406   : > { %v20101_v35 = vpop.f32.mrf.mxu1 }
0x1408   : > { %v20097_v28 = vpop.f32.mrf.mxu3 }
0x140c   : > { %v20107_v17 = vpop.f32.mrf.mxu0 }
0x140d   : > { %21482 = vst [vmem:[#allocation33_spill] sm:$0xff] %v20107_v17 }
0x140e   : > { %v20109_v7 = vpop.f32.mrf.mxu1 }
0x140f   : > { %21483 = vst [vmem:[#allocation50_spill] sm:$0xff] %v20109_v7 }
0x1410   : > { %v20103_v31 = vpop.f32.mrf.mxu2  ;;  %v20105_v19 = vpop.f32.mrf.mxu3 }
0x1414   : > { %v11737_v23 = vpop.f32.mrf.mxu0 }
0x1416   : > { %v11776_v2 = vpop.f32.mrf.mxu1 }
0x1417   : > { %v11777_v3 = vadd.f32 %v11776_v2, %v11737_v23 }
0x1418   : > { %v20111_v57 = vpop.f32.mrf.mxu2  ;;  %v20113_v38 = vpop.f32.mrf.mxu3 }
0x1419   : > { %21484 = vst [vmem:[#allocation62_spill] sm:$0xff] %v20113_v38 }
0x141c   : > { %v11745_v29 = vpop.f32.mrf.mxu0 }
0x141e   : > { %v11780_v36 = vpop.f32.mrf.mxu1 }
0x141f   : > { %v11781_v23 = vadd.f32 %v11780_v36, %v11745_v29 }
0x1420   : > { %v20115_v54 = vpop.f32.mrf.mxu2  ;;  %v20117_v32 = vpop.f32.mrf.mxu3 }
0x1421   : > { %21485 = vst [vmem:[#allocation49_spill] sm:$0xff] %v20117_v32 }
0x1424   : > { %v11869_v37 = vpop.f32.mrf.mxu0 }
0x1426   : > { %v11896_v56 = vpop.f32.mrf.mxu1 }
0x1428   : > { %v20119_v9 = vpop.f32.mrf.mxu2  ;;  %v11836_v0 = vpop.f32.mrf.mxu3 }
0x1429   : > { %21486 = vst [vmem:[#allocation41_spill] sm:$0xff] %v20119_v9  ;;  %v12115_v9 = vand.u32 4294901760, %v10931_v61 }
0x142b   : > { %12116 = vmatpush.msra.mxu0 %v12115_v9  ;;  %v12155_v22 = vsub.f32 %v10931_v61, %v12115_v9 }
0x142c   : > { %v11873_v40 = vpop.f32.mrf.mxu0 }
0x142e   : > { %v11900_v5 = vpop.f32.mrf.mxu1 }
0x1430   : > { %v11806_v13 = vpop.f32.mrf.mxu2  ;;  %v11842_v39 = vpop.f32.mrf.mxu3 }
0x1431   : > { %v11807_v27 = vadd.f32 %v11806_v13, %v11777_v3 }
0x1433   : > { %v11837_v14 = vadd.f32 %v11836_v0, %v11807_v27  ;;  %v12156_v0 = vand.u32 4294901760, %v12155_v22 }
0x1435   : > { %v11870_v32 = vadd.f32 %v11869_v37, %v11837_v14  ;;  %v12157_v50 = vsub.f32 %v12155_v22, %v12156_v0 }
0x1437   : > { %v11897_v2 = vadd.f32 %v11896_v56, %v11870_v32  ;;  %v12158_v32 = vand.u32 4294901760, %v12157_v50 }
0x1438   : > { %v11811_v47 = vpop.f32.mrf.mxu2 }
0x1439   : > { %v11904_v52 = vsel %vm830_vm0, %v11897_v2, 0  ;;  %v11812_v3 = vadd.f32 %v11811_v47, %v11781_v23  ;;  %12159 = vmatpush.msra.mxu1 %v12158_v32  ;;  %v20186_v32 = vld [vmem:[%s18098_s22 + $0x68] sm:$0xff] }
0x143a   : > { %v11927_v13 = vand.u32 4294901760, %v11904_v52 }
0x143b   : > { %v11843_v27 = vadd.f32 %v11842_v39, %v11812_v3 }
0x143c   : > { %v11928_v14 = vsub.f32 %v11904_v52, %v11927_v13  ;;  %11971 = vmatmul.f32.vlgmr.msra.gmra.mxu3 %v11927_v13 }
0x143d   : > { %v11874_v29 = vadd.f32 %v11873_v40, %v11843_v27  ;;  %12215 = vmatpush.msra.mxu3 %v12113_v4 }
0x143e   : > { %v11929_v56 = vand.u32 4294901760, %v11928_v14  ;;  %12001 = vmatmul.f32.vlgmr.msrb.gmra.mxu0 %v11928_v14 }
0x143f   : > { %v11901_v36 = vadd.f32 %v11900_v5, %v11874_v29  ;;  %12217 = vmatpush.msra.mxu3 %v12115_v9  ;;  %12248 = vmatpush.msrb.mxu0 %v12150_v59 }
0x1440   : > { %v11930_v47 = vsub.f32 %v11928_v14, %v11929_v56  ;;  %12031 = vmatmul.f32.vlgmr.msrb.gmra.mxu1 %v11929_v56 }
0x1441   : > { %v11907_v61 = vsel %vm830_vm0, %v11901_v36, 0  ;;  %12252 = vmatpush.msrb.mxu0 %v12156_v0  ;;  %12277 = vmatpush.msrb.mxu1 %v12113_v4  ;;  %v20190_v36 = vmul.f32 %v20186_v32, %v19992_v60 }
0x1442   : > { %v11931_v37 = vand.u32 4294901760, %v11930_v47  ;;  %v11935_v23 = vand.u32 4294901760, %v11907_v61  ;;  %v21503_v47 = vld [vmem:[#allocation46_spill] sm:$0xff] }
0x1443   : > { %12279 = vmatpush.msrb.mxu1 %v12115_v9  ;;  %21502 = vst [vmem:[#allocation51_spill] sm:$0xff] %v20190_v36 }
0x1444   : > { %11932 = vmatmul.f32.vlgmr.msra.gmra.mxu2 %v11931_v37  ;;  %11975 = vmatmul.f32.gmra.mxu3 %v11935_v23  ;;  %v11936_v2 = vsub.f32 %v11907_v61, %v11935_v23  ;;  %v10934_v61 = vmul.f32 0.38439733, %v21503_v47  ;;  %v21504_v37 = vld [vmem:[#allocation27_spill] sm:$0xff] }
0x1445   : > { %12185 = vmatpush.msra.mxu2 %v12149_v42  ;;  %v21507_v47 = vld [vmem:[#allocation31_spill] sm:$0xff] }
0x1446   : > { %12006 = vmatmul.f32.gmra.mxu0 %v11936_v2  ;;  %v11937_v39 = vand.u32 4294901760, %v11936_v2 }
0x1447   : > { %12188 = vmatpush.msra.mxu2 %v12155_v22 }
0x1448   : > { %12037 = vmatmul.f32.gmra.mxu1 %v11937_v39  ;;  %v11938_v52 = vsub.f32 %v11936_v2, %v11937_v39  ;;  %v20196_v2 = vld [vmem:[%s18098_s22 + $0x60] sm:$0xff] }
0x1449   : > { %v20200_v39 = vmul.f32 %v20196_v2, %v19998_v11 }
0x144a   : > { %v11939_v59 = vand.u32 4294901760, %v11938_v52 }
0x144b   : > { %21505 = vst [vmem:[#allocation30_spill] sm:$0xff] %v20200_v39 }
0x144c   : > { %11940 = vmatmul.f32.gmra.mxu2 %v11939_v59  ;;  %12091 = vmatmul.f32.vlgmr.msrb.gmra.mxu3 %v11927_v13 }
0x144d   : > { %12349 = vmatpush.msrb.mxu3 %v18193_v49 }
0x144e   : > { %12122 = vmatmul.f32.vlgmr.msra.gmra.mxu0 %v18150_v33 }
0x144f   : > { %12355 = vmatpush.msrb.mxu3 %v18199_v51  ;;  %12381 = vmatpush.msra.mxu0 %v18173_v43 }
0x1450   : > { %12161 = vmatmul.f32.vlgmr.msra.gmra.mxu1 %v18131_v16 }
0x1451   : > { %12384 = vmatpush.msra.mxu0 %v18181_v46  ;;  %12411 = vmatpush.msra.mxu1 %v18152_v34 }
0x1453   : > { %12413 = vmatpush.msra.mxu1 %v18175_v44 }
0x1454   : > { %12064 = vmatmul.f32.vlgmr.msrb.gmra.mxu2 %v11927_v13  ;;  %12095 = vmatmul.f32.gmra.mxu3 %v11935_v23 }
0x1455   : > { %12310 = vmatpush.msrb.mxu2 %v18152_v34 }
0x1456   : > { %12130 = vmatmul.f32.gmra.mxu0 %v18160_v41 }
0x1457   : > { %12312 = vmatpush.msrb.mxu2 %v18175_v44 }
0x1458   : > { %12165 = vmatmul.f32.gmra.mxu1 %v18134_v20 }
0x145c   : > { %12068 = vmatmul.f32.gmra.mxu2 %v11935_v23  ;;  %12221 = vmatmul.f32.vlgmr.msra.gmra.mxu3 %v18143_v25  ;;  %v10936_v23 = vadd.f32 %v20190_v36, %v21504_v37 }
0x145d   : > { %12473 = vmatpush.msra.mxu3 %v18152_v34 }
0x145e   : > { %12254 = vmatmul.f32.vlgmr.msrb.gmra.mxu0 %v18131_v16  ;;  %v10938_v10 = vmul.f32 0.30780134, %v10936_v23 }
0x145f   : > { %12475 = vmatpush.msra.mxu3 %v18175_v44 }
0x1460   : > { %12281 = vmatmul.f32.vlgmr.msrb.gmra.mxu1 %v18131_v16  ;;  %v10940_v55 = vadd.f32 %v10938_v10, %v10934_v61 }
0x1464   : > { %12191 = vmatmul.f32.vlgmr.msra.gmra.mxu2 %v18137_v21  ;;  %12227 = vmatmul.f32.gmra.mxu3 %v18148_v30 }
0x1465   : > { %12444 = vmatpush.msra.mxu2 %v18178_v45 }
0x1466   : > { %12258 = vmatmul.f32.gmra.mxu0 %v18134_v20 }
0x1467   : > { %12448 = vmatpush.msra.mxu2 %v18189_v48 }
0x1468   : > { %12285 = vmatmul.f32.gmra.mxu1 %v18134_v20 }
0x146c   : > { %12196 = vmatmul.f32.gmra.mxu2 %v18140_v24 }
0x14bb   : > { %v20163_v9 = vpop.f32.mrf.mxu0 }
0x14bd   : > { %v20165_v22 = vpop.f32.mrf.mxu1 }
0x14be   : > { %21493 = vst [vmem:[#allocation57_spill] sm:$0xff] %v20165_v22 }
0x14bf   : > { %v20161_v42 = vpop.f32.mrf.mxu3 }
0x14c3   : > { %v20171_v6 = vpop.f32.mrf.mxu0 }
0x14c4   : > { %21495 = vst [vmem:[#allocation37_spill] sm:$0xff] %v20171_v6  ;;  %v10933_v6 = vmul.f32 0.38439733, %v21507_v47 }
0x14c5   : > { %v20173_v13 = vpop.f32.mrf.mxu1 }
0x14c6   : > { %21496 = vst [vmem:[#allocation53_spill] sm:$0xff] %v20173_v13 }
0x14c7   : > { %v20167_v4 = vpop.f32.mrf.mxu2  ;;  %v20169_v3 = vpop.f32.mrf.mxu3 }
0x14c8   : > { %21494 = vst [vmem:[#allocation36_spill] sm:$0xff] %v20169_v3 }
0x14cb   : > { %v12123_v27 = vpop.f32.mrf.mxu0 }
0x14cd   : > { %v12162_v14 = vpop.f32.mrf.mxu1 }
0x14ce   : > { %v12163_v59 = vadd.f32 %v12162_v14, %v12123_v27 }
0x14cf   : > { %v20175_v40 = vpop.f32.mrf.mxu2  ;;  %v20177_v0 = vpop.f32.mrf.mxu3 }
0x14d0   : > { %21497 = vst [vmem:[#allocation28_spill] sm:$0xff] %v20175_v40 }
0x14d1   : > { %21498 = vst [vmem:[#allocation52_spill] sm:$0xff] %v20177_v0 }
0x14d3   : > { %v12131_v50 = vpop.f32.mrf.mxu0 }
0x14d5   : > { %v12166_v56 = vpop.f32.mrf.mxu1 }
0x14d6   : > { %v12167_v27 = vadd.f32 %v12166_v56, %v12131_v50 }
0x14d7   : > { %v20179_v58 = vpop.f32.mrf.mxu2  ;;  %v20181_v5 = vpop.f32.mrf.mxu3 }
0x14d8   : > { %21499 = vst [vmem:[#allocation66_spill] sm:$0xff] %v20179_v58  ;;  %v12499_v58 = vand.u32 4294901760, %v10940_v55 }
0x14d9   : > { %21500 = vst [vmem:[#allocation64_spill] sm:$0xff] %v20181_v5  ;;  %v21506_v5 = vld [vmem:[#allocation48_spill] sm:$0xff] }
0x14da   : > { %12500 = vmatpush.msrb.mxu0 %v12499_v58  ;;  %v12535_v11 = vsub.f32 %v10940_v55, %v12499_v58 }
0x14db   : > { %v12255_v60 = vpop.f32.mrf.mxu0 }
0x14dc   : > { %v12536_v23 = vand.u32 4294901760, %v12535_v11 }
0x14dd   : > { %v12282_v37 = vpop.f32.mrf.mxu1 }
0x14de   : > { %v12537_v61 = vsub.f32 %v12535_v11, %v12536_v23 }
0x14df   : > { %v20183_v29 = vpop.f32.mrf.mxu2  ;;  %v12222_v52 = vpop.f32.mrf.mxu3 }
0x14e0   : > { %21501 = vst [vmem:[#allocation56_spill] sm:$0xff] %v20183_v29  ;;  %v10935_v29 = vadd.f32 %v20200_v39, %v21506_v5 }
0x14e2   : > { %v10937_v7 = vmul.f32 0.30780134, %v10935_v29 }
0x14e4   : > { %v10939_v38 = vadd.f32 %v10937_v7, %v10933_v6  ;;  %v12538_v7 = vand.u32 4294901760, %v12537_v61 }
0x14e5   : > { %v12286_v55 = vpop.f32.mrf.mxu1 }
0x14e6   : > { %v12501_v22 = vand.u32 4294901760, %v10939_v38  ;;  %12539 = vmatpush.msrb.mxu1 %v12538_v7 }
0x14e7   : > { %v12192_v13 = vpop.f32.mrf.mxu2  ;;  %v12228_v26 = vpop.f32.mrf.mxu3 }
0x14e8   : > { %v12193_v0 = vadd.f32 %v12192_v13, %v12163_v59  ;;  %12502 = vmatpush.msrb.mxu0 %v12501_v22  ;;  %v12541_v5 = vsub.f32 %v10939_v38, %v12501_v22 }
0x14ea   : > { %v12223_v36 = vadd.f32 %v12222_v52, %v12193_v0  ;;  %v12542_v29 = vand.u32 4294901760, %v12541_v5  ;;  %v12259_v0 = vpop.f32.mrf.mxu0 }
0x14ec   : > { %v12256_v8 = vadd.f32 %v12255_v60, %v12223_v36  ;;  %v12543_v6 = vsub.f32 %v12541_v5, %v12542_v29 }
0x14ee   : > { %v12283_v14 = vadd.f32 %v12282_v37, %v12256_v8  ;;  %v12544_v8 = vand.u32 4294901760, %v12543_v6 }
0x14ef   : > { %v12197_v39 = vpop.f32.mrf.mxu2 }
0x14f0   : > { %v12290_v10 = vsel %vm830_vm0, %v12283_v14, 0  ;;  %v12198_v13 = vadd.f32 %v12197_v39, %v12167_v27  ;;  %12545 = vmatpush.msrb.mxu1 %v12544_v8 }
0x14f1   : > { %v12313_v59 = vand.u32 4294901760, %v12290_v10 }
0x14f2   : > { %v12229_v52 = vadd.f32 %v12228_v26, %v12198_v13 }
0x14f3   : > { %v12314_v36 = vsub.f32 %v12290_v10, %v12313_v59  ;;  %12357 = vmatmul.f32.vlgmr.msrb.gmra.mxu3 %v12313_v59 }
0x14f4   : > { %v12260_v50 = vadd.f32 %v12259_v0, %v12229_v52  ;;  %12601 = vmatpush.msrb.mxu3 %v12499_v58 }
0x14f5   : > { %v12315_v38 = vand.u32 4294901760, %v12314_v36  ;;  %12387 = vmatmul.f32.vlgmr.msra.gmra.mxu0 %v12314_v36 }
0x14f6   : > { %v12287_v56 = vadd.f32 %v12286_v55, %v12260_v50  ;;  %12603 = vmatpush.msrb.mxu3 %v12501_v22  ;;  %12634 = vmatpush.msra.mxu0 %v12536_v23 }
0x14f7   : > { %v12316_v39 = vsub.f32 %v12314_v36, %v12315_v38  ;;  %12417 = vmatmul.f32.vlgmr.msra.gmra.mxu1 %v12315_v38  ;;  %v20256_v38 = vld [vmem:[%s18098_s22 + $0x78] sm:$0xff] }
0x14f8   : > { %v12293_v60 = vsel %vm830_vm0, %v12287_v56, 0  ;;  %12663 = vmatpush.msra.mxu1 %v12499_v58  ;;  %12638 = vmatpush.msra.mxu0 %v12542_v29  ;;  %21515 = vst [vmem:[#allocation27_spill] sm:$0xff] %v20256_v38  ;;  %v12923_v56 = vmul.f32 0.38439733, %v20186_v32 }
0x14f9   : > { %v12317_v26 = vand.u32 4294901760, %v12316_v39  ;;  %v12321_v37 = vand.u32 4294901760, %v12293_v60  ;;  %v17492_v39 = vld [vmem:[%s18098_s22 + $0x58] sm:$0xff] }
0x14fa   : > { %12665 = vmatpush.msra.mxu1 %v12501_v22 }
0x14fb   : > { %12318 = vmatmul.f32.vlgmr.msrb.gmra.mxu2 %v12317_v26  ;;  %12361 = vmatmul.f32.gmra.mxu3 %v12321_v37  ;;  %v12322_v27 = vsub.f32 %v12293_v60, %v12321_v37  ;;  %v12925_v60 = vadd.f32 %v17492_v39, %v20256_v38 }
0x14fc   : > { %12571 = vmatpush.msrb.mxu2 %v12535_v11 }
0x14fd   : > { %12392 = vmatmul.f32.gmra.mxu0 %v12322_v27  ;;  %v12323_v14 = vand.u32 4294901760, %v12322_v27 }
0x14fe   : > { %12574 = vmatpush.msrb.mxu2 %v12541_v5 }
0x14ff   : > { %12423 = vmatmul.f32.gmra.mxu1 %v12323_v14  ;;  %v12324_v10 = vsub.f32 %v12322_v27, %v12323_v14  ;;  %v12927_v14 = vmul.f32 0.30780134, %v12925_v60 }
0x1501   : > { %v12325_v13 = vand.u32 4294901760, %v12324_v10  ;;  %v17493_v10 = vld [vmem:[%s18098_s22 + $0x50] sm:$0xff] }
0x1503   : > { %12326 = vmatmul.f32.gmra.mxu2 %v12325_v13  ;;  %12477 = vmatmul.f32.vlgmr.msra.gmra.mxu3 %v12313_v59 }
0x1504   : > { %12735 = vmatpush.msra.mxu3 %v18193_v49 }
0x1505   : > { %12508 = vmatmul.f32.vlgmr.msrb.gmra.mxu0 %v18150_v33 }
0x1506   : > { %12741 = vmatpush.msra.mxu3 %v18199_v51  ;;  %12767 = vmatpush.msrb.mxu0 %v18173_v43 }
0x1507   : > { %12547 = vmatmul.f32.vlgmr.msrb.gmra.mxu1 %v18131_v16 }
0x1508   : > { %12770 = vmatpush.msrb.mxu0 %v18181_v46  ;;  %12797 = vmatpush.msrb.mxu1 %v18152_v34 }
0x150a   : > { %12799 = vmatpush.msrb.mxu1 %v18175_v44 }
0x150b   : > { %12450 = vmatmul.f32.vlgmr.msra.gmra.mxu2 %v12313_v59  ;;  %12481 = vmatmul.f32.gmra.mxu3 %v12321_v37 }
0x150c   : > { %12696 = vmatpush.msra.mxu2 %v18152_v34 }
0x150d   : > { %12516 = vmatmul.f32.gmra.mxu0 %v18160_v41 }
0x150e   : > { %12698 = vmatpush.msra.mxu2 %v18175_v44 }
0x150f   : > { %12551 = vmatmul.f32.gmra.mxu1 %v18134_v20 }
0x1513   : > { %12454 = vmatmul.f32.gmra.mxu2 %v12321_v37  ;;  %12607 = vmatmul.f32.vlgmr.msrb.gmra.mxu3 %v18143_v25  ;;  %v20262_v37 = vld [vmem:[%s18098_s22 + $0x70] sm:$0xff] }
0x1514   : > { %12859 = vmatpush.msrb.mxu3 %v18152_v34  ;;  %21516 = vst [vmem:[#allocation48_spill] sm:$0xff] %v20262_v37  ;;  %v12924_v13 = vadd.f32 %v17493_v10, %v20262_v37 }
0x1515   : > { %12640 = vmatmul.f32.vlgmr.msra.gmra.mxu0 %v18131_v16 }
0x1516   : > { %12861 = vmatpush.msrb.mxu3 %v18175_v44 }
0x1517   : > { %12667 = vmatmul.f32.vlgmr.msra.gmra.mxu1 %v18131_v16 }
0x151b   : > { %12577 = vmatmul.f32.vlgmr.msrb.gmra.mxu2 %v18137_v21  ;;  %12613 = vmatmul.f32.gmra.mxu3 %v18148_v30 }
0x151c   : > { %12830 = vmatpush.msrb.mxu2 %v18178_v45 }
0x151d   : > { %12644 = vmatmul.f32.gmra.mxu0 %v18134_v20 }
0x151e   : > { %12834 = vmatpush.msrb.mxu2 %v18189_v48 }
0x151f   : > { %12671 = vmatmul.f32.gmra.mxu1 %v18134_v20 }
0x1523   : > { %12582 = vmatmul.f32.gmra.mxu2 %v18140_v24 }
0x1572   : > { %v20233_v58 = vpop.f32.mrf.mxu0 }
0x1574   : > { %v20235_v11 = vpop.f32.mrf.mxu1 }
0x1575   : > { %21508 = vst [vmem:[#allocation54_spill] sm:$0xff] %v20235_v11 }
0x1576   : > { %v20231_v22 = vpop.f32.mrf.mxu3 }
0x157a   : > { %v20241_v61 = vpop.f32.mrf.mxu0 }
0x157b   : > { %21509 = vst [vmem:[#allocation26_spill] sm:$0xff] %v20241_v61 }
0x157c   : > { %v20243_v29 = vpop.f32.mrf.mxu1 }
0x157d   : > { %21510 = vst [vmem:[#allocation38_spill] sm:$0xff] %v20243_v29 }
0x157e   : > { %v20237_v23 = vpop.f32.mrf.mxu2  ;;  %v20239_v5 = vpop.f32.mrf.mxu3 }
0x1582   : > { %v12509_v52 = vpop.f32.mrf.mxu0 }
0x1584   : > { %v12548_v6 = vpop.f32.mrf.mxu1 }
0x1585   : > { %v12549_v27 = vadd.f32 %v12548_v6, %v12509_v52 }
0x1586   : > { %v20245_v59 = vpop.f32.mrf.mxu2  ;;  %v20247_v0 = vpop.f32.mrf.mxu3 }
0x1587   : > { %21511 = vst [vmem:[#allocation47_spill] sm:$0xff] %v20247_v0  ;;  %v12922_v0 = vmul.f32 0.38439733, %v20196_v2 }
0x158a   : > { %v12517_v55 = vpop.f32.mrf.mxu0 }
0x158c   : > { %v12552_v8 = vpop.f32.mrf.mxu1 }
0x158d   : > { %v12553_v52 = vadd.f32 %v12552_v8, %v12517_v55 }
0x158e   : > { %v20249_v7 = vpop.f32.mrf.mxu2  ;;  %v20251_v36 = vpop.f32.mrf.mxu3 }
0x158f   : > { %21512 = vst [vmem:[#allocation55_spill] sm:$0xff] %v20249_v7  ;;  %v12926_v7 = vmul.f32 0.30780134, %v12924_v13 }
0x1590   : > { %21513 = vst [vmem:[#allocation34_spill] sm:$0xff] %v20251_v36 }
0x1591   : > { %v12928_v40 = vadd.f32 %v12926_v7, %v12922_v0 }
0x1592   : > { %v12641_v36 = vpop.f32.mrf.mxu0 }
0x1593   : > { %v12978_v17 = vand.u32 4294901760, %v12928_v40 }
0x1594   : > { %v12668_v61 = vpop.f32.mrf.mxu1 }
0x1595   : > { %v13018_v37 = vsub.f32 %v12928_v40, %v12978_v17 }
0x1596   : > { %v20253_v50 = vpop.f32.mrf.mxu2  ;;  %v12608_v26 = vpop.f32.mrf.mxu3 }
0x1597   : > { %21514 = vst [vmem:[#allocation59_spill] sm:$0xff] %v20253_v50  ;;  %v12929_v50 = vadd.f32 %v12927_v14, %v12923_v56 }
0x1599   : > { %v12976_v3 = vand.u32 4294901760, %v12929_v50 }
0x159a   : > { %v12645_v14 = vpop.f32.mrf.mxu0 }
0x159b   : > { %12977 = vmatpush.msra.mxu0 %v12976_v3  ;;  %v13012_v38 = vsub.f32 %v12929_v50, %v12976_v3 }
0x159d   : > { %v13013_v60 = vand.u32 4294901760, %v13012_v38  ;;  %12979 = vmatpush.msra.mxu0 %v12978_v17 }
0x159e   : > { %v12578_v47 = vpop.f32.mrf.mxu2  ;;  %v12614_v10 = vpop.f32.mrf.mxu3 }
0x159f   : > { %v12579_v29 = vadd.f32 %v12578_v47, %v12549_v27  ;;  %v13014_v2 = vsub.f32 %v13012_v38, %v13013_v60 }
0x15a1   : > { %v12609_v32 = vadd.f32 %v12608_v26, %v12579_v29  ;;  %v13019_v29 = vand.u32 4294901760, %v13018_v37  ;;  %v13015_v0 = vand.u32 4294901760, %v13014_v2 }
0x15a3   : > { %v12642_v39 = vadd.f32 %v12641_v36, %v12609_v32  ;;  %v12672_v36 = vpop.f32.mrf.mxu1  ;;  %v13020_v50 = vsub.f32 %v13018_v37, %v13019_v29  ;;  %13016 = vmatpush.msra.mxu1 %v13015_v0 }
0x15a5   : > { %v12669_v6 = vadd.f32 %v12668_v61, %v12642_v39  ;;  %v13021_v8 = vand.u32 4294901760, %v13020_v50  ;;  %v21528_v50 = vld [vmem:[#allocation50_spill] sm:$0xff] }
0x15a6   : > { %v12583_v11 = vpop.f32.mrf.mxu2 }
0x15a7   : > { %v12676_v47 = vsel %vm830_vm0, %v12669_v6, 0  ;;  %v12584_v56 = vadd.f32 %v12583_v11, %v12553_v52  ;;  %13022 = vmatpush.msra.mxu1 %v13021_v8 }
0x15a8   : > { %v12699_v27 = vand.u32 4294901760, %v12676_v47 }
0x15a9   : > { %v12615_v26 = vadd.f32 %v12614_v10, %v12584_v56 }
0x15aa   : > { %v12700_v7 = vsub.f32 %v12676_v47, %v12699_v27  ;;  %12743 = vmatmul.f32.vlgmr.msra.gmra.mxu3 %v12699_v27  ;;  %v11973_v47 = vadd.f32 %v20161_v42, %v20167_v4 }
0x15ab   : > { %v12646_v55 = vadd.f32 %v12645_v14, %v12615_v26  ;;  %13078 = vmatpush.msra.mxu3 %v12976_v3  ;;  %v21523_v26 = vld [vmem:[#allocation55_spill] sm:$0xff] }
0x15ac   : > { %v12701_v61 = vand.u32 4294901760, %v12700_v7  ;;  %12773 = vmatmul.f32.vlgmr.msrb.gmra.mxu0 %v12700_v7 }
0x15ad   : > { %v12673_v40 = vadd.f32 %v12672_v36, %v12646_v55  ;;  %13080 = vmatpush.msra.mxu3 %v12978_v17  ;;  %13111 = vmatpush.msrb.mxu0 %v13013_v60 }
0x15ae   : > { %v12702_v11 = vsub.f32 %v12700_v7, %v12701_v61  ;;  %12803 = vmatmul.f32.vlgmr.msrb.gmra.mxu1 %v12701_v61  ;;  %v21529_v61 = vld [vmem:[#allocation37_spill] sm:$0xff] }
0x15af   : > { %v12679_v13 = vsel %vm830_vm0, %v12673_v40, 0  ;;  %13115 = vmatpush.msrb.mxu0 %v13019_v29  ;;  %13140 = vmatpush.msrb.mxu1 %v12976_v3  ;;  %v11201_v3 = vadd.f32 %v20033_v15, %v20039_v53  ;;  %v11205_v15 = vadd.f32 %v20041_v12, %v20047_v63  ;;  %v12363_v53 = vadd.f32 %v20239_v5, %v20245_v59  ;;  %v21524_v63 = vld [vmem:[#allocation43_spill] sm:$0xff]  ;;  %v21525_v5 = vld [vmem:[#allocation26_spill] sm:$0xff] }
0x15b0   : > { %v12703_v32 = vand.u32 4294901760, %v12702_v11  ;;  %v12707_v39 = vand.u32 4294901760, %v12679_v13  ;;  %v21530_v40 = vld [vmem:[#allocation39_spill] sm:$0xff] }
0x15b1   : > { %13142 = vmatpush.msrb.mxu1 %v12978_v17  ;;  %v11587_v17 = vadd.f32 %v20097_v28, %v20103_v31  ;;  %v11231_v56 = vadd.f32 %v20035_v62, %v11201_v3  ;;  %v12003_v31 = vadd.f32 %v20163_v9, %v11973_v47  ;;  %v21517_v62 = vld [vmem:[#allocation54_spill] sm:$0xff]  ;;  %v21522_v9 = vld [vmem:[#allocation57_spill] sm:$0xff]  ;;  %v11236_v0 = vadd.f32 %v21524_v63, %v11205_v15 }
0x15b2   : > { %12704 = vmatmul.f32.vlgmr.msra.gmra.mxu2 %v12703_v32  ;;  %12747 = vmatmul.f32.gmra.mxu3 %v12707_v39  ;;  %v12708_v52 = vsub.f32 %v12679_v13, %v12707_v39  ;;  %v12394_v59 = vadd.f32 %v21525_v5, %v12363_v53  ;;  %v21531_v13 = vld [vmem:[#allocation47_spill] sm:$0xff]  ;;  %v21536_v47 = vld [vmem:[#allocation65_spill] sm:$0xff] }
0x15b3   : > { %13048 = vmatpush.msra.mxu2 %v13012_v38  ;;  %v12359_v38 = vadd.f32 %v20231_v22, %v20237_v23  ;;  %v21518_v22 = vld [vmem:[#allocation33_spill] sm:$0xff]  ;;  %v21519_v23 = vld [vmem:[#allocation28_spill] sm:$0xff]  ;;  %v12033_v29 = vadd.f32 %v21522_v9, %v12003_v31 }
0x15b4   : > { %12778 = vmatmul.f32.gmra.mxu0 %v12708_v52  ;;  %v12709_v6 = vand.u32 4294901760, %v12708_v52  ;;  %v21543_v9 = vld [vmem:[#allocation64_spill] sm:$0xff] }
0x15b5   : > { %13051 = vmatpush.msra.mxu2 %v13018_v37  ;;  %v11617_v37 = vadd.f32 %v20099_v18, %v11587_v17  ;;  %v12389_v2 = vadd.f32 %v20233_v58, %v12359_v38  ;;  %v11261_v18 = vadd.f32 %v20037_v1, %v11231_v56  ;;  %v21526_v1 = vld [vmem:[#allocation62_spill] sm:$0xff]  ;;  %v21535_v38 = vld [vmem:[#allocation52_spill] sm:$0xff] }
0x15b6   : > { %12809 = vmatmul.f32.gmra.mxu1 %v12709_v6  ;;  %v12710_v10 = vsub.f32 %v12708_v52, %v12709_v6  ;;  %v21533_v6 = vld [vmem:[#allocation41_spill] sm:$0xff] }
0x15b7   : > { %v11647_v28 = vadd.f32 %v20101_v35, %v11617_v37  ;;  %v12419_v4 = vadd.f32 %v21517_v62, %v12389_v2  ;;  %v21521_v35 = vld [vmem:[#allocation35_spill] sm:$0xff]  ;;  %v21537_v2 = vld [vmem:[#allocation53_spill] sm:$0xff]  ;;  %v21540_v62 = vld [vmem:[#allocation56_spill] sm:$0xff] }
0x15b8   : > { %v12711_v60 = vand.u32 4294901760, %v12710_v10  ;;  %v11294_v14 = vadd.f32 %v21521_v35, %v11261_v18  ;;  %v21539_v18 = vld [vmem:[#allocation49_spill] sm:$0xff] }
0x15b9   : > { %v11680_v42 = vadd.f32 %v20115_v54, %v11647_v28  ;;  %v12452_v12 = vadd.f32 %v21523_v26, %v12419_v4  ;;  %v21527_v54 = vld [vmem:[#allocation66_spill] sm:$0xff]  ;;  %v21538_v28 = vld [vmem:[#allocation59_spill] sm:$0xff] }
0x15ba   : > { %12712 = vmatmul.f32.gmra.mxu2 %v12711_v60  ;;  %12863 = vmatmul.f32.vlgmr.msrb.gmra.mxu3 %v12699_v27  ;;  %v12066_v36 = vadd.f32 %v21527_v54, %v12033_v29  ;;  %v11321_v11 = vadd.f32 %v21530_v40, %v11294_v14  ;;  %v21534_v60 = vld [vmem:[#allocation38_spill] sm:$0xff] }
0x15bb   : > { %13212 = vmatpush.msrb.mxu3 %v18193_v49  ;;  %v11707_v7 = vadd.f32 %v21526_v1, %v11680_v42  ;;  %v12479_v32 = vadd.f32 %v21531_v13, %v12452_v12  ;;  %v12425_v17 = vadd.f32 %v21534_v60, %v12394_v59 }
0x15bc   : > { %12985 = vmatmul.f32.vlgmr.msra.gmra.mxu0 %v18150_v33  ;;  %v12093_v37 = vadd.f32 %v21535_v38, %v12066_v36  ;;  %v12871_v15 = vmul.f32 %v11321_v11, %v11321_v11 }
0x15bd   : > { %13218 = vmatpush.msrb.mxu3 %v18199_v51  ;;  %13244 = vmatpush.msra.mxu0 %v18173_v43  ;;  %v12873_v3 = vmul.f32 %v11707_v7, %v11707_v7  ;;  %v12456_v31 = vadd.f32 %v21538_v28, %v12425_v17 }
0x15be   : > { %13024 = vmatmul.f32.vlgmr.msra.gmra.mxu1 %v18131_v16 }
0x15bf   : > { %13247 = vmatpush.msra.mxu0 %v18181_v46  ;;  %13274 = vmatpush.msra.mxu1 %v18152_v34  ;;  %v12879_v53 = vsub.f32 %v12479_v32, %v12873_v3  ;;  %v12893_v26 = vadd.f32 %v12873_v3, %v12871_v15 }
0x15c1   : > { %13276 = vmatpush.msra.mxu1 %v18175_v44  ;;  %v12895_v59 = vadd.f32 0.0001, %v12893_v26 }
0x15c2   : > { %12836 = vmatmul.f32.vlgmr.msrb.gmra.mxu2 %v12699_v27  ;;  %12867 = vmatmul.f32.gmra.mxu3 %v12707_v39  ;;  %v11591_v27 = vadd.f32 %v20105_v19, %v20111_v57  ;;  %v21520_v19 = vld [vmem:[#allocation36_spill] sm:$0xff] }
0x15c3   : > { %13173 = vmatpush.msrb.mxu2 %v18152_v34  ;;  %v11977_v57 = vadd.f32 %v21520_v19, %v21519_v23  ;;  %v21542_v19 = vld [vmem:[#allocation34_spill] sm:$0xff] }
0x15c4   : > { %12993 = vmatmul.f32.gmra.mxu0 %v18160_v41  ;;  %v11622_v58 = vadd.f32 %v21518_v22, %v11591_v27  ;;  %v12877_v22 = vsub.f32 %v12093_v37, %v12871_v15 }
0x15c5   : > { %13175 = vmatpush.msrb.mxu2 %v18175_v44  ;;  %v12008_v8 = vadd.f32 %v21529_v61, %v11977_v57  ;;  %v12483_v57 = vadd.f32 %v21542_v19, %v12456_v31 }
0x15c6   : > { %13028 = vmatmul.f32.gmra.mxu1 %v18134_v20  ;;  %v11653_v55 = vadd.f32 %v21528_v50, %v11622_v58  ;;  %v21541_v58 = vld [vmem:[#allocation61_spill] sm:$0xff]  ;;  %v12897_v35 = vadd.f32 %v12879_v53, %v12877_v22 }
0x15c7   : > { %v12039_v27 = vadd.f32 %v21537_v2, %v12008_v8 }
0x15c8   : > { %v11684_v10 = vadd.f32 %v21533_v6, %v11653_v55 }
0x15c9   : > { %v12070_v4 = vadd.f32 %v21540_v62, %v12039_v27  ;;  %v12875_v62 = vmul.f32 %v11707_v7, %v11321_v11 }
0x15ca   : > { %12840 = vmatmul.f32.gmra.mxu2 %v12707_v39  ;;  %13084 = vmatmul.f32.vlgmr.msra.gmra.mxu3 %v18143_v25  ;;  %v21532_v39 = vld [vmem:[#allocation58_spill] sm:$0xff]  ;;  %v11711_v42 = vadd.f32 %v21539_v18, %v11684_v10 }
0x15cb   : > { %13336 = vmatpush.msra.mxu3 %v18152_v34  ;;  %v11267_v52 = vadd.f32 %v21532_v39, %v11236_v0  ;;  %v12097_v29 = vadd.f32 %v21543_v9, %v12070_v4  ;;  %v12899_v0 = vadd.f32 0.0009, %v12897_v35  ;;  %v12883_v35 = vmul.f32 2.0, %v12875_v62 }
0x15cc   : > { %13117 = vmatmul.f32.vlgmr.msrb.gmra.mxu0 %v18131_v16  ;;  %v12874_v14 = vmul.f32 %v11711_v42, %v11711_v42 }
0x15cd   : > { %13338 = vmatpush.msra.mxu3 %v18175_v44  ;;  %v11298_v56 = vadd.f32 %v21536_v47, %v11267_v52  ;;  %v12901_v36 = vmul.f32 %v12899_v0, %v12895_v59 }
0x15ce   : > { %13144 = vmatmul.f32.vlgmr.msrb.gmra.mxu1 %v18131_v16  ;;  %v12880_v63 = vsub.f32 %v12483_v57, %v12874_v14 }
0x15cf   : > { %v11325_v23 = vadd.f32 %v21541_v58, %v11298_v56  ;;  %17438 = vrcp.f32 %v12901_v36 }
0x15d1   : > { %v12872_v12 = vmul.f32 %v11325_v23, %v11325_v23 }
0x15d2   : > { %13054 = vmatmul.f32.vlgmr.msra.gmra.mxu2 %v18137_v21  ;;  %13090 = vmatmul.f32.gmra.mxu3 %v18148_v30 }
0x15d3   : > { %13307 = vmatpush.msra.mxu2 %v18178_v45  ;;  %v12878_v5 = vsub.f32 %v12097_v29, %v12872_v12  ;;  %v12894_v55 = vadd.f32 %v12874_v14, %v12872_v12 }
0x15d4   : > { %13121 = vmatmul.f32.gmra.mxu0 %v18134_v20 }
0x15d5   : > { %13311 = vmatpush.msra.mxu2 %v18189_v48  ;;  %v12898_v54 = vadd.f32 %v12880_v63, %v12878_v5  ;;  %v12896_v40 = vadd.f32 0.0001, %v12894_v55  ;;  %v17439_v52 = vpop.eup %17438  ;;  %v12876_v5 = vmul.f32 %v11711_v42, %v11325_v23  ;;  %v17495_v23 = vld [vmem:[%s18208_s15 + $0x58] sm:$0xff] }
0x15d6   : > { %13148 = vmatmul.f32.gmra.mxu1 %v18134_v20  ;;  %v12905_v10 = vmul.f32 %v17439_v52, %v12901_v36 }
0x15d7   : > { %v12900_v61 = vadd.f32 0.0009, %v12898_v54 }
0x15d8   : > { %v12907_v37 = vsub.f32 2.0, %v12905_v10 }
0x15d9   : > { %v12902_v32 = vmul.f32 %v12900_v61, %v12896_v40  ;;  %v20342_v40 = vld [vmem:[%s18208_s15 + $0x78] sm:$0xff] }
0x15da   : > { %13059 = vmatmul.f32.gmra.mxu2 %v18140_v24  ;;  %v12909_v28 = vmul.f32 %v17439_v52, %v12907_v37  ;;  %v17494_v52 = vld [vmem:[%s18208_s15 + $0x68] sm:$0xff]  ;;  %v17496_v37 = vld [vmem:[%s18208_s15 + $0x50] sm:$0xff] }
0x15db   : > { %17440 = vrcp.f32 %v12902_v32  ;;  %v12931_v42 = vmul.f32 0.38439733, %v17494_v52 }
0x15dc   : > { %v12911_v58 = vmul.f32 %v12909_v28, %v12901_v36 }
0x15de   : > { %v12913_v63 = vsub.f32 2.0, %v12911_v58 }
0x15e0   : > { %v12915_v55 = vmul.f32 %v12913_v63, %v12909_v28 }
0x15e1   : > { %v17441_v38 = vpop.eup %17440 }
0x15e2   : > { %v12906_v27 = vmul.f32 %v17441_v38, %v12902_v32 }
0x15e4   : > { %v12908_v22 = vsub.f32 2.0, %v12906_v27 }
0x15e6   : > { %v12910_v9 = vmul.f32 %v17441_v38, %v12908_v22 }
0x15e8   : > { %v12912_v54 = vmul.f32 %v12910_v9, %v12902_v32  ;;  %v20348_v32 = vld [vmem:[%s18208_s15 + $0x70] sm:$0xff] }
0x15ea   : > { %v12914_v10 = vsub.f32 2.0, %v12912_v54 }
0x1629   : > { %v12774_v50 = vpop.f32.mrf.mxu0 }
0x162b   : > { %v12804_v8 = vpop.f32.mrf.mxu1 }
0x162d   : > { %v12744_v1 = vpop.f32.mrf.mxu3 }
0x1631   : > { %v12779_v6 = vpop.f32.mrf.mxu0 }
0x1633   : > { %v12810_v17 = vpop.f32.mrf.mxu1 }
0x1635   : > { %v12705_v13 = vpop.f32.mrf.mxu2  ;;  %v12748_v39 = vpop.f32.mrf.mxu3 }
0x1636   : > { %v12745_v60 = vadd.f32 %v12744_v1, %v12705_v13  ;;  %v12885_v1 = vadd.f32 0.0001, %v12883_v35 }
0x1638   : > { %v12775_v47 = vadd.f32 %v12774_v50, %v12745_v60 }
0x1639   : > { %v12986_v2 = vpop.f32.mrf.mxu0 }
0x163a   : > { %v12805_v15 = vadd.f32 %v12804_v8, %v12775_v47  ;;  %v12884_v8 = vmul.f32 2.0, %v12876_v5  ;;  %v12932_v47 = vadd.f32 %v17496_v37, %v20348_v32 }
0x163b   : > { %v13025_v18 = vpop.f32.mrf.mxu1 }
0x163c   : > { %v12934_v58 = vmul.f32 0.30780134, %v12932_v47 }
0x163d   : > { %v12713_v3 = vpop.f32.mrf.mxu2  ;;  %v12864_v56 = vpop.f32.mrf.mxu3 }
0x163e   : > { %v12749_v31 = vadd.f32 %v12748_v39, %v12713_v3 }
0x1640   : > { %v12780_v19 = vadd.f32 %v12779_v6, %v12749_v31  ;;  %v12933_v6 = vadd.f32 %v17495_v23, %v20342_v40 }
0x1641   : > { %v12994_v26 = vpop.f32.mrf.mxu0 }
0x1642   : > { %v12811_v0 = vadd.f32 %v12810_v17, %v12780_v19  ;;  %v13026_v17 = vadd.f32 %v13025_v18, %v12986_v2  ;;  %v12935_v38 = vmul.f32 0.30780134, %v12933_v6 }
0x1643   : > { %v13029_v36 = vpop.f32.mrf.mxu1 }
0x1645   : > { %v12837_v53 = vpop.f32.mrf.mxu2  ;;  %v12868_v29 = vpop.f32.mrf.mxu3 }
0x1646   : > { %v12838_v4 = vadd.f32 %v12837_v53, %v12805_v15  ;;  %v12937_v53 = vadd.f32 %v12935_v38, %v12931_v42 }
0x1648   : > { %v12865_v57 = vadd.f32 %v12864_v56, %v12838_v4  ;;  %v12886_v56 = vadd.f32 0.0001, %v12884_v8  ;;  %v13362_v2 = vand.u32 4294901760, %v12937_v53 }
0x1649   : > { %v13118_v28 = vpop.f32.mrf.mxu0 }
0x164a   : > { %v12881_v14 = vsub.f32 %v12865_v57, %v12875_v62  ;;  %v17497_v62 = vld [vmem:[%s18208_s15 + $0x60] sm:$0xff]  ;;  %v12916_v57 = vmul.f32 %v12914_v10, %v12910_v9  ;;  %13363 = vmatpush.msrb.mxu0 %v13362_v2 }
0x164b   : > { %v12930_v4 = vmul.f32 0.38439733, %v17497_v62  ;;  %v13145_v22 = vpop.f32.mrf.mxu1 }
0x164c   : > { %v12887_v12 = vmul.f32 2.0, %v12881_v14 }
0x164d   : > { %v12841_v59 = vpop.f32.mrf.mxu2  ;;  %v13085_v60 = vpop.f32.mrf.mxu3  ;;  %v12936_v18 = vadd.f32 %v12934_v58, %v12930_v4 }
0x164e   : > { %v12889_v7 = vadd.f32 0.0009, %v12887_v12  ;;  %v12842_v11 = vadd.f32 %v12841_v59, %v12811_v0  ;;  %v13398_v12 = vsub.f32 %v12937_v53, %v13362_v2  ;;  %v13030_v0 = vadd.f32 %v13029_v36, %v12994_v26 }
0x164f   : > { %v13364_v63 = vand.u32 4294901760, %v12936_v18 }
0x1650   : > { %v12891_v50 = vmul.f32 %v12889_v7, %v12885_v1  ;;  %v12869_v61 = vadd.f32 %v12868_v29, %v12842_v11  ;;  %v13399_v59 = vand.u32 4294901760, %v13398_v12 }
0x1651   : > { %13365 = vmatpush.msrb.mxu0 %v13364_v63  ;;  %v13404_v11 = vsub.f32 %v12936_v18, %v13364_v63 }
0x1652   : > { %v12917_v13 = vmul.f32 %v12915_v55, %v12891_v50  ;;  %v12882_v39 = vsub.f32 %v12869_v61, %v12876_v5  ;;  %v13400_v50 = vsub.f32 %v13398_v12, %v13399_v59  ;;  %v13122_v61 = vpop.f32.mrf.mxu0 }
0x1653   : > { %v13405_v8 = vand.u32 4294901760, %v13404_v11  ;;  %v13149_v42 = vpop.f32.mrf.mxu1 }
0x1654   : > { %17284 = vst.msk [vmem:[%s18598_s26 + $0x50] sm:$0xff] %vm830_vm0, %v12917_v13  ;;  %v12888_v3 = vmul.f32 2.0, %v12882_v39  ;;  %v13401_v39 = vand.u32 4294901760, %v13400_v50 }
0x1655   : > { %v13055_v27 = vpop.f32.mrf.mxu2  ;;  %v13091_v7 = vpop.f32.mrf.mxu3  ;;  %v13406_v23 = vsub.f32 %v13404_v11, %v13405_v8 }
0x1656   : > { %v12890_v31 = vadd.f32 0.0009, %v12888_v3  ;;  %v13056_v15 = vadd.f32 %v13055_v27, %v13026_v17  ;;  %13402 = vmatpush.msrb.mxu1 %v13401_v39 }
0x1657   : > { %v13407_v6 = vand.u32 4294901760, %v13406_v23  ;;  %v21557_v23 = vld [vmem:[#allocation42_spill] sm:$0xff] }
0x1658   : > { %v12892_v19 = vmul.f32 %v12890_v31, %v12886_v56  ;;  %v13086_v35 = vadd.f32 %v13085_v60, %v13056_v15 }
0x1659   : > { %13408 = vmatpush.msrb.mxu1 %v13407_v6 }
0x165a   : > { %v12918_v14 = vmul.f32 %v12916_v57, %v12892_v19  ;;  %v13119_v29 = vadd.f32 %v13118_v28, %v13086_v35 }
0x165c   : > { %17285 = vst.msk [vmem:[%s18598_s26 + $0x58] sm:$0xff] %vm830_vm0, %v12918_v14  ;;  %v13146_v5 = vadd.f32 %v13145_v22, %v13119_v29 }
0x165d   : > { %v13060_v1 = vpop.f32.mrf.mxu2 }
0x165e   : > { %v13153_v54 = vsel %vm830_vm0, %v13146_v5, 0  ;;  %v13061_v9 = vadd.f32 %v13060_v1, %v13030_v0  ;;  %v21552_v5 = vld [vmem:[#allocation40_spill] sm:$0xff] }
0x165f   : > { %v13176_v55 = vand.u32 4294901760, %v13153_v54  ;;  %v21553_v1 = vld [vmem:[#allocation32_spill] sm:$0xff] }
0x1660   : > { %v13092_v13 = vadd.f32 %v13091_v7, %v13061_v9 }
0x1661   : > { %v13177_v52 = vsub.f32 %v13153_v54, %v13176_v55  ;;  %13220 = vmatmul.f32.vlgmr.msrb.gmra.mxu3 %v13176_v55 }
0x1662   : > { %v13123_v26 = vadd.f32 %v13122_v61, %v13092_v13  ;;  %13464 = vmatpush.msrb.mxu3 %v13362_v2  ;;  %v21556_v61 = vld [vmem:[#allocation45_spill] sm:$0xff] }
0x1663   : > { %v13178_v36 = vand.u32 4294901760, %v13177_v52  ;;  %13250 = vmatmul.f32.vlgmr.msra.gmra.mxu0 %v13177_v52 }
0x1664   : > { %v13150_v10 = vadd.f32 %v13149_v42, %v13123_v26  ;;  %13466 = vmatpush.msrb.mxu3 %v13364_v63  ;;  %13497 = vmatpush.msra.mxu0 %v13399_v59  ;;  %v12939_v59 = vmul.f32 0.38439733, %v21552_v5  ;;  %v12938_v26 = vmul.f32 0.38439733, %v21557_v23  ;;  %v21568_v5 = vld [vmem:[#allocation63_spill] sm:$0xff] }
0x1665   : > { %v13179_v60 = vsub.f32 %v13177_v52, %v13178_v36  ;;  %13280 = vmatmul.f32.vlgmr.msra.gmra.mxu1 %v13178_v36 }
0x1666   : > { %v13156_v17 = vsel %vm830_vm0, %v13150_v10, 0  ;;  %13501 = vmatpush.msra.mxu0 %v13405_v8  ;;  %13526 = vmatpush.msra.mxu1 %v13362_v2 }
0x1667   : > { %v13180_v3 = vand.u32 4294901760, %v13179_v60  ;;  %v13184_v38 = vand.u32 4294901760, %v13156_v17 }
0x1668   : > { %13528 = vmatpush.msra.mxu1 %v13364_v63  ;;  %v21550_v63 = vld [vmem:[#allocation27_spill] sm:$0xff] }
0x1669   : > { %13181 = vmatmul.f32.vlgmr.msrb.gmra.mxu2 %v13180_v3  ;;  %13224 = vmatmul.f32.gmra.mxu3 %v13184_v38  ;;  %v13185_v37 = vsub.f32 %v13156_v17, %v13184_v38  ;;  %v20409_v0 = vmul.f32 %v21550_v63, %v21550_v63 }
0x166a   : > { %13434 = vmatpush.msrb.mxu2 %v13398_v12 }
0x166b   : > { %13255 = vmatmul.f32.gmra.mxu0 %v13185_v37  ;;  %v13186_v47 = vand.u32 4294901760, %v13185_v37  ;;  %21551 = vst [vmem:[#allocation55_spill] sm:$0xff] %v20409_v0  ;;  %v12941_v7 = vadd.f32 %v20409_v0, %v21553_v1 }
0x166c   : > { %13437 = vmatpush.msrb.mxu2 %v13404_v11  ;;  %v21554_v11 = vld [vmem:[#allocation48_spill] sm:$0xff] }
0x166d   : > { %13286 = vmatmul.f32.gmra.mxu1 %v13186_v47  ;;  %v13187_v56 = vsub.f32 %v13185_v37, %v13186_v47  ;;  %v20416_v54 = vmul.f32 %v21554_v11, %v21554_v11 }
0x166f   : > { %v13188_v27 = vand.u32 4294901760, %v13187_v56  ;;  %21555 = vst [vmem:[#allocation43_spill] sm:$0xff] %v20416_v54  ;;  %v12940_v8 = vadd.f32 %v20416_v54, %v21556_v61 }
0x1671   : > { %13189 = vmatmul.f32.gmra.mxu2 %v13188_v27  ;;  %13340 = vmatmul.f32.vlgmr.msra.gmra.mxu3 %v13176_v55  ;;  %v12942_v36 = vmul.f32 0.30780134, %v12940_v8 }
0x1672   : > { %13598 = vmatpush.msra.mxu3 %v18193_v49 }
0x1673   : > { %13371 = vmatmul.f32.vlgmr.msrb.gmra.mxu0 %v18150_v33  ;;  %v12944_v17 = vadd.f32 %v12942_v36, %v12938_v26 }
0x1674   : > { %13604 = vmatpush.msra.mxu3 %v18199_v51  ;;  %13630 = vmatpush.msrb.mxu0 %v18173_v43 }
0x1675   : > { %13410 = vmatmul.f32.vlgmr.msrb.gmra.mxu1 %v18131_v16  ;;  %v13750_v37 = vand.u32 4294901760, %v12944_v17 }
0x1676   : > { %13633 = vmatpush.msrb.mxu0 %v18181_v46  ;;  %13660 = vmatpush.msrb.mxu1 %v18152_v34 }
0x1678   : > { %13662 = vmatpush.msrb.mxu1 %v18175_v44 }
0x1679   : > { %13313 = vmatmul.f32.vlgmr.msra.gmra.mxu2 %v13176_v55  ;;  %13344 = vmatmul.f32.gmra.mxu3 %v13184_v38  ;;  %v12943_v55 = vmul.f32 0.30780134, %v12941_v7 }
0x167a   : > { %13559 = vmatpush.msra.mxu2 %v18152_v34 }
0x167b   : > { %13379 = vmatmul.f32.gmra.mxu0 %v18160_v41  ;;  %v12945_v42 = vadd.f32 %v12943_v55, %v12939_v59 }
0x167c   : > { %13561 = vmatpush.msra.mxu2 %v18175_v44 }
0x167d   : > { %13414 = vmatmul.f32.gmra.mxu1 %v18134_v20  ;;  %v13748_v60 = vand.u32 4294901760, %v12945_v42 }
0x1681   : > { %13317 = vmatmul.f32.gmra.mxu2 %v13184_v38  ;;  %13470 = vmatmul.f32.vlgmr.msrb.gmra.mxu3 %v18143_v25  ;;  %v13784_v38 = vsub.f32 %v12945_v42, %v13748_v60 }
0x1682   : > { %13722 = vmatpush.msrb.mxu3 %v18152_v34 }
0x1683   : > { %13503 = vmatmul.f32.vlgmr.msra.gmra.mxu0 %v18131_v16  ;;  %v13785_v27 = vand.u32 4294901760, %v13784_v38 }
0x1684   : > { %13724 = vmatpush.msrb.mxu3 %v18175_v44  ;;  %13749 = vmatpush.msra.mxu0 %v13748_v60 }
0x1685   : > { %13530 = vmatmul.f32.vlgmr.msra.gmra.mxu1 %v18131_v16  ;;  %v13786_v7 = vsub.f32 %v13784_v38, %v13785_v27 }
0x1686   : > { %13751 = vmatpush.msra.mxu0 %v13750_v37 }
0x1687   : > { %v13787_v61 = vand.u32 4294901760, %v13786_v7 }
0x1689   : > { %13440 = vmatmul.f32.vlgmr.msrb.gmra.mxu2 %v18137_v21  ;;  %13476 = vmatmul.f32.gmra.mxu3 %v18148_v30 }
0x168a   : > { %13693 = vmatpush.msrb.mxu2 %v18178_v45  ;;  %13788 = vmatpush.msra.mxu1 %v13787_v61 }
0x168b   : > { %13507 = vmatmul.f32.gmra.mxu0 %v18134_v20 }
0x168c   : > { %13697 = vmatpush.msrb.mxu2 %v18189_v48 }
0x168d   : > { %13534 = vmatmul.f32.gmra.mxu1 %v18134_v20 }
0x1691   : > { %13445 = vmatmul.f32.gmra.mxu2 %v18140_v24 }
0x16e0   : > { %v20385_v31 = vpop.f32.mrf.mxu0 }
0x16e2   : > { %v20387_v15 = vpop.f32.mrf.mxu1 }
0x16e4   : > { %v20383_v28 = vpop.f32.mrf.mxu3 }
0x16e8   : > { %v20393_v4 = vpop.f32.mrf.mxu0 }
0x16e9   : > { %21544 = vst [vmem:[#allocation54_spill] sm:$0xff] %v20393_v4 }
0x16ea   : > { %v20395_v22 = vpop.f32.mrf.mxu1 }
0x16eb   : > { %21545 = vst [vmem:[#allocation33_spill] sm:$0xff] %v20395_v22 }
0x16ec   : > { %v20389_v53 = vpop.f32.mrf.mxu2  ;;  %v20391_v62 = vpop.f32.mrf.mxu3 }
0x16f0   : > { %v13372_v57 = vpop.f32.mrf.mxu0 }
0x16f2   : > { %v13411_v2 = vpop.f32.mrf.mxu1 }
0x16f3   : > { %v13412_v50 = vadd.f32 %v13411_v2, %v13372_v57  ;;  %v13790_v57 = vsub.f32 %v12944_v17, %v13750_v37 }
0x16f4   : > { %v20397_v58 = vpop.f32.mrf.mxu2  ;;  %v20399_v19 = vpop.f32.mrf.mxu3 }
0x16f5   : > { %21546 = vst [vmem:[#allocation28_spill] sm:$0xff] %v20399_v19  ;;  %v13791_v11 = vand.u32 4294901760, %v13790_v57 }
0x16f7   : > { %v13792_v8 = vsub.f32 %v13790_v57, %v13791_v11 }
0x16f8   : > { %v13380_v14 = vpop.f32.mrf.mxu0 }
0x16fa   : > { %v13415_v12 = vpop.f32.mrf.mxu1 }
0x16fb   : > { %v13416_v47 = vadd.f32 %v13415_v12, %v13380_v14  ;;  %v13793_v12 = vand.u32 4294901760, %v13792_v8 }
0x16fc   : > { %v20401_v35 = vpop.f32.mrf.mxu2  ;;  %v20403_v18 = vpop.f32.mrf.mxu3 }
0x16fd   : > { %21547 = vst [vmem:[#allocation36_spill] sm:$0xff] %v20401_v35  ;;  %13794 = vmatpush.msra.mxu1 %v13793_v12  ;;  %v21565_v12 = vld [vmem:[#allocation44_spill] sm:$0xff] }
0x16fe   : > { %21548 = vst [vmem:[#allocation35_spill] sm:$0xff] %v20403_v18 }
0x1700   : > { %v13504_v39 = vpop.f32.mrf.mxu0 }
0x1702   : > { %v13531_v6 = vpop.f32.mrf.mxu1 }
0x1704   : > { %v20405_v29 = vpop.f32.mrf.mxu2  ;;  %v13471_v9 = vpop.f32.mrf.mxu3 }
0x1705   : > { %21549 = vst [vmem:[#allocation57_spill] sm:$0xff] %v20405_v29 }
0x170c   : > { %v13441_v13 = vpop.f32.mrf.mxu2  ;;  %v13477_v63 = vpop.f32.mrf.mxu3 }
0x170d   : > { %v13442_v52 = vadd.f32 %v13441_v13, %v13412_v50 }
0x170f   : > { %v13472_v10 = vadd.f32 %v13471_v9, %v13442_v52  ;;  %v13508_v9 = vpop.f32.mrf.mxu0 }
0x1711   : > { %v13505_v3 = vadd.f32 %v13504_v39, %v13472_v10  ;;  %v13535_v39 = vpop.f32.mrf.mxu1 }
0x1713   : > { %v13532_v56 = vadd.f32 %v13531_v6, %v13505_v3 }
0x1714   : > { %v13446_v2 = vpop.f32.mrf.mxu2 }
0x1715   : > { %v13539_v59 = vsel %vm830_vm0, %v13532_v56, 0  ;;  %v13447_v1 = vadd.f32 %v13446_v2, %v13416_v47 }
0x1716   : > { %v13562_v50 = vand.u32 4294901760, %v13539_v59 }
0x1717   : > { %v13478_v55 = vadd.f32 %v13477_v63, %v13447_v1 }
0x1718   : > { %v13563_v13 = vsub.f32 %v13539_v59, %v13562_v50  ;;  %13606 = vmatmul.f32.vlgmr.msra.gmra.mxu3 %v13562_v50 }
0x1719   : > { %v13509_v14 = vadd.f32 %v13508_v9, %v13478_v55  ;;  %13850 = vmatpush.msra.mxu3 %v13748_v60 }
0x171a   : > { %v13564_v52 = vand.u32 4294901760, %v13563_v13  ;;  %13636 = vmatmul.f32.vlgmr.msrb.gmra.mxu0 %v13563_v13 }
0x171b   : > { %v13536_v42 = vadd.f32 %v13535_v39, %v13509_v14  ;;  %13852 = vmatpush.msra.mxu3 %v13750_v37  ;;  %13883 = vmatpush.msrb.mxu0 %v13785_v27  ;;  %v21564_v39 = vld [vmem:[#allocation29_spill] sm:$0xff] }
0x171c   : > { %v13565_v26 = vsub.f32 %v13563_v13, %v13564_v52  ;;  %13666 = vmatmul.f32.vlgmr.msrb.gmra.mxu1 %v13564_v52  ;;  %v20473_v13 = vmul.f32 %v20342_v40, %v20342_v40  ;;  %v12947_v14 = vmul.f32 0.38439733, %v21564_v39  ;;  %v12946_v39 = vmul.f32 0.38439733, %v21568_v5 }
0x171d   : > { %v13542_v36 = vsel %vm830_vm0, %v13536_v42, 0  ;;  %13912 = vmatpush.msrb.mxu1 %v13748_v60  ;;  %13887 = vmatpush.msrb.mxu0 %v13791_v11  ;;  %v20480_v42 = vmul.f32 %v20348_v32, %v20348_v32 }
0x171e   : > { %v13566_v6 = vand.u32 4294901760, %v13565_v26  ;;  %v13570_v10 = vand.u32 4294901760, %v13542_v36  ;;  %21563 = vst [vmem:[#allocation39_spill] sm:$0xff] %v20473_v13  ;;  %v12949_v52 = vadd.f32 %v20473_v13, %v21565_v12 }
0x171f   : > { %13914 = vmatpush.msrb.mxu1 %v13750_v37  ;;  %21566 = vst [vmem:[#allocation47_spill] sm:$0xff] %v20480_v42 }
0x1720   : > { %13567 = vmatmul.f32.vlgmr.msra.gmra.mxu2 %v13566_v6  ;;  %13610 = vmatmul.f32.gmra.mxu3 %v13570_v10  ;;  %v13571_v17 = vsub.f32 %v13542_v36, %v13570_v10  ;;  %v12951_v6 = vmul.f32 0.30780134, %v12949_v52 }
0x1721   : > { %13820 = vmatpush.msra.mxu2 %v13784_v38 }
0x1722   : > { %13641 = vmatmul.f32.gmra.mxu0 %v13571_v17  ;;  %v13572_v3 = vand.u32 4294901760, %v13571_v17  ;;  %v12953_v23 = vadd.f32 %v12951_v6, %v12947_v14 }
0x1723   : > { %13823 = vmatpush.msra.mxu2 %v13790_v57 }
0x1724   : > { %13672 = vmatmul.f32.gmra.mxu1 %v13572_v3  ;;  %v13573_v47 = vsub.f32 %v13571_v17, %v13572_v3  ;;  %v14134_v12 = vand.u32 4294901760, %v12953_v23 }
0x1726   : > { %v13574_v56 = vand.u32 4294901760, %v13573_v47  ;;  %v14170_v29 = vsub.f32 %v12953_v23, %v14134_v12 }
0x1728   : > { %13575 = vmatmul.f32.gmra.mxu2 %v13574_v56  ;;  %13726 = vmatmul.f32.vlgmr.msrb.gmra.mxu3 %v13562_v50  ;;  %v14171_v52 = vand.u32 4294901760, %v14170_v29 }
0x1729   : > { %13984 = vmatpush.msrb.mxu3 %v18193_v49 }
0x172a   : > { %13757 = vmatmul.f32.vlgmr.msra.gmra.mxu0 %v18150_v33  ;;  %v14172_v6 = vsub.f32 %v14170_v29, %v14171_v52 }
0x172b   : > { %13990 = vmatpush.msrb.mxu3 %v18199_v51  ;;  %14016 = vmatpush.msra.mxu0 %v18173_v43 }
0x172c   : > { %13796 = vmatmul.f32.vlgmr.msra.gmra.mxu1 %v18131_v16 }
0x172d   : > { %14019 = vmatpush.msra.mxu0 %v18181_v46  ;;  %14046 = vmatpush.msra.mxu1 %v18152_v34 }
0x172f   : > { %14048 = vmatpush.msra.mxu1 %v18175_v44 }
0x1730   : > { %13699 = vmatmul.f32.vlgmr.msrb.gmra.mxu2 %v13562_v50  ;;  %13730 = vmatmul.f32.gmra.mxu3 %v13570_v10 }
0x1731   : > { %13945 = vmatpush.msrb.mxu2 %v18152_v34 }
0x1732   : > { %13765 = vmatmul.f32.gmra.mxu0 %v18160_v41 }
0x1733   : > { %13947 = vmatpush.msrb.mxu2 %v18175_v44 }
0x1734   : > { %13800 = vmatmul.f32.gmra.mxu1 %v18134_v20 }
0x1738   : > { %13703 = vmatmul.f32.gmra.mxu2 %v13570_v10  ;;  %13856 = vmatmul.f32.vlgmr.msra.gmra.mxu3 %v18143_v25  ;;  %v21567_v10 = vld [vmem:[#allocation60_spill] sm:$0xff] }
0x1739   : > { %14108 = vmatpush.msra.mxu3 %v18152_v34  ;;  %v12948_v17 = vadd.f32 %v20480_v42, %v21567_v10 }
0x173a   : > { %13889 = vmatmul.f32.vlgmr.msrb.gmra.mxu0 %v18131_v16 }
0x173b   : > { %14110 = vmatpush.msra.mxu3 %v18175_v44  ;;  %v12950_v0 = vmul.f32 0.30780134, %v12948_v17  ;;  %14135 = vmatpush.msrb.mxu0 %v14134_v12 }
0x173c   : > { %13916 = vmatmul.f32.vlgmr.msrb.gmra.mxu1 %v18131_v16 }
0x173d   : > { %v12952_v13 = vadd.f32 %v12950_v0, %v12946_v39  ;;  %v14173_v0 = vand.u32 4294901760, %v14172_v6 }
0x173f   : > { %14174 = vmatpush.msrb.mxu1 %v14173_v0 }
0x1740   : > { %13826 = vmatmul.f32.vlgmr.msra.gmra.mxu2 %v18137_v21  ;;  %13862 = vmatmul.f32.gmra.mxu3 %v18148_v30 }
0x1741   : > { %14079 = vmatpush.msra.mxu2 %v18178_v45 }
0x1742   : > { %13893 = vmatmul.f32.gmra.mxu0 %v18134_v20 }
0x1743   : > { %14083 = vmatpush.msra.mxu2 %v18189_v48 }
0x1744   : > { %13920 = vmatmul.f32.gmra.mxu1 %v18134_v20 }
0x1748   : > { %13831 = vmatmul.f32.gmra.mxu2 %v18140_v24 }
0x1797   : > { %v20449_v38 = vpop.f32.mrf.mxu0 }
0x1799   : > { %v20451_v37 = vpop.f32.mrf.mxu1 }
0x179b   : > { %v20447_v60 = vpop.f32.mrf.mxu3 }
0x179f   : > { %v20457_v2 = vpop.f32.mrf.mxu0 }
0x17a0   : > { %21558 = vst [vmem:[#allocation26_spill] sm:$0xff] %v20457_v2 }
0x17a1   : > { %v20459_v63 = vpop.f32.mrf.mxu1 }
0x17a2   : > { %21559 = vst [vmem:[#allocation62_spill] sm:$0xff] %v20459_v63 }
0x17a3   : > { %v20453_v27 = vpop.f32.mrf.mxu2  ;;  %v20455_v57 = vpop.f32.mrf.mxu3 }
0x17a7   : > { %v13758_v7 = vpop.f32.mrf.mxu0 }
0x17a9   : > { %v13797_v50 = vpop.f32.mrf.mxu1 }
0x17aa   : > { %v13798_v36 = vadd.f32 %v13797_v50, %v13758_v7 }
0x17ab   : > { %v20461_v59 = vpop.f32.mrf.mxu2  ;;  %v20463_v1 = vpop.f32.mrf.mxu3 }
0x17ac   : > { %21560 = vst [vmem:[#allocation66_spill] sm:$0xff] %v20463_v1 }
0x17af   : > { %v13766_v55 = vpop.f32.mrf.mxu0 }
0x17b1   : > { %v13801_v8 = vpop.f32.mrf.mxu1 }
0x17b2   : > { %v13802_v7 = vadd.f32 %v13801_v8, %v13766_v55 }
0x17b3   : > { %v20465_v11 = vpop.f32.mrf.mxu2  ;;  %v20467_v9 = vpop.f32.mrf.mxu3 }
0x17b4   : > { %21561 = vst [vmem:[#allocation50_spill] sm:$0xff] %v20467_v9 }
0x17b7   : > { %v13890_v47 = vpop.f32.mrf.mxu0 }
0x17b9   : > { %v13917_v54 = vpop.f32.mrf.mxu1 }
0x17bb   : > { %v20469_v61 = vpop.f32.mrf.mxu2  ;;  %v13857_v26 = vpop.f32.mrf.mxu3 }
0x17bc   : > { %21562 = vst [vmem:[#allocation37_spill] sm:$0xff] %v20469_v61  ;;  %v14136_v61 = vand.u32 4294901760, %v12952_v13 }
0x17be   : > { %14137 = vmatpush.msrb.mxu0 %v14136_v61  ;;  %v14176_v42 = vsub.f32 %v12952_v13, %v14136_v61 }
0x17bf   : > { %v13894_v17 = vpop.f32.mrf.mxu0 }
0x17c1   : > { %v13921_v23 = vpop.f32.mrf.mxu1 }
0x17c3   : > { %v13827_v3 = vpop.f32.mrf.mxu2  ;;  %v13863_v10 = vpop.f32.mrf.mxu3 }
0x17c4   : > { %v13828_v56 = vadd.f32 %v13827_v3, %v13798_v36 }
0x17c6   : > { %v13858_v18 = vadd.f32 %v13857_v26, %v13828_v56  ;;  %v14177_v26 = vand.u32 4294901760, %v14176_v42 }
0x17c8   : > { %v13891_v9 = vadd.f32 %v13890_v47, %v13858_v18  ;;  %v14178_v39 = vsub.f32 %v14176_v42, %v14177_v26 }
0x17ca   : > { %v13918_v50 = vadd.f32 %v13917_v54, %v13891_v9  ;;  %v14179_v9 = vand.u32 4294901760, %v14178_v39 }
0x17cb   : > { %v13832_v22 = vpop.f32.mrf.mxu2 }
0x17cc   : > { %v13925_v14 = vsel %vm830_vm0, %v13918_v50, 0  ;;  %v13833_v36 = vadd.f32 %v13832_v22, %v13802_v7  ;;  %14180 = vmatpush.msrb.mxu1 %v14179_v9  ;;  %v20536_v9 = vld [vmem:[%s18098_s22 + $0x78] sm:$0xff] }
0x17cd   : > { %v13948_v3 = vand.u32 4294901760, %v13925_v14 }
0x17ce   : > { %v13864_v56 = vadd.f32 %v13863_v10, %v13833_v36 }
0x17cf   : > { %v13949_v18 = vsub.f32 %v13925_v14, %v13948_v3  ;;  %13992 = vmatmul.f32.vlgmr.msrb.gmra.mxu3 %v13948_v3 }
0x17d0   : > { %v13895_v55 = vadd.f32 %v13894_v17, %v13864_v56  ;;  %14236 = vmatpush.msrb.mxu3 %v14134_v12 }
0x17d1   : > { %v13950_v54 = vand.u32 4294901760, %v13949_v18  ;;  %14022 = vmatmul.f32.vlgmr.msra.gmra.mxu0 %v13949_v18 }
0x17d2   : > { %v13922_v8 = vadd.f32 %v13921_v23, %v13895_v55  ;;  %14238 = vmatpush.msrb.mxu3 %v14136_v61  ;;  %14269 = vmatpush.msra.mxu0 %v14171_v52 }
0x17d3   : > { %v13951_v22 = vsub.f32 %v13949_v18, %v13950_v54  ;;  %14052 = vmatmul.f32.vlgmr.msra.gmra.mxu1 %v13950_v54 }
0x17d4   : > { %v13928_v13 = vsel %vm830_vm0, %v13922_v8, 0  ;;  %14273 = vmatpush.msra.mxu0 %v14177_v26  ;;  %14298 = vmatpush.msra.mxu1 %v14134_v12  ;;  %v20540_v8 = vmul.f32 %v20536_v9, %v20342_v40 }
0x17d5   : > { %v13952_v47 = vand.u32 4294901760, %v13951_v22  ;;  %v13956_v7 = vand.u32 4294901760, %v13928_v13  ;;  %v21579_v22 = vld [vmem:[#allocation51_spill] sm:$0xff] }
0x17d6   : > { %14300 = vmatpush.msra.mxu1 %v14136_v61  ;;  %21578 = vst [vmem:[#allocation61_spill] sm:$0xff] %v20540_v8 }
0x17d7   : > { %13953 = vmatmul.f32.vlgmr.msrb.gmra.mxu2 %v13952_v47  ;;  %13996 = vmatmul.f32.gmra.mxu3 %v13956_v7  ;;  %v13957_v50 = vsub.f32 %v13928_v13, %v13956_v7  ;;  %v12955_v13 = vmul.f32 0.38439733, %v21579_v22  ;;  %v21580_v47 = vld [vmem:[#allocation46_spill] sm:$0xff] }
0x17d8   : > { %14206 = vmatpush.msrb.mxu2 %v14170_v29  ;;  %v21583_v22 = vld [vmem:[#allocation30_spill] sm:$0xff] }
0x17d9   : > { %14027 = vmatmul.f32.gmra.mxu0 %v13957_v50  ;;  %v13958_v10 = vand.u32 4294901760, %v13957_v50 }
0x17da   : > { %14209 = vmatpush.msrb.mxu2 %v14176_v42 }
0x17db   : > { %14058 = vmatmul.f32.gmra.mxu1 %v13958_v10  ;;  %v13959_v14 = vsub.f32 %v13957_v50, %v13958_v10  ;;  %v20546_v50 = vld [vmem:[%s18098_s22 + $0x70] sm:$0xff] }
0x17dc   : > { %v20550_v10 = vmul.f32 %v20546_v50, %v20348_v32 }
0x17dd   : > { %v13960_v52 = vand.u32 4294901760, %v13959_v14 }
0x17de   : > { %21581 = vst [vmem:[#allocation34_spill] sm:$0xff] %v20550_v10 }
0x17df   : > { %13961 = vmatmul.f32.gmra.mxu2 %v13960_v52  ;;  %14112 = vmatmul.f32.vlgmr.msra.gmra.mxu3 %v13948_v3 }
0x17e0   : > { %14370 = vmatpush.msra.mxu3 %v18193_v49 }
0x17e1   : > { %14143 = vmatmul.f32.vlgmr.msrb.gmra.mxu0 %v18150_v33 }
0x17e2   : > { %14376 = vmatpush.msra.mxu3 %v18199_v51  ;;  %14402 = vmatpush.msrb.mxu0 %v18173_v43 }
0x17e3   : > { %14182 = vmatmul.f32.vlgmr.msrb.gmra.mxu1 %v18131_v16 }
0x17e4   : > { %14405 = vmatpush.msrb.mxu0 %v18181_v46  ;;  %14432 = vmatpush.msrb.mxu1 %v18152_v34 }
0x17e6   : > { %14434 = vmatpush.msrb.mxu1 %v18175_v44 }
0x17e7   : > { %14085 = vmatmul.f32.vlgmr.msra.gmra.mxu2 %v13948_v3  ;;  %14116 = vmatmul.f32.gmra.mxu3 %v13956_v7 }
0x17e8   : > { %14331 = vmatpush.msra.mxu2 %v18152_v34 }
0x17e9   : > { %14151 = vmatmul.f32.gmra.mxu0 %v18160_v41 }
0x17ea   : > { %14333 = vmatpush.msra.mxu2 %v18175_v44 }
0x17eb   : > { %14186 = vmatmul.f32.gmra.mxu1 %v18134_v20 }
0x17ef   : > { %14089 = vmatmul.f32.gmra.mxu2 %v13956_v7  ;;  %14242 = vmatmul.f32.vlgmr.msrb.gmra.mxu3 %v18143_v25  ;;  %v12957_v7 = vadd.f32 %v20540_v8, %v21580_v47 }
0x17f0   : > { %14494 = vmatpush.msrb.mxu3 %v18152_v34 }
0x17f1   : > { %14275 = vmatmul.f32.vlgmr.msra.gmra.mxu0 %v18131_v16  ;;  %v12959_v5 = vmul.f32 0.30780134, %v12957_v7 }
0x17f2   : > { %14496 = vmatpush.msrb.mxu3 %v18175_v44 }
0x17f3   : > { %14302 = vmatmul.f32.vlgmr.msra.gmra.mxu1 %v18131_v16  ;;  %v12961_v19 = vadd.f32 %v12959_v5, %v12955_v13 }
0x17f7   : > { %14212 = vmatmul.f32.vlgmr.msrb.gmra.mxu2 %v18137_v21  ;;  %14248 = vmatmul.f32.gmra.mxu3 %v18148_v30 }
0x17f8   : > { %14465 = vmatpush.msrb.mxu2 %v18178_v45 }
0x17f9   : > { %14279 = vmatmul.f32.gmra.mxu0 %v18134_v20 }
0x17fa   : > { %14469 = vmatpush.msrb.mxu2 %v18189_v48 }
0x17fb   : > { %14306 = vmatmul.f32.gmra.mxu1 %v18134_v20 }
0x17ff   : > { %14217 = vmatmul.f32.gmra.mxu2 %v18140_v24 }
0x184e   : > { %v20513_v61 = vpop.f32.mrf.mxu0 }
0x1850   : > { %v20515_v42 = vpop.f32.mrf.mxu1 }
0x1851   : > { %21569 = vst [vmem:[#allocation58_spill] sm:$0xff] %v20515_v42 }
0x1852   : > { %v20511_v29 = vpop.f32.mrf.mxu3 }
0x1856   : > { %v20521_v6 = vpop.f32.mrf.mxu0 }
0x1857   : > { %21571 = vst [vmem:[#allocation38_spill] sm:$0xff] %v20521_v6  ;;  %v12954_v6 = vmul.f32 0.38439733, %v21583_v22 }
0x1858   : > { %v20523_v3 = vpop.f32.mrf.mxu1 }
0x1859   : > { %21572 = vst [vmem:[#allocation52_spill] sm:$0xff] %v20523_v3 }
0x185a   : > { %v20517_v12 = vpop.f32.mrf.mxu2  ;;  %v20519_v36 = vpop.f32.mrf.mxu3 }
0x185b   : > { %21570 = vst [vmem:[#allocation41_spill] sm:$0xff] %v20519_v36 }
0x185e   : > { %v14144_v56 = vpop.f32.mrf.mxu0 }
0x1860   : > { %v14183_v18 = vpop.f32.mrf.mxu1 }
0x1861   : > { %v14184_v52 = vadd.f32 %v14183_v18, %v14144_v56 }
0x1862   : > { %v20525_v17 = vpop.f32.mrf.mxu2  ;;  %v20527_v26 = vpop.f32.mrf.mxu3 }
0x1863   : > { %21573 = vst [vmem:[#allocation65_spill] sm:$0xff] %v20525_v17 }
0x1864   : > { %21574 = vst [vmem:[#allocation53_spill] sm:$0xff] %v20527_v26 }
0x1866   : > { %v14152_v39 = vpop.f32.mrf.mxu0 }
0x1868   : > { %v14187_v54 = vpop.f32.mrf.mxu1 }
0x1869   : > { %v14188_v56 = vadd.f32 %v14187_v54, %v14152_v39 }
0x186a   : > { %v20529_v0 = vpop.f32.mrf.mxu2  ;;  %v20531_v23 = vpop.f32.mrf.mxu3 }
0x186b   : > { %21575 = vst [vmem:[#allocation59_spill] sm:$0xff] %v20529_v0  ;;  %v14520_v0 = vand.u32 4294901760, %v12961_v19 }
0x186c   : > { %21576 = vst [vmem:[#allocation49_spill] sm:$0xff] %v20531_v23  ;;  %v21582_v23 = vld [vmem:[#allocation31_spill] sm:$0xff] }
0x186d   : > { %14521 = vmatpush.msra.mxu0 %v14520_v0  ;;  %v14556_v32 = vsub.f32 %v12961_v19, %v14520_v0 }
0x186e   : > { %v14276_v40 = vpop.f32.mrf.mxu0 }
0x186f   : > { %v14557_v7 = vand.u32 4294901760, %v14556_v32 }
0x1870   : > { %v14303_v47 = vpop.f32.mrf.mxu1 }
0x1871   : > { %v14558_v13 = vsub.f32 %v14556_v32, %v14557_v7 }
0x1872   : > { %v20533_v55 = vpop.f32.mrf.mxu2  ;;  %v14243_v14 = vpop.f32.mrf.mxu3 }
0x1873   : > { %21577 = vst [vmem:[#allocation56_spill] sm:$0xff] %v20533_v55  ;;  %v12956_v55 = vadd.f32 %v20550_v10, %v21582_v23 }
0x1875   : > { %v12958_v63 = vmul.f32 0.30780134, %v12956_v55 }
0x1877   : > { %v12960_v1 = vadd.f32 %v12958_v63, %v12954_v6  ;;  %v14559_v63 = vand.u32 4294901760, %v14558_v13 }
0x1878   : > { %v14307_v19 = vpop.f32.mrf.mxu1 }
0x1879   : > { %v14522_v42 = vand.u32 4294901760, %v12960_v1  ;;  %14560 = vmatpush.msra.mxu1 %v14559_v63 }
0x187a   : > { %v14213_v3 = vpop.f32.mrf.mxu2  ;;  %v14249_v35 = vpop.f32.mrf.mxu3 }
0x187b   : > { %v14214_v26 = vadd.f32 %v14213_v3, %v14184_v52  ;;  %14523 = vmatpush.msra.mxu0 %v14522_v42  ;;  %v14562_v23 = vsub.f32 %v12960_v1, %v14522_v42 }
0x187d   : > { %v14244_v8 = vadd.f32 %v14243_v14, %v14214_v26  ;;  %v14563_v55 = vand.u32 4294901760, %v14562_v23  ;;  %v14280_v26 = vpop.f32.mrf.mxu0 }
0x187f   : > { %v14277_v4 = vadd.f32 %v14276_v40, %v14244_v8  ;;  %v14564_v6 = vsub.f32 %v14562_v23, %v14563_v55 }
0x1881   : > { %v14304_v18 = vadd.f32 %v14303_v47, %v14277_v4  ;;  %v14565_v4 = vand.u32 4294901760, %v14564_v6 }
0x1882   : > { %v14218_v10 = vpop.f32.mrf.mxu2 }
0x1883   : > { %v14311_v5 = vsel %vm830_vm0, %v14304_v18, 0  ;;  %v14219_v3 = vadd.f32 %v14218_v10, %v14188_v56  ;;  %14566 = vmatpush.msra.mxu1 %v14565_v4 }
0x1884   : > { %v14334_v52 = vand.u32 4294901760, %v14311_v5 }
0x1885   : > { %v14250_v14 = vadd.f32 %v14249_v35, %v14219_v3 }
0x1886   : > { %v14335_v8 = vsub.f32 %v14311_v5, %v14334_v52  ;;  %14378 = vmatmul.f32.vlgmr.msra.gmra.mxu3 %v14334_v52 }
0x1887   : > { %v14281_v39 = vadd.f32 %v14280_v26, %v14250_v14  ;;  %14622 = vmatpush.msra.mxu3 %v14520_v0 }
0x1888   : > { %v14336_v1 = vand.u32 4294901760, %v14335_v8  ;;  %14408 = vmatmul.f32.vlgmr.msrb.gmra.mxu0 %v14335_v8 }
0x1889   : > { %v14308_v54 = vadd.f32 %v14307_v19, %v14281_v39  ;;  %14624 = vmatpush.msra.mxu3 %v14522_v42  ;;  %14655 = vmatpush.msrb.mxu0 %v14557_v7 }
0x188a   : > { %v14337_v10 = vsub.f32 %v14335_v8, %v14336_v1  ;;  %14438 = vmatmul.f32.vlgmr.msrb.gmra.mxu1 %v14336_v1  ;;  %v20609_v1 = vld [vmem:[%s20606_s16 + $0x8] sm:$0xff] }
0x188b   : > { %v14314_v40 = vsel %vm830_vm0, %v14308_v54, 0  ;;  %14684 = vmatpush.msrb.mxu1 %v14520_v0  ;;  %14659 = vmatpush.msrb.mxu0 %v14563_v55  ;;  %21591 = vst [vmem:[#allocation46_spill] sm:$0xff] %v20609_v1  ;;  %v14944_v54 = vmul.f32 0.38439733, %v20536_v9 }
0x188c   : > { %v14338_v35 = vand.u32 4294901760, %v14337_v10  ;;  %v14342_v47 = vand.u32 4294901760, %v14314_v40  ;;  %v17500_v10 = vld [vmem:[%s18098_s22 + $0x68] sm:$0xff] }
0x188d   : > { %14686 = vmatpush.msrb.mxu1 %v14522_v42 }
0x188e   : > { %14339 = vmatmul.f32.vlgmr.msra.gmra.mxu2 %v14338_v35  ;;  %14382 = vmatmul.f32.gmra.mxu3 %v14342_v47  ;;  %v14343_v56 = vsub.f32 %v14314_v40, %v14342_v47  ;;  %v14946_v40 = vmul.f32 0.30780134, %v17500_v10  ;;  %v14950_v35 = vmul.f32 0.0, %v20609_v1 }
0x188f   : > { %14592 = vmatpush.msra.mxu2 %v14556_v32 }
0x1890   : > { %14413 = vmatmul.f32.gmra.mxu0 %v14343_v56  ;;  %v14344_v18 = vand.u32 4294901760, %v14343_v56 }
0x1891   : > { %14595 = vmatpush.msra.mxu2 %v14562_v23 }
0x1892   : > { %14444 = vmatmul.f32.gmra.mxu1 %v14344_v18  ;;  %v14345_v5 = vsub.f32 %v14343_v56, %v14344_v18  ;;  %v14948_v56 = vadd.f32 %v14946_v40, %v14944_v54 }
0x1894   : > { %v14346_v3 = vand.u32 4294901760, %v14345_v5  ;;  %v14943_v5 = vmul.f32 0.38439733, %v20546_v50 }
0x1896   : > { %14347 = vmatmul.f32.gmra.mxu2 %v14346_v3  ;;  %14498 = vmatmul.f32.vlgmr.msrb.gmra.mxu3 %v14334_v52  ;;  %v17501_v3 = vld [vmem:[%s18098_s22 + $0x60] sm:$0xff] }
0x1897   : > { %14756 = vmatpush.msrb.mxu3 %v18193_v49  ;;  %v14945_v22 = vmul.f32 0.30780134, %v17501_v3 }
0x1898   : > { %14529 = vmatmul.f32.vlgmr.msra.gmra.mxu0 %v18150_v33 }
0x1899   : > { %14762 = vmatpush.msrb.mxu3 %v18199_v51  ;;  %14788 = vmatpush.msra.mxu0 %v18173_v43 }
0x189a   : > { %14568 = vmatmul.f32.vlgmr.msra.gmra.mxu1 %v18131_v16 }
0x189b   : > { %14791 = vmatpush.msra.mxu0 %v18181_v46  ;;  %14818 = vmatpush.msra.mxu1 %v18152_v34 }
0x189d   : > { %14820 = vmatpush.msra.mxu1 %v18175_v44 }
0x189e   : > { %14471 = vmatmul.f32.vlgmr.msrb.gmra.mxu2 %v14334_v52  ;;  %14502 = vmatmul.f32.gmra.mxu3 %v14342_v47 }
0x189f   : > { %14717 = vmatpush.msrb.mxu2 %v18152_v34 }
0x18a0   : > { %14537 = vmatmul.f32.gmra.mxu0 %v18160_v41 }
0x18a1   : > { %14719 = vmatpush.msrb.mxu2 %v18175_v44 }
0x18a2   : > { %14572 = vmatmul.f32.gmra.mxu1 %v18134_v20 }
0x18a6   : > { %14475 = vmatmul.f32.gmra.mxu2 %v14342_v47  ;;  %14628 = vmatmul.f32.vlgmr.msra.gmra.mxu3 %v18143_v25 }
0x18a7   : > { %14880 = vmatpush.msra.mxu3 %v18152_v34 }
0x18a8   : > { %14661 = vmatmul.f32.vlgmr.msrb.gmra.mxu0 %v18131_v16 }
0x18a9   : > { %14882 = vmatpush.msra.mxu3 %v18175_v44 }
0x18aa   : > { %14688 = vmatmul.f32.vlgmr.msrb.gmra.mxu1 %v18131_v16 }
0x18ae   : > { %14598 = vmatmul.f32.vlgmr.msra.gmra.mxu2 %v18137_v21  ;;  %14634 = vmatmul.f32.gmra.mxu3 %v18148_v30 }
0x18af   : > { %14851 = vmatpush.msra.mxu2 %v18178_v45 }
0x18b0   : > { %14665 = vmatmul.f32.gmra.mxu0 %v18134_v20 }
0x18b1   : > { %14855 = vmatpush.msra.mxu2 %v18189_v48 }
0x18b2   : > { %14692 = vmatmul.f32.gmra.mxu1 %v18134_v20 }
0x18b6   : > { %14603 = vmatmul.f32.gmra.mxu2 %v18140_v24 }
0x1905   : > { %v20583_v0 = vpop.f32.mrf.mxu0 }
0x1907   : > { %v20585_v32 = vpop.f32.mrf.mxu1 }
0x1908   : > { %21584 = vst [vmem:[#allocation64_spill] sm:$0xff] %v20585_v32 }
0x1909   : > { %v20581_v42 = vpop.f32.mrf.mxu3 }
0x190d   : > { %v20591_v13 = vpop.f32.mrf.mxu0 }
0x190e   : > { %21585 = vst [vmem:[#allocation27_spill] sm:$0xff] %v20591_v13 }
0x190f   : > { %v20593_v55 = vpop.f32.mrf.mxu1 }
0x1910   : > { %21586 = vst [vmem:[#allocation32_spill] sm:$0xff] %v20593_v55  ;;  %v14952_v55 = vadd.f32 %v14950_v35, %v14948_v56 }
0x1911   : > { %v20587_v7 = vpop.f32.mrf.mxu2  ;;  %v20589_v23 = vpop.f32.mrf.mxu3 }
0x1912   : > { %v15007_v10 = vand.u32 4294901760, %v14952_v55 }
0x1914   : > { %15008 = vmatpush.msrb.mxu0 %v15007_v10  ;;  %v15043_v54 = vsub.f32 %v14952_v55, %v15007_v10 }
0x1915   : > { %v14530_v14 = vpop.f32.mrf.mxu0 }
0x1916   : > { %v15044_v50 = vand.u32 4294901760, %v15043_v54 }
0x1917   : > { %v14569_v6 = vpop.f32.mrf.mxu1 }
0x1918   : > { %v14570_v18 = vadd.f32 %v14569_v6, %v14530_v14  ;;  %v15045_v32 = vsub.f32 %v15043_v54, %v15044_v50 }
0x1919   : > { %v20595_v52 = vpop.f32.mrf.mxu2  ;;  %v20597_v26 = vpop.f32.mrf.mxu3 }
0x191a   : > { %21587 = vst [vmem:[#allocation48_spill] sm:$0xff] %v20597_v26  ;;  %v20617_v26 = vld [vmem:[%s20606_s16] sm:$0xff] }
0x191b   : > { %21592 = vst [vmem:[#allocation31_spill] sm:$0xff] %v20617_v26  ;;  %v14949_v9 = vmul.f32 0.0, %v20617_v26 }
0x191d   : > { %v14538_v19 = vpop.f32.mrf.mxu0 }
0x191f   : > { %v14573_v4 = vpop.f32.mrf.mxu1 }
0x1920   : > { %v14574_v40 = vadd.f32 %v14573_v4, %v14538_v19 }
0x1921   : > { %v20599_v63 = vpop.f32.mrf.mxu2  ;;  %v20601_v8 = vpop.f32.mrf.mxu3 }
0x1922   : > { %21588 = vst [vmem:[#allocation45_spill] sm:$0xff] %v20599_v63  ;;  %v14947_v63 = vadd.f32 %v14945_v22, %v14943_v5 }
0x1923   : > { %21589 = vst [vmem:[#allocation44_spill] sm:$0xff] %v20601_v8 }
0x1924   : > { %v14951_v1 = vadd.f32 %v14949_v9, %v14947_v63 }
0x1926   : > { %v15009_v6 = vand.u32 4294901760, %v14951_v1 }
0x1927   : > { %v14689_v36 = vpop.f32.mrf.mxu1 }
0x1928   : > { %15010 = vmatpush.msrb.mxu0 %v15009_v6  ;;  %v15049_v2 = vsub.f32 %v14951_v1, %v15009_v6 }
0x1929   : > { %v20603_v39 = vpop.f32.mrf.mxu2  ;;  %v14629_v47 = vpop.f32.mrf.mxu3 }
0x192a   : > { %21590 = vst [vmem:[#allocation60_spill] sm:$0xff] %v20603_v39  ;;  %v14662_v39 = vpop.f32.mrf.mxu0 }
0x1931   : > { %v14599_v8 = vpop.f32.mrf.mxu2  ;;  %v14635_v56 = vpop.f32.mrf.mxu3 }
0x1932   : > { %v14600_v13 = vadd.f32 %v14599_v8, %v14570_v18  ;;  %v15050_v18 = vand.u32 4294901760, %v15049_v2  ;;  %v14666_v26 = vpop.f32.mrf.mxu0 }
0x1934   : > { %v14630_v17 = vadd.f32 %v14629_v47, %v14600_v13  ;;  %v15046_v13 = vand.u32 4294901760, %v15045_v32  ;;  %v15051_v47 = vsub.f32 %v15049_v2, %v15050_v18 }
0x1936   : > { %v14663_v14 = vadd.f32 %v14662_v39, %v14630_v17  ;;  %v14693_v17 = vpop.f32.mrf.mxu1  ;;  %15047 = vmatpush.msrb.mxu1 %v15046_v13  ;;  %v21599_v13 = vld [vmem:[#allocation45_spill] sm:$0xff] }
0x1938   : > { %v14690_v3 = vadd.f32 %v14689_v36, %v14663_v14  ;;  %v15052_v36 = vand.u32 4294901760, %v15051_v47 }
0x1939   : > { %v14604_v35 = vpop.f32.mrf.mxu2 }
0x193a   : > { %v14697_v22 = vsel %vm830_vm0, %v14690_v3, 0  ;;  %v14605_v8 = vadd.f32 %v14604_v35, %v14574_v40  ;;  %15053 = vmatpush.msrb.mxu1 %v15052_v36  ;;  %v21605_v36 = vld [vmem:[#allocation38_spill] sm:$0xff] }
0x193b   : > { %v14720_v5 = vand.u32 4294901760, %v14697_v22 }
0x193c   : > { %v14636_v63 = vadd.f32 %v14635_v56, %v14605_v8  ;;  %v13612_v8 = vadd.f32 %v20455_v57, %v20461_v59  ;;  %v21596_v57 = vld [vmem:[#allocation41_spill] sm:$0xff] }
0x193d   : > { %v14721_v55 = vsub.f32 %v14697_v22, %v14720_v5  ;;  %14764 = vmatmul.f32.vlgmr.msrb.gmra.mxu3 %v14720_v5 }
0x193e   : > { %v14667_v19 = vadd.f32 %v14666_v26, %v14636_v63  ;;  %15109 = vmatpush.msrb.mxu3 %v15007_v10 }
0x193f   : > { %v14722_v39 = vand.u32 4294901760, %v14721_v55  ;;  %14794 = vmatmul.f32.vlgmr.msra.gmra.mxu0 %v14721_v55 }
0x1940   : > { %v14694_v4 = vadd.f32 %v14693_v17, %v14667_v19  ;;  %15111 = vmatpush.msrb.mxu3 %v15009_v6  ;;  %15142 = vmatpush.msra.mxu0 %v15044_v50  ;;  %v13994_v50 = vadd.f32 %v20511_v29, %v20517_v12  ;;  %v21604_v17 = vld [vmem:[#allocation62_spill] sm:$0xff] }
0x1941   : > { %v14723_v1 = vsub.f32 %v14721_v55, %v14722_v39  ;;  %14824 = vmatmul.f32.vlgmr.msra.gmra.mxu1 %v14722_v39 }
0x1942   : > { %v14700_v9 = vsel %vm830_vm0, %v14694_v4, 0  ;;  %15171 = vmatpush.msra.mxu1 %v15007_v10  ;;  %15146 = vmatpush.msra.mxu0 %v15050_v18  ;;  %v13222_v10 = vadd.f32 %v20383_v28, %v20389_v53  ;;  %v13226_v28 = vadd.f32 %v20391_v62, %v20397_v58  ;;  %v14384_v53 = vadd.f32 %v20589_v23, %v20595_v52  ;;  %v21600_v58 = vld [vmem:[#allocation54_spill] sm:$0xff]  ;;  %v21601_v23 = vld [vmem:[#allocation27_spill] sm:$0xff]  ;;  %v21606_v4 = vld [vmem:[#allocation28_spill] sm:$0xff] }
0x1943   : > { %v14724_v32 = vand.u32 4294901760, %v14723_v1  ;;  %v14728_v14 = vand.u32 4294901760, %v14700_v9 }
0x1944   : > { %15173 = vmatpush.msra.mxu1 %v15009_v6  ;;  %v13252_v56 = vadd.f32 %v20385_v31, %v13222_v10  ;;  %v21593_v31 = vld [vmem:[#allocation64_spill] sm:$0xff]  ;;  %v13257_v63 = vadd.f32 %v21600_v58, %v13226_v28  ;;  %v14415_v52 = vadd.f32 %v21601_v23, %v14384_v53 }
0x1945   : > { %14725 = vmatmul.f32.vlgmr.msrb.gmra.mxu2 %v14724_v32  ;;  %14768 = vmatmul.f32.gmra.mxu3 %v14728_v14  ;;  %v14729_v26 = vsub.f32 %v14700_v9, %v14728_v14  ;;  %v21607_v9 = vld [vmem:[#allocation48_spill] sm:$0xff] }
0x1946   : > { %15079 = vmatpush.msrb.mxu2 %v15043_v54  ;;  %v14380_v54 = vadd.f32 %v20581_v42, %v20587_v7  ;;  %v21594_v42 = vld [vmem:[#allocation26_spill] sm:$0xff]  ;;  %v21595_v7 = vld [vmem:[#allocation65_spill] sm:$0xff] }
0x1947   : > { %14799 = vmatmul.f32.gmra.mxu0 %v14729_v26  ;;  %v14730_v40 = vand.u32 4294901760, %v14729_v26  ;;  %v13998_v59 = vadd.f32 %v21596_v57, %v21595_v7  ;;  %v21618_v57 = vld [vmem:[#allocation44_spill] sm:$0xff] }
0x1948   : > { %15082 = vmatpush.msrb.mxu2 %v15049_v2  ;;  %v13608_v2 = vadd.f32 %v20447_v60, %v20453_v27  ;;  %v14410_v22 = vadd.f32 %v20583_v0, %v14380_v54  ;;  %v14024_v27 = vadd.f32 %v20513_v61, %v13994_v50  ;;  %v13643_v0 = vadd.f32 %v21594_v42, %v13612_v8  ;;  %v21598_v61 = vld [vmem:[#allocation58_spill] sm:$0xff]  ;;  %v21611_v54 = vld [vmem:[#allocation53_spill] sm:$0xff] }
0x1949   : > { %14830 = vmatmul.f32.gmra.mxu1 %v14730_v40  ;;  %v14731_v3 = vsub.f32 %v14729_v26, %v14730_v40  ;;  %v14029_v39 = vadd.f32 %v21605_v36, %v13998_v59  ;;  %v21609_v40 = vld [vmem:[#allocation37_spill] sm:$0xff] }
0x194a   : > { %v13638_v6 = vadd.f32 %v20449_v38, %v13608_v2  ;;  %v13282_v38 = vadd.f32 %v20387_v15, %v13252_v56  ;;  %v14440_v12 = vadd.f32 %v21593_v31, %v14410_v22  ;;  %v21602_v15 = vld [vmem:[#allocation66_spill] sm:$0xff]  ;;  %v13674_v19 = vadd.f32 %v21604_v17, %v13643_v0  ;;  %v21612_v50 = vld [vmem:[#allocation57_spill] sm:$0xff]  ;;  %v21613_v22 = vld [vmem:[#allocation52_spill] sm:$0xff] }
0x194b   : > { %v14732_v35 = vand.u32 4294901760, %v14731_v3  ;;  %v14060_v8 = vadd.f32 %v21613_v22, %v14029_v39  ;;  %v21616_v31 = vld [vmem:[#allocation56_spill] sm:$0xff]  ;;  %v21617_v0 = vld [vmem:[#allocation35_spill] sm:$0xff] }
0x194c   : > { %v13668_v60 = vadd.f32 %v20451_v37, %v13638_v6  ;;  %v21597_v37 = vld [vmem:[#allocation36_spill] sm:$0xff]  ;;  %v14473_v62 = vadd.f32 %v21599_v13, %v14440_v12  ;;  %v13705_v3 = vadd.f32 %v21609_v40, %v13674_v19 }
0x194d   : > { %14733 = vmatmul.f32.gmra.mxu2 %v14732_v35  ;;  %14884 = vmatmul.f32.vlgmr.msra.gmra.mxu3 %v14720_v5  ;;  %v13315_v18 = vadd.f32 %v21597_v37, %v13282_v38  ;;  %v21610_v35 = vld [vmem:[#allocation32_spill] sm:$0xff]  ;;  %v21615_v38 = vld [vmem:[#allocation50_spill] sm:$0xff]  ;;  %v14091_v12 = vadd.f32 %v21616_v31, %v14060_v8 }
0x194e   : > { %15243 = vmatpush.msra.mxu3 %v18193_v49  ;;  %v13701_v29 = vadd.f32 %v20465_v11, %v13668_v60  ;;  %v21603_v11 = vld [vmem:[#allocation59_spill] sm:$0xff]  ;;  %v14500_v32 = vadd.f32 %v21607_v9, %v14473_v62  ;;  %v14446_v2 = vadd.f32 %v21610_v35, %v14415_v52  ;;  %v21614_v60 = vld [vmem:[#allocation60_spill] sm:$0xff] }
0x194f   : > { %15016 = vmatmul.f32.vlgmr.msrb.gmra.mxu0 %v18150_v33  ;;  %v13342_v1 = vadd.f32 %v21606_v4, %v13315_v18 }
0x1950   : > { %15249 = vmatpush.msra.mxu3 %v18199_v51  ;;  %15275 = vmatpush.msrb.mxu0 %v18173_v43  ;;  %v13728_v47 = vadd.f32 %v21602_v15, %v13701_v29  ;;  %v13732_v29 = vadd.f32 %v21615_v38, %v13705_v3 }
0x1951   : > { %15055 = vmatmul.f32.vlgmr.msrb.gmra.mxu1 %v18131_v16  ;;  %v14892_v28 = vmul.f32 %v13342_v1, %v13342_v1 }
0x1952   : > { %15278 = vmatpush.msrb.mxu0 %v18181_v46  ;;  %15305 = vmatpush.msrb.mxu1 %v18152_v34  ;;  %v14894_v10 = vmul.f32 %v13728_v47, %v13728_v47  ;;  %v14895_v18 = vmul.f32 %v13732_v29, %v13732_v29  ;;  %v14896_v31 = vmul.f32 %v13728_v47, %v13342_v1 }
0x1954   : > { %15307 = vmatpush.msrb.mxu1 %v18175_v44  ;;  %v14900_v53 = vsub.f32 %v14500_v32, %v14894_v10  ;;  %v14914_v13 = vadd.f32 %v14894_v10, %v14892_v28 }
0x1955   : > { %14857 = vmatmul.f32.vlgmr.msra.gmra.mxu2 %v14720_v5  ;;  %14888 = vmatmul.f32.gmra.mxu3 %v14728_v14  ;;  %v14054_v5 = vadd.f32 %v21598_v61, %v14024_v27  ;;  %v14477_v27 = vadd.f32 %v21614_v60, %v14446_v2  ;;  %v21619_v61 = vld [vmem:[#allocation49_spill] sm:$0xff] }
0x1956   : > { %15204 = vmatpush.msra.mxu2 %v18152_v34  ;;  %v14916_v52 = vadd.f32 0.0001, %v14914_v13 }
0x1957   : > { %15024 = vmatmul.f32.gmra.mxu0 %v18160_v41  ;;  %v14087_v55 = vadd.f32 %v21603_v11, %v14054_v5  ;;  %v14504_v59 = vadd.f32 %v21618_v57, %v14477_v27  ;;  %v14118_v5 = vadd.f32 %v21619_v61, %v14091_v12 }
0x1958   : > { %15206 = vmatpush.msra.mxu2 %v18175_v44 }
0x1959   : > { %15059 = vmatmul.f32.gmra.mxu1 %v18134_v20  ;;  %v14114_v6 = vadd.f32 %v21611_v54, %v14087_v55  ;;  %v14901_v58 = vsub.f32 %v14504_v59, %v14895_v18 }
0x195b   : > { %v14898_v42 = vsub.f32 %v14114_v6, %v14892_v28 }
0x195d   : > { %14861 = vmatmul.f32.gmra.mxu2 %v14728_v14  ;;  %15115 = vmatmul.f32.vlgmr.msrb.gmra.mxu3 %v18143_v25  ;;  %v21608_v14 = vld [vmem:[#allocation33_spill] sm:$0xff]  ;;  %v14918_v37 = vadd.f32 %v14900_v53, %v14898_v42 }
0x195e   : > { %15367 = vmatpush.msrb.mxu3 %v18152_v34  ;;  %v13288_v26 = vadd.f32 %v21608_v14, %v13257_v63 }
0x195f   : > { %15148 = vmatmul.f32.vlgmr.msra.gmra.mxu0 %v18131_v16  ;;  %v14920_v63 = vadd.f32 0.0009, %v14918_v37  ;;  %v14904_v37 = vmul.f32 2.0, %v14896_v31 }
0x1960   : > { %15369 = vmatpush.msrb.mxu3 %v18175_v44  ;;  %v13319_v56 = vadd.f32 %v21612_v50, %v13288_v26 }
0x1961   : > { %15175 = vmatmul.f32.vlgmr.msra.gmra.mxu1 %v18131_v16  ;;  %v14922_v55 = vmul.f32 %v14920_v63, %v14916_v52 }
0x1962   : > { %v13346_v7 = vadd.f32 %v21617_v0, %v13319_v56 }
0x1963   : > { %17442 = vrcp.f32 %v14922_v55 }
0x1964   : > { %v14893_v62 = vmul.f32 %v13346_v7, %v13346_v7 }
0x1965   : > { %15085 = vmatmul.f32.vlgmr.msrb.gmra.mxu2 %v18137_v21  ;;  %15121 = vmatmul.f32.gmra.mxu3 %v18148_v30 }
0x1966   : > { %15338 = vmatpush.msrb.mxu2 %v18178_v45  ;;  %v14899_v23 = vsub.f32 %v14118_v5, %v14893_v62  ;;  %v14915_v19 = vadd.f32 %v14895_v18, %v14893_v62 }
0x1967   : > { %15152 = vmatmul.f32.gmra.mxu0 %v18134_v20 }
0x1968   : > { %15342 = vmatpush.msrb.mxu2 %v18189_v48  ;;  %v14919_v11 = vadd.f32 %v14901_v58, %v14899_v23  ;;  %v14917_v4 = vadd.f32 0.0001, %v14915_v19  ;;  %v14897_v23 = vmul.f32 %v13732_v29, %v13346_v7 }
0x1969   : > { %15179 = vmatmul.f32.gmra.mxu1 %v18134_v20  ;;  %v17443_v26 = vpop.eup %17442 }
0x196a   : > { %v14921_v36 = vadd.f32 0.0009, %v14919_v11  ;;  %v14926_v3 = vmul.f32 %v17443_v26, %v14922_v55 }
0x196c   : > { %v14923_v32 = vmul.f32 %v14921_v36, %v14917_v4  ;;  %v14928_v6 = vsub.f32 2.0, %v14926_v3  ;;  %v20695_v4 = vld [vmem:[%s581_s14 + $0x8] sm:$0xff] }
0x196d   : > { %15090 = vmatmul.f32.gmra.mxu2 %v18140_v24  ;;  %v14960_v3 = vmul.f32 0.0, %v20695_v4 }
0x196e   : > { %17444 = vrcp.f32 %v14923_v32  ;;  %v14930_v60 = vmul.f32 %v17443_v26, %v14928_v6  ;;  %v17503_v26 = vld [vmem:[%s18208_s15 + $0x68] sm:$0xff]  ;;  %v17504_v6 = vld [vmem:[%s18208_s15 + $0x70] sm:$0xff] }
0x196f   : > { %v14956_v29 = vmul.f32 0.30780134, %v17503_v26 }
0x1970   : > { %v14932_v0 = vmul.f32 %v14930_v60, %v14922_v55 }
0x1972   : > { %v14934_v58 = vsub.f32 2.0, %v14932_v0 }
0x1974   : > { %v17445_v54 = vpop.eup %17444  ;;  %v14936_v19 = vmul.f32 %v14934_v58, %v14930_v60 }
0x1975   : > { %v14927_v8 = vmul.f32 %v17445_v54, %v14923_v32 }
0x1977   : > { %v14929_v42 = vsub.f32 2.0, %v14927_v8 }
0x1979   : > { %v14931_v61 = vmul.f32 %v17445_v54, %v14929_v42 }
0x197b   : > { %v14933_v11 = vmul.f32 %v14931_v61, %v14923_v32 }
0x197d   : > { %v14935_v32 = vsub.f32 2.0, %v14933_v11 }
0x19bc   : > { %v14795_v17 = vpop.f32.mrf.mxu0 }
0x19be   : > { %v14825_v39 = vpop.f32.mrf.mxu1 }
0x19c0   : > { %v14765_v15 = vpop.f32.mrf.mxu3 }
0x19c4   : > { %v14800_v40 = vpop.f32.mrf.mxu0 }
0x19c6   : > { %v14831_v2 = vpop.f32.mrf.mxu1 }
0x19c8   : > { %v14726_v9 = vpop.f32.mrf.mxu2  ;;  %v14769_v14 = vpop.f32.mrf.mxu3 }
0x19c9   : > { %v14766_v35 = vadd.f32 %v14765_v15, %v14726_v9  ;;  %v14906_v15 = vadd.f32 0.0001, %v14904_v37  ;;  %v17502_v9 = vld [vmem:[%s18208_s15 + $0x78] sm:$0xff] }
0x19cb   : > { %v14796_v50 = vadd.f32 %v14795_v17, %v14766_v35 }
0x19cc   : > { %v15017_v22 = vpop.f32.mrf.mxu0 }
0x19cd   : > { %v14826_v28 = vadd.f32 %v14825_v39, %v14796_v50  ;;  %v14905_v39 = vmul.f32 2.0, %v14897_v23  ;;  %v14953_v50 = vmul.f32 0.38439733, %v17504_v6 }
0x19ce   : > { %v15056_v38 = vpop.f32.mrf.mxu1 }
0x19cf   : > { %v14907_v60 = vadd.f32 0.0001, %v14905_v39 }
0x19d0   : > { %v14734_v10 = vpop.f32.mrf.mxu2  ;;  %v14885_v56 = vpop.f32.mrf.mxu3 }
0x19d1   : > { %v14770_v27 = vadd.f32 %v14769_v14, %v14734_v10  ;;  %v14954_v14 = vmul.f32 0.38439733, %v17502_v9  ;;  %v15057_v10 = vadd.f32 %v15056_v38, %v15017_v22  ;;  %v14937_v38 = vmul.f32 %v14935_v32, %v14931_v61 }
0x19d3   : > { %v14801_v57 = vadd.f32 %v14800_v40, %v14770_v27 }
0x19d4   : > { %v15025_v13 = vpop.f32.mrf.mxu0 }
0x19d5   : > { %v14832_v63 = vadd.f32 %v14831_v2, %v14801_v57  ;;  %v14958_v2 = vadd.f32 %v14956_v29, %v14954_v14 }
0x19d6   : > { %v15060_v55 = vpop.f32.mrf.mxu1 }
0x19d8   : > { %v14858_v53 = vpop.f32.mrf.mxu2  ;;  %v14889_v5 = vpop.f32.mrf.mxu3 }
0x19d9   : > { %v14859_v12 = vadd.f32 %v14858_v53, %v14826_v28  ;;  %v14962_v53 = vadd.f32 %v14960_v3, %v14958_v2 }
0x19db   : > { %v14886_v59 = vadd.f32 %v14885_v56, %v14859_v12  ;;  %v17505_v56 = vld [vmem:[%s18208_s15 + $0x60] sm:$0xff]  ;;  %v15393_v37 = vand.u32 4294901760, %v14962_v53 }
0x19dc   : > { %v14955_v8 = vmul.f32 0.30780134, %v17505_v56  ;;  %v15149_v28 = vpop.f32.mrf.mxu0 }
0x19dd   : > { %v14902_v18 = vsub.f32 %v14886_v59, %v14896_v31  ;;  %v20704_v31 = vld [vmem:[%s581_s14] sm:$0xff]  ;;  %15394 = vmatpush.msra.mxu0 %v15393_v37 }
0x19de   : > { %v14957_v0 = vadd.f32 %v14955_v8, %v14953_v50  ;;  %v14959_v57 = vmul.f32 0.0, %v20704_v31  ;;  %v15176_v59 = vpop.f32.mrf.mxu1 }
0x19df   : > { %v14908_v62 = vmul.f32 2.0, %v14902_v18 }
0x19e0   : > { %v14862_v52 = vpop.f32.mrf.mxu2  ;;  %v15116_v35 = vpop.f32.mrf.mxu3 }
0x19e1   : > { %v14910_v47 = vadd.f32 0.0009, %v14908_v62  ;;  %v14863_v1 = vadd.f32 %v14862_v52, %v14832_v63  ;;  %v15429_v62 = vsub.f32 %v14962_v53, %v15393_v37 }
0x19e3   : > { %v14912_v17 = vmul.f32 %v14910_v47, %v14906_v15  ;;  %v14890_v36 = vadd.f32 %v14889_v5, %v14863_v1  ;;  %v14961_v5 = vadd.f32 %v14959_v57, %v14957_v0  ;;  %v15430_v52 = vand.u32 4294901760, %v15429_v62 }
0x19e4   : > { %v15061_v15 = vadd.f32 %v15060_v55, %v15025_v13  ;;  %v15153_v14 = vpop.f32.mrf.mxu0 }
0x19e5   : > { %v14938_v7 = vmul.f32 %v14936_v19, %v14912_v17  ;;  %v14903_v40 = vsub.f32 %v14890_v36, %v14897_v23  ;;  %v15395_v23 = vand.u32 4294901760, %v14961_v5  ;;  %v15431_v19 = vsub.f32 %v15429_v62, %v15430_v52 }
0x19e6   : > { %v15180_v3 = vpop.f32.mrf.mxu1 }
0x19e7   : > { %17286 = vst.msk [vmem:[%s18598_s26 + $0x60] sm:$0xff] %vm830_vm0, %v14938_v7  ;;  %v14909_v54 = vmul.f32 2.0, %v14903_v40  ;;  %15396 = vmatpush.msra.mxu0 %v15395_v23  ;;  %v15435_v1 = vsub.f32 %v14961_v5, %v15395_v23  ;;  %v15432_v26 = vand.u32 4294901760, %v15431_v19 }
0x19e8   : > { %v15086_v27 = vpop.f32.mrf.mxu2  ;;  %v15122_v17 = vpop.f32.mrf.mxu3 }
0x19e9   : > { %v14911_v12 = vadd.f32 0.0009, %v14909_v54  ;;  %v15087_v42 = vadd.f32 %v15086_v27, %v15057_v10  ;;  %v15436_v39 = vand.u32 4294901760, %v15435_v1  ;;  %15433 = vmatpush.msra.mxu1 %v15432_v26 }
0x19eb   : > { %v14913_v22 = vmul.f32 %v14911_v12, %v14907_v60  ;;  %v15117_v18 = vadd.f32 %v15116_v35, %v15087_v42  ;;  %v15437_v7 = vsub.f32 %v15435_v1, %v15436_v39 }
0x19ed   : > { %v14939_v58 = vmul.f32 %v14937_v38, %v14913_v22  ;;  %v15150_v63 = vadd.f32 %v15149_v28, %v15117_v18  ;;  %v15438_v55 = vand.u32 4294901760, %v15437_v7 }
0x19ef   : > { %17287 = vst.msk [vmem:[%s18598_s26 + $0x68] sm:$0xff] %vm830_vm0, %v14939_v58  ;;  %v15177_v47 = vadd.f32 %v15176_v59, %v15150_v63  ;;  %15439 = vmatpush.msra.mxu1 %v15438_v55 }
0x19f0   : > { %v15091_v11 = vpop.f32.mrf.mxu2 }
0x19f1   : > { %v15184_v36 = vsel %vm830_vm0, %v15177_v47, 0  ;;  %v15092_v61 = vadd.f32 %v15091_v11, %v15061_v15  ;;  %v21621_v15 = vld [vmem:[#allocation55_spill] sm:$0xff] }
0x19f2   : > { %v15207_v9 = vand.u32 4294901760, %v15184_v36  ;;  %v14964_v47 = vmul.f32 0.38439733, %v21621_v15 }
0x19f3   : > { %v15123_v29 = vadd.f32 %v15122_v17, %v15092_v61 }
0x19f4   : > { %v15208_v40 = vsub.f32 %v15184_v36, %v15207_v9  ;;  %15251 = vmatmul.f32.vlgmr.msra.gmra.mxu3 %v15207_v9 }
0x19f5   : > { %v15154_v13 = vadd.f32 %v15153_v14, %v15123_v29  ;;  %15495 = vmatpush.msra.mxu3 %v15393_v37  ;;  %v21624_v14 = vld [vmem:[#allocation43_spill] sm:$0xff]  ;;  %v21625_v29 = vld [vmem:[#allocation42_spill] sm:$0xff] }
0x19f6   : > { %v15209_v32 = vand.u32 4294901760, %v15208_v40  ;;  %15281 = vmatmul.f32.vlgmr.msrb.gmra.mxu0 %v15208_v40  ;;  %v14963_v26 = vmul.f32 0.38439733, %v21624_v14  ;;  %v14965_v7 = vmul.f32 0.30780134, %v21625_v29 }
0x19f7   : > { %v15181_v35 = vadd.f32 %v15180_v3, %v15154_v13  ;;  %15497 = vmatpush.msra.mxu3 %v15395_v23  ;;  %15528 = vmatpush.msrb.mxu0 %v15430_v52 }
0x19f8   : > { %v15210_v2 = vsub.f32 %v15208_v40, %v15209_v32  ;;  %15311 = vmatmul.f32.vlgmr.msrb.gmra.mxu1 %v15209_v32  ;;  %v14967_v32 = vadd.f32 %v14965_v7, %v14963_v26 }
0x19f9   : > { %v15187_v10 = vsel %vm830_vm0, %v15181_v35, 0  ;;  %15557 = vmatpush.msrb.mxu1 %v15393_v37  ;;  %15532 = vmatpush.msrb.mxu0 %v15436_v39  ;;  %v21623_v39 = vld [vmem:[#allocation31_spill] sm:$0xff] }
0x19fa   : > { %v15211_v54 = vand.u32 4294901760, %v15210_v2  ;;  %v15215_v6 = vand.u32 4294901760, %v15187_v10 }
0x19fb   : > { %15559 = vmatpush.msrb.mxu1 %v15395_v23  ;;  %v21620_v23 = vld [vmem:[#allocation46_spill] sm:$0xff] }
0x19fc   : > { %15212 = vmatmul.f32.vlgmr.msra.gmra.mxu2 %v15211_v54  ;;  %15255 = vmatmul.f32.gmra.mxu3 %v15215_v6  ;;  %v15216_v50 = vsub.f32 %v15187_v10, %v15215_v6  ;;  %v772_v52 = vmul.f32 %v21620_v23, %v21620_v23 }
0x19fd   : > { %15465 = vmatpush.msra.mxu2 %v15429_v62 }
0x19fe   : > { %15286 = vmatmul.f32.gmra.mxu0 %v15216_v50  ;;  %v15217_v56 = vand.u32 4294901760, %v15216_v50  ;;  %v14970_v36 = vmul.f32 0.0, %v772_v52 }
0x19ff   : > { %15468 = vmatpush.msra.mxu2 %v15435_v1  ;;  %v21622_v1 = vld [vmem:[#allocation40_spill] sm:$0xff] }
0x1a00   : > { %15317 = vmatmul.f32.gmra.mxu1 %v15217_v56  ;;  %v15218_v8 = vsub.f32 %v15216_v50, %v15217_v56  ;;  %v14966_v11 = vmul.f32 0.30780134, %v21622_v1 }
0x1a02   : > { %v15219_v60 = vand.u32 4294901760, %v15218_v8  ;;  %v14968_v19 = vadd.f32 %v14966_v11, %v14964_v47 }
0x1a04   : > { %15220 = vmatmul.f32.gmra.mxu2 %v15219_v60  ;;  %15371 = vmatmul.f32.vlgmr.msrb.gmra.mxu3 %v15207_v9  ;;  %v14972_v13 = vadd.f32 %v14970_v36, %v14968_v19 }
0x1a05   : > { %15629 = vmatpush.msrb.mxu3 %v18193_v49 }
0x1a06   : > { %15402 = vmatmul.f32.vlgmr.msra.gmra.mxu0 %v18150_v33  ;;  %v15779_v10 = vand.u32 4294901760, %v14972_v13 }
0x1a07   : > { %15635 = vmatpush.msrb.mxu3 %v18199_v51  ;;  %15661 = vmatpush.msra.mxu0 %v18173_v43 }
0x1a08   : > { %15441 = vmatmul.f32.vlgmr.msra.gmra.mxu1 %v18131_v16  ;;  %v15815_v50 = vsub.f32 %v14972_v13, %v15779_v10 }
0x1a09   : > { %15664 = vmatpush.msra.mxu0 %v18181_v46  ;;  %15691 = vmatpush.msra.mxu1 %v18152_v34 }
0x1a0a   : > { %v15816_v60 = vand.u32 4294901760, %v15815_v50 }
0x1a0b   : > { %15693 = vmatpush.msra.mxu1 %v18175_v44 }
0x1a0c   : > { %15344 = vmatmul.f32.vlgmr.msrb.gmra.mxu2 %v15207_v9  ;;  %15375 = vmatmul.f32.gmra.mxu3 %v15215_v6  ;;  %v771_v9 = vmul.f32 %v21623_v39, %v21623_v39  ;;  %v15817_v47 = vsub.f32 %v15815_v50, %v15816_v60 }
0x1a0d   : > { %15590 = vmatpush.msrb.mxu2 %v18152_v34 }
0x1a0e   : > { %15410 = vmatmul.f32.gmra.mxu0 %v18160_v41  ;;  %v14969_v35 = vmul.f32 0.0, %v771_v9 }
0x1a0f   : > { %15592 = vmatpush.msrb.mxu2 %v18175_v44 }
0x1a10   : > { %15445 = vmatmul.f32.gmra.mxu1 %v18134_v20 }
0x1a14   : > { %15348 = vmatmul.f32.gmra.mxu2 %v15215_v6  ;;  %15501 = vmatmul.f32.vlgmr.msra.gmra.mxu3 %v18143_v25  ;;  %v14971_v6 = vadd.f32 %v14969_v35, %v14967_v32 }
0x1a15   : > { %15753 = vmatpush.msra.mxu3 %v18152_v34 }
0x1a16   : > { %15534 = vmatmul.f32.vlgmr.msrb.gmra.mxu0 %v18131_v16  ;;  %v15781_v8 = vand.u32 4294901760, %v14971_v6 }
0x1a17   : > { %15755 = vmatpush.msra.mxu3 %v18175_v44  ;;  %15780 = vmatpush.msrb.mxu0 %v15779_v10 }
0x1a18   : > { %15561 = vmatmul.f32.vlgmr.msrb.gmra.mxu1 %v18131_v16  ;;  %v15821_v23 = vsub.f32 %v14971_v6, %v15781_v8 }
0x1a19   : > { %15782 = vmatpush.msrb.mxu0 %v15781_v8 }
0x1a1a   : > { %v15822_v19 = vand.u32 4294901760, %v15821_v23 }
0x1a1c   : > { %15471 = vmatmul.f32.vlgmr.msra.gmra.mxu2 %v18137_v21  ;;  %15507 = vmatmul.f32.gmra.mxu3 %v18148_v30  ;;  %v15823_v9 = vsub.f32 %v15821_v23, %v15822_v19 }
0x1a1d   : > { %15724 = vmatpush.msra.mxu2 %v18178_v45 }
0x1a1e   : > { %15538 = vmatmul.f32.gmra.mxu0 %v18134_v20 }
0x1a1f   : > { %15728 = vmatpush.msra.mxu2 %v18189_v48 }
0x1a20   : > { %15565 = vmatmul.f32.gmra.mxu1 %v18134_v20 }
0x1a24   : > { %15476 = vmatmul.f32.gmra.mxu2 %v18140_v24 }
0x1a73   : > { %v20737_v28 = vpop.f32.mrf.mxu0 }
0x1a75   : > { %v20739_v53 = vpop.f32.mrf.mxu1 }
0x1a77   : > { %v20735_v27 = vpop.f32.mrf.mxu3 }
0x1a7b   : > { %v20745_v0 = vpop.f32.mrf.mxu0 }
0x1a7d   : > { %v20747_v57 = vpop.f32.mrf.mxu1 }
0x1a7f   : > { %v20741_v12 = vpop.f32.mrf.mxu2  ;;  %v20743_v42 = vpop.f32.mrf.mxu3 }
0x1a83   : > { %v15403_v22 = vpop.f32.mrf.mxu0 }
0x1a85   : > { %v15442_v18 = vpop.f32.mrf.mxu1 }
0x1a86   : > { %v15443_v61 = vadd.f32 %v15442_v18, %v15403_v22 }
0x1a87   : > { %v20749_v59 = vpop.f32.mrf.mxu2  ;;  %v20751_v37 = vpop.f32.mrf.mxu3 }
0x1a8b   : > { %v15411_v62 = vpop.f32.mrf.mxu0 }
0x1a8d   : > { %v15446_v63 = vpop.f32.mrf.mxu1 }
0x1a8e   : > { %v15447_v22 = vadd.f32 %v15446_v63, %v15411_v62  ;;  %v15824_v63 = vand.u32 4294901760, %v15823_v9 }
0x1a8f   : > { %v20753_v38 = vpop.f32.mrf.mxu2  ;;  %v20755_v5 = vpop.f32.mrf.mxu3 }
0x1a93   : > { %v15535_v3 = vpop.f32.mrf.mxu0 }
0x1a95   : > { %v15562_v2 = vpop.f32.mrf.mxu1 }
0x1a97   : > { %v20757_v58 = vpop.f32.mrf.mxu2  ;;  %v15502_v17 = vpop.f32.mrf.mxu3 }
0x1a9d   : > { %v15566_v26 = vpop.f32.mrf.mxu1 }
0x1a9f   : > { %v15472_v40 = vpop.f32.mrf.mxu2  ;;  %v15508_v15 = vpop.f32.mrf.mxu3 }
0x1aa0   : > { %v15473_v55 = vadd.f32 %v15472_v40, %v15443_v61  ;;  %v15539_v61 = vpop.f32.mrf.mxu0 }
0x1aa2   : > { %v15503_v54 = vadd.f32 %v15502_v17, %v15473_v55  ;;  %v15818_v17 = vand.u32 4294901760, %v15817_v47 }
0x1aa4   : > { %v15536_v56 = vadd.f32 %v15535_v3, %v15503_v54  ;;  %15819 = vmatpush.msrb.mxu1 %v15818_v17 }
0x1aa6   : > { %v15563_v18 = vadd.f32 %v15562_v2, %v15536_v56  ;;  %15825 = vmatpush.msrb.mxu1 %v15824_v63 }
0x1aa7   : > { %v15477_v52 = vpop.f32.mrf.mxu2 }
0x1aa8   : > { %v15570_v1 = vsel %vm830_vm0, %v15563_v18, 0  ;;  %v15478_v11 = vadd.f32 %v15477_v52, %v15447_v22 }
0x1aa9   : > { %v15593_v36 = vand.u32 4294901760, %v15570_v1 }
0x1aaa   : > { %v15509_v39 = vadd.f32 %v15508_v15, %v15478_v11 }
0x1aab   : > { %v15594_v14 = vsub.f32 %v15570_v1, %v15593_v36  ;;  %15637 = vmatmul.f32.vlgmr.msrb.gmra.mxu3 %v15593_v36 }
0x1aac   : > { %v15540_v62 = vadd.f32 %v15539_v61, %v15509_v39  ;;  %15881 = vmatpush.msrb.mxu3 %v15779_v10 }
0x1aad   : > { %v15595_v29 = vand.u32 4294901760, %v15594_v14  ;;  %15667 = vmatmul.f32.vlgmr.msra.gmra.mxu0 %v15594_v14 }
0x1aae   : > { %v15567_v7 = vadd.f32 %v15566_v26, %v15540_v62  ;;  %15883 = vmatpush.msrb.mxu3 %v15781_v8  ;;  %15914 = vmatpush.msra.mxu0 %v15816_v60 }
0x1aaf   : > { %v15596_v40 = vsub.f32 %v15594_v14, %v15595_v29  ;;  %15697 = vmatmul.f32.vlgmr.msra.gmra.mxu1 %v15595_v29 }
0x1ab0   : > { %v15573_v3 = vsel %vm830_vm0, %v15567_v7, 0  ;;  %15943 = vmatpush.msra.mxu1 %v15779_v10  ;;  %15918 = vmatpush.msra.mxu0 %v15822_v19 }
0x1ab1   : > { %v15597_v13 = vand.u32 4294901760, %v15596_v40  ;;  %v15601_v55 = vand.u32 4294901760, %v15573_v3  ;;  %v774_v40 = vmul.f32 %v20695_v4, %v20695_v4 }
0x1ab2   : > { %15945 = vmatpush.msra.mxu1 %v15781_v8 }
0x1ab3   : > { %v15602_v32 = vsub.f32 %v15573_v3, %v15601_v55  ;;  %15598 = vmatmul.f32.vlgmr.msrb.gmra.mxu2 %v15597_v13  ;;  %15641 = vmatmul.f32.gmra.mxu3 %v15601_v55  ;;  %v21626_v3 = vld [vmem:[#allocation39_spill] sm:$0xff] }
0x1ab4   : > { %15851 = vmatpush.msrb.mxu2 %v15815_v50  ;;  %v14974_v13 = vmul.f32 0.38439733, %v21626_v3 }
0x1ab5   : > { %15672 = vmatmul.f32.gmra.mxu0 %v15602_v32  ;;  %v15603_v35 = vand.u32 4294901760, %v15602_v32 }
0x1ab6   : > { %15854 = vmatpush.msrb.mxu2 %v15821_v23 }
0x1ab7   : > { %15703 = vmatmul.f32.gmra.mxu1 %v15603_v35  ;;  %v15604_v2 = vsub.f32 %v15602_v32, %v15603_v35 }
0x1ab9   : > { %v15605_v54 = vand.u32 4294901760, %v15604_v2 }
0x1abb   : > { %15606 = vmatmul.f32.gmra.mxu2 %v15605_v54  ;;  %15757 = vmatmul.f32.vlgmr.msra.gmra.mxu3 %v15593_v36  ;;  %v14980_v54 = vmul.f32 0.0, %v774_v40 }
0x1abc   : > { %16015 = vmatpush.msra.mxu3 %v18193_v49 }
0x1abd   : > { %15788 = vmatmul.f32.vlgmr.msrb.gmra.mxu0 %v18150_v33 }
0x1abe   : > { %16021 = vmatpush.msra.mxu3 %v18199_v51  ;;  %16047 = vmatpush.msrb.mxu0 %v18173_v43 }
0x1abf   : > { %15827 = vmatmul.f32.vlgmr.msrb.gmra.mxu1 %v18131_v16 }
0x1ac0   : > { %16050 = vmatpush.msrb.mxu0 %v18181_v46  ;;  %16077 = vmatpush.msrb.mxu1 %v18152_v34 }
0x1ac2   : > { %16079 = vmatpush.msrb.mxu1 %v18175_v44 }
0x1ac3   : > { %15730 = vmatmul.f32.vlgmr.msra.gmra.mxu2 %v15593_v36  ;;  %15761 = vmatmul.f32.gmra.mxu3 %v15601_v55 }
0x1ac4   : > { %15976 = vmatpush.msra.mxu2 %v18152_v34 }
0x1ac5   : > { %15796 = vmatmul.f32.gmra.mxu0 %v18160_v41 }
0x1ac6   : > { %15978 = vmatpush.msra.mxu2 %v18175_v44 }
0x1ac7   : > { %15831 = vmatmul.f32.gmra.mxu1 %v18134_v20 }
0x1acb   : > { %15734 = vmatmul.f32.gmra.mxu2 %v15601_v55  ;;  %15887 = vmatmul.f32.vlgmr.msrb.gmra.mxu3 %v18143_v25  ;;  %v21627_v55 = vld [vmem:[#allocation29_spill] sm:$0xff] }
0x1acc   : > { %16139 = vmatpush.msrb.mxu3 %v18152_v34  ;;  %v14976_v32 = vmul.f32 0.30780134, %v21627_v55 }
0x1acd   : > { %15920 = vmatmul.f32.vlgmr.msra.gmra.mxu0 %v18131_v16 }
0x1ace   : > { %16141 = vmatpush.msrb.mxu3 %v18175_v44  ;;  %v14978_v2 = vadd.f32 %v14976_v32, %v14974_v13 }
0x1acf   : > { %15947 = vmatmul.f32.vlgmr.msra.gmra.mxu1 %v18131_v16 }
0x1ad3   : > { %15857 = vmatmul.f32.vlgmr.msrb.gmra.mxu2 %v18137_v21  ;;  %15893 = vmatmul.f32.gmra.mxu3 %v18148_v30 }
0x1ad4   : > { %16110 = vmatpush.msrb.mxu2 %v18178_v45 }
0x1ad5   : > { %15924 = vmatmul.f32.gmra.mxu0 %v18134_v20 }
0x1ad6   : > { %16114 = vmatpush.msrb.mxu2 %v18189_v48 }
0x1ad7   : > { %15951 = vmatmul.f32.gmra.mxu1 %v18134_v20 }
0x1adb   : > { %15862 = vmatmul.f32.gmra.mxu2 %v18140_v24 }
0x1b2a   : > { %v15668_v6 = vpop.f32.mrf.mxu0 }
0x1b2c   : > { %v15698_v50 = vpop.f32.mrf.mxu1 }
0x1b2e   : > { %v15638_v10 = vpop.f32.mrf.mxu3 }
0x1b32   : > { %v15673_v18 = vpop.f32.mrf.mxu0 }
0x1b34   : > { %v15704_v52 = vpop.f32.mrf.mxu1 }
0x1b36   : > { %v15599_v56 = vpop.f32.mrf.mxu2  ;;  %v15642_v60 = vpop.f32.mrf.mxu3 }
0x1b37   : > { %v15639_v8 = vadd.f32 %v15638_v10, %v15599_v56 }
0x1b39   : > { %v15669_v22 = vadd.f32 %v15668_v6, %v15639_v8  ;;  %v773_v6 = vmul.f32 %v20704_v31, %v20704_v31 }
0x1b3a   : > { %v15789_v19 = vpop.f32.mrf.mxu0 }
0x1b3b   : > { %v15699_v23 = vadd.f32 %v15698_v50, %v15669_v22  ;;  %v21628_v50 = vld [vmem:[#allocation47_spill] sm:$0xff]  ;;  %v14982_v22 = vadd.f32 %v14980_v54, %v14978_v2 }
0x1b3c   : > { %v15828_v17 = vpop.f32.mrf.mxu1  ;;  %v14973_v56 = vmul.f32 0.38439733, %v21628_v50 }
0x1b3d   : > { %v15829_v10 = vadd.f32 %v15828_v17, %v15789_v19 }
0x1b3e   : > { %v15607_v15 = vpop.f32.mrf.mxu2  ;;  %v15758_v11 = vpop.f32.mrf.mxu3 }
0x1b3f   : > { %v15643_v47 = vadd.f32 %v15642_v60, %v15607_v15  ;;  %v14979_v15 = vmul.f32 0.0, %v773_v6 }
0x1b41   : > { %v15674_v1 = vadd.f32 %v15673_v18, %v15643_v47  ;;  %v21629_v18 = vld [vmem:[#allocation63_spill] sm:$0xff] }
0x1b42   : > { %v15797_v26 = vpop.f32.mrf.mxu0 }
0x1b43   : > { %v15705_v36 = vadd.f32 %v15704_v52, %v15674_v1  ;;  %v16165_v1 = vand.u32 4294901760, %v14982_v22 }
0x1b44   : > { %v15832_v29 = vpop.f32.mrf.mxu1 }
0x1b45   : > { %16166 = vmatpush.msra.mxu0 %v16165_v1 }
0x1b46   : > { %v15731_v61 = vpop.f32.mrf.mxu2  ;;  %v15762_v14 = vpop.f32.mrf.mxu3 }
0x1b47   : > { %v15732_v39 = vadd.f32 %v15731_v61, %v15699_v23  ;;  %v14975_v23 = vmul.f32 0.30780134, %v21629_v18  ;;  %v16201_v61 = vsub.f32 %v14982_v22, %v16165_v1 }
0x1b49   : > { %v20793_v9 = vadd.f32 %v15758_v11, %v15732_v39  ;;  %v14977_v11 = vadd.f32 %v14975_v23, %v14973_v56  ;;  %v16202_v17 = vand.u32 4294901760, %v16201_v61 }
0x1b4a   : > { %v15921_v60 = vpop.f32.mrf.mxu0 }
0x1b4b   : > { %v14981_v39 = vadd.f32 %v14979_v15, %v14977_v11  ;;  %v16203_v13 = vsub.f32 %v16201_v61, %v16202_v17 }
0x1b4c   : > { %v15948_v47 = vpop.f32.mrf.mxu1 }
0x1b4d   : > { %v16204_v6 = vand.u32 4294901760, %v16203_v13 }
0x1b4e   : > { %v15735_v62 = vpop.f32.mrf.mxu2  ;;  %v15888_v35 = vpop.f32.mrf.mxu3 }
0x1b4f   : > { %v15736_v63 = vadd.f32 %v15735_v62, %v15705_v36  ;;  %v15833_v62 = vadd.f32 %v15832_v29, %v15797_v26  ;;  %16205 = vmatpush.msra.mxu1 %v16204_v6 }
0x1b51   : > { %v20795_v7 = vadd.f32 %v15762_v14, %v15736_v63  ;;  %v16167_v14 = vand.u32 4294901760, %v14981_v39 }
0x1b53   : > { %16168 = vmatpush.msra.mxu0 %v16167_v14  ;;  %v16207_v55 = vsub.f32 %v14981_v39, %v16167_v14 }
0x1b56   : > { %v15858_v8 = vpop.f32.mrf.mxu2  ;;  %v15894_v3 = vpop.f32.mrf.mxu3 }
0x1b57   : > { %v15859_v52 = vadd.f32 %v15858_v8, %v15829_v10  ;;  %v15925_v10 = vpop.f32.mrf.mxu0  ;;  %v15952_v8 = vpop.f32.mrf.mxu1 }
0x1b59   : > { %v15889_v36 = vadd.f32 %v15888_v35, %v15859_v52  ;;  %v16208_v35 = vand.u32 4294901760, %v16207_v55 }
0x1b5b   : > { %v15922_v19 = vadd.f32 %v15921_v60, %v15889_v36  ;;  %v16209_v60 = vsub.f32 %v16207_v55, %v16208_v35 }
0x1b5d   : > { %v15949_v63 = vadd.f32 %v15948_v47, %v15922_v19  ;;  %v16210_v22 = vand.u32 4294901760, %v16209_v60 }
0x1b5e   : > { %v15863_v40 = vpop.f32.mrf.mxu2 }
0x1b5f   : > { %v15956_v32 = vsel %vm830_vm0, %v15949_v63, 0  ;;  %v15864_v2 = vadd.f32 %v15863_v40, %v15833_v62  ;;  %16211 = vmatpush.msra.mxu1 %v16210_v22 }
0x1b60   : > { %v15979_v54 = vand.u32 4294901760, %v15956_v32 }
0x1b61   : > { %v15895_v50 = vadd.f32 %v15894_v3, %v15864_v2 }
0x1b62   : > { %v15980_v56 = vsub.f32 %v15956_v32, %v15979_v54  ;;  %16023 = vmatmul.f32.vlgmr.msra.gmra.mxu3 %v15979_v54 }
0x1b63   : > { %v15926_v26 = vadd.f32 %v15925_v10, %v15895_v50  ;;  %16267 = vmatpush.msra.mxu3 %v16165_v1 }
0x1b64   : > { %v15981_v29 = vand.u32 4294901760, %v15980_v56  ;;  %16053 = vmatmul.f32.vlgmr.msrb.gmra.mxu0 %v15980_v56 }
0x1b65   : > { %v15953_v18 = vadd.f32 %v15952_v8, %v15926_v26  ;;  %16269 = vmatpush.msra.mxu3 %v16167_v14  ;;  %16300 = vmatpush.msrb.mxu0 %v16202_v17 }
0x1b66   : > { %v15982_v23 = vsub.f32 %v15980_v56, %v15981_v29  ;;  %16083 = vmatmul.f32.vlgmr.msrb.gmra.mxu1 %v15981_v29 }
0x1b67   : > { %v15959_v52 = vsel %vm830_vm0, %v15953_v18, 0  ;;  %16304 = vmatpush.msrb.mxu0 %v16208_v35  ;;  %16329 = vmatpush.msrb.mxu1 %v16165_v1 }
0x1b68   : > { %v15983_v15 = vand.u32 4294901760, %v15982_v23  ;;  %v15987_v47 = vand.u32 4294901760, %v15959_v52 }
0x1b69   : > { %16331 = vmatpush.msrb.mxu1 %v16167_v14 }
0x1b6a   : > { %v15988_v11 = vsub.f32 %v15959_v52, %v15987_v47  ;;  %15984 = vmatmul.f32.vlgmr.msra.gmra.mxu2 %v15983_v15  ;;  %16027 = vmatmul.f32.gmra.mxu3 %v15987_v47  ;;  %v17506_v15 = vld [vmem:[%s20606_s16 + $0x8] sm:$0xff] }
0x1b6b   : > { %16237 = vmatpush.msra.mxu2 %v16201_v61 }
0x1b6c   : > { %16058 = vmatmul.f32.gmra.mxu0 %v15988_v11  ;;  %v15989_v36 = vand.u32 4294901760, %v15988_v11 }
0x1b6d   : > { %16240 = vmatpush.msra.mxu2 %v16207_v55 }
0x1b6e   : > { %16089 = vmatmul.f32.gmra.mxu1 %v15989_v36  ;;  %v15990_v39 = vsub.f32 %v15988_v11, %v15989_v36  ;;  %v21630_v11 = vld [vmem:[#allocation61_spill] sm:$0xff] }
0x1b6f   : > { %v14984_v36 = vmul.f32 0.38439733, %v21630_v11 }
0x1b70   : > { %v15991_v19 = vand.u32 4294901760, %v15990_v39  ;;  %v21631_v39 = vld [vmem:[#allocation51_spill] sm:$0xff] }
0x1b72   : > { %15992 = vmatmul.f32.gmra.mxu2 %v15991_v19  ;;  %16143 = vmatmul.f32.vlgmr.msrb.gmra.mxu3 %v15979_v54  ;;  %v14986_v19 = vmul.f32 0.30780134, %v21631_v39 }
0x1b73   : > { %16401 = vmatpush.msrb.mxu3 %v18193_v49 }
0x1b74   : > { %16174 = vmatmul.f32.vlgmr.msra.gmra.mxu0 %v18150_v33 }
0x1b75   : > { %16407 = vmatpush.msrb.mxu3 %v18199_v51  ;;  %16433 = vmatpush.msra.mxu0 %v18173_v43 }
0x1b76   : > { %16213 = vmatmul.f32.vlgmr.msra.gmra.mxu1 %v18131_v16 }
0x1b77   : > { %16436 = vmatpush.msra.mxu0 %v18181_v46  ;;  %16463 = vmatpush.msra.mxu1 %v18152_v34 }
0x1b79   : > { %16465 = vmatpush.msra.mxu1 %v18175_v44 }
0x1b7a   : > { %16116 = vmatmul.f32.vlgmr.msrb.gmra.mxu2 %v15979_v54  ;;  %16147 = vmatmul.f32.gmra.mxu3 %v15987_v47 }
0x1b7b   : > { %16362 = vmatpush.msrb.mxu2 %v18152_v34 }
0x1b7c   : > { %16182 = vmatmul.f32.gmra.mxu0 %v18160_v41 }
0x1b7d   : > { %16364 = vmatpush.msrb.mxu2 %v18175_v44 }
0x1b7e   : > { %16217 = vmatmul.f32.gmra.mxu1 %v18134_v20 }
0x1b82   : > { %16120 = vmatmul.f32.gmra.mxu2 %v15987_v47  ;;  %16273 = vmatmul.f32.vlgmr.msra.gmra.mxu3 %v18143_v25  ;;  %v776_v47 = vmul.f32 %v17506_v15, %v20695_v4 }
0x1b83   : > { %16525 = vmatpush.msra.mxu3 %v18152_v34 }
0x1b84   : > { %16306 = vmatmul.f32.vlgmr.msrb.gmra.mxu0 %v18131_v16 }
0x1b85   : > { %16527 = vmatpush.msra.mxu3 %v18175_v44 }
0x1b86   : > { %16333 = vmatmul.f32.vlgmr.msrb.gmra.mxu1 %v18131_v16 }
0x1b8a   : > { %16243 = vmatmul.f32.vlgmr.msra.gmra.mxu2 %v18137_v21  ;;  %16279 = vmatmul.f32.gmra.mxu3 %v18148_v30 }
0x1b8b   : > { %16496 = vmatpush.msra.mxu2 %v18178_v45 }
0x1b8c   : > { %16310 = vmatmul.f32.gmra.mxu0 %v18134_v20 }
0x1b8d   : > { %16500 = vmatpush.msra.mxu2 %v18189_v48 }
0x1b8e   : > { %16337 = vmatmul.f32.gmra.mxu1 %v18134_v20 }
0x1b92   : > { %16248 = vmatmul.f32.gmra.mxu2 %v18140_v24 }
0x1be1   : > { %v16054_v61 = vpop.f32.mrf.mxu0 }
0x1be3   : > { %v16084_v17 = vpop.f32.mrf.mxu1 }
0x1be5   : > { %v16024_v1 = vpop.f32.mrf.mxu3 }
0x1be9   : > { %v16059_v3 = vpop.f32.mrf.mxu0 }
0x1beb   : > { %v16090_v55 = vpop.f32.mrf.mxu1 }
0x1bed   : > { %v15985_v14 = vpop.f32.mrf.mxu2  ;;  %v16028_v63 = vpop.f32.mrf.mxu3 }
0x1bee   : > { %v16025_v62 = vadd.f32 %v16024_v1, %v15985_v14 }
0x1bf0   : > { %v16055_v40 = vadd.f32 %v16054_v61, %v16025_v62  ;;  %v14988_v61 = vadd.f32 %v14986_v19, %v14984_v36  ;;  %v17507_v62 = vld [vmem:[%s20606_s16] sm:$0xff] }
0x1bf1   : > { %v16175_v6 = vpop.f32.mrf.mxu0 }
0x1bf2   : > { %v16085_v13 = vadd.f32 %v16084_v17, %v16055_v40  ;;  %v14990_v17 = vmul.f32 0.0, %v776_v47  ;;  %v21632_v40 = vld [vmem:[#allocation34_spill] sm:$0xff] }
0x1bf3   : > { %v16214_v56 = vpop.f32.mrf.mxu1 }
0x1bf4   : > { %v16215_v14 = vadd.f32 %v16214_v56, %v16175_v6 }
0x1bf5   : > { %v15993_v32 = vpop.f32.mrf.mxu2  ;;  %v16144_v10 = vpop.f32.mrf.mxu3 }
0x1bf6   : > { %v16029_v2 = vadd.f32 %v16028_v63, %v15993_v32  ;;  %v775_v63 = vmul.f32 %v17507_v62, %v20704_v31 }
0x1bf8   : > { %v16060_v54 = vadd.f32 %v16059_v3, %v16029_v2  ;;  %v14983_v3 = vmul.f32 0.38439733, %v21632_v40 }
0x1bf9   : > { %v16183_v29 = vpop.f32.mrf.mxu0 }
0x1bfa   : > { %v16091_v35 = vadd.f32 %v16090_v55, %v16060_v54  ;;  %v14992_v54 = vadd.f32 %v14990_v17, %v14988_v61 }
0x1bfb   : > { %v16218_v23 = vpop.f32.mrf.mxu1 }
0x1bfc   : > { %v16219_v31 = vadd.f32 %v16218_v23, %v16183_v29 }
0x1bfd   : > { %v16117_v50 = vpop.f32.mrf.mxu2  ;;  %v16148_v26 = vpop.f32.mrf.mxu3 }
0x1bfe   : > { %v16118_v8 = vadd.f32 %v16117_v50, %v16085_v13  ;;  %v21633_v13 = vld [vmem:[#allocation30_spill] sm:$0xff] }
0x1bff   : > { %v14985_v55 = vmul.f32 0.30780134, %v21633_v13 }
0x1c00   : > { %v20831_v60 = vadd.f32 %v16144_v10, %v16118_v8  ;;  %v16551_v8 = vand.u32 4294901760, %v14992_v54 }
0x1c01   : > { %v16307_v2 = vpop.f32.mrf.mxu0  ;;  %v14987_v4 = vadd.f32 %v14985_v55, %v14983_v3 }
0x1c02   : > { %16552 = vmatpush.msrb.mxu0 %v16551_v8 }
0x1c03   : > { %v16334_v50 = vpop.f32.mrf.mxu1 }
0x1c05   : > { %v16121_v22 = vpop.f32.mrf.mxu2  ;;  %v16274_v1 = vpop.f32.mrf.mxu3 }
0x1c06   : > { %v16122_v18 = vadd.f32 %v16121_v22, %v16091_v35  ;;  %v14989_v35 = vmul.f32 0.0, %v775_v63 }
0x1c08   : > { %v20833_v52 = vadd.f32 %v16148_v26, %v16122_v18  ;;  %v14991_v22 = vadd.f32 %v14989_v35, %v14987_v4  ;;  %v16587_v18 = vsub.f32 %v14992_v54, %v16551_v8 }
0x1c09   : > { %v16311_v63 = vpop.f32.mrf.mxu0 }
0x1c0a   : > { %v16553_v56 = vand.u32 4294901760, %v14991_v22  ;;  %v16588_v15 = vand.u32 4294901760, %v16587_v18 }
0x1c0b   : > { %v16338_v55 = vpop.f32.mrf.mxu1 }
0x1c0c   : > { %16554 = vmatpush.msrb.mxu0 %v16553_v56  ;;  %v16593_v11 = vsub.f32 %v14991_v22, %v16553_v56  ;;  %v16589_v19 = vsub.f32 %v16587_v18, %v16588_v15 }
0x1c0d   : > { %v16244_v32 = vpop.f32.mrf.mxu2  ;;  %v16280_v39 = vpop.f32.mrf.mxu3 }
0x1c0e   : > { %v16245_v10 = vadd.f32 %v16244_v32, %v16215_v14  ;;  %v16594_v14 = vand.u32 4294901760, %v16593_v11 }
0x1c10   : > { %v16275_v26 = vadd.f32 %v16274_v1, %v16245_v10  ;;  %v16590_v1 = vand.u32 4294901760, %v16589_v19  ;;  %v16595_v3 = vsub.f32 %v16593_v11, %v16594_v14 }
0x1c12   : > { %v16308_v6 = vadd.f32 %v16307_v2, %v16275_v26  ;;  %16591 = vmatpush.msrb.mxu1 %v16590_v1  ;;  %v16596_v23 = vand.u32 4294901760, %v16595_v3 }
0x1c14   : > { %v16335_v47 = vadd.f32 %v16334_v50, %v16308_v6  ;;  %16597 = vmatpush.msrb.mxu1 %v16596_v23 }
0x1c15   : > { %v16249_v36 = vpop.f32.mrf.mxu2 }
0x1c16   : > { %v16342_v61 = vsel %vm830_vm0, %v16335_v47, 0  ;;  %v16250_v17 = vadd.f32 %v16249_v36, %v16219_v31 }
0x1c17   : > { %v16365_v62 = vand.u32 4294901760, %v16342_v61 }
0x1c18   : > { %v16281_v40 = vadd.f32 %v16280_v39, %v16250_v17 }
0x1c19   : > { %v16366_v13 = vsub.f32 %v16342_v61, %v16365_v62  ;;  %16409 = vmatmul.f32.vlgmr.msrb.gmra.mxu3 %v16365_v62 }
0x1c1a   : > { %v16312_v29 = vadd.f32 %v16311_v63, %v16281_v40  ;;  %16653 = vmatpush.msrb.mxu3 %v16551_v8  ;;  %v16926_v63 = vmul.f32 %v20795_v7, %v20795_v7 }
0x1c1b   : > { %v16367_v32 = vand.u32 4294901760, %v16366_v13  ;;  %16439 = vmatmul.f32.vlgmr.msra.gmra.mxu0 %v16366_v13 }
0x1c1c   : > { %v16339_v2 = vadd.f32 %v16338_v55, %v16312_v29  ;;  %16655 = vmatpush.msrb.mxu3 %v16553_v56  ;;  %16686 = vmatpush.msra.mxu0 %v16588_v15 }
0x1c1d   : > { %v16368_v54 = vsub.f32 %v16366_v13, %v16367_v32  ;;  %16469 = vmatmul.f32.vlgmr.msra.gmra.mxu1 %v16367_v32 }
0x1c1e   : > { %v16345_v10 = vsel %vm830_vm0, %v16339_v2, 0  ;;  %16715 = vmatpush.msra.mxu1 %v16551_v8  ;;  %16690 = vmatpush.msra.mxu0 %v16594_v14 }
0x1c1f   : > { %v16369_v4 = vand.u32 4294901760, %v16368_v54  ;;  %v16373_v35 = vand.u32 4294901760, %v16345_v10 }
0x1c20   : > { %16717 = vmatpush.msra.mxu1 %v16553_v56 }
0x1c21   : > { %v16374_v50 = vsub.f32 %v16345_v10, %v16373_v35  ;;  %16370 = vmatmul.f32.vlgmr.msrb.gmra.mxu2 %v16369_v4  ;;  %16413 = vmatmul.f32.gmra.mxu3 %v16373_v35 }
0x1c22   : > { %16623 = vmatpush.msrb.mxu2 %v16587_v18 }
0x1c23   : > { %16444 = vmatmul.f32.gmra.mxu0 %v16374_v50  ;;  %v16375_v26 = vand.u32 4294901760, %v16374_v50 }
0x1c24   : > { %16626 = vmatpush.msrb.mxu2 %v16593_v11 }
0x1c25   : > { %16475 = vmatmul.f32.gmra.mxu1 %v16375_v26  ;;  %v16376_v22 = vsub.f32 %v16374_v50, %v16375_v26 }
0x1c27   : > { %v16377_v6 = vand.u32 4294901760, %v16376_v22 }
0x1c29   : > { %16378 = vmatmul.f32.gmra.mxu2 %v16377_v6  ;;  %16529 = vmatmul.f32.vlgmr.msra.gmra.mxu3 %v16365_v62 }
0x1c2a   : > { %16787 = vmatpush.msra.mxu3 %v18193_v49 }
0x1c2b   : > { %16560 = vmatmul.f32.vlgmr.msrb.gmra.mxu0 %v18150_v33 }
0x1c2c   : > { %16793 = vmatpush.msra.mxu3 %v18199_v51  ;;  %16819 = vmatpush.msrb.mxu0 %v18173_v43 }
0x1c2d   : > { %16599 = vmatmul.f32.vlgmr.msrb.gmra.mxu1 %v18131_v16 }
0x1c2e   : > { %16822 = vmatpush.msrb.mxu0 %v18181_v46  ;;  %16849 = vmatpush.msrb.mxu1 %v18152_v34 }
0x1c30   : > { %16851 = vmatpush.msrb.mxu1 %v18175_v44 }
0x1c31   : > { %16502 = vmatmul.f32.vlgmr.msra.gmra.mxu2 %v16365_v62  ;;  %16533 = vmatmul.f32.gmra.mxu3 %v16373_v35 }
0x1c32   : > { %16748 = vmatpush.msra.mxu2 %v18152_v34 }
0x1c33   : > { %16568 = vmatmul.f32.gmra.mxu0 %v18160_v41 }
0x1c34   : > { %16750 = vmatpush.msra.mxu2 %v18175_v44 }
0x1c35   : > { %16603 = vmatmul.f32.gmra.mxu1 %v18134_v20 }
0x1c39   : > { %16506 = vmatmul.f32.gmra.mxu2 %v16373_v35  ;;  %16659 = vmatmul.f32.vlgmr.msrb.gmra.mxu3 %v18143_v25 }
0x1c3a   : > { %16911 = vmatpush.msrb.mxu3 %v18152_v34 }
0x1c3b   : > { %16692 = vmatmul.f32.vlgmr.msra.gmra.mxu0 %v18131_v16 }
0x1c3c   : > { %16913 = vmatpush.msrb.mxu3 %v18175_v44 }
0x1c3d   : > { %16719 = vmatmul.f32.vlgmr.msra.gmra.mxu1 %v18131_v16  ;;  %v15253_v16 = vadd.f32 %v20735_v27, %v20741_v12 }
0x1c41   : > { %16629 = vmatmul.f32.vlgmr.msrb.gmra.mxu2 %v18137_v21  ;;  %16665 = vmatmul.f32.gmra.mxu3 %v18148_v30 }
0x1c42   : > { %16882 = vmatpush.msrb.mxu2 %v18178_v45  ;;  %v15283_v45 = vadd.f32 %v20737_v28, %v15253_v16 }
0x1c43   : > { %16696 = vmatmul.f32.gmra.mxu0 %v18134_v20 }
0x1c44   : > { %16886 = vmatpush.msrb.mxu2 %v18189_v48 }
0x1c45   : > { %16723 = vmatmul.f32.gmra.mxu1 %v18134_v20  ;;  %v15257_v20 = vadd.f32 %v20743_v42, %v20749_v59  ;;  %v16925_v42 = vmul.f32 %v20793_v9, %v20793_v9 }
0x1c47   : > { %v15288_v12 = vadd.f32 %v20745_v0, %v15257_v20 }
0x1c49   : > { %16634 = vmatmul.f32.gmra.mxu2 %v18140_v24  ;;  %v15313_v24 = vadd.f32 %v20739_v53, %v15283_v45  ;;  %v15319_v11 = vadd.f32 %v20747_v57, %v15288_v12 }
0x1c4b   : > { %v15346_v8 = vadd.f32 %v20753_v38, %v15313_v24  ;;  %v15350_v38 = vadd.f32 %v20757_v58, %v15319_v11 }
0x1c4d   : > { %v20878_v31 = vadd.f32 %v20751_v37, %v15346_v8  ;;  %v20888_v17 = vadd.f32 %v20755_v5, %v15350_v38 }
0x1c4f   : > { %v16923_v59 = vmul.f32 %v20878_v31, %v20878_v31  ;;  %v16924_v58 = vmul.f32 %v20888_v17, %v20888_v17 }
0x1c51   : > { %v16945_v39 = vadd.f32 %v16925_v42, %v16923_v59  ;;  %v16929_v0 = vsub.f32 %v20831_v60, %v16923_v59  ;;  %v16946_v55 = vadd.f32 %v16926_v63, %v16924_v58  ;;  %v16930_v29 = vsub.f32 %v20833_v52, %v16924_v58 }
0x1c53   : > { %v16947_v62 = vadd.f32 0.0001, %v16945_v39  ;;  %v16948_v4 = vadd.f32 0.0001, %v16946_v55 }
0x1c98   : > { %v16440_v33 = vpop.f32.mrf.mxu0 }
0x1c9a   : > { %v16470_v34 = vpop.f32.mrf.mxu1 }
0x1c9c   : > { %v16410_v25 = vpop.f32.mrf.mxu3 }
0x1ca0   : > { %v16445_v44 = vpop.f32.mrf.mxu0 }
0x1ca2   : > { %v16476_v49 = vpop.f32.mrf.mxu1 }
0x1ca4   : > { %v16371_v41 = vpop.f32.mrf.mxu2  ;;  %v16414_v43 = vpop.f32.mrf.mxu3 }
0x1ca5   : > { %v16411_v21 = vadd.f32 %v16410_v25, %v16371_v41 }
0x1ca7   : > { %v16441_v30 = vadd.f32 %v16440_v33, %v16411_v21 }
0x1ca8   : > { %v16561_v27 = vpop.f32.mrf.mxu0 }
0x1ca9   : > { %v16471_v46 = vadd.f32 %v16470_v34, %v16441_v30 }
0x1caa   : > { %v16600_v47 = vpop.f32.mrf.mxu1 }
0x1cab   : > { %v16601_v32 = vadd.f32 %v16600_v47, %v16561_v27 }
0x1cac   : > { %v16379_v48 = vpop.f32.mrf.mxu2  ;;  %v16530_v56 = vpop.f32.mrf.mxu3 }
0x1cad   : > { %v16415_v51 = vadd.f32 %v16414_v43, %v16379_v48 }
0x1caf   : > { %v16446_v18 = vadd.f32 %v16445_v44, %v16415_v51 }
0x1cb0   : > { %v16569_v61 = vpop.f32.mrf.mxu0 }
0x1cb1   : > { %v16477_v15 = vadd.f32 %v16476_v49, %v16446_v18 }
0x1cb2   : > { %v16604_v3 = vpop.f32.mrf.mxu1 }
0x1cb3   : > { %v16605_v33 = vadd.f32 %v16604_v3, %v16569_v61 }
0x1cb4   : > { %v16503_v28 = vpop.f32.mrf.mxu2  ;;  %v16534_v37 = vpop.f32.mrf.mxu3 }
0x1cb5   : > { %v16504_v53 = vadd.f32 %v16503_v28, %v16471_v46 }
0x1cb7   : > { %v16531_v36 = vadd.f32 %v16530_v56, %v16504_v53 }
0x1cb8   : > { %v16693_v10 = vpop.f32.mrf.mxu0 }
0x1cb9   : > { %v16931_v19 = vsub.f32 %v16531_v36, %v16925_v42 }
0x1cba   : > { %v16720_v26 = vpop.f32.mrf.mxu1 }
0x1cbb   : > { %v16949_v57 = vadd.f32 %v16931_v19, %v16929_v0 }
0x1cbc   : > { %v16507_v14 = vpop.f32.mrf.mxu2  ;;  %v16660_v23 = vpop.f32.mrf.mxu3 }
0x1cbd   : > { %v16951_v1 = vadd.f32 0.0009, %v16949_v57  ;;  %v16508_v40 = vadd.f32 %v16507_v14, %v16477_v15 }
0x1cbf   : > { %v20894_v13 = vmul.f32 %v16951_v1, %v16947_v62  ;;  %v16535_v60 = vadd.f32 %v16534_v37, %v16508_v40  ;;  %v16927_v40 = vmul.f32 %v20793_v9, %v20878_v31  ;;  %v16928_v9 = vmul.f32 %v20795_v7, %v20888_v17 }
0x1cc0   : > { %v16697_v30 = vpop.f32.mrf.mxu0 }
0x1cc1   : > { %v16932_v5 = vsub.f32 %v16535_v60, %v16926_v63  ;;  %17446 = vrcp.f32 %v20894_v13 }
0x1cc2   : > { %v16724_v46 = vpop.f32.mrf.mxu1 }
0x1cc3   : > { %v16950_v2 = vadd.f32 %v16932_v5, %v16930_v29 }
0x1cc4   : > { %v16630_v54 = vpop.f32.mrf.mxu2  ;;  %v16666_v16 = vpop.f32.mrf.mxu3 }
0x1cc5   : > { %v16952_v35 = vadd.f32 0.0009, %v16950_v2  ;;  %v16631_v50 = vadd.f32 %v16630_v54, %v16601_v32 }
0x1cc7   : > { %v20897_v22 = vmul.f32 %v16952_v35, %v16948_v4  ;;  %v16661_v6 = vadd.f32 %v16660_v23, %v16631_v50  ;;  %v17447_v11 = vpop.eup %17446  ;;  %v16935_v23 = vmul.f32 2.0, %v16927_v40 }
0x1cc8   : > { %v16957_v53 = vmul.f32 %v17447_v11, %v20894_v13 }
0x1cc9   : > { %v16694_v25 = vadd.f32 %v16693_v10, %v16661_v6  ;;  %17448 = vrcp.f32 %v20897_v22 }
0x1cca   : > { %v16959_v39 = vsub.f32 2.0, %v16957_v53 }
0x1ccb   : > { %v16721_v34 = vadd.f32 %v16720_v26, %v16694_v25  ;;  %v16937_v26 = vadd.f32 0.0001, %v16935_v23 }
0x1ccc   : > { %v16635_v41 = vpop.f32.mrf.mxu2  ;;  %v16961_v61 = vmul.f32 %v17447_v11, %v16959_v39 }
0x1ccd   : > { %v16728_v52 = vsel %vm830_vm0, %v16721_v34, 0  ;;  %v16636_v21 = vadd.f32 %v16635_v41, %v16605_v33 }
0x1cce   : > { %v16751_v43 = vand.u32 4294901760, %v16728_v52  ;;  %v16963_v60 = vmul.f32 %v16961_v61, %v20894_v13 }
0x1ccf   : > { %v16667_v44 = vadd.f32 %v16666_v16, %v16636_v21  ;;  %v17449_v19 = vpop.eup %17448  ;;  %v16936_v16 = vmul.f32 2.0, %v16928_v9 }
0x1cd0   : > { %v16752_v45 = vsub.f32 %v16728_v52, %v16751_v43  ;;  %16795 = vmatmul.f32.vlgmr.msra.gmra.mxu3 %v16751_v43  ;;  %v16958_v57 = vmul.f32 %v17449_v19, %v20897_v22  ;;  %v16965_v4 = vsub.f32 2.0, %v16963_v60 }
0x1cd1   : > { %v16698_v49 = vadd.f32 %v16697_v30, %v16667_v44 }
0x1cd2   : > { %v16753_v48 = vand.u32 4294901760, %v16752_v45  ;;  %16825 = vmatmul.f32.vlgmr.msrb.gmra.mxu0 %v16752_v45  ;;  %v16960_v55 = vsub.f32 2.0, %v16958_v57  ;;  %v16967_v34 = vmul.f32 %v16965_v4, %v16961_v61 }
0x1cd3   : > { %v16725_v20 = vadd.f32 %v16724_v46, %v16698_v49 }
0x1cd4   : > { %v16754_v24 = vsub.f32 %v16752_v45, %v16753_v48  ;;  %16855 = vmatmul.f32.vlgmr.msrb.gmra.mxu1 %v16753_v48  ;;  %v16962_v54 = vmul.f32 %v17449_v19, %v16960_v55 }
0x1cd5   : > { %v16731_v51 = vsel %vm830_vm0, %v16725_v20, 0 }
0x1cd6   : > { %v16755_v8 = vand.u32 4294901760, %v16754_v24  ;;  %v16759_v18 = vand.u32 4294901760, %v16731_v51  ;;  %v16964_v25 = vmul.f32 %v16962_v54, %v20897_v22 }
0x1cd8   : > { %v16760_v56 = vsub.f32 %v16731_v51, %v16759_v18  ;;  %16756 = vmatmul.f32.vlgmr.msra.gmra.mxu2 %v16755_v8  ;;  %16799 = vmatmul.f32.gmra.mxu3 %v16759_v18  ;;  %v16966_v17 = vsub.f32 2.0, %v16964_v25 }
0x1cda   : > { %16830 = vmatmul.f32.gmra.mxu0 %v16760_v56  ;;  %v16761_v27 = vand.u32 4294901760, %v16760_v56  ;;  %v16968_v44 = vmul.f32 %v16966_v17, %v16962_v54 }
0x1cdc   : > { %16861 = vmatmul.f32.gmra.mxu1 %v16761_v27  ;;  %v16762_v12 = vsub.f32 %v16760_v56, %v16761_v27 }
0x1cde   : > { %v16763_v15 = vand.u32 4294901760, %v16762_v12 }
0x1ce0   : > { %16764 = vmatmul.f32.gmra.mxu2 %v16763_v15  ;;  %16915 = vmatmul.f32.vlgmr.msrb.gmra.mxu3 %v16751_v43 }
0x1ce8   : > { %16888 = vmatmul.f32.vlgmr.msrb.gmra.mxu2 %v16751_v43  ;;  %16919 = vmatmul.f32.gmra.mxu3 %v16759_v18  ;;  %v16938_v43 = vadd.f32 0.0001, %v16936_v16 }
0x1cf0   : > { %16892 = vmatmul.f32.gmra.mxu2 %v16759_v18 }
0x1d4f   : > { %v16826_v38 = vpop.f32.mrf.mxu0 }
0x1d51   : > { %v16856_v37 = vpop.f32.mrf.mxu1 }
0x1d53   : > { %v16796_v28 = vpop.f32.mrf.mxu3 }
0x1d57   : > { %v16831_v58 = vpop.f32.mrf.mxu0 }
0x1d59   : > { %v16862_v2 = vpop.f32.mrf.mxu1 }
0x1d5b   : > { %v16757_v47 = vpop.f32.mrf.mxu2  ;;  %v16800_v42 = vpop.f32.mrf.mxu3 }
0x1d5c   : > { %v16797_v59 = vadd.f32 %v16796_v28, %v16757_v47 }
0x1d5e   : > { %v16827_v0 = vadd.f32 %v16826_v38, %v16797_v59 }
0x1d60   : > { %v16857_v62 = vadd.f32 %v16856_v37, %v16827_v0 }
0x1d63   : > { %v16765_v36 = vpop.f32.mrf.mxu2  ;;  %v16916_v63 = vpop.f32.mrf.mxu3 }
0x1d64   : > { %v16801_v14 = vadd.f32 %v16800_v42, %v16765_v36 }
0x1d66   : > { %v16832_v29 = vadd.f32 %v16831_v58, %v16801_v14 }
0x1d68   : > { %v16863_v35 = vadd.f32 %v16862_v2, %v16832_v29 }
0x1d6b   : > { %v16889_v1 = vpop.f32.mrf.mxu2  ;;  %v16920_v13 = vpop.f32.mrf.mxu3 }
0x1d6c   : > { %v16890_v3 = vadd.f32 %v16889_v1, %v16857_v62 }
0x1d6e   : > { %v16917_v5 = vadd.f32 %v16916_v63, %v16890_v3 }
0x1d70   : > { %v16933_v32 = vsub.f32 %v16917_v5, %v16927_v40 }
0x1d72   : > { %v16939_v10 = vmul.f32 2.0, %v16933_v32 }
0x1d73   : > { %v16893_v50 = vpop.f32.mrf.mxu2 }
0x1d74   : > { %v16941_v31 = vadd.f32 0.0009, %v16939_v10  ;;  %v16894_v6 = vadd.f32 %v16893_v50, %v16863_v35 }
0x1d76   : > { %v16943_v33 = vmul.f32 %v16941_v31, %v16937_v26  ;;  %v16921_v41 = vadd.f32 %v16920_v13, %v16894_v6 }
0x1d78   : > { %v16969_v52 = vmul.f32 %v16967_v34, %v16943_v33  ;;  %v16934_v21 = vsub.f32 %v16921_v41, %v16928_v9 }
0x1d7a   : > { %17288 = vst.msk [vmem:[%s18598_s26 + $0x70] sm:$0xff] %vm830_vm0, %v16969_v52  ;;  %v16940_v7 = vmul.f32 2.0, %v16934_v21 }
0x1d7c   : > { %v16942_v22 = vadd.f32 0.0009, %v16940_v7 }
0x1d7e   : > { %v16944_v30 = vmul.f32 %v16942_v22, %v16938_v43 }
0x1d80   : > { %v16970_v45 = vmul.f32 %v16968_v44, %v16944_v30 }
0x1d82   : > { %17289 = vst.msk [vmem:[%s18598_s26 + $0x78] sm:$0xff] %vm830_vm0, %v16970_v45 }
0x1d83   : > { %17775 = shalt.err (!%p17772_p12)
}
0x1d84   : > { %s17844_s2 = smov 128   ;;  %s17845_s22 = smov 8  }
0x1d85   : > { %17326 = dma.vmem_to_hbm [thread:$0]  (%p17974_p3), %s16991_s23, 2048, %s16993_s3, %s16975_s30, %s17844_s2, %s17844_s2, %s17845_s22  }
0x1d86 PF: > { %s21635_s11 = sld [smem:[#allocation21_spill]] }
0x1d87   : > { %s21636_s25 = sld [smem:[#allocation18_spill]] }
0x1d8c   : > { %p17363_p13 = scmp.ge.s32.totalorder %s21635_s11, 2 }
0x1d8d   : > { %s17007_s15 = sand.u32 1, %s21636_s25  }
0x1d8e   : > { %p17355_p0 = pnand %p17363_p13, %p17936_p6  ;;  %s17008_s26 = scalar_lea.sflag [#allocation4], %s17007_s15 }
0x1d90   : > { %p17356_p5 = pneg %p17355_p0 }
0x1d92   : > { %17813 = dma.done.wait (%p17356_p5), %s17008_s26, 2048  }
0x1d93   : > { %17815 = vsyncadd (%p17356_p5), %s17008_s26, 4294965248  ;;  %s23_s10 = sadd.s32 1, %s21635_s11   ;;  %s21638_s16 = sld [smem:[#allocation19_spill]] }
0x1d94   : > { %p20_p7 = scmp.ge.s32.totalorder %s23_s10, 6   ;;  %s21639_s29 = sld [smem:[#allocation25_spill]] }
0x1d95   : > { %s21640_s30 = sld [smem:[#allocation20_spill]]  ;;  %s21642_s27 = smov %s17822_s28 }
0x1d96   : > { %s21641_s9 = sld [smem:[#allocation23_spill]]  ;;  %22 = sbr.rel (!%p20_p7) target bundleno = 10 (0xa), region = 180 }
0x1d99   : > { %s21643_s28 = smov %s21638_s16 }
0x1d9b   :  { %17014 = vsyncpa [#allocation3], 1 }
0x1d9c   :  { %17016 = vsyncpa [#allocation3 + $0x1], 1 }
0x1d9d   :  { %17017 = vsyncpa [#allocation6], 1 }
0x1d9e   :  { %17018 = vsyncpa [#allocation4], 1 }
0x1d9f   :  { %17020 = vsyncpa [#allocation4 + $0x1], 1 }

</bundles_post_ra>
